<compile_context>
chip_gen: v7x
topology: tpu7x:2x2x1
jax: 0.10.0
libtpu: 0.0.40
codegen_flags: <defaults>
</compile_context>

<pallas_src>
import functools

import jax
import jax.numpy as jnp
from jax.experimental import pallas as pl
from jax.experimental.pallas import tpu as pltpu


# ----------------------------------------------------------------------------
# Pallas kernel 1: generic KxK conv2d, NCHW in / NCHW-flat lane-dense out
# ----------------------------------------------------------------------------
def _conv2d_kernel(x_ref, w_ref, b_ref, o_ref, *, K, tH, Wo, relu, dot_dtype):
    # x_ref: (1, Cin, Hp, Wp)   w_ref: (Cout, K*K*Cin)   b_ref: (Cout, 1)
    # o_ref: (1, Cout, tH*Wo)   -- rows [r*tH, r*tH+tH) of the output image
    Cin = x_ref.shape[1]
    row0 = pl.multiple_of(pl.program_id(1) * tH, tH)
    # Row window with (K-1) halo, cast once for the MXU.
    xw = x_ref[0, :, pl.ds(row0, tH + K - 1), :].astype(dot_dtype)  # (Cin, tH+K-1, Wp)

    # im2col: single concatenate along the contraction axis, single MXU dot.
    slabs = []
    for kh in range(K):
        for kw in range(K):
            slabs.append(xw[:, kh:kh + tH, kw:kw + Wo].reshape(Cin, tH * Wo))
    patches = jnp.concatenate(slabs, axis=0)                        # (K*K*Cin, tH*Wo)

    acc = jnp.dot(w_ref[...], patches,
                  preferred_element_type=jnp.float32)               # (Cout, tH*Wo) f32
    acc = acc + b_ref[...]                                          # (Cout, 1) broadcast
    if relu:
        acc = jnp.maximum(acc, 0.0)
    o_ref[0] = acc.astype(o_ref.dtype)


def conv2d_nchw(x, w, b, *, padding, relu=False, row_tile=None,
                dot_dtype=jnp.bfloat16):
    """x: (B, Cin, H, W); w: (Cout, Cin, K, K); b: (Cout,) -> (B, Cout, Ho, Wo)."""
    B, Cin, H, W = x.shape
    Cout, _, K, _ = w.shape
    xp = jnp.pad(x, ((0, 0), (0, 0), (padding, padding), (padding, padding)))
    Hp, Wp = H + 2 * padding, W + 2 * padding
    Ho, Wo = Hp - K + 1, Wp - K + 1

    tH = Ho if (row_tile is None or Ho % row_tile != 0) else row_tile
    nR = Ho // tH

    # Weight flattened to match the (kh, kw, cin) contraction ordering; cast so
    # the DMA moves the narrow dtype.
    w_flat = jnp.transpose(w, (0, 2, 3, 1)).reshape(Cout, K * K * Cin).astype(dot_dtype)
    b2 = b.reshape(Cout, 1).astype(jnp.float32)

    out = pl.pallas_call(
        functools.partial(_conv2d_kernel, K=K, tH=tH, Wo=Wo, relu=relu,
                          dot_dtype=dot_dtype),
        out_shape=jax.ShapeDtypeStruct((B, Cout, Ho * Wo), x.dtype),
        grid=(B, nR),
        in_specs=[
            # Full padded image per batch; constant across row tiles so Pallas
            # does not re-DMA it between consecutive r steps.
            # TODO(synk): at production H/W/Cin, switch this to a halo'd row
            # window block (manual DMA) instead of a full-image block.
            pl.BlockSpec((1, Cin, Hp, Wp), lambda bi, r: (bi, 0, 0, 0)),
            pl.BlockSpec((Cout, K * K * Cin), lambda bi, r: (0, 0)),
            pl.BlockSpec((Cout, 1), lambda bi, r: (0, 0)),
        ],
        out_specs=pl.BlockSpec((1, Cout, tH * Wo), lambda bi, r: (bi, 0, r)),
        compiler_params=pltpu.CompilerParams(
            dimension_semantics=("parallel", "parallel"),
            vmem_limit_bytes=64 * 1024 * 1024),
    )(xp, w_flat, b2)
    return out.reshape(B, Cout, Ho, Wo)


# ----------------------------------------------------------------------------
# Pallas kernel 2: SCSA channel-attention gate (all batches+heads in one step)
# ----------------------------------------------------------------------------
def _scsa_attn_kernel(q_ref, k_ref, v_ref, o_ref, *, scaler):
    q = q_ref[...].astype(jnp.float32)          # (G, D, L)   G = B * heads
    k = k_ref[...].astype(jnp.float32)
    v = v_ref[...].astype(jnp.float32)
    s = jnp.einsum('gdl,gel->gde', q, k,
                   preferred_element_type=jnp.float32) * scaler     # (G, D, D)
    s = s - jnp.max(s, axis=-1, keepdims=True)
    p = jnp.exp(s)
    p = p / jnp.sum(p, axis=-1, keepdims=True)
    out = jnp.einsum('gde,gel->gdl', p, v,
                     preferred_element_type=jnp.float32)            # (G, D, L)
    m = jnp.mean(out, axis=-1)                                      # (G, D)
    gate = 1.0 / (1.0 + jnp.exp(-m))
    o_ref[...] = gate.astype(o_ref.dtype)


def scsa_channel_gate(q, k, v, scaler):
    # q, k, v: (G, D, L)  ->  (G, D) sigmoid gate; single grid step (shapes are tiny).
    G, D, L = q.shape
    spec = pl.BlockSpec((G, D, L), lambda i: (0, 0, 0))
    return pl.pallas_call(
        functools.partial(_scsa_attn_kernel, scaler=scaler),
        out_shape=jax.ShapeDtypeStruct((G, D), q.dtype),
        grid=(1,),
        in_specs=[spec, spec, spec],
        out_specs=pl.BlockSpec((G, D), lambda i: (0, 0)),
        compiler_params=pltpu.CompilerParams(
            dimension_semantics=("arbitrary",),
            vmem_limit_bytes=16 * 1024 * 1024),
    )(q, k, v)


# ----------------------------------------------------------------------------
# Plain-JAX glue (mirrors PyTorch NCHW semantics; fused by XLA under jit)
# ----------------------------------------------------------------------------
def group_norm(x, num_groups, weight, bias, eps=1e-5):
    B, C = x.shape[0], x.shape[1]
    orig = x.shape
    xg = x.reshape(B, num_groups, -1)
    mean = xg.mean(axis=-1, keepdims=True)
    var = ((xg - mean) ** 2).mean(axis=-1, keepdims=True)
    xg = (xg - mean) / jnp.sqrt(var + eps)
    x = xg.reshape(orig)
    shp = (1, C) + (1,) * (x.ndim - 2)
    return x * weight.reshape(shp) + bias.reshape(shp)


def dw_conv1d(x, w, b):
    # depthwise Conv1d, same padding. x: (B, C, L); w: (C, k); b: (C,)
    k = w.shape[1]
    pad = k // 2
    L = x.shape[2]
    xp = jnp.pad(x, ((0, 0), (0, 0), (pad, pad)))
    out = jnp.zeros_like(x)
    for j in range(k):
        out = out + w[None, :, j:j + 1] * xp[:, :, j:j + L]
    return out + b[None, :, None]


def dysample_lp(x, p, scale=2, groups=4):
    """DySample(style='lp', dyscope=False).  x: (B, C, H, W) -> (B, C, 2H, 2W)."""
    B, C, H, W = x.shape
    # 1x1 offset conv (Pallas) with `* 0.25 + init_pos` folded into weights/bias.
    off_w = p["offset_w"] * 0.25
    off_b = p["offset_b"] * 0.25 + p["init_pos"].reshape(-1)
    offset = conv2d_nchw(x, off_w, off_b, padding=0, relu=False,
                         row_tile=None, dot_dtype=jnp.float32)      # (B, 2*g*s*s, H, W)
    off = offset.reshape(B, 2, groups * scale * scale, H, W)

    cw = jnp.arange(W, dtype=x.dtype) + 0.5
    ch = jnp.arange(H, dtype=x.dtype) + 0.5
    cx = jnp.broadcast_to(cw[None, :], (H, W))
    cy = jnp.broadcast_to(ch[:, None], (H, W))
    coords = jnp.stack([cx, cy])[None, :, None]          # (1, 2, 1, H, W)
    norm = jnp.array([W, H], dtype=x.dtype).reshape(1, 2, 1, 1, 1)
    coords = 2.0 * (coords + off) / norm - 1.0           # (B, 2, g*s*s, H, W)

    # F.pixel_shuffle(scale) on the flattened (B, 2*g*s*s, H, W) view
    cp = coords.reshape(B, 2, groups, scale, scale, H, W)
    cp = cp.transpose(0, 1, 2, 5, 3, 6, 4).reshape(B, 2, groups, scale * H, scale * W)
    grid = cp.transpose(0, 2, 3, 4, 1)                    # (B, g, sH, sW, 2) = (x, y)

    # TODO(synk): grid_sample's data-dependent bilinear gather stays in JAX glue
    # (could become a PrefetchScalarGridSpec gather kernel if it shows in profiles).
    gx, gy = grid[..., 0], grid[..., 1]
    ix = jnp.clip(((gx + 1.0) * W - 1.0) * 0.5, 0.0, W - 1.0)   # padding_mode='border'
    iy = jnp.clip(((gy + 1.0) * H - 1.0) * 0.5, 0.0, H - 1.0)   # align_corners=False
    x0 = jnp.floor(ix)
    y0 = jnp.floor(iy)
    wx1, wy1 = ix - x0, iy - y0
    wx0, wy0 = 1.0 - wx1, 1.0 - wy1
    x0i = jnp.clip(x0, 0, W - 1).astype(jnp.int32)
    x1i = jnp.clip(x0 + 1, 0, W - 1).astype(jnp.int32)
    y0i = jnp.clip(y0, 0, H - 1).astype(jnp.int32)
    y1i = jnp.clip(y0 + 1, 0, H - 1).astype(jnp.int32)

    xg = x.reshape(B, groups, C // groups, H * W)

    def gather(img, idx):            # img: (Cg, H*W), idx: (sH, sW)
        return img[:, idx]
    gat = jax.vmap(jax.vmap(gather))

    def at(yi, xi):
        return gat(xg, yi * W + xi)  # (B, g, Cg, sH, sW)

    v00, v01 = at(y0i, x0i), at(y0i, x1i)
    v10, v11 = at(y1i, x0i), at(y1i, x1i)
    w00 = (wy0 * wx0)[:, :, None]
    w01 = (wy0 * wx1)[:, :, None]
    w10 = (wy1 * wx0)[:, :, None]
    w11 = (wy1 * wx1)[:, :, None]
    out = v00 * w00 + v01 * w01 + v10 * w10 + v11 * w11
    return out.reshape(B, C, scale * H, scale * W)


def scsa(x, p, dim, head_num=4, window_size=7):
    B, C, H, W = x.shape
    gc = dim // 4
    head_dim = dim // head_num
    scaler = float(head_dim) ** (-0.5)

    x_h = x.mean(axis=3)    # (B, C, H)
    x_w = x.mean(axis=2)    # (B, C, W)

    def sa_branch(xs, nw, nb):
        parts = []
        for i in range(4):
            seg = xs[:, i * gc:(i + 1) * gc]
            parts.append(dw_conv1d(seg, p[f"dwc{i}_w"], p[f"dwc{i}_b"]))
        cat = jnp.concatenate(parts, axis=1)
        return jax.nn.sigmoid(group_norm(cat, 4, nw, nb))

    x_h_attn = sa_branch(x_h, p["norm_h_w"], p["norm_h_b"]).reshape(B, C, H, 1)
    x_w_attn = sa_branch(x_w, p["norm_w_w"], p["norm_w_b"]).reshape(B, C, 1, W)
    x = x * x_h_attn * x_w_attn

    # AvgPool2d(window_size, stride=window_size)  (floor mode)
    ho, wo = H // window_size, W // window_size
    Hc, Wc = ho * window_size, wo * window_size
    y = x[:, :, :Hc, :Wc].reshape(B, C, ho, window_size, wo, window_size).mean(axis=(3, 5))

    y = group_norm(y, 1, p["gn_w"], p["gn_b"])
    q = y * p["q_w"].reshape(1, C, 1, 1)       # depthwise 1x1 conv, no bias
    k = y * p["k_w"].reshape(1, C, 1, 1)
    v = y * p["v_w"].reshape(1, C, 1, 1)
    L = ho * wo
    qh = q.reshape(B * head_num, head_dim, L)
    kh = k.reshape(B * head_num, head_dim, L)
    vh = v.reshape(B * head_num, head_dim, L)
    gate = scsa_channel_gate(qh, kh, vh, scaler)      # (B*heads, head_dim)  Pallas
    gate = gate.reshape(B, C, 1, 1)
    return gate * x


def esbup_forward(inputs1, inputs2, params):
    up = dysample_lp(inputs2, params["dysample"])
    outputs = jnp.concatenate([inputs1, up], axis=1)                    # (B, in_size, H, W)
    x = scsa(outputs, params["scsa"], outputs.shape[1])
    # gate*x + ReLU are cheap elementwise ops fused by XLA with the concat/pad
    # that feeds conv3 (whole forward is jitted).
    x = jnp.maximum(x, 0.0)
    o1 = conv2d_nchw(outputs, params["conv1_w"], params["conv1_b"],
                     padding=1, relu=True, row_tile=8)
    cat = jnp.concatenate([o1, x], axis=1)
    o3 = conv2d_nchw(cat, params["conv3_w"], params["conv3_b"],
                     padding=1, relu=True, row_tile=8)
    o2 = conv2d_nchw(o3, params["conv2_w"], params["conv2_b"],
                     padding=1, relu=True, row_tile=8)
    return o2


# ----------------------------------------------------------------------------
# Deterministic parameter initialization
# ----------------------------------------------------------------------------
def init_params(key, in_size, out_size, depth, groups=4, scale=2):
    keys = jax.random.split(key, 20)
    dim = in_size
    gc = dim // 4

    def nrm(k, shape, std=0.1):
        return std * jax.random.normal(k, shape, dtype=jnp.float32)

    # DySample offset conv: Conv2d(depth, 2*groups*scale^2, 1), normal(std=0.001), bias=0
    off_out = 2 * groups * scale * scale
    h = (jnp.arange(scale, dtype=jnp.float32) - (scale - 1) / 2.0) / scale
    t0 = jnp.broadcast_to(h[None, :], (scale, scale))
    t1 = jnp.broadcast_to(h[:, None], (scale, scale))
    init_pos = jnp.tile(jnp.stack([t0, t1]), (1, groups, 1)).reshape(1, -1, 1, 1)
    dys = dict(
        offset_w=nrm(keys[0], (off_out, depth, 1, 1), 0.001),
        offset_b=jnp.zeros((off_out,), jnp.float32),
        init_pos=init_pos.astype(jnp.float32),
    )

    dw_ks = [3, 5, 7, 9]
    scsa_p = dict(
        norm_h_w=jnp.ones((dim,), jnp.float32), norm_h_b=jnp.zeros((dim,), jnp.float32),
        norm_w_w=jnp.ones((dim,), jnp.float32), norm_w_b=jnp.zeros((dim,), jnp.float32),
        gn_w=jnp.ones((dim,), jnp.float32), gn_b=jnp.zeros((dim,), jnp.float32),
        q_w=nrm(keys[1], (dim,)), k_w=nrm(keys[2], (dim,)), v_w=nrm(keys[3], (dim,)),
    )
    for i, kk in enumerate(dw_ks):
        scsa_p[f"dwc{i}_w"] = nrm(keys[4 + i], (gc, kk))
        scsa_p[f"dwc{i}_b"] = nrm(keys[8 + i], (gc,), 0.05)

    return dict(
        dysample=dys,
        scsa=scsa_p,
        conv1_w=nrm(keys[12], (out_size, in_size, 3, 3)),
        conv1_b=nrm(keys[15], (out_size,), 0.05),
        conv3_w=nrm(keys[13], (out_size, in_size + out_size, 3, 3)),
        conv3_b=nrm(keys[16], (out_size,), 0.05),
        conv2_w=nrm(keys[14], (out_size, out_size, 3, 3)),
        conv2_b=nrm(keys[17], (out_size,), 0.05),
    )


if __name__ == "__main__":
    key = jax.random.PRNGKey(0)
    B, in_size, out_size, depth = 2, 16, 8, 8
    H = W = 16
    k1, k2, k3 = jax.random.split(key, 3)
    # inputs1 channels + depth must equal in_size (cat feeds SCSA(in_size) / conv1)
    inputs1 = jax.random.normal(k1, (B, in_size - depth, H, W), jnp.float32)
    inputs2 = jax.random.normal(k2, (B, depth, H // 2, W // 2), jnp.float32)
    params = init_params(k3, in_size, out_size, depth)

    fwd = jax.jit(esbup_forward)
    out = jax.block_until_ready(fwd(inputs1, inputs2, params))
    assert out.shape == (B, out_size, H, W), out.shape
    assert bool(jnp.all(jnp.isfinite(out)))
    print("KERNEL_OK")
</pallas_src>

<mosaic_0001>
module attributes {stable_mosaic.version = 11 : i64} {
  func.func @_conv2d_kernel(%arg0: i32, %arg1: i32, %arg2: memref<1x8x8x8xf32, #tpu.memory_space<vmem>>, %arg3: memref<32x8xf32, #tpu.memory_space<vmem>>, %arg4: memref<32x1xf32, #tpu.memory_space<vmem>>, %arg5: memref<1x32x64xf32, #tpu.memory_space<vmem>>) attributes {dimension_semantics = [#tpu.dimension_semantics<parallel>, #tpu.dimension_semantics<parallel>], iteration_bounds = array<i64: 2, 1>, scalar_prefetch = 0 : i64, scratch_operands = 0 : i64, tpu.core_type = #tpu.core_type<tc>, window_params = [{transform_indices = @transform_0, window_bounds = array<i64: 1, 8, 8, 8>}, {pipeline_mode = #tpu.pipeline_mode<synchronous>, transform_indices = @transform_1, window_bounds = array<i64: 32, 8>}, {pipeline_mode = #tpu.pipeline_mode<synchronous>, transform_indices = @transform_2, window_bounds = array<i64: 32, 1>}, {transform_indices = @transform_3, window_bounds = array<i64: 1, 32, 64>}]} {
    %c8_i32 = arith.constant 8 : i32
    %0 = arith.muli %arg1, %c8_i32 : i32
    %1 = tpu.assume_multiple %0, 8 : i32
    %c0 = arith.constant 0 : index
    %c0_0 = arith.constant 0 : index
    %2 = arith.index_cast %1 : i32 to index
    %c0_1 = arith.constant 0 : index
    %3 = vector.load %arg2[%c0, %c0_0, %2, %c0_1] : memref<1x8x8x8xf32, #tpu.memory_space<vmem>>, vector<1x8x8x8xf32>
    %4 = vector.shape_cast %3 : vector<1x8x8x8xf32> to vector<8x8x8xf32>
    %5 = vector.shape_cast %4 : vector<8x8x8xf32> to vector<8x64xf32>
    %c0_2 = arith.constant 0 : index
    %c0_3 = arith.constant 0 : index
    %6 = vector.load %arg3[%c0_2, %c0_3] : memref<32x8xf32, #tpu.memory_space<vmem>>, vector<32x8xf32>
    %cst = arith.constant dense<0.000000e+00> : vector<32x64xf32>
    %7 = tpu.matmul %6, %5, %cst {dimension_numbers = #tpu.dot_dimension_numbers<[1], [0], [0], [1], [0, 0, 1, 1], [], []>} : vector<32x8xf32>, vector<8x64xf32>, vector<32x64xf32> -> vector<32x64xf32>
    %c0_4 = arith.constant 0 : index
    %c0_5 = arith.constant 0 : index
    %8 = vector.load %arg4[%c0_4, %c0_5] : memref<32x1xf32, #tpu.memory_space<vmem>>, vector<32x1xf32>
    %9 = vector.broadcast %8 : vector<32x1xf32> to vector<32x64xf32>
    %10 = arith.addf %7, %9 : vector<32x64xf32>
    %c0_6 = arith.constant 0 : index
    %c0_7 = arith.constant 0 : index
    %c0_8 = arith.constant 0 : index
    %11 = vector.load %arg5[%c0_6, %c0_7, %c0_8] : memref<1x32x64xf32, #tpu.memory_space<vmem>>, vector<1x32x64xf32>
    %12 = vector.shape_cast %11 : vector<1x32x64xf32> to vector<32x64xf32>
    %13 = vector.shape_cast %10 : vector<32x64xf32> to vector<1x32x64xf32>
    tpu.vector_store %arg5[%c0_6, %c0_7, %c0_8], %13 {strides = array<i32>} : memref<1x32x64xf32, #tpu.memory_space<vmem>>, vector<1x32x64xf32>,
    return
  }
  func.func @transform_0(%arg0: i32, %arg1: i32) -> (i32, i32, i32, i32) {
    %c0_i32 = arith.constant 0 : i32
    %c0_i32_0 = arith.constant 0 : i32
    %c0_i32_1 = arith.constant 0 : i32
    %c0_i32_2 = arith.constant 0 : i32
    return %arg0, %c0_i32, %c0_i32_0, %c0_i32_1 : i32, i32, i32, i32
  }
  func.func @transform_1(%arg0: i32, %arg1: i32) -> (i32, i32) {
    %c0_i32 = arith.constant 0 : i32
    %c0_i32_0 = arith.constant 0 : i32
    %c0_i32_1 = arith.constant 0 : i32
    return %c0_i32, %c0_i32_0 : i32, i32
  }
  func.func @transform_2(%arg0: i32, %arg1: i32) -> (i32, i32) {
    %c0_i32 = arith.constant 0 : i32
    %c0_i32_0 = arith.constant 0 : i32
    %c0_i32_1 = arith.constant 0 : i32
    return %c0_i32, %c0_i32_0 : i32, i32
  }
  func.func @transform_3(%arg0: i32, %arg1: i32) -> (i32, i32, i32) {
    %c0_i32 = arith.constant 0 : i32
    %c0_i32_0 = arith.constant 0 : i32
    return %arg0, %c0_i32, %arg1 : i32, i32, i32
  }
}

module attributes {stable_mosaic.version = 11 : i64} {
  func.func @_scsa_attn_kernel(%arg0: i32, %arg1: memref<8x4x4xf32, #tpu.memory_space<vmem>>, %arg2: memref<8x4x4xf32, #tpu.memory_space<vmem>>, %arg3: memref<8x4x4xf32, #tpu.memory_space<vmem>>, %arg4: memref<8x4xf32, #tpu.memory_space<vmem>>) attributes {dimension_semantics = [#tpu.dimension_semantics<arbitrary>], iteration_bounds = array<i64: 1>, scalar_prefetch = 0 : i64, scratch_operands = 0 : i64, tpu.core_type = #tpu.core_type<tc>, window_params = [{pipeline_mode = #tpu.pipeline_mode<synchronous>, transform_indices = @transform_0, window_bounds = array<i64: 8, 4, 4>}, {pipeline_mode = #tpu.pipeline_mode<synchronous>, transform_indices = @transform_1, window_bounds = array<i64: 8, 4, 4>}, {pipeline_mode = #tpu.pipeline_mode<synchronous>, transform_indices = @transform_2, window_bounds = array<i64: 8, 4, 4>}, {pipeline_mode = #tpu.pipeline_mode<synchronous>, transform_indices = @transform_3, window_bounds = array<i64: 8, 4>}]} {
    %c0 = arith.constant 0 : index
    %c0_0 = arith.constant 0 : index
    %c0_1 = arith.constant 0 : index
    %0 = vector.load %arg1[%c0, %c0_0, %c0_1] : memref<8x4x4xf32, #tpu.memory_space<vmem>>, vector<8x4x4xf32>
    %c0_2 = arith.constant 0 : index
    %c0_3 = arith.constant 0 : index
    %c0_4 = arith.constant 0 : index
    %1 = vector.load %arg2[%c0_2, %c0_3, %c0_4] : memref<8x4x4xf32, #tpu.memory_space<vmem>>, vector<8x4x4xf32>
    %c0_5 = arith.constant 0 : index
    %c0_6 = arith.constant 0 : index
    %c0_7 = arith.constant 0 : index
    %2 = vector.load %arg3[%c0_5, %c0_6, %c0_7] : memref<8x4x4xf32, #tpu.memory_space<vmem>>, vector<8x4x4xf32>
    "tpu.trace_start"() <{level = 10 : i32, message = "gdl,gel->gde"}> : () -> ()
    %cst = arith.constant dense<0.000000e+00> : vector<8x4x4xf32>
    %3 = tpu.matmul %0, %1, %cst {dimension_numbers = #tpu.dot_dimension_numbers<[2], [2], [1], [1], [0, 0, 0, 1, 1, 1], [0], [0]>} : vector<8x4x4xf32>, vector<8x4x4xf32>, vector<8x4x4xf32> -> vector<8x4x4xf32>
    "tpu.trace_stop"() : () -> ()
    %cst_8 = arith.constant 5.000000e-01 : f32
    %4 = vector.broadcast %cst_8 : f32 to vector<8x4x4xf32>
    %5 = arith.mulf %3, %4 : vector<8x4x4xf32>
    %cst_9 = arith.constant dense<0xFF800000> : vector<8x4xf32>
    %6 = vector.multi_reduction <maximumf>, %5, %cst_9 [2] : vector<8x4x4xf32> to vector<8x4xf32>
    %7 = vector.shape_cast %6 : vector<8x4xf32> to vector<8x4x1xf32>
    %8 = vector.broadcast %7 : vector<8x4x1xf32> to vector<8x4x4xf32>
    %9 = arith.subf %5, %8 : vector<8x4x4xf32>
    %10 = math.exp %9 : vector<8x4x4xf32>
    %cst_10 = arith.constant dense<0.000000e+00> : vector<8x4xf32>
    %11 = vector.multi_reduction <add>, %10, %cst_10 [2] : vector<8x4x4xf32> to vector<8x4xf32>
    %12 = vector.shape_cast %11 : vector<8x4xf32> to vector<8x4x1xf32>
    %13 = vector.broadcast %12 : vector<8x4x1xf32> to vector<8x4x4xf32>
    %14 = arith.divf %10, %13 : vector<8x4x4xf32>
    "tpu.trace_start"() <{level = 10 : i32, message = "gde,gel->gdl"}> : () -> ()
    %cst_11 = arith.constant dense<0.000000e+00> : vector<8x4x4xf32>
    %15 = tpu.matmul %14, %2, %cst_11 {dimension_numbers = #tpu.dot_dimension_numbers<[2], [1], [1], [2], [0, 0, 0, 1, 1, 2], [0], [0]>} : vector<8x4x4xf32>, vector<8x4x4xf32>, vector<8x4x4xf32> -> vector<8x4x4xf32>
    "tpu.trace_stop"() : () -> ()
    %cst_12 = arith.constant dense<0.000000e+00> : vector<8x4xf32>
    %16 = vector.multi_reduction <add>, %15, %cst_12 [2] : vector<8x4x4xf32> to vector<8x4xf32>
    %cst_13 = arith.constant 4.000000e+00 : f32
    %17 = vector.broadcast %cst_13 : f32 to vector<8x4xf32>
    %18 = arith.divf %16, %17 : vector<8x4xf32>
    %cst_14 = arith.constant 0.000000e+00 : f32
    %19 = vector.broadcast %cst_14 : f32 to vector<8x4xf32>
    %20 = arith.subf %19, %18 : vector<8x4xf32>
    %21 = math.exp %20 : vector<8x4xf32>
    %cst_15 = arith.constant 1.000000e+00 : f32
    %22 = vector.broadcast %cst_15 : f32 to vector<8x4xf32>
    %23 = arith.addf %22, %21 : vector<8x4xf32>
    %cst_16 = arith.constant 1.000000e+00 : f32
    %24 = vector.broadcast %cst_16 : f32 to vector<8x4xf32>
    %25 = arith.divf %24, %23 : vector<8x4xf32>
    %c0_17 = arith.constant 0 : index
    %c0_18 = arith.constant 0 : index
    %26 = vector.load %arg4[%c0_17, %c0_18] : memref<8x4xf32, #tpu.memory_space<vmem>>, vector<8x4xf32>
    tpu.vector_store %arg4[%c0_17, %c0_18], %25 {strides = array<i32>} : memref<8x4xf32, #tpu.memory_space<vmem>>, vector<8x4xf32>,
    return
  }
  func.func @transform_0(%arg0: i32) -> (i32, i32, i32) {
    %c0_i32 = arith.constant 0 : i32
    %c0_i32_0 = arith.constant 0 : i32
    %c0_i32_1 = arith.constant 0 : i32
    %c0_i32_2 = arith.constant 0 : i32
    return %c0_i32, %c0_i32_0, %c0_i32_1 : i32, i32, i32
  }
  func.func @transform_1(%arg0: i32) -> (i32, i32, i32) {
    %c0_i32 = arith.constant 0 : i32
    %c0_i32_0 = arith.constant 0 : i32
    %c0_i32_1 = arith.constant 0 : i32
    %c0_i32_2 = arith.constant 0 : i32
    return %c0_i32, %c0_i32_0, %c0_i32_1 : i32, i32, i32
  }
  func.func @transform_2(%arg0: i32) -> (i32, i32, i32) {
    %c0_i32 = arith.constant 0 : i32
    %c0_i32_0 = arith.constant 0 : i32
    %c0_i32_1 = arith.constant 0 : i32
    %c0_i32_2 = arith.constant 0 : i32
    return %c0_i32, %c0_i32_0, %c0_i32_1 : i32, i32, i32
  }
  func.func @transform_3(%arg0: i32) -> (i32, i32) {
    %c0_i32 = arith.constant 0 : i32
    %c0_i32_0 = arith.constant 0 : i32
    %c0_i32_1 = arith.constant 0 : i32
    return %c0_i32, %c0_i32_0 : i32, i32
  }
}

module attributes {stable_mosaic.version = 11 : i64} {
  func.func @_conv2d_kernel(%arg0: i32, %arg1: i32, %arg2: memref<1x16x18x18xf32, #tpu.memory_space<vmem>>, %arg3: memref<8x144xbf16, #tpu.memory_space<vmem>>, %arg4: memref<8x1xf32, #tpu.memory_space<vmem>>, %arg5: memref<1x8x128xf32, #tpu.memory_space<vmem>>) attributes {dimension_semantics = [#tpu.dimension_semantics<parallel>, #tpu.dimension_semantics<parallel>], iteration_bounds = array<i64: 2, 2>, scalar_prefetch = 0 : i64, scratch_operands = 0 : i64, tpu.core_type = #tpu.core_type<tc>, window_params = [{transform_indices = @transform_0, window_bounds = array<i64: 1, 16, 18, 18>}, {pipeline_mode = #tpu.pipeline_mode<synchronous>, transform_indices = @transform_1, window_bounds = array<i64: 8, 144>}, {pipeline_mode = #tpu.pipeline_mode<synchronous>, transform_indices = @transform_2, window_bounds = array<i64: 8, 1>}, {transform_indices = @transform_3, window_bounds = array<i64: 1, 8, 128>}]} {
    %c8_i32 = arith.constant 8 : i32
    %0 = arith.muli %arg1, %c8_i32 : i32
    %1 = tpu.assume_multiple %0, 8 : i32
    %c0 = arith.constant 0 : index
    %c0_0 = arith.constant 0 : index
    %2 = arith.index_cast %1 : i32 to index
    %c0_1 = arith.constant 0 : index
    %3 = vector.load %arg2[%c0, %c0_0, %2, %c0_1] : memref<1x16x18x18xf32, #tpu.memory_space<vmem>>, vector<1x16x10x18xf32>
    %4 = vector.shape_cast %3 : vector<1x16x10x18xf32> to vector<16x10x18xf32>
    %5 = arith.truncf %4 : vector<16x10x18xf32> to vector<16x10x18xbf16>
    %6 = vector.extract_strided_slice %5 {offsets = [0, 0, 0], sizes = [16, 8, 16], strides = [1, 1, 1]} : vector<16x10x18xbf16> to vector<16x8x16xbf16>
    %7 = vector.shape_cast %6 : vector<16x8x16xbf16> to vector<16x128xbf16>
    %8 = vector.extract_strided_slice %5 {offsets = [0, 0, 1], sizes = [16, 8, 16], strides = [1, 1, 1]} : vector<16x10x18xbf16> to vector<16x8x16xbf16>
    %9 = vector.shape_cast %8 : vector<16x8x16xbf16> to vector<16x128xbf16>
    %10 = vector.extract_strided_slice %5 {offsets = [0, 0, 2], sizes = [16, 8, 16], strides = [1, 1, 1]} : vector<16x10x18xbf16> to vector<16x8x16xbf16>
    %11 = vector.shape_cast %10 : vector<16x8x16xbf16> to vector<16x128xbf16>
    %12 = vector.extract_strided_slice %5 {offsets = [0, 1, 0], sizes = [16, 8, 16], strides = [1, 1, 1]} : vector<16x10x18xbf16> to vector<16x8x16xbf16>
    %13 = vector.shape_cast %12 : vector<16x8x16xbf16> to vector<16x128xbf16>
    %14 = vector.extract_strided_slice %5 {offsets = [0, 1, 1], sizes = [16, 8, 16], strides = [1, 1, 1]} : vector<16x10x18xbf16> to vector<16x8x16xbf16>
    %15 = vector.shape_cast %14 : vector<16x8x16xbf16> to vector<16x128xbf16>
    %16 = vector.extract_strided_slice %5 {offsets = [0, 1, 2], sizes = [16, 8, 16], strides = [1, 1, 1]} : vector<16x10x18xbf16> to vector<16x8x16xbf16>
    %17 = vector.shape_cast %16 : vector<16x8x16xbf16> to vector<16x128xbf16>
    %18 = vector.extract_strided_slice %5 {offsets = [0, 2, 0], sizes = [16, 8, 16], strides = [1, 1, 1]} : vector<16x10x18xbf16> to vector<16x8x16xbf16>
    %19 = vector.shape_cast %18 : vector<16x8x16xbf16> to vector<16x128xbf16>
    %20 = vector.extract_strided_slice %5 {offsets = [0, 2, 1], sizes = [16, 8, 16], strides = [1, 1, 1]} : vector<16x10x18xbf16> to vector<16x8x16xbf16>
    %21 = vector.shape_cast %20 : vector<16x8x16xbf16> to vector<16x128xbf16>
    %22 = vector.extract_strided_slice %5 {offsets = [0, 2, 2], sizes = [16, 8, 16], strides = [1, 1, 1]} : vector<16x10x18xbf16> to vector<16x8x16xbf16>
    %23 = vector.shape_cast %22 : vector<16x8x16xbf16> to vector<16x128xbf16>
    %24 = tpu.concatenate %7, %9, %11, %13, %15, %17, %19, %21, %23 in 0 : vector<16x128xbf16>, vector<16x128xbf16>, vector<16x128xbf16>, vector<16x128xbf16>, vector<16x128xbf16>, vector<16x128xbf16>, vector<16x128xbf16>, vector<16x128xbf16>, vector<16x128xbf16> -> vector<144x128xbf16>
    %c0_2 = arith.constant 0 : index
    %c0_3 = arith.constant 0 : index
    %25 = vector.load %arg3[%c0_2, %c0_3] : memref<8x144xbf16, #tpu.memory_space<vmem>>, vector<8x144xbf16>
    %cst = arith.constant dense<0.000000e+00> : vector<8x128xf32>
    %26 = tpu.matmul %25, %24, %cst {dimension_numbers = #tpu.dot_dimension_numbers<[1], [0], [0], [1], [0, 0, 1, 1], [], []>} : vector<8x144xbf16>, vector<144x128xbf16>, vector<8x128xf32> -> vector<8x128xf32>
    %c0_4 = arith.constant 0 : index
    %c0_5 = arith.constant 0 : index
    %27 = vector.load %arg4[%c0_4, %c0_5] : memref<8x1xf32, #tpu.memory_space<vmem>>, vector<8x1xf32>
    %28 = vector.broadcast %27 : vector<8x1xf32> to vector<8x128xf32>
    %29 = arith.addf %26, %28 : vector<8x128xf32>
    %cst_6 = arith.constant 0.000000e+00 : f32
    %30 = vector.broadcast %cst_6 : f32 to vector<8x128xf32>
    %31 = arith.maximumf %29, %30 : vector<8x128xf32>
    %c0_7 = arith.constant 0 : index
    %c0_8 = arith.constant 0 : index
    %c0_9 = arith.constant 0 : index
    %32 = vector.load %arg5[%c0_7, %c0_8, %c0_9] : memref<1x8x128xf32, #tpu.memory_space<vmem>>, vector<1x8x128xf32>
    %33 = vector.shape_cast %32 : vector<1x8x128xf32> to vector<8x128xf32>
    %34 = vector.shape_cast %31 : vector<8x128xf32> to vector<1x8x128xf32>
    tpu.vector_store %arg5[%c0_7, %c0_8, %c0_9], %34 {strides = array<i32>} : memref<1x8x128xf32, #tpu.memory_space<vmem>>, vector<1x8x128xf32>,
    return
  }
  func.func @transform_0(%arg0: i32, %arg1: i32) -> (i32, i32, i32, i32) {
    %c0_i32 = arith.constant 0 : i32
    %c0_i32_0 = arith.constant 0 : i32
    %c0_i32_1 = arith.constant 0 : i32
    %c0_i32_2 = arith.constant 0 : i32
    return %arg0, %c0_i32, %c0_i32_0, %c0_i32_1 : i32, i32, i32, i32
  }
  func.func @transform_1(%arg0: i32, %arg1: i32) -> (i32, i32) {
    %c0_i32 = arith.constant 0 : i32
    %c0_i32_0 = arith.constant 0 : i32
    %c0_i32_1 = arith.constant 0 : i32
    return %c0_i32, %c0_i32_0 : i32, i32
  }
  func.func @transform_2(%arg0: i32, %arg1: i32) -> (i32, i32) {
    %c0_i32 = arith.constant 0 : i32
    %c0_i32_0 = arith.constant 0 : i32
    %c0_i32_1 = arith.constant 0 : i32
    return %c0_i32, %c0_i32_0 : i32, i32
  }
  func.func @transform_3(%arg0: i32, %arg1: i32) -> (i32, i32, i32) {
    %c0_i32 = arith.constant 0 : i32
    %c0_i32_0 = arith.constant 0 : i32
    return %arg0, %c0_i32, %arg1 : i32, i32, i32
  }
}

module attributes {stable_mosaic.version = 11 : i64} {
  func.func @_conv2d_kernel(%arg0: i32, %arg1: i32, %arg2: memref<1x24x18x18xf32, #tpu.memory_space<vmem>>, %arg3: memref<8x216xbf16, #tpu.memory_space<vmem>>, %arg4: memref<8x1xf32, #tpu.memory_space<vmem>>, %arg5: memref<1x8x128xf32, #tpu.memory_space<vmem>>) attributes {dimension_semantics = [#tpu.dimension_semantics<parallel>, #tpu.dimension_semantics<parallel>], iteration_bounds = array<i64: 2, 2>, scalar_prefetch = 0 : i64, scratch_operands = 0 : i64, tpu.core_type = #tpu.core_type<tc>, window_params = [{transform_indices = @transform_0, window_bounds = array<i64: 1, 24, 18, 18>}, {pipeline_mode = #tpu.pipeline_mode<synchronous>, transform_indices = @transform_1, window_bounds = array<i64: 8, 216>}, {pipeline_mode = #tpu.pipeline_mode<synchronous>, transform_indices = @transform_2, window_bounds = array<i64: 8, 1>}, {transform_indices = @transform_3, window_bounds = array<i64: 1, 8, 128>}]} {
    %c8_i32 = arith.constant 8 : i32
    %0 = arith.muli %arg1, %c8_i32 : i32
    %1 = tpu.assume_multiple %0, 8 : i32
    %c0 = arith.constant 0 : index
    %c0_0 = arith.constant 0 : index
    %2 = arith.index_cast %1 : i32 to index
    %c0_1 = arith.constant 0 : index
    %3 = vector.load %arg2[%c0, %c0_0, %2, %c0_1] : memref<1x24x18x18xf32, #tpu.memory_space<vmem>>, vector<1x24x10x18xf32>
    %4 = vector.shape_cast %3 : vector<1x24x10x18xf32> to vector<24x10x18xf32>
    %5 = arith.truncf %4 : vector<24x10x18xf32> to vector<24x10x18xbf16>
    %6 = vector.extract_strided_slice %5 {offsets = [0, 0, 0], sizes = [24, 8, 16], strides = [1, 1, 1]} : vector<24x10x18xbf16> to vector<24x8x16xbf16>
    %7 = vector.shape_cast %6 : vector<24x8x16xbf16> to vector<24x128xbf16>
    %8 = vector.extract_strided_slice %5 {offsets = [0, 0, 1], sizes = [24, 8, 16], strides = [1, 1, 1]} : vector<24x10x18xbf16> to vector<24x8x16xbf16>
    %9 = vector.shape_cast %8 : vector<24x8x16xbf16> to vector<24x128xbf16>
    %10 = vector.extract_strided_slice %5 {offsets = [0, 0, 2], sizes = [24, 8, 16], strides = [1, 1, 1]} : vector<24x10x18xbf16> to vector<24x8x16xbf16>
    %11 = vector.shape_cast %10 : vector<24x8x16xbf16> to vector<24x128xbf16>
    %12 = vector.extract_strided_slice %5 {offsets = [0, 1, 0], sizes = [24, 8, 16], strides = [1, 1, 1]} : vector<24x10x18xbf16> to vector<24x8x16xbf16>
    %13 = vector.shape_cast %12 : vector<24x8x16xbf16> to vector<24x128xbf16>
    %14 = vector.extract_strided_slice %5 {offsets = [0, 1, 1], sizes = [24, 8, 16], strides = [1, 1, 1]} : vector<24x10x18xbf16> to vector<24x8x16xbf16>
    %15 = vector.shape_cast %14 : vector<24x8x16xbf16> to vector<24x128xbf16>
    %16 = vector.extract_strided_slice %5 {offsets = [0, 1, 2], sizes = [24, 8, 16], strides = [1, 1, 1]} : vector<24x10x18xbf16> to vector<24x8x16xbf16>
    %17 = vector.shape_cast %16 : vector<24x8x16xbf16> to vector<24x128xbf16>
    %18 = vector.extract_strided_slice %5 {offsets = [0, 2, 0], sizes = [24, 8, 16], strides = [1, 1, 1]} : vector<24x10x18xbf16> to vector<24x8x16xbf16>
    %19 = vector.shape_cast %18 : vector<24x8x16xbf16> to vector<24x128xbf16>
    %20 = vector.extract_strided_slice %5 {offsets = [0, 2, 1], sizes = [24, 8, 16], strides = [1, 1, 1]} : vector<24x10x18xbf16> to vector<24x8x16xbf16>
    %21 = vector.shape_cast %20 : vector<24x8x16xbf16> to vector<24x128xbf16>
    %22 = vector.extract_strided_slice %5 {offsets = [0, 2, 2], sizes = [24, 8, 16], strides = [1, 1, 1]} : vector<24x10x18xbf16> to vector<24x8x16xbf16>
    %23 = vector.shape_cast %22 : vector<24x8x16xbf16> to vector<24x128xbf16>
    %24 = tpu.concatenate %7, %9, %11, %13, %15, %17, %19, %21, %23 in 0 : vector<24x128xbf16>, vector<24x128xbf16>, vector<24x128xbf16>, vector<24x128xbf16>, vector<24x128xbf16>, vector<24x128xbf16>, vector<24x128xbf16>, vector<24x128xbf16>, vector<24x128xbf16> -> vector<216x128xbf16>
    %c0_2 = arith.constant 0 : index
    %c0_3 = arith.constant 0 : index
    %25 = vector.load %arg3[%c0_2, %c0_3] : memref<8x216xbf16, #tpu.memory_space<vmem>>, vector<8x216xbf16>
    %cst = arith.constant dense<0.000000e+00> : vector<8x128xf32>
    %26 = tpu.matmul %25, %24, %cst {dimension_numbers = #tpu.dot_dimension_numbers<[1], [0], [0], [1], [0, 0, 1, 1], [], []>} : vector<8x216xbf16>, vector<216x128xbf16>, vector<8x128xf32> -> vector<8x128xf32>
    %c0_4 = arith.constant 0 : index
    %c0_5 = arith.constant 0 : index
    %27 = vector.load %arg4[%c0_4, %c0_5] : memref<8x1xf32, #tpu.memory_space<vmem>>, vector<8x1xf32>
    %28 = vector.broadcast %27 : vector<8x1xf32> to vector<8x128xf32>
    %29 = arith.addf %26, %28 : vector<8x128xf32>
    %cst_6 = arith.constant 0.000000e+00 : f32
    %30 = vector.broadcast %cst_6 : f32 to vector<8x128xf32>
    %31 = arith.maximumf %29, %30 : vector<8x128xf32>
    %c0_7 = arith.constant 0 : index
    %c0_8 = arith.constant 0 : index
    %c0_9 = arith.constant 0 : index
    %32 = vector.load %arg5[%c0_7, %c0_8, %c0_9] : memref<1x8x128xf32, #tpu.memory_space<vmem>>, vector<1x8x128xf32>
    %33 = vector.shape_cast %32 : vector<1x8x128xf32> to vector<8x128xf32>
    %34 = vector.shape_cast %31 : vector<8x128xf32> to vector<1x8x128xf32>
    tpu.vector_store %arg5[%c0_7, %c0_8, %c0_9], %34 {strides = array<i32>} : memref<1x8x128xf32, #tpu.memory_space<vmem>>, vector<1x8x128xf32>,
    return
  }
  func.func @transform_0(%arg0: i32, %arg1: i32) -> (i32, i32, i32, i32) {
    %c0_i32 = arith.constant 0 : i32
    %c0_i32_0 = arith.constant 0 : i32
    %c0_i32_1 = arith.constant 0 : i32
    %c0_i32_2 = arith.constant 0 : i32
    return %arg0, %c0_i32, %c0_i32_0, %c0_i32_1 : i32, i32, i32, i32
  }
  func.func @transform_1(%arg0: i32, %arg1: i32) -> (i32, i32) {
    %c0_i32 = arith.constant 0 : i32
    %c0_i32_0 = arith.constant 0 : i32
    %c0_i32_1 = arith.constant 0 : i32
    return %c0_i32, %c0_i32_0 : i32, i32
  }
  func.func @transform_2(%arg0: i32, %arg1: i32) -> (i32, i32) {
    %c0_i32 = arith.constant 0 : i32
    %c0_i32_0 = arith.constant 0 : i32
    %c0_i32_1 = arith.constant 0 : i32
    return %c0_i32, %c0_i32_0 : i32, i32
  }
  func.func @transform_3(%arg0: i32, %arg1: i32) -> (i32, i32, i32) {
    %c0_i32 = arith.constant 0 : i32
    %c0_i32_0 = arith.constant 0 : i32
    return %arg0, %c0_i32, %arg1 : i32, i32, i32
  }
}

module attributes {stable_mosaic.version = 11 : i64} {
  func.func @_conv2d_kernel(%arg0: i32, %arg1: i32, %arg2: memref<1x8x18x18xf32, #tpu.memory_space<vmem>>, %arg3: memref<8x72xbf16, #tpu.memory_space<vmem>>, %arg4: memref<8x1xf32, #tpu.memory_space<vmem>>, %arg5: memref<1x8x128xf32, #tpu.memory_space<vmem>>) attributes {dimension_semantics = [#tpu.dimension_semantics<parallel>, #tpu.dimension_semantics<parallel>], iteration_bounds = array<i64: 2, 2>, scalar_prefetch = 0 : i64, scratch_operands = 0 : i64, tpu.core_type = #tpu.core_type<tc>, window_params = [{transform_indices = @transform_0, window_bounds = array<i64: 1, 8, 18, 18>}, {pipeline_mode = #tpu.pipeline_mode<synchronous>, transform_indices = @transform_1, window_bounds = array<i64: 8, 72>}, {pipeline_mode = #tpu.pipeline_mode<synchronous>, transform_indices = @transform_2, window_bounds = array<i64: 8, 1>}, {transform_indices = @transform_3, window_bounds = array<i64: 1, 8, 128>}]} {
    %c8_i32 = arith.constant 8 : i32
    %0 = arith.muli %arg1, %c8_i32 : i32
    %1 = tpu.assume_multiple %0, 8 : i32
    %c0 = arith.constant 0 : index
    %c0_0 = arith.constant 0 : index
    %2 = arith.index_cast %1 : i32 to index
    %c0_1 = arith.constant 0 : index
    %3 = vector.load %arg2[%c0, %c0_0, %2, %c0_1] : memref<1x8x18x18xf32, #tpu.memory_space<vmem>>, vector<1x8x10x18xf32>
    %4 = vector.shape_cast %3 : vector<1x8x10x18xf32> to vector<8x10x18xf32>
    %5 = arith.truncf %4 : vector<8x10x18xf32> to vector<8x10x18xbf16>
    %6 = vector.extract_strided_slice %5 {offsets = [0, 0, 0], sizes = [8, 8, 16], strides = [1, 1, 1]} : vector<8x10x18xbf16> to vector<8x8x16xbf16>
    %7 = vector.shape_cast %6 : vector<8x8x16xbf16> to vector<8x128xbf16>
    %8 = vector.extract_strided_slice %5 {offsets = [0, 0, 1], sizes = [8, 8, 16], strides = [1, 1, 1]} : vector<8x10x18xbf16> to vector<8x8x16xbf16>
    %9 = vector.shape_cast %8 : vector<8x8x16xbf16> to vector<8x128xbf16>
    %10 = vector.extract_strided_slice %5 {offsets = [0, 0, 2], sizes = [8, 8, 16], strides = [1, 1, 1]} : vector<8x10x18xbf16> to vector<8x8x16xbf16>
    %11 = vector.shape_cast %10 : vector<8x8x16xbf16> to vector<8x128xbf16>
    %12 = vector.extract_strided_slice %5 {offsets = [0, 1, 0], sizes = [8, 8, 16], strides = [1, 1, 1]} : vector<8x10x18xbf16> to vector<8x8x16xbf16>
    %13 = vector.shape_cast %12 : vector<8x8x16xbf16> to vector<8x128xbf16>
    %14 = vector.extract_strided_slice %5 {offsets = [0, 1, 1], sizes = [8, 8, 16], strides = [1, 1, 1]} : vector<8x10x18xbf16> to vector<8x8x16xbf16>
    %15 = vector.shape_cast %14 : vector<8x8x16xbf16> to vector<8x128xbf16>
    %16 = vector.extract_strided_slice %5 {offsets = [0, 1, 2], sizes = [8, 8, 16], strides = [1, 1, 1]} : vector<8x10x18xbf16> to vector<8x8x16xbf16>
    %17 = vector.shape_cast %16 : vector<8x8x16xbf16> to vector<8x128xbf16>
    %18 = vector.extract_strided_slice %5 {offsets = [0, 2, 0], sizes = [8, 8, 16], strides = [1, 1, 1]} : vector<8x10x18xbf16> to vector<8x8x16xbf16>
    %19 = vector.shape_cast %18 : vector<8x8x16xbf16> to vector<8x128xbf16>
    %20 = vector.extract_strided_slice %5 {offsets = [0, 2, 1], sizes = [8, 8, 16], strides = [1, 1, 1]} : vector<8x10x18xbf16> to vector<8x8x16xbf16>
    %21 = vector.shape_cast %20 : vector<8x8x16xbf16> to vector<8x128xbf16>
    %22 = vector.extract_strided_slice %5 {offsets = [0, 2, 2], sizes = [8, 8, 16], strides = [1, 1, 1]} : vector<8x10x18xbf16> to vector<8x8x16xbf16>
    %23 = vector.shape_cast %22 : vector<8x8x16xbf16> to vector<8x128xbf16>
    %24 = tpu.concatenate %7, %9, %11, %13, %15, %17, %19, %21, %23 in 0 : vector<8x128xbf16>, vector<8x128xbf16>, vector<8x128xbf16>, vector<8x128xbf16>, vector<8x128xbf16>, vector<8x128xbf16>, vector<8x128xbf16>, vector<8x128xbf16>, vector<8x128xbf16> -> vector<72x128xbf16>
    %c0_2 = arith.constant 0 : index
    %c0_3 = arith.constant 0 : index
    %25 = vector.load %arg3[%c0_2, %c0_3] : memref<8x72xbf16, #tpu.memory_space<vmem>>, vector<8x72xbf16>
    %cst = arith.constant dense<0.000000e+00> : vector<8x128xf32>
    %26 = tpu.matmul %25, %24, %cst {dimension_numbers = #tpu.dot_dimension_numbers<[1], [0], [0], [1], [0, 0, 1, 1], [], []>} : vector<8x72xbf16>, vector<72x128xbf16>, vector<8x128xf32> -> vector<8x128xf32>
    %c0_4 = arith.constant 0 : index
    %c0_5 = arith.constant 0 : index
    %27 = vector.load %arg4[%c0_4, %c0_5] : memref<8x1xf32, #tpu.memory_space<vmem>>, vector<8x1xf32>
    %28 = vector.broadcast %27 : vector<8x1xf32> to vector<8x128xf32>
    %29 = arith.addf %26, %28 : vector<8x128xf32>
    %cst_6 = arith.constant 0.000000e+00 : f32
    %30 = vector.broadcast %cst_6 : f32 to vector<8x128xf32>
    %31 = arith.maximumf %29, %30 : vector<8x128xf32>
    %c0_7 = arith.constant 0 : index
    %c0_8 = arith.constant 0 : index
    %c0_9 = arith.constant 0 : index
    %32 = vector.load %arg5[%c0_7, %c0_8, %c0_9] : memref<1x8x128xf32, #tpu.memory_space<vmem>>, vector<1x8x128xf32>
    %33 = vector.shape_cast %32 : vector<1x8x128xf32> to vector<8x128xf32>
    %34 = vector.shape_cast %31 : vector<8x128xf32> to vector<1x8x128xf32>
    tpu.vector_store %arg5[%c0_7, %c0_8, %c0_9], %34 {strides = array<i32>} : memref<1x8x128xf32, #tpu.memory_space<vmem>>, vector<1x8x128xf32>,
    return
  }
  func.func @transform_0(%arg0: i32, %arg1: i32) -> (i32, i32, i32, i32) {
    %c0_i32 = arith.constant 0 : i32
    %c0_i32_0 = arith.constant 0 : i32
    %c0_i32_1 = arith.constant 0 : i32
    %c0_i32_2 = arith.constant 0 : i32
    return %arg0, %c0_i32, %c0_i32_0, %c0_i32_1 : i32, i32, i32, i32
  }
  func.func @transform_1(%arg0: i32, %arg1: i32) -> (i32, i32) {
    %c0_i32 = arith.constant 0 : i32
    %c0_i32_0 = arith.constant 0 : i32
    %c0_i32_1 = arith.constant 0 : i32
    return %c0_i32, %c0_i32_0 : i32, i32
  }
  func.func @transform_2(%arg0: i32, %arg1: i32) -> (i32, i32) {
    %c0_i32 = arith.constant 0 : i32
    %c0_i32_0 = arith.constant 0 : i32
    %c0_i32_1 = arith.constant 0 : i32
    return %c0_i32, %c0_i32_0 : i32, i32
  }
  func.func @transform_3(%arg0: i32, %arg1: i32) -> (i32, i32, i32) {
    %c0_i32 = arith.constant 0 : i32
    %c0_i32_0 = arith.constant 0 : i32
    return %arg0, %c0_i32, %arg1 : i32, i32, i32
  }
}

</mosaic_0001>

<bundles_post_ra>
// kernel: esbup_forward.5
= control target key start
LH: loop header
LB: loop body
LE: loop exit
PB: predicated region body
PF: predicated region fallthrough
CT: control target
= control target key end

     0   :  { %8 = vsyncpa [#allocation3], 0  ;;  %s1302_s0 = inlined_call_operand.hbm [shape: f32[2,8,8,8], index: 0, kind: input, shape index: {}]   ;;  %s1303_s1 = inlined_call_operand.hbm [shape: f32[32,8], index: 1, kind: input, shape index: {}]   ;;  %s1304_s2 = inlined_call_operand.hbm [shape: f32[32,1], index: 2, kind: input, shape index: {}]   ;;  %s1305_s3 = inlined_call_operand.hbm [shape: f32[2,32,64], index: 3, kind: output, shape index: {}]  }
   0x1   :  { %10 = vsyncpa [#allocation3 + $0x1], 0 }
   0x2   :  { %11 = vsyncpa [#allocation6], 0 }
   0x3   :  { %12 = vsyncpa [#allocation4], 0 }
   0x4   :  { %14 = vsyncpa [#allocation4 + $0x1], 0  ;;  %s1030_s12 = smov 0   ;;  %s1032_s13 = smov 0  }
   0x5   :  { %s1034_s14 = smov 0   ;;  %s1036_s15 = smov 0  }
   0x6   :  { %s1038_s16 = smov 0   ;;  %s1040_s17 = smov 0  }
   0x7 LB: > { %s669_s18 = sadd.s32 4294967295, %s991_s17   ;;  %s670_s19 = sadd.s32 4294967294, %s991_s17   ;;  %s991_s17 = sphi %s1040_s17, %s20_s17   ;;  %s987_s16 = sphi %s1038_s16, %s1327_s16   ;;  %s983_s15 = sphi %s1036_s15, %s1326_s15   ;;  %s979_s14 = sphi %s1034_s14, %s1325_s14   ;;  %s975_s13 = sphi %s1032_s13, %s1324_s13   ;;  %s971_s12 = sphi %s1030_s12, %s1323_s12  }
   0x8   : > { %p52_p0 = scmp.ne.s32.totalorder %s975_s13, %s971_s12  ;;  %p1064_p1 = scmp.eq.s32.totalorder %s669_s18, 0 }
   0x9   : > { %p1068_p2 = scmp.eq.s32.totalorder %s669_s18, 1  ;;  %p126_p3 = scmp.eq.s32.totalorder %s670_s19, 1 }
   0xa   : > { %s1310_s20 = scalar_select %p1064_p1, 1, 0 }
   0xb   : > { %p1074_p4 = por %p1064_p1, %p52_p0  ;;  %p671_p5 = scmp.ge.s32.totalorder %s991_s17, 1 }
   0xc   : > { %p1079_p6 = por %p126_p3, %p52_p0  ;;  %p133_p7 = scmp.lt.s32.totalorder %s991_s17, 3 }
   0xd   : > { %s1312_s22 = scalar_select %p1074_p4, 1, 0 }
   0xe   : > { %s1313_s23 = scalar_select %p1079_p6, 1, 0 }
   0xf   : > { %p1084_p8 = pnand %p671_p5, %p133_p7  ;;  %s993_s25 = smov [#allocation5]  }
  0x10   : > { %s145_s26 = sshll.u32 %s993_s25, 4  ;;  %s994_s28 = smov [#allocation7]   ;;  %s1088_s26 = int_to_ptr.vmem [resolvable:$true] %s145_s26 }
  0x11   : > { %p721_p9 = pneg %p1084_p8  ;;  %s158_s29 = sshll.u32 %s994_s28, 4  ;;  %s1099_s29 = int_to_ptr.vmem [resolvable:$true] %s158_s29 }
  0x12   : > { %s819_s5 = scalar_lea.hbm %s1303_s1, 512 }
  0x13   : > { %p1095_p11 = pnand %p721_p9, %p1064_p1  ;;  %p820_p12 = scmp.ne.s32.totalorder %s1303_s1, %s819_s5 }
  0x14   : > { %p826_p5 = scmp.lt.u32.totalorder %s819_s5, %s1303_s1 }
  0x15   : > { %p821_p13 = pneg %p1095_p11 }
  0x17   : > { %p822_p0 = pnand %p821_p13, %p820_p12 }
  0x19   : > { %p823_p3 = pneg %p822_p0 }
  0x1b   : > { %p828_p7 = pnand %p826_p5, %p823_p3 }
  0x1d   : > { %831 = shalt.err (!%p828_p7)
}
  0x1e   : > { %s832_s10 = scalar_lea.vmem %s1088_s26, 512  ;;  %p840_p1 = scmp.lt.s32.totalorder %s1088_s26, %s1088_s26 }
  0x1f   : > { %p833_p9 = scmp.ne.s32.totalorder %s1088_s26, %s832_s10  ;;  %p841_p12 = scmp.lt.s32.totalorder %s832_s10, %s832_s10 }
  0x21   : > { %p835_p10 = pnand %p833_p9, %p821_p13  ;;  %p842_p0 = por %p841_p12, %p840_p1 }
  0x23   : > { %p836_p6 = pneg %p835_p10 }
  0x25   : > { %p843_p4 = pnand %p842_p0, %p836_p6 }
  0x27   : > { %846 = shalt.err (!%p843_p4)
}
  0x28   : > { %s995_s11 = smov 128   ;;  %s996_s18 = smov 8  }
  0x29   : > { %724 = dma.hbm_to_vmem [thread:$0]  (!%p1095_p11), %s1303_s1, 512, %s1088_s26, [#allocation6], %s995_s11, %s995_s11, %s996_s18  }
  0x2a   : > { %s847_s4 = scalar_lea.hbm %s1304_s2, 512 }
  0x2b   : > { %p848_p1 = scmp.ne.s32.totalorder %s1304_s2, %s847_s4  ;;  %p854_p10 = scmp.lt.u32.totalorder %s847_s4, %s1304_s2 }
  0x2d   : > { %p850_p4 = pnand %p848_p1, %p821_p13 }
  0x2f   : > { %p851_p6 = pneg %p850_p4 }
  0x31   : > { %p856_p3 = pnand %p854_p10, %p851_p6 }
  0x33   : > { %859 = shalt.err (!%p856_p3)
}
  0x34   : > { %s860_s26 = scalar_lea.vmem %s1099_s29, 512  ;;  %p868_p12 = scmp.lt.s32.totalorder %s1099_s29, %s1099_s29 }
  0x35   : > { %p861_p5 = scmp.ne.s32.totalorder %s1099_s29, %s860_s26  ;;  %p869_p0 = scmp.lt.s32.totalorder %s860_s26, %s860_s26 }
  0x37   : > { %p863_p7 = pnand %p861_p5, %p821_p13  ;;  %p870_p1 = por %p869_p0, %p868_p12 }
  0x39   : > { %p864_p9 = pneg %p863_p7 }
  0x3b   : > { %p871_p4 = pnand %p870_p1, %p864_p9 }
  0x3d   : > { %874 = shalt.err (!%p871_p4)
}
  0x3e   : > { %727 = dma.hbm_to_vmem [thread:$0]  (!%p1095_p11), %s1304_s2, 512, %s1099_s29, [#allocation6], %s995_s11, %s995_s11, %s996_s18  }
  0x3f   : > { %s32_s27 = sadd.s32 1, %s987_s16  ;;  %s39_s19 = sadd.s32 1, %s979_s14 }
  0x40   : > { %p34_p13 = scmp.ge.s32.totalorder %s32_s27, 2  ;;  %p46_p6 = scmp.ne.s32.totalorder %s979_s14, %s975_s13 }
  0x41   : > { %p47_p10 = scmp.eq.s32.totalorder %s991_s17, 0  ;;  %p738_p3 = scmp.lt.s32.totalorder %s991_s17, 2 }
  0x42   : > { %s1329_s27 = smov (%p34_p13, %s32_s27), 0  ;;  %p1169_p7 = por %p1068_p2, %p46_p6 }
  0x43   : > { %p48_p5 = por %p47_p10, %p46_p6  ;;  %s36_s28 = ssub.s32 %s987_s16, %s1329_s27 }
  0x44   : > { %s1316_s25 = scalar_select %p1169_p7, 1, 0 }
  0x45   : > { %s172_s30 = sand.u32 1, %s979_s14   ;;  %p37_p9 = scmp.eq.s32.totalorder %s36_s28, 0 }
  0x46   : > { %s675_s29 = sshll.u32 %s172_s30, 6  ;;  %s692_s4 = sshll.u32 %s987_s16, 10 }
  0x47   : > { %s1178_s5 = scalar_select %p37_p9, %s979_s14, %s39_s19  }
  0x48   : > { %s1183_s8 = scalar_lea.hbm %s1302_s0, %s692_s4  ;;  %s176_s21 = scalar_lea.vmem [#allocation2], %s675_s29 }
  0x49   : > { %s183_s26 = sshll.u32 %s176_s21, 4  ;;  %p1187_p2 = pnand %p738_p3, %p48_p5  ;;  %s1191_s26 = int_to_ptr.vmem [resolvable:$true] %s183_s26 }
  0x4a   : > { %s1193_s10 = scalar_lea.sflag [#allocation3], %s172_s30  ;;  %s875_s19 = scalar_lea.hbm %s1183_s8, 1024 }
  0x4b   : > { %p876_p11 = scmp.ne.s32.totalorder %s1183_s8, %s875_s19  ;;  %p877_p12 = pneg %p1187_p2 }
  0x4c   : > { %s880_s4 = scalar_lea.hbm %s1302_s0, 2048  ;;  %p881_p4 = scmp.lt.u32.totalorder %s1183_s8, %s1302_s0 }
  0x4d   : > { %p878_p0 = pnand %p877_p12, %p876_p11  ;;  %p882_p13 = scmp.lt.u32.totalorder %s880_s4, %s875_s19 }
  0x4e   : > { %p884_p10 = scmp.lt.u32.totalorder %s875_s19, %s1183_s8 }
  0x4f   : > { %p879_p1 = pneg %p878_p0  ;;  %p883_p6 = por %p882_p13, %p881_p4 }
  0x51   : > { %p885_p3 = por %p884_p10, %p883_p6 }
  0x53   : > { %p886_p5 = pnand %p885_p3, %p879_p1 }
  0x55   : > { %889 = shalt.err (!%p886_p5)
}
  0x56   : > { %s890_s30 = scalar_lea.vmem %s1191_s26, 1024  ;;  %s997_s21 = smov [#allocation2]  }
  0x57   : > { %p891_p9 = scmp.ne.s32.totalorder %s1191_s26, %s890_s30  ;;  %s895_s28 = sshll.u32 %s997_s21, 4  ;;  %s896_s28 = int_to_ptr.vmem [resolvable:$false] %s895_s28 }
  0x58   : > { %s897_s29 = scalar_lea.vmem %s896_s28, 2048  ;;  %p898_p7 = scmp.lt.s32.totalorder %s1191_s26, %s896_s28 }
  0x59   : > { %p893_p11 = pnand %p891_p9, %p877_p12  ;;  %p899_p4 = scmp.lt.s32.totalorder %s897_s29, %s890_s30 }
  0x5b   : > { %p894_p0 = pneg %p893_p11  ;;  %p900_p13 = por %p899_p4, %p898_p7 }
  0x5d   : > { %p901_p6 = pnand %p900_p13, %p894_p0 }
  0x5f   : > { %904 = shalt.err (!%p901_p6)
}
  0x60   : > { %731 = dma.hbm_to_vmem [thread:$0]  (!%p1187_p2), %s1183_s8, 1024, %s1191_s26, %s1193_s10, %s995_s11, %s995_s11, %s996_s18  }
  0x61   : > { %195 = sbr.rel (%p1084_p8) target bundleno = 484 (0x1e4), region = 32  ;;  %s1227_s19 = sand.u32 (!%p1084_p8), 1, %s975_s13  }
  0x62   : > { %s679_s4 = sshll.u32 (!%p1084_p8), %s1227_s19, 6  ;;  %s198_s6 = scalar_lea.sflag (!%p1084_p8), [#allocation3], %s1227_s19 }
  0x63   : > { %s201_s7 = scalar_lea.vmem (!%p1084_p8), [#allocation2], %s679_s4  ;;  %p1318_p7 = scmp.ne.s32.totalorder (!%p1084_p8), %s1312_s22, 0 }
  0x68   : > { %958 = dma.done.wait (%p1318_p7), %s198_s6, 1024  }
  0x69   : > { %960 = vsyncadd (%p1318_p7), %s198_s6, 4294966272  ;;  %p1319_p12 = scmp.ne.s32.totalorder %s1310_s20, 0 }
  0x6b   : > { %962 = dma.done.wait (%p1319_p12), [#allocation6], 1024  }
  0x6c   : > { %964 = vsyncadd (%p1319_p12), [#allocation6], 4294966272  ;;  %v247_v0 = vlaneseq  ;;  %v998_v1 = vmov 1983009808   ;;  %v999_v5 = vmov 1934713408  }
  0x6d   : > { %v245_v2 = vunpack.c.l.s4 %v998_v1  ;;  %v309_v6 = vunpack.c.l.s4 %v999_v5  ;;  %v807_v9 = vld [vmem:[%s201_s7] ss:$16 sps:$4 sm:$0xff]   ;;  %v809_v10 = vld [vmem:[%s201_s7 + $0x4] ss:$16 sps:$4 sm:$0xff]   ;;  %v810_v11 = vld [vmem:[%s201_s7 + $0x8] ss:$16 sps:$4 sm:$0xff]  }
  0x6e   : > { %v248_v4 = vshrl.u32 %v247_v0, 7  ;;  %v812_v12 = vld [vmem:[%s201_s7 + $0xc] ss:$16 sps:$4 sm:$0xff]   ;;  %v813_v14 = vld [vmem:[%s201_s7 + $0x20] ss:$16 sps:$4 sm:$0xff]   ;;  %s1000_s20 = smov 8  }
  0x6f   : > { %v246_v3 = vunpack.c.0.s8 %v245_v2  ;;  %v310_v8 = vunpack.c.0.s8 %v309_v6  ;;  %v815_v15 = vld [vmem:[%s201_s7 + $0x24] ss:$16 sps:$4 sm:$0xff]   ;;  %v816_v16 = vld [vmem:[%s201_s7 + $0x28] ss:$16 sps:$4 sm:$0xff]   ;;  %v818_v18 = vld [vmem:[%s201_s7 + $0x2c] ss:$16 sps:$4 sm:$0xff]  }
  0x70   : > { %s1001_s22 = smov 24   ;;  %vm406_vm0 = vcmask 64512   ;;  %v420_v47 = vld [vmem:[#allocation5] sm:$0xff]  ;;  %v422_v48 = vld [vmem:[#allocation5 + $0x10] sm:$0xff]  ;;  %v1002_v49 = vmov 0   ;;  %s1003_s24 = smov 16  }
  0x71   : > { %v249_v7 = vsub.s32 %v246_v3, %v248_v4  ;;  %v313_v19 = vsub.s32 %v310_v8, %v248_v4  ;;  %701 = vmatprep.mubr.msk.f32.mxu0 %vm406_vm0, %v420_v47  ;;  %704 = vmatprep.mubr.msk.f32.mxu1 %vm406_vm0, %v422_v48  ;;  %s1004_s11 = smov 32   ;;  %s1005_s18 = smov 40   ;;  %v424_v53 = vld [vmem:[#allocation7] sm:$0xff]  ;;  %v426_v54 = vld [vmem:[#allocation7 + $0x10] sm:$0xff]  ;;  %v425_v55 = vld [vmem:[#allocation7 + $0x8] sm:$0xff]  ;;  %vm408_vm1 = vcmask 130048  }
  0x72   : > { %805 = vset.pattern.permute.xlu1 %v1002_v49  ;;  %806 = vset.pattern.permute.xlu0 %v1002_v49  ;;  %s1006_s8 = smov 48   ;;  %s1007_s26 = smov 56   ;;  %v427_v56 = vld [vmem:[#allocation7 + $0x18] sm:$0xff]  ;;  %vm410_vm2 = vcmask 195584   ;;  %vm412_vm3 = vcmask 261120   ;;  %vm414_vm4 = vcmask 326656  }
  0x73   : > { %v250_v13 = vrot.slane %v807_v9, %v249_v7  ;;  %v266_v17 = vrot.slane %v810_v11, %v249_v7  ;;  %v257_v20 = vrot.slane %v809_v10, %v249_v7  ;;  %v273_v21 = vrot.slane %v812_v12, %v249_v7  ;;  %v423_v8 = vld [vmem:[#allocation5 + $0x18] sm:$0xff]  ;;  %s682_s9 = sshll.u32 %s1227_s19, 5  ;;  %s693_s21 = sshll.u32 %s983_s15, 9 }
  0x74   : > { %v282_v22 = vrot.slane %v813_v14, %v249_v7  ;;  %v298_v23 = vrot.slane %v816_v16, %v249_v7  ;;  %v289_v24 = vrot.slane %v815_v15, %v249_v7  ;;  %v305_v27 = vrot.slane %v818_v18, %v249_v7  ;;  %v421_v7 = vld [vmem:[#allocation5 + $0x8] sm:$0xff]  ;;  %s231_s10 = scalar_lea.vmem [#allocation8], %s682_s9  ;;  %s1252_s15 = scalar_lea.hbm %s1305_s3, %s693_s21 }
  0x75   : > { %v306_v25 = vcombine.low %v250_v13, %v266_v17  ;;  %v307_v26 = vcombine.high %v250_v13, %v266_v17  ;;  %v322_v28 = vcombine.low %v257_v20, %v273_v21  ;;  %v323_v34 = vcombine.high %v257_v20, %v273_v21  ;;  %s565_s30 = sshll.u32 %s231_s10, 4  ;;  %s551_s4 = scalar_lea.sflag [#allocation4], %s1227_s19  ;;  %s1247_s30 = int_to_ptr.vmem [resolvable:$true] %s565_s30 }
  0x76   : > { %v338_v29 = vcombine.low %v282_v22, %v298_v23  ;;  %v339_v30 = vcombine.high %v282_v22, %v298_v23  ;;  %v354_v33 = vcombine.low %v289_v24, %v305_v27  ;;  %v355_v38 = vcombine.high %v289_v24, %v305_v27  ;;  %s905_s6 = scalar_lea.vmem %s1247_s30, 512  ;;  %p1320_p2 = scmp.ne.s32.totalorder %s1316_s25, 0 }
  0x77   : > { %v314_v31 = vrot.slane %v306_v25, %v313_v19  ;;  %v321_v32 = vrot.slane %v307_v26, %v313_v19  ;;  %v330_v37 = vrot.slane %v322_v28, %v313_v19  ;;  %v337_v43 = vrot.slane %v323_v34, %v313_v19  ;;  %p906_p8 = scmp.ne.s32.totalorder %s1247_s30, %s905_s6  ;;  %s1008_s7 = smov [#allocation8]  }
  0x78   : > { %v346_v35 = vrot.slane %v338_v29, %v313_v19  ;;  %v353_v36 = vrot.slane %v339_v30, %v313_v19  ;;  %v362_v39 = vrot.slane %v354_v33, %v313_v19  ;;  %v369_v46 = vrot.slane %v355_v38, %v313_v19 }
  0x79   : > { %vm416_vm5 = vcmask 392192   ;;  %vm418_vm6 = vcmask 457728   ;;  %vm545_vm7 = vcmask 523264   ;;  %p907_p1 = pnand %p906_p8, %p1320_p2 }
  0x7a   : > { %v371_v40 = vcombine.high %v314_v31, %v346_v35  ;;  %v370_v41 = vcombine.low %v314_v31, %v346_v35  ;;  %v373_v42 = vcombine.high %v321_v32, %v353_v36  ;;  %v372_v44 = vcombine.low %v321_v32, %v353_v36 }
  0x7b   : > { %v374_v45 = vcombine.low %v330_v37, %v362_v39  ;;  %v375_v50 = vcombine.high %v330_v37, %v362_v39  ;;  %v376_v51 = vcombine.low %v337_v43, %v369_v46  ;;  %v377_v52 = vcombine.high %v337_v43, %v369_v46  ;;  %p908_p10 = pneg %p907_p1 }
  0x7c   : > { %379 = vrot.lane.b32.xlu0 %v371_v40, %s1000_s20  ;;  %387 = vrot.lane.b32.xlu1 %v373_v42, %s1001_s22  ;;  %s909_s22 = sshll.u32 %s1008_s7, 4  ;;  %s910_s22 = int_to_ptr.vmem [resolvable:$false] %s909_s22 }
  0x7d   : > { %p912_p3 = scmp.lt.s32.totalorder %s1247_s30, %s910_s22 }
  0x80   : > { %383 = vrot.lane.b32.xlu0 %v372_v44, %s1003_s24  ;;  %391 = vrot.lane.b32.xlu1 %v374_v45, %s1004_s11  ;;  %s911_s24 = scalar_lea.vmem %s910_s22, 1024 }
  0x81   : > { %p913_p5 = scmp.lt.s32.totalorder %s911_s24, %s905_s6 }
  0x83   : > { %p914_p9 = por %p913_p5, %p912_p3 }
  0x84   : > { %395 = vrot.lane.b32.xlu0 %v375_v50, %s1005_s18  ;;  %399 = vrot.lane.b32.xlu1 %v376_v51, %s1006_s8 }
  0x85   : > { %p915_p11 = pnand %p914_p9, %p908_p10 }
  0x88   : > { %403 = vrot.lane.b32.xlu0 %v377_v52, %s1007_s26  ;;  %430 = vperm.xlu1 %805, %v424_v53  }
  0x8c   : > { %440 = vperm.xlu1 %805, %v426_v54   ;;  %435 = vperm.xlu0 %806, %v425_v55  }
  0x90   : > { %445 = vperm.xlu1 %805, %v427_v56  }
  0xee   : > { %v380_v57 = vpop.permute.xlu0 %379  ;;  %v388_v58 = vpop.permute.xlu1 %387 }
  0xef   : > { %v407_v59 = vsel %vm406_vm0, %v370_v41, %v380_v57 }
  0xf2   : > { %v384_v60 = vpop.permute.xlu0 %383  ;;  %v392_v61 = vpop.permute.xlu1 %391 }
  0xf3   : > { %v409_v62 = vsel %vm408_vm1, %v407_v59, %v384_v60 }
  0xf4   : > { %v411_v63 = vsel %vm410_vm2, %v409_v62, %v388_v58 }
  0xf5   : > { %v413_v0 = vsel %vm412_vm3, %v411_v63, %v392_v61 }
  0xf6   : > { %v396_v1 = vpop.permute.xlu0 %395  ;;  %v400_v3 = vpop.permute.xlu1 %399 }
  0xf7   : > { %v415_v2 = vsel %vm414_vm4, %v413_v0, %v396_v1 }
  0xf8   : > { %v417_v4 = vsel %vm416_vm5, %v415_v2, %v400_v3 }
  0xfa   : > { %v404_v5 = vpop.permute.xlu0 %403 }
  0xfb   : > { %v419_v6 = vsel %vm418_vm6, %v417_v4, %v404_v5 }
  0xfc   : > { %699 = vmatprep.subr.mxu0 %v419_v6  ;;  %707 = vmatprep.subr.mxu1 %v419_v6 }
  0xfd   : > { %700 = vmatpush3.msra.mxu0 %v419_v6  ;;  %708 = vmatpush3.msra.mxu1 %v419_v6 }
  0xfe   : > { %702 = vmatmul.mubr.msk.f32.vlgmr.msra.gmra.mrb[0].mxu0 %vm406_vm0, %v421_v7  ;;  %705 = vmatmul.mubr.msk.f32.vlgmr.msra.gmra.mrb[0].mxu1 %vm406_vm0, %v423_v8 }
 0x107   : > { %v431_v9 = vpop.permute.xlu1 %430 }
 0x10b   : > { %v441_v10 = vpop.permute.xlu1 %440  ;;  %v436_v11 = vpop.permute.xlu0 %435 }
 0x10f   : > { %v446_v12 = vpop.permute.xlu1 %445 }
 0x1d1   : > { %v703_v13 = vpop.f32.mrb[0].mxu0  ;;  %v706_v14 = vpop.f32.mrb[0].mxu1 }
 0x1d2   : > { %v532_v15 = vadd.f32 %v703_v13, %v436_v11  ;;  %v542_v16 = vadd.f32 %v706_v14, %v446_v12  ;;  %v526_v17 = vpop.f32.mrb[1].mxu0  ;;  %v536_v18 = vpop.f32.mrb[1].mxu1 }
 0x1d3   : > { %v527_v19 = vadd.f32 %v526_v17, %v431_v9  ;;  %v537_v20 = vadd.f32 %v536_v18, %v441_v10 }
 0x1d4   : > { %547 = vst.msk [vmem:[%s231_s10 + $0x8] sm:$0xff] %vm545_vm7, %v532_v15  ;;  %549 = vst.msk [vmem:[%s231_s10 + $0x18] sm:$0xff] %vm545_vm7, %v542_v16 }
 0x1d5   : > { %546 = vst.msk [vmem:[%s231_s10] sm:$0xff] %vm545_vm7, %v527_v19  ;;  %548 = vst.msk [vmem:[%s231_s10 + $0x10] sm:$0xff] %vm545_vm7, %v537_v20 }
 0x1d6   : > { %918 = shalt.err (!%p915_p11)
}
 0x1d7   : > { %s919_s11 = scalar_lea.hbm %s1252_s15, 512  ;;  %s923_s26 = scalar_lea.hbm %s1305_s3, 1024 }
 0x1d8   : > { %p920_p0 = scmp.ne.s32.totalorder %s1252_s15, %s919_s11  ;;  %p924_p6 = scmp.lt.u32.totalorder %s1252_s15, %s1305_s3 }
 0x1d9   : > { %p925_p7 = scmp.lt.u32.totalorder %s923_s26, %s919_s11  ;;  %p927_p8 = scmp.lt.u32.totalorder %s919_s11, %s1252_s15 }
 0x1da   : > { %p921_p4 = pnand %p920_p0, %p1320_p2 }
 0x1db   : > { %p926_p12 = por %p925_p7, %p924_p6 }
 0x1dc   : > { %p922_p13 = pneg %p921_p4 }
 0x1dd   : > { %p928_p1 = por %p927_p8, %p926_p12 }
 0x1df   : > { %p929_p10 = pnand %p928_p1, %p922_p13 }
 0x1e1   : > { %932 = shalt.err (!%p929_p10)
}
 0x1e2   : > { %s1009_s21 = smov 128  }
 0x1e3   : > { %719 = dma.vmem_to_hbm [thread:$0]  (%p1320_p2), %s1247_s30, 512, %s1252_s15, %s551_s4, %s1009_s21, %s1009_s21, %s1000_s20  }
 0x1e4 PF: > { %s580_s28 = sand.u32 1, %s971_s12   ;;  %p1321_p3 = scmp.ne.s32.totalorder %s1313_s23, 0 }
 0x1e5   : > { %p1322_p5 = scmp.ge.s32.totalorder %s991_s17, 2  ;;  %s581_s29 = scalar_lea.sflag [#allocation4], %s580_s28 }
 0x1e7   : > { %p733_p9 = pnand %p1322_p5, %p1321_p3 }
 0x1e9   : > { %966 = dma.done.wait (!%p733_p9), %s581_s29, 512  }
 0x1ea   : > { %968 = vsyncadd (!%p733_p9), %s581_s29, 4294966784  ;;  %s20_s17 = sadd.s32 1, %s991_s17   ;;  %s1323_s12 = smov %s975_s13 }
 0x1eb   : > { %p17_p11 = scmp.ge.s32.totalorder %s20_s17, 4   ;;  %s1324_s13 = smov %s979_s14 }
 0x1ec   : > { %s1325_s14 = smov %s1178_s5  ;;  %s1326_s15 = smov %s987_s16 }
 0x1ed   : > { %s1327_s16 = smov %s1329_s27  ;;  %19 = sbr.rel (!%p17_p11) target bundleno = 7 (0x7), region = 86 }
 0x1f4   :  { %586 = vsyncpa [#allocation3], 1 }
 0x1f5   :  { %588 = vsyncpa [#allocation3 + $0x1], 1 }
 0x1f6   :  { %589 = vsyncpa [#allocation6], 1 }
 0x1f7   :  { %590 = vsyncpa [#allocation4], 1 }
 0x1f8   :  { %592 = vsyncpa [#allocation4 + $0x1], 1 }

// kernel: mul.521
= control target key start
LH: loop header
LB: loop body
LE: loop exit
PB: predicated region body
PF: predicated region fallthrough
CT: control target
= control target key end

     0   :  { %s7_s6 = smov 3  ;;  %s14_s9 = smov 3  ;;  %vm4_vm0 = vcmask 31744   ;;  %vm11_vm1 = vcmask 130144   ;;  %vm18_vm2 = vcmask 97344   ;;  %vm25_vm3 = vcmask 64544   ;;  %s67_s0 = inlined_call_operand.vmem [shape: f32[8,4], index: 0, kind: input, shape index: {}]   ;;  %s68_s1 = inlined_call_operand.vmem [shape: f32[2,16], index: 1, kind: output, shape index: {}]  }
   0x1   :  { %v33_v0 = vld [vmem:[%s67_s0 + $0x3] ss:$4 sm:%s7_s6]   ;;  %s39_s10 = smov 12   ;;  %s21_s11 = smov 3  ;;  %v34_v1 = vld [vmem:[%s67_s0 + $0x2] ss:$4 sm:%s14_s9]  }
   0x2   :  { %9 = vrot.lane.b32.xlu0 %v33_v0, %s39_s10  ;;  %v35_v2 = vld [vmem:[%s67_s0 + $0x1] ss:$4 sm:%s21_s11]   ;;  %s2_s16 = smov 3  ;;  %s40_s17 = smov 4  }
   0x3   :  { %23 = vrot.lane.b32.xlu1 %v35_v2, %s40_s17  ;;  %v3_v3 = vld [vmem:[%s67_s0] ss:$4 sm:%s2_s16]   ;;  %s41_s0 = smov 8  }
   0x4   :  { %5 = vst.msk [vmem:[#allocation0] sm:$0x3] %vm4_vm0, %v3_v3  }
   0x6   :  { %16 = vrot.lane.b32.xlu0 %v34_v1, %s41_s0 }
  0x74   :  { %v10_v4 = vpop.permute.xlu0 %9  }
  0x75   :  { %12 = vst.msk [vmem:[#allocation0] sm:$0x3] %vm11_vm1, %v10_v4   ;;  %v24_v5 = vpop.permute.xlu1 %23  }
  0x78   :  { %v17_v6 = vpop.permute.xlu0 %16  }
  0x79   :  { %19 = vst.msk [vmem:[#allocation0] sm:$0x3] %vm18_vm2, %v17_v6  }
  0x7a   :  { %26 = vst.msk [vmem:[#allocation0] sm:$0x3] %vm25_vm3, %v24_v5  }
  0x81   :  { %v30_v7 = vld [vmem:[#allocation0] sm:$0x3] }
  0x82   :  { %32 = vst [vmem:[%s68_s1] sm:$0x3] %v30_v7 }

// kernel: esbup_forward.6
= control target key start
LH: loop header
LB: loop body
LE: loop exit
PB: predicated region body
PF: predicated region fallthrough
CT: control target
= control target key end

     0   :  { %vm38_vm0 = vcmask 31744   ;;  %v1706_v0 = vmov 0.0   ;;  %vm1707_vm1 = vmmov 0   ;;  %vm655_vm2 = vcmask 27648   ;;  %s1920_s1 = inlined_call_operand.vmem [shape: f32[8,4,4], index: 1, kind: input, shape index: {}]   ;;  %s1921_s0 = inlined_call_operand.vmem [shape: f32[8,4,4], index: 0, kind: input, shape index: {}]   ;;  %s1922_s2 = inlined_call_operand.vmem [shape: f32[8,4,4], index: 2, kind: input, shape index: {}]   ;;  %s1923_s3 = inlined_call_operand.vmem [shape: f32[8,4], index: 3, kind: output, shape index: {}]  }
   0x1   :  { %1560 = vmatprep.subr.mxu0 %v1706_v0  ;;  %v22_v1 = vld [vmem:[%s1920_s1] sm:$0xf]  ;;  %1562 = vmatprep.mubr.msk.f32.mxu0 %vm1707_vm1, %v1706_v0  ;;  %v23_v2 = vld [vmem:[%s1920_s1 + $0x4] sm:$0xf]  ;;  %v24_v4 = vld [vmem:[%s1920_s1 + $0x8] sm:$0xf] }
   0x2   :  { %1561 = vmatpush3.xpose.msk.msra.mxu0 %vm38_vm0, %v22_v1  ;;  %v14_v3 = vld [vmem:[%s1921_s0] sm:$0xf]  ;;  %1565 = vmatprep.subr.mxu1 %v1706_v0  ;;  %v15_v5 = vld [vmem:[%s1921_s0 + $0x4] sm:$0xf]  ;;  %v25_v6 = vld [vmem:[%s1920_s1 + $0xc] sm:$0xf] }
   0x3   :  { %1570 = vmatprep.subr.mxu0 %v1706_v0  ;;  %1566 = vmatpush3.xpose.msk.msra.mxu1 %vm38_vm0, %v23_v2  ;;  %v16_v7 = vld [vmem:[%s1921_s0 + $0x8] sm:$0xf]  ;;  %v26_v8 = vld [vmem:[%s1920_s1 + $0x10] sm:$0xf]  ;;  %v17_v9 = vld [vmem:[%s1921_s0 + $0xc] sm:$0xf] }
   0x4   :  { %1567 = vmatprep.mubr.msk.f32.mxu1 %vm1707_vm1, %v1706_v0  ;;  %1575 = vmatprep.subr.mxu1 %v1706_v0  ;;  %v27_v10 = vld [vmem:[%s1920_s1 + $0x14] sm:$0xf]  ;;  %v18_v11 = vld [vmem:[%s1921_s0 + $0x10] sm:$0xf]  ;;  %v28_v12 = vld [vmem:[%s1920_s1 + $0x18] sm:$0xf] }
   0x5   :  { %1563 = vmatmul.mubr.msk.f32.vlgmr.msra.gmra.mrb[0].mxu0 %vm38_vm0, %v14_v3  ;;  %v19_v13 = vld [vmem:[%s1921_s0 + $0x14] sm:$0xf]  ;;  %v29_v14 = vld [vmem:[%s1920_s1 + $0x1c] sm:$0xf]  ;;  %v20_v15 = vld [vmem:[%s1921_s0 + $0x18] sm:$0xf] }
   0x6   :  { %1571 = vmatpush3.xpose.msk.msra.mxu0 %vm38_vm0, %v24_v4  ;;  %1572 = vmatprep.mubr.msk.f32.mxu0 %vm1707_vm1, %v1706_v0  ;;  %v21_v16 = vld [vmem:[%s1921_s0 + $0x1c] sm:$0xf]  ;;  %vm747_vm3 = vcmask 1043456   ;;  %vm1476_vm4 = vcmask 1041409   ;;  %vm1478_vm5 = vcmask 1042434   ;;  %vm1480_vm6 = vcmask 1043459  }
   0x7   :  { %1568 = vmatmul.mubr.msk.f32.vlgmr.msra.gmra.mrb[0].mxu1 %vm38_vm0, %v15_v5  ;;  %1580 = vmatprep.subr.mxu0 %v1706_v0  ;;  %vm1482_vm7 = vcmask 1044484   ;;  %vm1484_vm8 = vcmask 1045509   ;;  %vm1486_vm9 = vcmask 1046534   ;;  %vm1488_vm10 = vcmask 1047559  }
   0x8   :  { %1576 = vmatpush3.xpose.msk.msra.mxu1 %vm38_vm0, %v25_v6  ;;  %1577 = vmatprep.mubr.msk.f32.mxu1 %vm1707_vm1, %v1706_v0 }
   0x9   :  { %1573 = vmatmul.mubr.msk.f32.vlgmr.msra.gmra.mrb[2].mxu0 %vm38_vm0, %v16_v7  ;;  %1585 = vmatprep.subr.mxu1 %v1706_v0 }
   0xa   :  { %1581 = vmatpush3.xpose.msk.msra.mxu0 %vm38_vm0, %v26_v8  ;;  %1582 = vmatprep.mubr.msk.f32.mxu0 %vm1707_vm1, %v1706_v0 }
   0xb   :  { %1578 = vmatmul.mubr.msk.f32.vlgmr.msra.gmra.mrb[2].mxu1 %vm38_vm0, %v17_v9  ;;  %1590 = vmatprep.subr.mxu0 %v1706_v0 }
   0xc   :  { %1586 = vmatpush3.xpose.msk.msra.mxu1 %vm38_vm0, %v27_v10  ;;  %1587 = vmatprep.mubr.msk.f32.mxu1 %vm1707_vm1, %v1706_v0 }
   0xd   :  { %1583 = vmatmul.mubr.msk.f32.vlgmr.msra.gmra.mrb[4].mxu0 %vm38_vm0, %v18_v11  ;;  %1595 = vmatprep.subr.mxu1 %v1706_v0 }
   0xe   :  { %1591 = vmatpush3.xpose.msk.msra.mxu0 %vm38_vm0, %v28_v12  ;;  %1592 = vmatprep.mubr.msk.f32.mxu0 %vm1707_vm1, %v1706_v0 }
   0xf   :  { %1588 = vmatmul.mubr.msk.f32.vlgmr.msra.gmra.mrb[4].mxu1 %vm38_vm0, %v19_v13  ;;  %1600 = vmatprep.subr.mxu0 %v1706_v0 }
  0x10   :  { %1596 = vmatpush3.xpose.msk.msra.mxu1 %vm38_vm0, %v29_v14  ;;  %1597 = vmatprep.mubr.msk.f32.mxu1 %vm1707_vm1, %v1706_v0 }
  0x11   :  { %1593 = vmatmul.mubr.msk.f32.vlgmr.msra.gmra.mrb[6].mxu0 %vm38_vm0, %v20_v15  ;;  %1605 = vmatprep.subr.mxu1 %v1706_v0 }
  0x12   :  { %1602 = vmatprep.mubr.msk.f32.mxu0 %vm1707_vm1, %v1706_v0 }
  0x13   :  { %1598 = vmatmul.mubr.msk.f32.vlgmr.msra.gmra.mrb[6].mxu1 %vm38_vm0, %v21_v16 }
  0x14   :  { %1607 = vmatprep.mubr.msk.f32.mxu1 %vm1707_vm1, %v1706_v0 }
  0xd8   :  { %v111_v17 = vpop.f32.mrb[0].mxu0 }
  0xd9   :  { %v647_v18 = vmul.f32 0.5, %v111_v17  ;;  %v1564_v19 = vpop.f32.mrb[1].mxu0 }
  0xda   :  { %v187_v20 = vpop.f32.mrb[0].mxu1 }
  0xdb   :  { %v648_v21 = vmul.f32 0.5, %v187_v20  ;;  %v656_v22 = vsel %vm655_vm2, %v647_v18, -inf  ;;  %v1569_v23 = vpop.f32.mrb[1].mxu1 }
  0xdc   :  { %657 = vmax.xlane.f32.xlu0 %v656_v22  ;;  %v263_v24 = vpop.f32.mrb[2].mxu0 }
  0xdd   :  { %v649_v25 = vmul.f32 0.5, %v263_v24  ;;  %v1574_v26 = vpop.f32.mrb[3].mxu0  ;;  %v659_v27 = vsel %vm655_vm2, %v648_v21, -inf }
  0xde   :  { %v339_v28 = vpop.f32.mrb[2].mxu1  ;;  %v30_v26 = vld [vmem:[%s1922_s2] sm:$0xf] }
  0xdf   :  { %v650_v29 = vmul.f32 0.5, %v339_v28  ;;  %v662_v30 = vsel %vm655_vm2, %v649_v25, -inf  ;;  %v1579_v31 = vpop.f32.mrb[3].mxu1  ;;  %1601 = vmatpush3.msk.msra.mxu0 %vm747_vm3, %v30_v26 }
  0xe0   :  { %660 = vmax.xlane.f32.xlu0 %v659_v27  ;;  %663 = vmax.xlane.f32.xlu1 %v662_v30  ;;  %v415_v32 = vpop.f32.mrb[4].mxu0  ;;  %v31_v27 = vld [vmem:[%s1922_s2 + $0x4] sm:$0xf] }
  0xe1   :  { %v651_v33 = vmul.f32 0.5, %v415_v32  ;;  %v1584_v34 = vpop.f32.mrb[5].mxu0  ;;  %v665_v35 = vsel %vm655_vm2, %v650_v29, -inf  ;;  %1610 = vmatprep.subr.mxu0 %v1706_v0  ;;  %1606 = vmatpush3.msk.msra.mxu1 %vm747_vm3, %v31_v27 }
  0xe2   :  { %v491_v36 = vpop.f32.mrb[4].mxu1  ;;  %1615 = vmatprep.subr.mxu1 %v1706_v0 }
  0xe3   :  { %v652_v37 = vmul.f32 0.5, %v491_v36  ;;  %v668_v38 = vsel %vm655_vm2, %v651_v33, -inf  ;;  %v1589_v39 = vpop.f32.mrb[5].mxu1  ;;  %v32_v36 = vld [vmem:[%s1922_s2 + $0x8] sm:$0xf] }
  0xe4   :  { %666 = vmax.xlane.f32.xlu1 %v665_v35  ;;  %669 = vmax.xlane.f32.xlu0 %v668_v38  ;;  %v567_v40 = vpop.f32.mrb[6].mxu0 }
  0xe5   :  { %v653_v41 = vmul.f32 0.5, %v567_v40  ;;  %v671_v42 = vsel %vm655_vm2, %v652_v37, -inf  ;;  %v1594_v43 = vpop.f32.mrb[7].mxu0 }
  0xe6   :  { %v643_v44 = vpop.f32.mrb[6].mxu1 }
  0xe7   :  { %v654_v45 = vmul.f32 0.5, %v643_v44  ;;  %v674_v46 = vsel %vm655_vm2, %v653_v41, -inf  ;;  %v1599_v47 = vpop.f32.mrb[7].mxu1  ;;  %v34_v44 = vld [vmem:[%s1922_s2 + $0x10] sm:$0xf] }
  0xe8   :  { %672 = vmax.xlane.f32.xlu1 %v671_v42  ;;  %675 = vmax.xlane.f32.xlu0 %v674_v46  ;;  %v33_v42 = vld [vmem:[%s1922_s2 + $0xc] sm:$0xf] }
  0xe9   :  { %v677_v48 = vsel %vm655_vm2, %v654_v45, -inf }
  0xec   :  { %678 = vmax.xlane.f32.xlu1 %v677_v48  ;;  %v35_v48 = vld [vmem:[%s1922_s2 + $0x14] sm:$0xf] }
 0x169   :  { %v658_v49 = vpop.xlane.xlu0 %657 }
 0x16a   :  { %v680_v50 = vsub.f32 %v647_v18, %v658_v49 }
 0x16c   :  { %v688_v51 = vmul.f32 1.442695, %v680_v50  ;;  %v36_v50 = vld [vmem:[%s1922_s2 + $0x18] sm:$0xf] }
 0x16d   :  { %v661_v52 = vpop.xlane.xlu0 %660  ;;  %v664_v53 = vpop.xlane.xlu1 %663 }
 0x16e   :  { %1642 = vpow2.f32 %v688_v51  ;;  %v681_v54 = vsub.f32 %v648_v21, %v661_v52  ;;  %v682_v55 = vsub.f32 %v649_v25, %v664_v53 }
 0x170   :  { %v690_v56 = vmul.f32 1.442695, %v681_v54  ;;  %v692_v57 = vmul.f32 1.442695, %v682_v55  ;;  %v37_v54 = vld [vmem:[%s1922_s2 + $0x1c] sm:$0xf] }
 0x171   :  { %v667_v58 = vpop.xlane.xlu1 %666  ;;  %v670_v59 = vpop.xlane.xlu0 %669 }
 0x172   :  { %1644 = vpow2.f32 %v690_v56  ;;  %v683_v60 = vsub.f32 %v650_v29, %v667_v58  ;;  %v684_v61 = vsub.f32 %v651_v33, %v670_v59 }
 0x173   :  { %1646 = vpow2.f32 %v692_v57 }
 0x174   :  { %v694_v62 = vmul.f32 1.442695, %v683_v60  ;;  %v696_v63 = vmul.f32 1.442695, %v684_v61 }
 0x175   :  { %v673_v1 = vpop.xlane.xlu1 %672  ;;  %v676_v2 = vpop.xlane.xlu0 %675 }
 0x176   :  { %1648 = vpow2.f32 %v694_v62  ;;  %v685_v3 = vsub.f32 %v652_v37, %v673_v1  ;;  %v686_v4 = vsub.f32 %v653_v41, %v676_v2 }
 0x177   :  { %1650 = vpow2.f32 %v696_v63 }
 0x178   :  { %v1643_v5 = vpop.eup %1642  ;;  %v698_v6 = vmul.f32 1.442695, %v685_v3  ;;  %v700_v7 = vmul.f32 1.442695, %v686_v4 }
 0x179   :  { %v679_v8 = vpop.xlane.xlu1 %678  ;;  %v704_v9 = vsel %vm655_vm2, %v1643_v5, 0.0 }
 0x17a   :  { %1652 = vpow2.f32 %v698_v6  ;;  %v687_v10 = vsub.f32 %v654_v45, %v679_v8  ;;  %705 = vadd.xlane.f32.xlu0 %v704_v9 }
 0x17b   :  { %1654 = vpow2.f32 %v700_v7 }
 0x17c   :  { %v1645_v11 = vpop.eup %1644  ;;  %v702_v12 = vmul.f32 1.442695, %v687_v10 }
 0x17d   :  { %v1647_v13 = vpop.eup %1646  ;;  %v707_v14 = vsel %vm655_vm2, %v1645_v11, 0.0 }
 0x17e   :  { %1656 = vpow2.f32 %v702_v12  ;;  %708 = vadd.xlane.f32.xlu1 %v707_v14  ;;  %v710_v15 = vsel %vm655_vm2, %v1647_v13, 0.0 }
 0x17f   :  { %711 = vadd.xlane.f32.xlu0 %v710_v15 }
 0x180   :  { %v1649_v16 = vpop.eup %1648 }
 0x181   :  { %v1651_v17 = vpop.eup %1650  ;;  %v713_v18 = vsel %vm655_vm2, %v1649_v16, 0.0 }
 0x182   :  { %714 = vadd.xlane.f32.xlu1 %v713_v18  ;;  %v716_v19 = vsel %vm655_vm2, %v1651_v17, 0.0 }
 0x183   :  { %717 = vadd.xlane.f32.xlu0 %v716_v19 }
 0x184   :  { %v1835_v20 = vpop.eup %1652 }
 0x185   :  { %v1837_v21 = vpop.eup %1654  ;;  %v719_v22 = vsel %vm655_vm2, %v1835_v20, 0.0 }
 0x186   :  { %720 = vadd.xlane.f32.xlu1 %v719_v22  ;;  %v722_v23 = vsel %vm655_vm2, %v1837_v21, 0.0 }
 0x187   :  { %723 = vadd.xlane.f32.xlu0 %v722_v23 }
 0x188   :  { %v1843_v24 = vpop.eup %1656 }
 0x189   :  { %v725_v25 = vsel %vm655_vm2, %v1843_v24, 0.0 }
 0x18a   :  { %726 = vadd.xlane.f32.xlu1 %v725_v25 }
 0x207   :  { %v706_v28 = vpop.xlane.xlu0 %705 }
 0x208   :  { %1658 = vrcp.f32 %v706_v28 }
 0x20b   :  { %v709_v29 = vpop.xlane.xlu1 %708 }
 0x20c   :  { %1660 = vrcp.f32 %v709_v29  ;;  %v712_v30 = vpop.xlane.xlu0 %711 }
 0x20d   :  { %1662 = vrcp.f32 %v712_v30 }
 0x20f   :  { %v715_v31 = vpop.xlane.xlu1 %714 }
 0x210   :  { %1664 = vrcp.f32 %v715_v31  ;;  %v718_v32 = vpop.xlane.xlu0 %717 }
 0x211   :  { %1666 = vrcp.f32 %v718_v32 }
 0x212   :  { %v1659_v33 = vpop.eup %1658 }
 0x213   :  { %v729_v34 = vmul.f32 %v1659_v33, %v1643_v5  ;;  %v721_v35 = vpop.xlane.xlu1 %720 }
 0x214   :  { %1668 = vrcp.f32 %v721_v35  ;;  %v724_v37 = vpop.xlane.xlu0 %723 }
 0x215   :  { %1670 = vrcp.f32 %v724_v37  ;;  %1603 = vmatmul.mubr.msk.f32.vlgmr.msra.gmra.mrb[8].mxu0 %vm38_vm0, %v729_v34 }
 0x216   :  { %v1661_v38 = vpop.eup %1660  ;;  %1611 = vmatpush3.msk.msra.mxu0 %vm747_vm3, %v32_v36  ;;  %1612 = vmatprep.mubr.msk.f32.mxu0 %vm1707_vm1, %v1706_v0 }
 0x217   :  { %v1663_v39 = vpop.eup %1662  ;;  %v731_v40 = vmul.f32 %v1661_v38, %v1645_v11  ;;  %v727_v41 = vpop.xlane.xlu1 %726  ;;  %1620 = vmatprep.subr.mxu0 %v1706_v0 }
 0x218   :  { %v733_v43 = vmul.f32 %v1663_v39, %v1647_v13  ;;  %1672 = vrcp.f32 %v727_v41 }
 0x219   :  { %1608 = vmatmul.mubr.msk.f32.vlgmr.msra.gmra.mrb[8].mxu1 %vm38_vm0, %v731_v40 }
 0x21a   :  { %v1665_v45 = vpop.eup %1664  ;;  %1613 = vmatmul.mubr.msk.f32.vlgmr.msra.gmra.mrb[10].mxu0 %vm38_vm0, %v733_v43  ;;  %1616 = vmatpush3.msk.msra.mxu1 %vm747_vm3, %v33_v42 }
 0x21b   :  { %v1667_v46 = vpop.eup %1666  ;;  %v735_v47 = vmul.f32 %v1665_v45, %v1649_v16  ;;  %1617 = vmatprep.mubr.msk.f32.mxu1 %vm1707_vm1, %v1706_v0  ;;  %1621 = vmatpush3.msk.msra.mxu0 %vm747_vm3, %v34_v44 }
 0x21c   :  { %v737_v49 = vmul.f32 %v1667_v46, %v1651_v17  ;;  %1622 = vmatprep.mubr.msk.f32.mxu0 %vm1707_vm1, %v1706_v0  ;;  %1625 = vmatprep.subr.mxu1 %v1706_v0 }
 0x21d   :  { %1618 = vmatmul.mubr.msk.f32.vlgmr.msra.gmra.mrb[10].mxu1 %vm38_vm0, %v735_v47  ;;  %1630 = vmatprep.subr.mxu0 %v1706_v0 }
 0x21e   :  { %v1669_v51 = vpop.eup %1668  ;;  %1623 = vmatmul.mubr.msk.f32.vlgmr.msra.gmra.mrb[12].mxu0 %vm38_vm0, %v737_v49  ;;  %1626 = vmatpush3.msk.msra.mxu1 %vm747_vm3, %v35_v48 }
 0x21f   :  { %v1671_v52 = vpop.eup %1670  ;;  %v739_v53 = vmul.f32 %v1669_v51, %v1835_v20  ;;  %1627 = vmatprep.mubr.msk.f32.mxu1 %vm1707_vm1, %v1706_v0  ;;  %1631 = vmatpush3.msk.msra.mxu0 %vm747_vm3, %v36_v50 }
 0x220   :  { %v741_v55 = vmul.f32 %v1671_v52, %v1837_v21  ;;  %1632 = vmatprep.mubr.msk.f32.mxu0 %vm1707_vm1, %v1706_v0  ;;  %1635 = vmatprep.subr.mxu1 %v1706_v0 }
 0x221   :  { %1628 = vmatmul.mubr.msk.f32.vlgmr.msra.gmra.mrb[12].mxu1 %vm38_vm0, %v739_v53 }
 0x222   :  { %v1673_v56 = vpop.eup %1672  ;;  %1633 = vmatmul.mubr.msk.f32.vlgmr.msra.gmra.mrb[14].mxu0 %vm38_vm0, %v741_v55  ;;  %1636 = vmatpush3.msk.msra.mxu1 %vm747_vm3, %v37_v54  ;;  %v1442_v55 = vlaneseq }
 0x223   :  { %v743_v57 = vmul.f32 %v1673_v56, %v1843_v24  ;;  %1637 = vmatprep.mubr.msk.f32.mxu1 %vm1707_vm1, %v1706_v0 }
 0x225   :  { %1638 = vmatmul.mubr.msk.f32.vlgmr.msra.gmra.mrb[14].mxu1 %vm38_vm0, %v743_v57 }
 0x2e8   :  { %v817_v58 = vpop.f32.mrb[8].mxu0 }
 0x2e9   :  { %v1604_v59 = vpop.f32.mrb[9].mxu0  ;;  %v1353_v60 = vsel %vm655_vm2, %v817_v58, 0.0 }
 0x2ea   :  { %1354 = vadd.xlane.f32.xlu0 %v1353_v60  ;;  %v1443_v60 = vand.u32 127, %v1442_v55 }
 0x2ec   :  { %v893_v61 = vpop.f32.mrb[8].mxu1 }
 0x2ed   :  { %v969_v62 = vpop.f32.mrb[10].mxu0  ;;  %v1609_v63 = vpop.f32.mrb[9].mxu1  ;;  %v1356_v1 = vsel %vm655_vm2, %v893_v61, 0.0  ;;  %v1445_v61 = vshrl.u32 %v1442_v55, 7 }
 0x2ee   :  { %v1614_v2 = vpop.f32.mrb[11].mxu0  ;;  %1357 = vadd.xlane.f32.xlu1 %v1356_v1  ;;  %v1359_v3 = vsel %vm655_vm2, %v969_v62, 0.0 }
 0x2ef   :  { %1360 = vadd.xlane.f32.xlu0 %v1359_v3  ;;  %v1446_v3 = vsub.s32 %v1443_v60, %v1445_v61 }
 0x2f0   :  { %v1045_v4 = vpop.f32.mrb[10].mxu1 }
 0x2f1   :  { %v1121_v5 = vpop.f32.mrb[12].mxu0  ;;  %v1619_v0 = vpop.f32.mrb[11].mxu1  ;;  %v1362_v6 = vsel %vm655_vm2, %v1045_v4, 0.0 }
 0x2f2   :  { %v1624_v7 = vpop.f32.mrb[13].mxu0  ;;  %1363 = vadd.xlane.f32.xlu1 %v1362_v6  ;;  %v1365_v8 = vsel %vm655_vm2, %v1121_v5, 0.0 }
 0x2f3   :  { %1366 = vadd.xlane.f32.xlu0 %v1365_v8 }
 0x2f4   :  { %v1197_v9 = vpop.f32.mrb[12].mxu1 }
 0x2f5   :  { %v1273_v10 = vpop.f32.mrb[14].mxu0  ;;  %v1629_v11 = vpop.f32.mrb[13].mxu1  ;;  %v1368_v12 = vsel %vm655_vm2, %v1197_v9, 0.0 }
 0x2f6   :  { %v1634_v13 = vpop.f32.mrb[15].mxu0  ;;  %1369 = vadd.xlane.f32.xlu1 %v1368_v12  ;;  %v1371_v14 = vsel %vm655_vm2, %v1273_v10, 0.0 }
 0x2f7   :  { %1372 = vadd.xlane.f32.xlu0 %v1371_v14 }
 0x2f8   :  { %v1349_v15 = vpop.f32.mrb[14].mxu1 }
 0x2f9   :  { %v1639_v16 = vpop.f32.mrb[15].mxu1  ;;  %v1374_v17 = vsel %vm655_vm2, %v1349_v15, 0.0 }
 0x2fa   :  { %1375 = vadd.xlane.f32.xlu1 %v1374_v17 }
 0x377   :  { %v1355_v18 = vpop.xlane.xlu0 %1354 }
 0x378   :  { %v1378_v19 = vmul.f32 0.25, %v1355_v18 }
 0x37a   :  { %v1386_v20 = vsub.f32 0.0, %v1378_v19 }
 0x37b   :  { %v1358_v21 = vpop.xlane.xlu1 %1357 }
 0x37c   :  { %v1394_v22 = vmul.f32 1.442695, %v1386_v20  ;;  %v1379_v23 = vmul.f32 0.25, %v1358_v21  ;;  %v1361_v24 = vpop.xlane.xlu0 %1360 }
 0x37d   :  { %v1380_v25 = vmul.f32 0.25, %v1361_v24 }
 0x37e   :  { %1674 = vpow2.f32 %v1394_v22  ;;  %v1387_v26 = vsub.f32 0.0, %v1379_v23 }
 0x37f   :  { %v1388_v27 = vsub.f32 0.0, %v1380_v25  ;;  %v1364_v28 = vpop.xlane.xlu1 %1363 }
 0x380   :  { %v1396_v29 = vmul.f32 1.442695, %v1387_v26  ;;  %v1381_v30 = vmul.f32 0.25, %v1364_v28  ;;  %v1367_v31 = vpop.xlane.xlu0 %1366 }
 0x381   :  { %v1398_v32 = vmul.f32 1.442695, %v1388_v27  ;;  %v1382_v33 = vmul.f32 0.25, %v1367_v31 }
 0x382   :  { %1676 = vpow2.f32 %v1396_v29  ;;  %v1389_v34 = vsub.f32 0.0, %v1381_v30 }
 0x383   :  { %1678 = vpow2.f32 %v1398_v32  ;;  %v1390_v35 = vsub.f32 0.0, %v1382_v33  ;;  %v1370_v36 = vpop.xlane.xlu1 %1369 }
 0x384   :  { %v1400_v37 = vmul.f32 1.442695, %v1389_v34  ;;  %v1383_v38 = vmul.f32 0.25, %v1370_v36  ;;  %v1373_v39 = vpop.xlane.xlu0 %1372 }
 0x385   :  { %v1402_v40 = vmul.f32 1.442695, %v1390_v35  ;;  %v1384_v41 = vmul.f32 0.25, %v1373_v39 }
 0x386   :  { %1680 = vpow2.f32 %v1400_v37  ;;  %v1391_v42 = vsub.f32 0.0, %v1383_v38 }
 0x387   :  { %1682 = vpow2.f32 %v1402_v40  ;;  %v1392_v43 = vsub.f32 0.0, %v1384_v41  ;;  %v1376_v44 = vpop.xlane.xlu1 %1375 }
 0x388   :  { %v1675_v45 = vpop.eup %1674  ;;  %v1404_v46 = vmul.f32 1.442695, %v1391_v42  ;;  %v1385_v47 = vmul.f32 0.25, %v1376_v44 }
 0x389   :  { %v1410_v48 = vadd.f32 1.0, %v1675_v45  ;;  %v1406_v49 = vmul.f32 1.442695, %v1392_v43 }
 0x38a   :  { %1684 = vpow2.f32 %v1404_v46  ;;  %v1393_v50 = vsub.f32 0.0, %v1385_v47 }
 0x38b   :  { %1686 = vpow2.f32 %v1406_v49 }
 0x38c   :  { %v1677_v51 = vpop.eup %1676  ;;  %v1408_v52 = vmul.f32 1.442695, %v1393_v50  ;;  %1688 = vrcp.f32 %v1410_v48 }
 0x38d   :  { %v1679_v53 = vpop.eup %1678  ;;  %v1411_v54 = vadd.f32 1.0, %v1677_v51 }
 0x38e   :  { %v1412_v56 = vadd.f32 1.0, %v1679_v53  ;;  %1690 = vpow2.f32 %v1408_v52 }
 0x38f   :  { %1692 = vrcp.f32 %v1411_v54 }
 0x390   :  { %v1681_v57 = vpop.eup %1680  ;;  %1694 = vrcp.f32 %v1412_v56 }
 0x391   :  { %v1683_v58 = vpop.eup %1682  ;;  %v1413_v59 = vadd.f32 1.0, %v1681_v57 }
 0x392   :  { %v1414_v62 = vadd.f32 1.0, %v1683_v58 }
 0x393   :  { %1696 = vrcp.f32 %v1413_v59 }
 0x394   :  { %v1685_v63 = vpop.eup %1684  ;;  %1698 = vrcp.f32 %v1414_v62 }
 0x395   :  { %v1415_v1 = vadd.f32 1.0, %v1685_v63  ;;  %v1687_v2 = vpop.eup %1686 }
 0x396   :  { %v1689_v4 = vpop.eup %1688  ;;  %v1416_v5 = vadd.f32 1.0, %v1687_v2 }
 0x397   :  { %1700 = vrcp.f32 %v1415_v1  ;;  %v1447_v9 = vrot.slane %v1689_v4, %v1446_v3 }
 0x398   :  { %v1691_v0 = vpop.eup %1690  ;;  %1702 = vrcp.f32 %v1416_v5 }
 0x399   :  { %v1693_v6 = vpop.eup %1692  ;;  %v1417_v7 = vadd.f32 1.0, %v1691_v0 }
 0x39a   :  { %v1695_v8 = vpop.eup %1694  ;;  %v1451_v10 = vrot.slane %v1693_v6, %v1446_v3 }
 0x39b   :  { %v1455_v11 = vrot.slane %v1695_v8, %v1446_v3  ;;  %1704 = vrcp.f32 %v1417_v7 }
 0x39c   :  { %v1477_v12 = vsel %vm1476_vm4, %v1451_v10, %v1447_v9 }
 0x39d   :  { %v1697_v13 = vpop.eup %1696  ;;  %v1479_v16 = vsel %vm1478_vm5, %v1455_v11, %v1477_v12 }
 0x39e   :  { %v1699_v14 = vpop.eup %1698  ;;  %v1459_v15 = vrot.slane %v1697_v13, %v1446_v3 }
 0x39f   :  { %v1463_v17 = vrot.slane %v1699_v14, %v1446_v3 }
 0x3a0   :  { %v1481_v18 = vsel %vm1480_vm6, %v1459_v15, %v1479_v16 }
 0x3a1   :  { %v1701_v19 = vpop.eup %1700  ;;  %v1483_v22 = vsel %vm1482_vm7, %v1463_v17, %v1481_v18 }
 0x3a2   :  { %v1467_v20 = vrot.slane %v1701_v19, %v1446_v3  ;;  %v1703_v21 = vpop.eup %1702 }
 0x3a3   :  { %v1471_v24 = vrot.slane %v1703_v21, %v1446_v3 }
 0x3a4   :  { %v1485_v23 = vsel %vm1484_vm8, %v1467_v20, %v1483_v22 }
 0x3a5   :  { %v1705_v25 = vpop.eup %1704  ;;  %v1487_v27 = vsel %vm1486_vm9, %v1471_v24, %v1485_v23 }
 0x3a6   :  { %v1475_v26 = vrot.slane %v1705_v25, %v1446_v3 }
 0x3a8   :  { %v1489_v28 = vsel %vm1488_vm10, %v1475_v26, %v1487_v27 }
 0x3a9   :  { %1491 = vst.msk [vmem:[%s1923_s3] sm:$0xff] %vm38_vm0, %v1489_v28 }

// kernel: esbup_forward.7
= control target key start
LH: loop header
LB: loop body
LE: loop exit
PB: predicated region body
PF: predicated region fallthrough
CT: control target
= control target key end

     0   :  { %s4589_s0 = inlined_call_operand.hbm [shape: f32[2,16,18,18], index: 0, kind: input, shape index: {}]   ;;  %s4590_s1 = inlined_call_operand.hbm [shape: bf16[8,144], index: 1, kind: input, shape index: {}]   ;;  %s4591_s2 = inlined_call_operand.hbm [shape: f32[8,1], index: 2, kind: input, shape index: {}]   ;;  %s4592_s3 = inlined_call_operand.hbm [shape: f32[2,8,256], index: 3, kind: output, shape index: {}]  }
   0x1   :  { %4633 = sst [smem:[#allocation45_spill]] %s4590_s1 }
   0x2   :  { %4634 = sst [smem:[#allocation46_spill]] %s4591_s2 }
   0x3   :  { %8 = vsyncpa [#allocation3], 0 }
   0x4   :  { %10 = vsyncpa [#allocation3 + $0x1], 0 }
   0x5   :  { %11 = vsyncpa [#allocation6], 0 }
   0x6   :  { %12 = vsyncpa [#allocation4], 0 }
   0x7   :  { %14 = vsyncpa [#allocation4 + $0x1], 0  ;;  %s3062_s12 = smov 0   ;;  %s3064_s13 = smov 0  }
   0x8   :  { %s3066_s14 = smov 0   ;;  %s3068_s15 = smov 0  }
   0x9   :  { %s3070_s16 = smov 0   ;;  %s3072_s17 = smov 0  }
   0xa   :  { %s3074_s18 = smov 0   ;;  %s3076_s19 = smov 0  }
   0xb   :  { %s3078_s20 = smov 0   ;;  %s3080_s21 = smov 0  }
   0xc   :  { %s3082_s22 = smov 0  }
   0xd LB: > { %4635 = sst [smem:[#allocation12_spill]] %s2982_s12  ;;  %s2638_s23 = sadd.s32 4294967295, %s3022_s22   ;;  %s3022_s22 = sphi %s3082_s22, %s20_s22   ;;  %s3018_s21 = sphi %s3080_s21, %s4734_s21   ;;  %s3014_s20 = sphi %s3078_s20, %s4733_s20   ;;  %s3010_s19 = sphi %s3076_s19, %s4732_s19   ;;  %s3006_s18 = sphi %s3074_s18, %s4724_s18   ;;  %s3002_s17 = sphi %s3072_s17, %s4731_s17   ;;  %s2998_s16 = sphi %s3070_s16, %s4730_s16   ;;  %s2994_s15 = sphi %s3068_s15, %s4729_s15   ;;  %s2990_s14 = sphi %s3066_s14, %s4728_s14   ;;  %s2986_s13 = sphi %s3064_s13, %s4727_s13   ;;  %s2982_s12 = sphi %s3062_s12, %s4726_s12  }
   0xe   : > { %4636 = sst [smem:[#allocation13_spill]] %s3014_s20  ;;  %p46_p0 = scmp.ne.s32.totalorder %s3002_s17, %s2998_s16 }
   0xf   : > { %p47_p1 = scmp.eq.s32.totalorder %s3022_s22, 0  ;;  %p52_p2 = scmp.ne.s32.totalorder %s2998_s16, %s2994_s15 }
  0x10   : > { %s2639_s24 = sadd.s32 4294967294, %s3022_s22   ;;  %p3121_p3 = scmp.eq.s32.totalorder %s2638_s23, 0 }
  0x11   : > { %p3125_p4 = por %p47_p1, %p46_p0  ;;  %p119_p5 = scmp.ne.s32.totalorder %s2990_s14, %s2986_s13 }
  0x12   : > { %s4637_s25 = scalar_select %p3121_p3, 1, 0 }
  0x13   : > { %p3133_p6 = por %p3121_p3, %p52_p2  ;;  %p120_p7 = scmp.eq.s32.totalorder %s2638_s23, 3 }
  0x14   : > { %p125_p8 = scmp.ne.s32.totalorder %s2986_s13, %s2982_s12  ;;  %p126_p9 = scmp.eq.s32.totalorder %s2639_s24, 3 }
  0x15   : > { %s4639_s27 = scalar_select %p3133_p6, 1, 0 }
  0x16   : > { %p3139_p10 = por %p120_p7, %p119_p5  ;;  %p2640_p11 = scmp.ge.s32.totalorder %s3022_s22, 1 }
  0x17   : > { %p3144_p12 = por %p126_p9, %p125_p8  ;;  %p133_p13 = scmp.lt.s32.totalorder %s3022_s22, 5 }
  0x18   : > { %s4640_s28 = scalar_select %p3139_p10, 1, 0 }
  0x19   : > { %s4641_s29 = scalar_select %p3144_p12, 1, 0 }
  0x1a   : > { %p3149_p0 = pnand %p2640_p11, %p133_p13  ;;  %s3024_s4 = smov [#allocation5]  }
  0x1b   : > { %4642 = sst [smem:[#allocation14_spill]] %s4641_s29  ;;  %s146_s5 = sshll.u32 %s3024_s4, 4  ;;  %s147_s5 = int_to_ptr.vmem [resolvable:$true] %s146_s5 }
  0x1c   : > { %s4643_s30 = scalar_select %p3149_p0, 1, 0 }
  0x1d   : > { %p2681_p1 = pneg %p3149_p0  ;;  %p2698_p2 = scmp.lt.s32.totalorder %s3022_s22, 4 }
  0x1e   : > { %s3025_s8 = smov [#allocation7]   ;;  %s4646_s1 = sld [smem:[#allocation45_spill]] }
  0x1f   : > { %p3158_p5 = pnand %p2681_p1, %p3121_p3  ;;  %p3164_p7 = pnand %p2698_p2, %p3125_p4 }
  0x20   : > { %s157_s9 = sshll.u32 %s3025_s8, 4  ;;  %s158_s9 = int_to_ptr.vmem [resolvable:$true] %s157_s9 }
  0x21   : > { %s4645_s7 = scalar_select %p3164_p7, 1, 0 }
  0x22   : > { %p2812_p9 = pneg %p3158_p5 }
  0x24   : > { %s2810_s15 = scalar_lea.hbm %s4646_s1, 128 }
  0x25   : > { %p2811_p8 = scmp.ne.s32.totalorder %s4646_s1, %s2810_s15  ;;  %p2817_p4 = scmp.lt.u32.totalorder %s2810_s15, %s4646_s1 }
  0x27   : > { %p2813_p11 = pnand %p2812_p9, %p2811_p8 }
  0x29   : > { %p2814_p13 = pneg %p2813_p11 }
  0x2b   : > { %p2819_p1 = pnand %p2817_p4, %p2814_p13 }
  0x2d   : > { %2822 = shalt.err (!%p2819_p1)
}
  0x2e   : > { %s2823_s8 = scalar_lea.vmem %s147_s5, 128  ;;  %p2831_p3 = scmp.lt.s32.totalorder %s147_s5, %s147_s5 }
  0x2f   : > { %p2824_p2 = scmp.ne.s32.totalorder %s147_s5, %s2823_s8  ;;  %p2832_p6 = scmp.lt.s32.totalorder %s2823_s8, %s2823_s8 }
  0x31   : > { %p2826_p12 = pnand %p2824_p2, %p2812_p9  ;;  %p2833_p0 = por %p2832_p6, %p2831_p3 }
  0x33   : > { %p2827_p10 = pneg %p2826_p12 }
  0x35   : > { %p2834_p7 = pnand %p2833_p0, %p2827_p10 }
  0x37   : > { %2837 = shalt.err (!%p2834_p7)
}
  0x38   : > { %2684 = dma.hbm_to_vmem [thread:$0]  (!%p3158_p5), %s4646_s1, 128, %s147_s5, [#allocation6]  }
  0x39   : > { %s4647_s2 = sld [smem:[#allocation46_spill]] }
  0x3f   : > { %s2838_s24 = scalar_lea.hbm %s4647_s2, 128 }
  0x40   : > { %p2839_p12 = scmp.ne.s32.totalorder %s4647_s2, %s2838_s24  ;;  %p2845_p10 = scmp.lt.u32.totalorder %s2838_s24, %s4647_s2 }
  0x42   : > { %p2841_p3 = pnand %p2839_p12, %p2812_p9 }
  0x44   : > { %p2842_p6 = pneg %p2841_p3 }
  0x46   : > { %p2847_p0 = pnand %p2845_p10, %p2842_p6 }
  0x48   : > { %2850 = shalt.err (!%p2847_p0)
}
  0x49   : > { %s2851_s5 = scalar_lea.vmem %s158_s9, 128  ;;  %p2859_p13 = scmp.lt.s32.totalorder %s158_s9, %s158_s9 }
  0x4a   : > { %p2852_p7 = scmp.ne.s32.totalorder %s158_s9, %s2851_s5  ;;  %p2860_p4 = scmp.lt.s32.totalorder %s2851_s5, %s2851_s5 }
  0x4c   : > { %p2854_p8 = pnand %p2852_p7, %p2812_p9  ;;  %p2861_p1 = por %p2860_p4, %p2859_p13 }
  0x4e   : > { %p2855_p11 = pneg %p2854_p8 }
  0x50   : > { %p2862_p2 = pnand %p2861_p1, %p2855_p11 }
  0x52   : > { %2865 = shalt.err (!%p2862_p2)
}
  0x53   : > { %2687 = dma.hbm_to_vmem [thread:$0]  (!%p3158_p5), %s4647_s2, 128, %s158_s9, [#allocation6]  }
  0x54   : > { %s39_s29 = sadd.s32 1, %s3002_s17  ;;  %s29_s15 = sadd.s32 1, %s3014_s20 }
  0x55   : > { %s168_s23 = sand.u32 1, %s3002_s17   ;;  %p30_p9 = scmp.ge.s32.totalorder %s29_s15, 2 }
  0x56   : > { %s32_s24 = sadd.s32 1, %s3018_s21  ;;  %s109_s26 = sadd.s32 1, %s2990_s14 }
  0x57   : > { %s2666_s6 = smul.u32 384, %s168_s23  ;;  %s4736_s15 = smov (%p30_p9, %s29_s15), 0 }
  0x58   : > { %4648 = sst [smem:[#allocation15_spill]] %s4736_s15  ;;  %s4738_s24 = smov (!%p30_p9, %s32_s24), %s3018_s21 }
  0x59   : > { %p34_p12 = scmp.ge.s32.totalorder %s4738_s24, 2  ;;  %s2667_s4 = smul.u32 6144, %s3018_s21 }
  0x5a   : > { %s105_s8 = ssub.s32 %s3014_s20, %s4736_s15  ;;  %s172_s9 = scalar_lea.vmem [#allocation2], %s2666_s6 }
  0x5b   : > { %s4740_s24 = smov (%p34_p12, %s4738_s24), 0  ;;  %s179_s5 = sshll.u32 %s172_s9, 4  ;;  %s3230_s5 = int_to_ptr.vmem [resolvable:$true] %s179_s5 }
  0x5c   : > { %s36_s10 = ssub.s32 %s3018_s21, %s4740_s24  ;;  %s3228_s2 = scalar_lea.hbm %s4589_s0, %s2667_s4 }
  0x5d   : > { %p37_p5 = scmp.eq.s32.totalorder %s36_s10, 0  ;;  %s106_s12 = sor.u32 %s105_s8, %s36_s10 }
  0x5e   : > { %p107_p3 = scmp.eq.s32.totalorder %s106_s12, 0  ;;  %s3238_s6 = scalar_lea.sflag [#allocation3], %s168_s23 }
  0x5f   : > { %s3233_s15 = scalar_select %p37_p5, %s3002_s17, %s39_s29  }
  0x60   : > { %s3236_s20 = scalar_select %p107_p3, %s2990_s14, %s109_s26  }
  0x61   : > { %s2866_s9 = scalar_lea.hbm %s3228_s2, 6144  ;;  %p4649_p10 = scmp.ne.s32.totalorder %s4645_s7, 0 }
  0x62   : > { %p2867_p6 = scmp.ne.s32.totalorder %s3228_s2, %s2866_s9  ;;  %s2871_s12 = scalar_lea.hbm %s4589_s0, 12288 }
  0x63   : > { %p2868_p0 = pneg %p4649_p10  ;;  %p2872_p11 = scmp.lt.u32.totalorder %s3228_s2, %s4589_s0 }
  0x64   : > { %p2873_p13 = scmp.lt.u32.totalorder %s2871_s12, %s2866_s9  ;;  %p2875_p1 = scmp.lt.u32.totalorder %s2866_s9, %s3228_s2 }
  0x65   : > { %p2869_p7 = pnand %p2868_p0, %p2867_p6 }
  0x66   : > { %p2874_p4 = por %p2873_p13, %p2872_p11 }
  0x67   : > { %p2870_p8 = pneg %p2869_p7 }
  0x68   : > { %p2876_p2 = por %p2875_p1, %p2874_p4 }
  0x6a   : > { %p2877_p9 = pnand %p2876_p2, %p2870_p8 }
  0x6c   : > { %2880 = shalt.err (!%p2877_p9)
}
  0x6d   : > { %s2881_s29 = scalar_lea.vmem %s3230_s5, 6144  ;;  %s3026_s23 = smov [#allocation2]  }
  0x6e   : > { %p2882_p12 = scmp.ne.s32.totalorder %s3230_s5, %s2881_s29  ;;  %s2886_s26 = sshll.u32 %s3026_s23, 4  ;;  %s2887_s26 = int_to_ptr.vmem [resolvable:$false] %s2886_s26 }
  0x6f   : > { %s2888_s11 = scalar_lea.vmem %s2887_s26, 12288  ;;  %p2889_p6 = scmp.lt.s32.totalorder %s3230_s5, %s2887_s26 }
  0x70   : > { %p2884_p5 = pnand %p2882_p12, %p2868_p0  ;;  %p2890_p7 = scmp.lt.s32.totalorder %s2888_s11, %s2881_s29 }
  0x72   : > { %p2885_p3 = pneg %p2884_p5  ;;  %p2891_p11 = por %p2890_p7, %p2889_p6 }
  0x74   : > { %p2892_p13 = pnand %p2891_p11, %p2885_p3 }
  0x76   : > { %2895 = shalt.err (!%p2892_p13)
}
  0x77   : > { %s3027_s9 = smov 128   ;;  %s3028_s1 = smov 8  }
  0x78   : > { %2691 = dma.hbm_to_vmem [thread:$0]  (!%p4649_p10), %s3228_s2, 6144, %s3230_s5, %s3238_s6, %s3027_s9, %s3027_s9, %s3028_s1  }
  0x79   : > { %p4650_p0 = scmp.ne.s32.totalorder %s4643_s30, 0 }
  0x7b   : > { %191 = sbr.rel (%p4650_p0) target bundleno = 826 (0x33a), region = 32 }
  0x82   : > { %s193_s4 = sand.u32 1, %s2998_s16   ;;  %p4651_p8 = scmp.ne.s32.totalorder %s4639_s27, 0 }
  0x83   : > { %s2668_s12 = smul.u32 384, %s193_s4  ;;  %s194_s8 = scalar_lea.sflag [#allocation3], %s193_s4 }
  0x85   : > { %s197_s10 = scalar_lea.vmem [#allocation2], %s2668_s12 }
  0x86   : > { %2969 = dma.done.wait (%p4651_p8), %s194_s8, 6144  }
  0x87   : > { %2971 = vsyncadd (%p4651_p8), %s194_s8, 4294961152  ;;  %p4652_p4 = scmp.ne.s32.totalorder %s4637_s25, 0 }
  0x89   : > { %2973 = dma.done.wait (%p4652_p4), [#allocation6], 256  }
  0x8a   : > { %2975 = vsyncadd (%p4652_p4), [#allocation6], 4294967040  ;;  %s2649_s2 = sshll.u32 %s3006_s18, 3  ;;  %s3029_s25 = smov 127   ;;  %v3031_v48 = vmov 1983009808   ;;  %v283_v50 = vlaneseq }
  0x8b   : > { %s3278_s30 = scalar_lea.vmem %s197_s10, %s2649_s2 [#allocation2]  ;;  %s3030_s27 = smov 126   ;;  %v281_v49 = vunpack.c.l.s4 %v3031_v48  ;;  %v3032_v54 = vmov 1934713408   ;;  %vm453_vm0 = vcmask 130048   ;;  %vm457_vm1 = vcmask 261120  }
  0x8c   : > { %v3281_v0 = vld [vmem:[%s3278_s30 + $0x30] sm:$0xff]  ;;  %v236_v1 = vld [vmem:[%s3278_s30 + $0x38] sm:$0x3]  ;;  %v3285_v2 = vld [vmem:[%s3278_s30] sm:$0xff]  ;;  %v284_v52 = vshrl.u32 %v283_v50, 7  ;;  %v314_v55 = vunpack.c.l.s4 %v3032_v54  ;;  %s3033_s7 = smov 32  }
  0x8d   : > { %v3288_v3 = vpack.c.bf16 %v236_v1, %v3281_v0  ;;  %v232_v4 = vld [vmem:[%s3278_s30 + $0x8] sm:$0x3]  ;;  %v238_v6 = vld [vmem:[%s3278_s30 + $0x50] sm:$0x3]  ;;  %v3299_v8 = vld [vmem:[%s3278_s30 + $0x18] sm:$0xff]  ;;  %v282_v51 = vunpack.c.0.s8 %v281_v49  ;;  %s3034_s5 = smov 16  }
  0x8e   : > { %v3292_v5 = vld [vmem:[%s3278_s30 + $0x48] sm:$0xff]  ;;  %v3296_v7 = vpack.c.bf16 %v232_v4, %v3285_v2  ;;  %v234_v9 = vld [vmem:[%s3278_s30 + $0x20] sm:$0x3]  ;;  %v3313_v12 = vld [vmem:[%s3278_s30 + $0x78] sm:$0xff]  ;;  %v315_v62 = vunpack.c.0.s8 %v314_v55  ;;  %s3035_s6 = smov 64   ;;  %s3036_s29 = smov 48  }
  0x8f   : > { %496 = vrot.lane.b32.xlu1 %v3288_v3, %s3029_s25  ;;  %v3305_v10 = vpack.c.bf16 %v238_v6, %v3292_v5  ;;  %v3310_v11 = vpack.c.bf16 %v234_v9, %v3299_v8  ;;  %v242_v13 = vld [vmem:[%s3278_s30 + $0x80] sm:$0x3]  ;;  %v240_v15 = vld [vmem:[%s3278_s30 + $0x68] sm:$0x3]  ;;  %v246_v19 = vld [vmem:[%s3278_s30 + $0xb0] sm:$0x3]  ;;  %v3435_v58 = vsub.s32 %v282_v51, %v284_v52  ;;  %v2654_v9 = vpack.c.bf16 %v3313_v12, %v3299_v8 }
  0x90   : > { %492 = vrot.lane.b32.xlu0 %v3296_v7, %s3029_s25  ;;  %v3317_v14 = vld [vmem:[%s3278_s30 + $0x60] sm:$0xff]  ;;  %v3323_v16 = vpack.c.bf16 %v242_v13, %v3313_v12  ;;  %v3331_v18 = vld [vmem:[%s3278_s30 + $0xa8] sm:$0xff]  ;;  %v3335_v20 = vld [vmem:[%s3278_s30 + $0x90] sm:$0xff]  ;;  %v971_v53 = vshll.u32 %v3296_v7, 16  ;;  %v969_v57 = vshrl.u32 %v3296_v7, 16  ;;  %s3037_s23 = smov 80  }
  0x91   : > { %v3328_v17 = vpack.c.bf16 %v240_v15, %v3317_v14  ;;  %v244_v21 = vld [vmem:[%s3278_s30 + $0x98] sm:$0x3]  ;;  %v3341_v22 = vpack.c.bf16 %v246_v19, %v3331_v18  ;;  %v250_v25 = vld [vmem:[%s3278_s30 + $0xe0] sm:$0x3]  ;;  %v248_v27 = vld [vmem:[%s3278_s30 + $0xc8] sm:$0x3]  ;;  %v2650_v63 = vpack.c.bf16 %v3317_v14, %v3285_v2  ;;  %v2651_v1 = vpack.c.bf16 %v3335_v20, %v3281_v0 }
  0x92   : > { %v3346_v23 = vpack.c.bf16 %v244_v21, %v3335_v20  ;;  %v3349_v24 = vld [vmem:[%s3278_s30 + $0xd8] sm:$0xff]  ;;  %v3353_v26 = vld [vmem:[%s3278_s30 + $0xc0] sm:$0xff]  ;;  %v3367_v30 = vld [vmem:[%s3278_s30 + $0x108] sm:$0xff]  ;;  %v976_v56 = vshrl.u32 %v3310_v11, 16  ;;  %v978_v59 = vshll.u32 %v3310_v11, 16  ;;  %v973_v60 = vrot.slane %v971_v53, 1 }
  0x93   : > { %498 = vrot.lane.b32.xlu1 %v3305_v10, %s3029_s25  ;;  %v3359_v28 = vpack.c.bf16 %v250_v25, %v3349_v24  ;;  %v3364_v29 = vpack.c.bf16 %v248_v27, %v3353_v26  ;;  %v254_v31 = vld [vmem:[%s3278_s30 + $0x110] sm:$0x3]  ;;  %v252_v33 = vld [vmem:[%s3278_s30 + $0xf8] sm:$0x3]  ;;  %v258_v37 = vld [vmem:[%s3278_s30 + $0x140] sm:$0x3]  ;;  %v2655_v13 = vpack.c.bf16 %v3331_v18, %v3292_v5  ;;  %v286_v0 = vrot.slane %v2650_v63, %v3435_v58 }
  0x94   : > { %494 = vrot.lane.b32.xlu0 %v3310_v11, %s3029_s25  ;;  %v3371_v32 = vld [vmem:[%s3278_s30 + $0xf0] sm:$0xff]  ;;  %v3377_v34 = vpack.c.bf16 %v254_v31, %v3367_v30  ;;  %v257_v36 = vld [vmem:[%s3278_s30 + $0x138] sm:$0xff]  ;;  %v255_v38 = vld [vmem:[%s3278_s30 + $0x120] sm:$0xff]  ;;  %v992_v61 = vshll.u32 %v3305_v10, 16  ;;  %v294_v14 = vrot.slane %v2651_v1, %v3435_v58  ;;  %v354_v8 = vrot.slane %v2654_v9, %v3435_v58  ;;  %s3039_s26 = smov 96   ;;  %s3040_s11 = smov 112  }
  0x95   : > { %v3382_v35 = vpack.c.bf16 %v252_v33, %v3371_v32  ;;  %v256_v39 = vld [vmem:[%s3278_s30 + $0x128] sm:$0x3]  ;;  %v3390_v40 = vpack.c.bf16 %v258_v37, %v257_v36  ;;  %v262_v43 = vld [vmem:[%s3278_s30 + $0x170] sm:$0x3]  ;;  %v260_v45 = vld [vmem:[%s3278_s30 + $0x158] sm:$0x3]  ;;  %v2652_v4 = vpack.c.bf16 %v255_v38, %v3353_v26  ;;  %v2656_v15 = vpack.c.bf16 %v257_v36, %v3349_v24 }
  0x96   : > { %v3394_v41 = vpack.c.bf16 %v256_v39, %v255_v38  ;;  %v261_v42 = vld [vmem:[%s3278_s30 + $0x168] sm:$0xff]  ;;  %v259_v44 = vld [vmem:[%s3278_s30 + $0x150] sm:$0xff]  ;;  %v362_v12 = vrot.slane %v2655_v13, %v3435_v58  ;;  %v980_v21 = vrot.slane %v978_v59, 1  ;;  %v3463_v24 = vsub.s32 %v315_v62, %v284_v52  ;;  %s225_s9 = sand.u32 1, %s2986_s13   ;;  %s2662_s4 = sshll.u32 %s3010_s19, 1 }
  0x97   : > { %502 = vrot.lane.b32.xlu1 %v3323_v16, %s3029_s25  ;;  %v3402_v46 = vpack.c.bf16 %v262_v43, %v261_v42  ;;  %v3406_v47 = vpack.c.bf16 %v260_v45, %v259_v44  ;;  %v2653_v6 = vpack.c.bf16 %v259_v44, %v3371_v32  ;;  %v2657_v2 = vpack.c.bf16 %v261_v42, %v3367_v30  ;;  %s2648_s1 = sshll.u32 %s225_s9, 3  ;;  %s2530_s12 = sadd.s32 %s3006_s18, %s2662_s4 }
  0x98   : > { %500 = vrot.lane.b32.xlu0 %v3328_v17, %s3029_s25  ;;  %v302_v19 = vrot.slane %v2652_v4, %v3435_v58  ;;  %v370_v5 = vrot.slane %v2656_v15, %v3435_v58  ;;  %v311_v25 = vcombine.low %v286_v0, %v294_v14  ;;  %v985_v27 = vshll.u32 %v3288_v3, 16  ;;  %s2663_s8 = sshll.u32 %s2530_s12, 7  ;;  %s227_s10 = scalar_lea.vmem [#allocation8], %s2648_s1 }
  0x99   : > { %v310_v20 = vrot.slane %v2653_v6, %v3435_v58  ;;  %v378_v18 = vrot.slane %v2657_v2, %v3435_v58  ;;  %v379_v30 = vcombine.low %v354_v8, %v362_v12  ;;  %v983_v32 = vshrl.u32 %v3288_v3, 16  ;;  %s2534_s2 = sshll.u32 %s227_s10, 4  ;;  %s2519_s18 = scalar_lea.sflag [#allocation4], %s225_s9  ;;  %s4529_s2 = int_to_ptr.vmem [resolvable:$true] %s2534_s2 }
  0x9a   : > { %v319_v33 = vrot.slane %v311_v25, %v3463_v24  ;;  %v990_v37 = vshrl.u32 %v3305_v10, 16  ;;  %v994_v38 = vrot.slane %v992_v61, 1  ;;  %v3476_v43 = vor.u32 %v980_v21, %v976_v56  ;;  %s2896_s19 = scalar_lea.vmem %s4529_s2, 128  ;;  %p4719_p1 = scmp.ne.s32.totalorder %s4640_s28, 0 }
  0x9b   : > { %506 = vrot.lane.b32.xlu1 %v3341_v22, %s3029_s25  ;;  %v327_v26 = vcombine.low %v302_v19, %v310_v20  ;;  %v395_v31 = vcombine.low %v370_v5, %v378_v18  ;;  %v387_v39 = vrot.slane %v379_v30, %v3463_v24  ;;  %v3478_v44 = vor.u32 %v973_v60, %v969_v57  ;;  %p2897_p10 = scmp.ne.s32.totalorder %s4529_s2, %s2896_s19 }
  0x9c   : > { %504 = vrot.lane.b32.xlu0 %v3346_v23, %s3029_s25  ;;  %v1006_v45 = vshll.u32 %v3323_v16, 16  ;;  %v987_v49 = vrot.slane %v985_v27, 1  ;;  %v1004_v50 = vshrl.u32 %v3323_v16, 16  ;;  %v997_v51 = vshrl.u32 %v3328_v17, 16 }
  0x9d   : > { %v335_v36 = vrot.slane %v327_v26, %v3463_v24  ;;  %v403_v42 = vrot.slane %v395_v31, %v3463_v24  ;;  %v999_v53 = vshll.u32 %v3328_v17, 16  ;;  %v312_v56 = vcombine.high %v286_v0, %v294_v14  ;;  %p2898_p2 = pnand %p2897_p10, %p4719_p1 }
  0x9e   : > { %v3496_v57 = vor.u32 %v994_v38, %v990_v37  ;;  %v328_v59 = vcombine.high %v302_v19, %v310_v20  ;;  %v380_v60 = vcombine.high %v354_v8, %v362_v12  ;;  %v396_v61 = vcombine.high %v370_v5, %v378_v18 }
  0x9f   : > { %510 = vrot.lane.b32.xlu1 %v3359_v28, %s3029_s25  ;;  %v3481_v48 = vcombine.low %v319_v33, %v335_v36  ;;  %v3487_v52 = vcombine.low %v387_v39, %v403_v42  ;;  %v3492_v54 = vcombine.high %v319_v33, %v335_v36  ;;  %v3494_v55 = vcombine.high %v387_v39, %v403_v42  ;;  %p2899_p9 = pneg %p2898_p2 }
  0xa0   : > { %508 = vrot.lane.b32.xlu0 %v3364_v29, %s3029_s25  ;;  %v1008_v62 = vrot.slane %v1006_v45, 1  ;;  %v1020_v63 = vshll.u32 %v3341_v22, 16  ;;  %v326_v4 = vrot.slane %v312_v56, %v3463_v24  ;;  %v3504_v6 = vor.u32 %v987_v49, %v983_v32 }
  0xa1   : > { %4653 = vst [vmem:[#allocation16_spill] sm:$0xff] %v3481_v48  ;;  %4654 = vst [vmem:[#allocation17_spill] sm:$0xff] %v3487_v52  ;;  %v342_v9 = vrot.slane %v328_v59, %v3463_v24  ;;  %v394_v13 = vrot.slane %v380_v60, %v3463_v24  ;;  %v410_v15 = vrot.slane %v396_v61, %v3463_v24  ;;  %v1001_v2 = vrot.slane %v999_v53, 1 }
  0xa2   : > { %v1013_v0 = vshll.u32 %v3346_v23, 16  ;;  %v424_v14 = vshrl.u32 %v3492_v54, 16  ;;  %v425_v19 = vshrl.u32 %v3494_v55, 16  ;;  %v3518_v12 = vor.u32 %v1008_v62, %v1004_v50 }
  0xa3   : > { %514 = vrot.lane.b32.xlu1 %v3377_v34, %s3029_s25  ;;  %v3514_v20 = vcombine.low %v326_v4, %v342_v9  ;;  %v3516_v8 = vcombine.low %v394_v13, %v410_v15  ;;  %v1018_v5 = vshrl.u32 %v3341_v22, 16  ;;  %v1011_v18 = vshrl.u32 %v3346_v23, 16 }
  0xa4   : > { %512 = vrot.lane.b32.xlu0 %v3382_v35, %s3029_s25  ;;  %v3522_v21 = vpack.i.b16 %v425_v19, %v424_v14  ;;  %v1022_v25 = vrot.slane %v1020_v63, 1  ;;  %v1034_v26 = vshll.u32 %v3359_v28, 16  ;;  %v1027_v27 = vshll.u32 %v3364_v29, 16 }
  0xa5   : > { %4655 = vst [vmem:[#allocation18_spill] sm:$0xff] %v3514_v20  ;;  %4656 = vst [vmem:[#allocation19_spill] sm:$0xff] %v3516_v8  ;;  %v3532_v31 = vor.u32 %v1001_v2, %v997_v51  ;;  %v1015_v32 = vrot.slane %v1013_v0, 1  ;;  %v430_v33 = vshrl.u32 %v3514_v20, 16  ;;  %v431_v36 = vshrl.u32 %v3516_v8, 16 }
  0xa6   : > { %4657 = vst [vmem:[#allocation20_spill] sm:$0xff] %v3522_v21  ;;  %v1032_v37 = vshrl.u32 %v3359_v28, 16  ;;  %v1025_v38 = vshrl.u32 %v3364_v29, 16  ;;  %v3542_v42 = vor.u32 %v1022_v25, %v1018_v5  ;;  %v1036_v45 = vrot.slane %v1034_v26, 1 }
  0xa7   : > { %518 = vrot.lane.b32.xlu1 %v3390_v40, %s3029_s25  ;;  %v3538_v39 = vpack.i.b16 %v431_v36, %v430_v33  ;;  %v1029_v49 = vrot.slane %v1027_v27, 1  ;;  %v1048_v50 = vshll.u32 %v3377_v34, 16  ;;  %v3547_v51 = vor.u32 %v1015_v32, %v1011_v18 }
  0xa8   : > { %516 = vrot.lane.b32.xlu0 %v3394_v41, %s3029_s25  ;;  %v1041_v53 = vshll.u32 %v3382_v35, 16  ;;  %v3550_v56 = vcombine.high %v326_v4, %v342_v9  ;;  %v3552_v59 = vcombine.high %v394_v13, %v410_v15  ;;  %v1046_v60 = vshrl.u32 %v3377_v34, 16 }
  0xa9   : > { %4658 = vst [vmem:[#allocation21_spill] sm:$0xff] %v3538_v39  ;;  %v1039_v61 = vshrl.u32 %v3382_v35, 16  ;;  %v3560_v63 = vor.u32 %v1036_v45, %v1032_v37  ;;  %v3562_v2 = vor.u32 %v1029_v49, %v1025_v38  ;;  %v1050_v0 = vrot.slane %v1048_v50, 1 }
  0xaa   : > { %4659 = vst [vmem:[#allocation22_spill] sm:$0xff] %v3550_v56  ;;  %4660 = vst [vmem:[#allocation23_spill] sm:$0xff] %v3552_v59  ;;  %v1062_v4 = vshll.u32 %v3390_v40, 16  ;;  %v1043_v9 = vrot.slane %v1041_v53, 1  ;;  %v1055_v13 = vshll.u32 %v3394_v41, 16  ;;  %v436_v15 = vshrl.u32 %v3550_v56, 16 }
  0xab   : > { %522 = vrot.lane.b32.xlu1 %v3402_v46, %s3029_s25  ;;  %v437_v14 = vshrl.u32 %v3552_v59, 16  ;;  %v3574_v5 = vor.u32 %v1050_v0, %v1046_v60  ;;  %v1060_v18 = vshrl.u32 %v3390_v40, 16  ;;  %v1076_v26 = vshll.u32 %v3402_v46, 16 }
  0xac   : > { %520 = vrot.lane.b32.xlu0 %v3406_v47, %s3029_s25  ;;  %v1064_v25 = vrot.slane %v1062_v4, 1  ;;  %v3580_v27 = vor.u32 %v1043_v9, %v1039_v61  ;;  %v1053_v32 = vshrl.u32 %v3394_v41, 16  ;;  %v1057_v33 = vrot.slane %v1055_v13, 1 }
  0xad   : > { %v3570_v19 = vpack.i.b16 %v437_v14, %v436_v15  ;;  %v1069_v36 = vshll.u32 %v3406_v47, 16  ;;  %v1074_v38 = vshrl.u32 %v3402_v46, 16  ;;  %v1078_v45 = vrot.slane %v1076_v26, 1 }
  0xae   : > { %v3586_v37 = vor.u32 %v1064_v25, %v1060_v18  ;;  %v3591_v49 = vor.u32 %v1057_v33, %v1053_v32  ;;  %v1067_v50 = vshrl.u32 %v3406_v47, 16  ;;  %v3637_v18 = vrot.slane %v3310_v11, 1 }
  0xaf   : > { %732 = vrot.lane.b32.xlu1 %v3310_v11, %s3030_s27  ;;  %4661 = vst [vmem:[#allocation24_spill] sm:$0xff] %v3570_v19  ;;  %v1071_v53 = vrot.slane %v1069_v36, 1  ;;  %v3596_v60 = vor.u32 %v1078_v45, %v1074_v38  ;;  %v3642_v25 = vrot.slane %v3296_v7, 1  ;;  %v3647_v33 = vrot.slane %v3305_v10, 1 }
  0xb0   : > { %730 = vrot.lane.b32.xlu0 %v3296_v7, %s3030_s27  ;;  %4662 = vst [vmem:[#allocation25_spill] sm:$0xff] %v3637_v18  ;;  %v3652_v11 = vrot.slane %v3288_v3, 1  ;;  %v3657_v7 = vrot.slane %v3323_v16, 1  ;;  %vm460_vm2 = vcmask 392192   ;;  %vm463_vm3 = vcmask 523264  }
  0xb1   : > { %v3600_v61 = vor.u32 %v1071_v53, %v1067_v50  ;;  %4663 = vst [vmem:[#allocation26_spill] sm:$0xff] %v3642_v25  ;;  %4664 = vst [vmem:[#allocation27_spill] sm:$0xff] %v3647_v33  ;;  %vm466_vm4 = vcmask 654336   ;;  %vm469_vm5 = vcmask 785408   ;;  %vm472_vm6 = vcmask 916480  }
  0xb2   : > { %4665 = vst [vmem:[#allocation28_spill] sm:$0xff] %v3652_v11  ;;  %4666 = vst [vmem:[#allocation29_spill] sm:$0xff] %v3657_v7 }
  0xb3   : > { %736 = vrot.lane.b32.xlu1 %v3305_v10, %s3030_s27  ;;  %v3662_v10 = vrot.slane %v3328_v17, 1 }
  0xb4   : > { %734 = vrot.lane.b32.xlu0 %v3288_v3, %s3030_s27  ;;  %v3667_v3 = vrot.slane %v3341_v22, 1 }
  0xb5   : > { %4667 = vst [vmem:[#allocation30_spill] sm:$0xff] %v3662_v10 }
  0xb7   : > { %740 = vrot.lane.b32.xlu1 %v3323_v16, %s3030_s27  ;;  %v3672_v16 = vrot.slane %v3346_v23, 1 }
  0xb8   : > { %738 = vrot.lane.b32.xlu0 %v3328_v17, %s3030_s27  ;;  %v3677_v17 = vrot.slane %v3359_v28, 1 }
  0xba   : > { %4668 = vst [vmem:[#allocation31_spill] sm:$0xff] %v3677_v17 }
  0xbb   : > { %744 = vrot.lane.b32.xlu1 %v3341_v22, %s3030_s27  ;;  %v3682_v22 = vrot.slane %v3364_v29, 1 }
  0xbc   : > { %742 = vrot.lane.b32.xlu0 %v3346_v23, %s3030_s27 }
  0xbd   : > { %4669 = vst [vmem:[#allocation32_spill] sm:$0xff] %v3682_v22 }
  0xbf   : > { %748 = vrot.lane.b32.xlu1 %v3359_v28, %s3030_s27  ;;  %v3687_v28 = vrot.slane %v3377_v34, 1 }
  0xc0   : > { %746 = vrot.lane.b32.xlu0 %v3364_v29, %s3030_s27 }
  0xc1   : > { %4670 = vst [vmem:[#allocation33_spill] sm:$0xff] %v3687_v28 }
  0xc3   : > { %752 = vrot.lane.b32.xlu1 %v3377_v34, %s3030_s27 }
  0xc4   : > { %750 = vrot.lane.b32.xlu0 %v3382_v35, %s3030_s27 }
  0xc7   : > { %756 = vrot.lane.b32.xlu1 %v3390_v40, %s3030_s27 }
  0xc8   : > { %754 = vrot.lane.b32.xlu0 %v3394_v41, %s3030_s27 }
  0xcb   : > { %760 = vrot.lane.b32.xlu1 %v3402_v46, %s3030_s27 }
  0xcc   : > { %758 = vrot.lane.b32.xlu0 %v3406_v47, %s3030_s27 }
  0xcf   : > { %1288 = vrot.lane.b32.xlu1 %v3476_v43, %s3029_s25 }
  0xd0   : > { %1286 = vrot.lane.b32.xlu0 %v3478_v44, %s3029_s25 }
  0xd3   : > { %1292 = vrot.lane.b32.xlu1 %v3496_v57, %s3029_s25 }
  0xd4   : > { %1290 = vrot.lane.b32.xlu0 %v3504_v6, %s3029_s25 }
  0xd7   : > { %1296 = vrot.lane.b32.xlu1 %v3518_v12, %s3029_s25 }
  0xd8   : > { %1294 = vrot.lane.b32.xlu0 %v3532_v31, %s3029_s25 }
  0xdb   : > { %1300 = vrot.lane.b32.xlu1 %v3542_v42, %s3029_s25 }
  0xdc   : > { %1298 = vrot.lane.b32.xlu0 %v3547_v51, %s3029_s25 }
  0xdf   : > { %1304 = vrot.lane.b32.xlu1 %v3560_v63, %s3029_s25 }
  0xe0   : > { %1302 = vrot.lane.b32.xlu0 %v3562_v2, %s3029_s25 }
  0xe3   : > { %1308 = vrot.lane.b32.xlu1 %v3574_v5, %s3029_s25 }
  0xe4   : > { %1306 = vrot.lane.b32.xlu0 %v3580_v27, %s3029_s25 }
  0xe7   : > { %1312 = vrot.lane.b32.xlu1 %v3586_v37, %s3029_s25 }
  0xe8   : > { %1310 = vrot.lane.b32.xlu0 %v3591_v49, %s3029_s25 }
  0xeb   : > { %1316 = vrot.lane.b32.xlu1 %v3596_v60, %s3029_s25 }
  0xec   : > { %1314 = vrot.lane.b32.xlu0 %v3600_v61, %s3029_s25 }
  0xef   : > { %1526 = vrot.lane.b32.xlu1 %v3476_v43, %s3030_s27 }
  0xf0   : > { %1524 = vrot.lane.b32.xlu0 %v3478_v44, %s3030_s27 }
  0xf3   : > { %1530 = vrot.lane.b32.xlu1 %v3496_v57, %s3030_s27 }
  0xf4   : > { %1528 = vrot.lane.b32.xlu0 %v3504_v6, %s3030_s27 }
  0xf7   : > { %1534 = vrot.lane.b32.xlu1 %v3518_v12, %s3030_s27 }
  0xf8   : > { %1532 = vrot.lane.b32.xlu0 %v3532_v31, %s3030_s27 }
  0xfb   : > { %1538 = vrot.lane.b32.xlu1 %v3542_v42, %s3030_s27 }
  0xfc   : > { %1536 = vrot.lane.b32.xlu0 %v3547_v51, %s3030_s27 }
  0xff   : > { %1542 = vrot.lane.b32.xlu1 %v3560_v63, %s3030_s27 }
 0x100   : > { %1540 = vrot.lane.b32.xlu0 %v3562_v2, %s3030_s27 }
 0x101   : > { %v497_v0 = vpop.permute.xlu1 %496 }
 0x102   : > { %v493_v4 = vpop.permute.xlu0 %492 }
 0x103   : > { %1546 = vrot.lane.b32.xlu1 %v3574_v5, %s3030_s27 }
 0x104   : > { %1544 = vrot.lane.b32.xlu0 %v3580_v27, %s3030_s27 }
 0x105   : > { %v499_v9 = vpop.permute.xlu1 %498 }
 0x106   : > { %v495_v13 = vpop.permute.xlu0 %494 }
 0x107   : > { %1550 = vrot.lane.b32.xlu1 %v3586_v37, %s3030_s27 }
 0x108   : > { %1548 = vrot.lane.b32.xlu0 %v3591_v49, %s3030_s27 }
 0x109   : > { %v503_v15 = vpop.permute.xlu1 %502 }
 0x10a   : > { %v501_v14 = vpop.permute.xlu0 %500  ;;  %v608_v59 = vcombine.low %v495_v13, %v503_v15 }
 0x10b   : > { %1554 = vrot.lane.b32.xlu1 %v3596_v60, %s3030_s27  ;;  %v540_v39 = vcombine.low %v493_v4, %v501_v14 }
 0x10c   : > { %1552 = vrot.lane.b32.xlu0 %v3600_v61, %s3030_s27 }
 0x10d   : > { %v507_v26 = vpop.permute.xlu1 %506 }
 0x10e   : > { %v505_v32 = vpop.permute.xlu0 %504  ;;  %v616_v30 = vcombine.low %v499_v9, %v507_v26 }
 0x10f   : > { %1986 = vrot.lane.b32.xlu1 %v3637_v18, %s3029_s25  ;;  %v548_v1 = vcombine.low %v497_v0, %v505_v32  ;;  %v3690_v0 = vrot.slane %v3382_v35, 1  ;;  %v3747_v32 = vrot.slane %v3402_v46, 1 }
 0x110   : > { %1984 = vrot.lane.b32.xlu0 %v3642_v25, %s3029_s25  ;;  %v3693_v9 = vrot.slane %v616_v30, %v3435_v58 }
 0x111   : > { %v511_v36 = vpop.permute.xlu1 %510  ;;  %4671 = vst [vmem:[#allocation34_spill] sm:$0xff] %v3690_v0  ;;  %v3696_v29 = vrot.slane %v548_v1, %v3435_v58  ;;  %v3715_v1 = vrot.slane %v608_v59, %v3435_v58  ;;  %v3736_v59 = vrot.slane %v3394_v41, 1  ;;  %4676 = vst [vmem:[#allocation39_spill] sm:$0xff] %v3747_v32 }
 0x112   : > { %v509_v38 = vpop.permute.xlu0 %508 }
 0x113   : > { %1990 = vrot.lane.b32.xlu1 %v3647_v33, %s3029_s25  ;;  %4673 = vst [vmem:[#allocation36_spill] sm:$0xff] %v3736_v59 }
 0x114   : > { %1988 = vrot.lane.b32.xlu0 %v3652_v11, %s3029_s25 }
 0x115   : > { %v515_v45 = vpop.permute.xlu1 %514 }
 0x116   : > { %v513_v50 = vpop.permute.xlu0 %512 }
 0x117   : > { %1994 = vrot.lane.b32.xlu1 %v3657_v7, %s3029_s25 }
 0x118   : > { %1992 = vrot.lane.b32.xlu0 %v3662_v10, %s3029_s25 }
 0x119   : > { %v519_v53 = vpop.permute.xlu1 %518 }
 0x11a   : > { %v517_v62 = vpop.permute.xlu0 %516  ;;  %v624_v19 = vcombine.low %v511_v36, %v519_v53 }
 0x11b   : > { %1998 = vrot.lane.b32.xlu1 %v3667_v3, %s3029_s25  ;;  %v556_v56 = vcombine.low %v509_v38, %v517_v62  ;;  %v3758_v38 = vrot.slane %v3406_v47, 1 }
 0x11c   : > { %1996 = vrot.lane.b32.xlu0 %v3672_v16, %s3029_s25  ;;  %v3699_v62 = vrot.slane %v624_v19, %v3435_v58  ;;  %v3718_v19 = vrot.slane %v540_v39, %v3435_v58 }
 0x11d   : > { %v523_v23 = vpop.permute.xlu1 %522  ;;  %v3707_v34 = vrot.slane %v556_v56, %v3435_v58  ;;  %v640_v56 = vcombine.low %v3715_v1, %v3693_v9  ;;  %4679 = vst [vmem:[#allocation42_spill] sm:$0xff] %v3758_v38 }
 0x11e   : > { %v632_v21 = vcombine.low %v515_v45, %v523_v23  ;;  %v521_v20 = vpop.permute.xlu0 %520  ;;  %4672 = vst [vmem:[#allocation35_spill] sm:$0xff] %v3718_v19  ;;  %v572_v39 = vcombine.low %v3718_v19, %v3696_v29 }
 0x11f   : > { %v564_v8 = vcombine.low %v513_v50, %v521_v20  ;;  %2002 = vrot.lane.b32.xlu1 %v3677_v17, %s3029_s25  ;;  %v3750_v36 = vrot.slane %v640_v56, %v3463_v24 }
 0x120   : > { %v3702_v20 = vrot.slane %v632_v21, %v3435_v58  ;;  %2000 = vrot.lane.b32.xlu0 %v3682_v22, %s3029_s25  ;;  %v3753_v41 = vrot.slane %v572_v39, %v3463_v24 }
 0x121   : > { %v3710_v35 = vrot.slane %v564_v8, %v3435_v58  ;;  %v3712_v30 = vpop.permute.xlu1 %732  ;;  %v3727_v8 = vrot.slane %v3390_v40, 1  ;;  %4677 = vst [vmem:[#allocation40_spill] sm:$0xff] %v3750_v36 }
 0x122   : > { %v656_v21 = vcombine.low %v3699_v62, %v3702_v20  ;;  %v731_v4 = vpop.permute.xlu0 %730  ;;  %4678 = vst [vmem:[#allocation41_spill] sm:$0xff] %v3753_v41 }
 0x123   : > { %v588_v13 = vcombine.low %v3707_v34, %v3710_v35  ;;  %2006 = vrot.lane.b32.xlu1 %v3687_v28, %s3029_s25 }
 0x124   : > { %2004 = vrot.lane.b32.xlu0 %v3690_v0, %s3029_s25  ;;  %v3739_v14 = vrot.slane %v656_v21, %v3463_v24 }
 0x125   : > { %v737_v15 = vpop.permute.xlu1 %736  ;;  %v3742_v26 = vrot.slane %v588_v13, %v3463_v24 }
 0x126   : > { %4674 = vst [vmem:[#allocation37_spill] sm:$0xff] %v3739_v14  ;;  %v735_v40 = vpop.permute.xlu0 %734  ;;  %v3762_v50 = vcombine.low %v3750_v36, %v3739_v14 }
 0x127   : > { %4675 = vst [vmem:[#allocation38_spill] sm:$0xff] %v3742_v26  ;;  %2010 = vrot.lane.b32.xlu1 %v3727_v8, %s3029_s25  ;;  %v3766_v46 = vcombine.low %v3753_v41, %v3742_v26 }
 0x128   : > { %2008 = vrot.lane.b32.xlu0 %v3736_v59, %s3029_s25  ;;  %4680 = vst [vmem:[#allocation43_spill] sm:$0xff] %v3762_v50 }
 0x129   : > { %v741_v45 = vpop.permute.xlu1 %740  ;;  %4681 = vst [vmem:[#allocation44_spill] sm:$0xff] %v3766_v46 }
 0x12a   : > { %v739_v53 = vpop.permute.xlu0 %738  ;;  %v846_v26 = vcombine.low %v3712_v30, %v741_v45 }
 0x12b   : > { %2014 = vrot.lane.b32.xlu1 %v3747_v32, %s3029_s25  ;;  %v778_v50 = vcombine.low %v731_v4, %v739_v53 }
 0x12c   : > { %2012 = vrot.lane.b32.xlu0 %v3758_v38, %s3029_s25  ;;  %v3816_v4 = vrot.slane %v846_v26, %v3435_v58 }
 0x12d   : > { %v745_v23 = vpop.permute.xlu1 %744 }
 0x12e   : > { %v743_v21 = vpop.permute.xlu0 %742 }
 0x12f   : > { %2224 = vrot.lane.b32.xlu1 %v3637_v18, %s3030_s27  ;;  %v786_v14 = vcombine.low %v735_v40, %v743_v21  ;;  %v418_v21 = vshrl.u32 %v3481_v48, 16  ;;  %v1164_v48 = vcombine.low %v3476_v43, %v3518_v12  ;;  %v657_v43 = vcombine.high %v3699_v62, %v3702_v20  ;;  %v4683_v62 = vld [vmem:[#allocation35_spill] sm:$0xff] }
 0x130   : > { %2222 = vrot.lane.b32.xlu0 %v3642_v25, %s3030_s27  ;;  %v854_v25 = vcombine.low %v737_v15, %v745_v23  ;;  %v589_v12 = vcombine.high %v3707_v34, %v3710_v35  ;;  %v573_v20 = vcombine.high %v4683_v62, %v3696_v29  ;;  %v4685_v35 = vld [vmem:[#allocation43_spill] sm:$0xff] }
 0x131   : > { %v749_v13 = vpop.permute.xlu1 %748  ;;  %v3797_v15 = vrot.slane %v786_v14, %v3435_v58  ;;  %v3819_v14 = vrot.slane %v778_v50, %v3435_v58 }
 0x132   : > { %v747_v56 = vpop.permute.xlu0 %746  ;;  %v603_v29 = vrot.slane %v589_v12, %v3463_v24  ;;  %v587_v12 = vrot.slane %v573_v20, %v3463_v24 }
 0x133   : > { %2228 = vrot.lane.b32.xlu1 %v3647_v33, %s3030_s27  ;;  %v810_v26 = vcombine.low %v3819_v14, %v3797_v15 }
 0x134   : > { %2226 = vrot.lane.b32.xlu0 %v3652_v11, %s3030_s27 }
 0x135   : > { %v753_v39 = vpop.permute.xlu1 %752  ;;  %v3851_v23 = vrot.slane %v810_v26, %v3463_v24  ;;  %v1112_v26 = vcombine.low %v3562_v2, %v3591_v49  ;;  %v1180_v49 = vcombine.low %v3560_v63, %v3586_v37  ;;  %v641_v37 = vcombine.high %v3715_v1, %v3693_v9  ;;  %v4693_v2 = vld [vmem:[#allocation40_spill] sm:$0xff] }
 0x136   : > { %v751_v36 = vpop.permute.xlu0 %750  ;;  %v671_v1 = vrot.slane %v657_v43, %v3463_v24  ;;  %v4689_v43 = vld [vmem:[#allocation20_spill] sm:$0xff] }
 0x137   : > { %2232 = vrot.lane.b32.xlu1 %v3657_v7, %s3030_s27 }
 0x138   : > { %2230 = vrot.lane.b32.xlu0 %v3662_v10, %s3030_s27  ;;  %v3794_v10 = vrot.slane %v854_v25, %v3435_v58 }
 0x139   : > { %v757_v47 = vpop.permute.xlu1 %756 }
 0x13a   : > { %v755_v18 = vpop.permute.xlu0 %754  ;;  %v862_v41 = vcombine.low %v749_v13, %v757_v47  ;;  %v419_v47 = vshrl.u32 %v3487_v52, 16 }
 0x13b   : > { %2236 = vrot.lane.b32.xlu1 %v3667_v3, %s3030_s27  ;;  %v794_v11 = vcombine.low %v747_v56, %v755_v18  ;;  %v1096_v56 = vcombine.low %v3478_v44, %v3532_v31  ;;  %v1120_v44 = vcombine.low %v3580_v27, %v3600_v61  ;;  %v1188_v61 = vcombine.low %v3574_v5, %v3596_v60 }
 0x13c   : > { %2234 = vrot.lane.b32.xlu0 %v3672_v16, %s3030_s27  ;;  %v3800_v40 = vrot.slane %v862_v41, %v3435_v58  ;;  %v420_v31 = vpack.i.b16 %v419_v47, %v418_v21  ;;  %v680_v21 = vshrl.u32 %v4685_v35, 16  ;;  %v3925_v5 = vrot.slane %v1164_v48, %v3435_v58 }
 0x13d   : > { %v761_v33 = vpop.permute.xlu1 %760  ;;  %v3913_v63 = vrot.slane %v1120_v44, %v3435_v58  ;;  %v3941_v48 = vrot.slane %v1180_v49, %v3435_v58  ;;  %v3944_v44 = vrot.slane %v1188_v61, %v3435_v58 }
 0x13e   : > { %v870_v7 = vcombine.low %v753_v39, %v761_v33  ;;  %v759_v46 = vpop.permute.xlu0 %758  ;;  %v3808_v33 = vrot.slane %v794_v11, %v3435_v58 }
 0x13f   : > { %v802_v19 = vcombine.low %v751_v36, %v759_v46  ;;  %2240 = vrot.lane.b32.xlu1 %v3677_v17, %s3030_s27  ;;  %v1212_v20 = vcombine.low %v3941_v48, %v3944_v44 }
 0x140   : > { %v3803_v18 = vrot.slane %v870_v7, %v3435_v58  ;;  %2238 = vrot.lane.b32.xlu0 %v3682_v22, %s3030_s27  ;;  %v4629_v22 = vmov 0  }
 0x141   : > { %v3811_v30 = vrot.slane %v802_v19, %v3435_v58  ;;  %v3813_v25 = vpop.permute.xlu1 %1288  ;;  %v878_v19 = vcombine.low %v3816_v4, %v3794_v10  ;;  %2476 = vmatprep.subr.bf16.mxu0 %v4629_v22  ;;  %2806 = vset.pattern.permute.xlu1 %v4629_v22 }
 0x142   : > { %v894_v7 = vcombine.low %v3800_v40, %v3803_v18  ;;  %v3823_v36 = vpop.permute.xlu0 %1286  ;;  %2807 = vset.pattern.permute.xlu0 %v4629_v22 }
 0x143   : > { %v826_v11 = vcombine.low %v3808_v33, %v3811_v30  ;;  %2244 = vrot.lane.b32.xlu1 %v3687_v28, %s3030_s27  ;;  %v3848_v53 = vrot.slane %v878_v19, %v3463_v24  ;;  %v1104_v19 = vcombine.low %v3504_v6, %v3547_v51  ;;  %v3886_v6 = vrot.slane %v1096_v56, %v3435_v58  ;;  %v4686_v56 = vld [vmem:[#allocation19_spill] sm:$0xff] }
 0x144   : > { %2242 = vrot.lane.b32.xlu0 %v3690_v0, %s3030_s27  ;;  %v3838_v45 = vrot.slane %v894_v7, %v3463_v24  ;;  %v1172_v51 = vcombine.low %v3496_v57, %v3542_v42  ;;  %v4682_v57 = vpack.i.b16 %v3494_v55, %v3492_v54  ;;  %v3908_v42 = vrot.slane %v1112_v26, %v3435_v58  ;;  %v4684_v55 = vld [vmem:[#allocation44_spill] sm:$0xff] }
 0x145   : > { %v3835_v41 = vpop.permute.xlu1 %1292  ;;  %v3841_v50 = vrot.slane %v826_v11, %v3463_v24  ;;  %v3895_v27 = vrot.slane %v1104_v19, %v3435_v58  ;;  %v679_v34 = vshrl.u32 %v4684_v55, 16  ;;  %v4687_v19 = vld [vmem:[#allocation18_spill] sm:$0xff] }
 0x146   : > { %v3843_v46 = vpop.permute.xlu0 %1290  ;;  %v3863_v39 = vcombine.low %v3848_v53, %v3838_v45  ;;  %v3930_v47 = vrot.slane %v1172_v51, %v3435_v58  ;;  %v4688_v26 = vpack.i.b16 %v4686_v56, %v4687_v19  ;;  %v655_v51 = vrot.slane %v641_v37, %v3463_v24  ;;  %v4690_v56 = vld [vmem:[#allocation38_spill] sm:$0xff]  ;;  %v4691_v19 = vld [vmem:[#allocation41_spill] sm:$0xff] }
 0x147   : > { %2248 = vrot.lane.b32.xlu1 %v3727_v8, %s3030_s27  ;;  %v3867_v7 = vcombine.low %v3851_v23, %v3841_v50  ;;  %v1128_v9 = vcombine.low %v3886_v6, %v3895_v27  ;;  %v681_v62 = vpack.i.b16 %v680_v21, %v679_v34  ;;  %v605_v49 = vcombine.high %v4691_v19, %v4690_v56  ;;  %v4694_v34 = vld [vmem:[#allocation21_spill] sm:$0xff] }
 0x148   : > { %2246 = vrot.lane.b32.xlu0 %v3736_v59, %s3030_s27  ;;  %v1196_v35 = vcombine.low %v3925_v5, %v3930_v47  ;;  %v3960_v37 = vcombine.low %v587_v12, %v603_v29  ;;  %v675_v17 = vcombine.high %v655_v51, %v671_v1 }
 0x149   : > { %v3857_v13 = vpop.permute.xlu1 %1296  ;;  %v3968_v21 = vrot.slane %v1128_v9, %v3463_v24  ;;  %v685_v19 = vshrl.u32 %v605_v49, 16 }
 0x14a   : > { %v3869_v11 = vpop.permute.xlu0 %1294  ;;  %v691_v9 = vshrl.u32 %v3960_v37, 16 }
 0x14b   : > { %2252 = vrot.lane.b32.xlu1 %v3747_v32, %s3030_s27 }
 0x14c   : > { %2250 = vrot.lane.b32.xlu0 %v3758_v38, %s3030_s27  ;;  %v3958_v38 = vcombine.low %v655_v51, %v671_v1  ;;  %s4527_s27 = scalar_lea.hbm %s4592_s3, %s2663_s8 }
 0x14d   : > { %v3881_v52 = vpop.permute.xlu1 %1300 }
 0x14e   : > { %v3890_v0 = vpop.permute.xlu0 %1298  ;;  %v690_v1 = vpack.i.b16 %v3958_v38, %v3960_v37 }
 0x14f   : > { %441 = vrot.lane.b32.xlu1 %v4682_v57, %s3033_s7  ;;  %v1342_v28 = vcombine.low %v3843_v46, %v3890_v0  ;;  %v1334_v0 = vcombine.low %v3823_v36, %v3869_v11  ;;  %v4695_v46 = vld [vmem:[#allocation23_spill] sm:$0xff] }
 0x150   : > { %439 = vrot.lane.b32.xlu0 %v420_v31, %s3034_s5  ;;  %v1144_v31 = vcombine.low %v3908_v42, %v3913_v63 }
 0x151   : > { %v3920_v54 = vpop.permute.xlu1 %1304 }
 0x152   : > { %v3927_v60 = vpop.permute.xlu0 %1302 }
 0x153   : > { %445 = vrot.lane.b32.xlu1 %v4688_v26, %s3035_s6  ;;  %v4692_v26 = vld [vmem:[#allocation37_spill] sm:$0xff] }
 0x154   : > { %443 = vrot.lane.b32.xlu0 %v4689_v43, %s3036_s29  ;;  %v673_v61 = vcombine.high %v4693_v2, %v4692_v26  ;;  %v3971_v2 = vrot.slane %v1144_v31, %v3463_v24  ;;  %v692_v31 = vshrl.u32 %v3958_v38, 16 }
 0x155   : > { %v1309_v57 = vpop.permute.xlu1 %1308 }
 0x156   : > { %v1307_v55 = vpop.permute.xlu0 %1306  ;;  %v684_v56 = vpack.i.b16 %v673_v61, %v605_v49  ;;  %v686_v26 = vshrl.u32 %v673_v61, 16  ;;  %v3983_v49 = vrot.slane %v1196_v35, %v3463_v24  ;;  %v4696_v61 = vld [vmem:[#allocation22_spill] sm:$0xff] }
 0x157   : > { %700 = vrot.lane.b32.xlu1 %v681_v62, %s3034_s5  ;;  %v1410_v62 = vcombine.low %v3835_v41, %v3881_v52  ;;  %v1402_v52 = vcombine.low %v3813_v25, %v3857_v13  ;;  %v4001_v25 = vcombine.low %v3968_v21, %v3971_v2  ;;  %v4007_v13 = vrot.slane %v1342_v28, %v3435_v58 }
 0x158   : > { %447 = vrot.lane.b32.xlu0 %v4694_v34, %s3037_s23  ;;  %v4697_v34 = vpack.i.b16 %v4695_v46, %v4696_v61  ;;  %v687_v59 = vpack.i.b16 %v686_v26, %v685_v19  ;;  %v4018_v19 = vrot.slane %v1334_v0, %v3435_v58  ;;  %v879_v26 = vcombine.high %v3816_v4, %v3794_v10 }
 0x159   : > { %v1313_v43 = vpop.permute.xlu1 %1312  ;;  %v4004_v36 = vrot.slane %v1410_v62, %v3435_v58  ;;  %v4015_v51 = vrot.slane %v1402_v52, %v3435_v58  ;;  %v811_v62 = vcombine.high %v3819_v14, %v3797_v15  ;;  %v698_v10 = vshrl.u32 %v675_v17, 16 }
 0x15a   : > { %v1311_v32 = vpop.permute.xlu0 %1310  ;;  %v1418_v41 = vcombine.low %v3920_v54, %v1313_v43  ;;  %v607_v43 = vcombine.high %v587_v12, %v603_v29  ;;  %v918_v29 = vshrl.u32 %v3863_v39, 16  ;;  %v911_v61 = vcombine.high %v3848_v53, %v3838_v45 }
 0x15b   : > { %702 = vrot.lane.b32.xlu1 %v684_v56, %s3033_s7  ;;  %v3996_v56 = vrot.slane %v1212_v20, %v3463_v24  ;;  %v1350_v35 = vcombine.low %v3927_v60, %v1311_v32  ;;  %v895_v20 = vcombine.high %v3800_v40, %v3803_v18  ;;  %v693_v60 = vpack.i.b16 %v692_v31, %v691_v9  ;;  %v4698_v40 = vld [vmem:[#allocation24_spill] sm:$0xff] }
 0x15c   : > { %449 = vrot.lane.b32.xlu0 %v4697_v34, %s3039_s26  ;;  %v1434_v12 = vcombine.low %v4015_v51, %v4004_v36  ;;  %v696_v0 = vpack.i.b16 %v675_v17, %v607_v43 }
 0x15d   : > { %v1317_v22 = vpop.permute.xlu1 %1316  ;;  %v4031_v38 = vrot.slane %v1350_v35, %v3435_v58  ;;  %v4057_v31 = vcombine.low %v3983_v49, %v3996_v56  ;;  %v909_v4 = vrot.slane %v895_v20, %v3463_v24  ;;  %v825_v20 = vrot.slane %v811_v62, %v3463_v24 }
 0x15e   : > { %v1426_v11 = vcombine.low %v1309_v57, %v1317_v22  ;;  %v1315_v54 = vpop.permute.xlu0 %1314  ;;  %v4021_v22 = vrot.slane %v1418_v41, %v3435_v58  ;;  %v1366_v57 = vcombine.low %v4018_v19, %v4007_v13  ;;  %v697_v41 = vshrl.u32 %v607_v43, 16 }
 0x15f   : > { %v1358_v32 = vcombine.low %v1307_v55, %v1315_v54  ;;  %704 = vrot.lane.b32.xlu1 %v687_v59, %s3036_s29  ;;  %v827_v59 = vcombine.high %v3808_v33, %v3811_v30  ;;  %v917_v30 = vshrl.u32 %v3867_v7, 16  ;;  %v4073_v34 = vrot.slane %v1434_v12, %v3463_v24 }
 0x160   : > { %v4024_v28 = vrot.slane %v1426_v11, %v3435_v58  ;;  %451 = vrot.lane.b32.xlu0 %v4698_v40, %s3040_s11  ;;  %v4076_v35 = vrot.slane %v1366_v57, %v3463_v24  ;;  %v843_v54 = vcombine.high %v3851_v23, %v3841_v50  ;;  %v893_v43 = vrot.slane %v879_v26, %v3463_v24 }
 0x161   : > { %v4034_v18 = vrot.slane %v1358_v32, %v3435_v58  ;;  %v4036_v55 = vpop.permute.xlu1 %1526  ;;  %v841_v15 = vrot.slane %v827_v59, %v3463_v24  ;;  %v919_v17 = vpack.i.b16 %v918_v29, %v917_v30  ;;  %v1235_v32 = vshrl.u32 %v4001_v25, 16 }
 0x162   : > { %v1450_v37 = vcombine.low %v4021_v22, %v4024_v28  ;;  %v4045_v33 = vpop.permute.xlu0 %1524  ;;  %v699_v50 = vpack.i.b16 %v698_v10, %v697_v41  ;;  %v1236_v40 = vshrl.u32 %v4057_v31, 16  ;;  %v922_v29 = vpack.i.b16 %v911_v61, %v843_v54 }
 0x163   : > { %v1382_v9 = vcombine.low %v4031_v38, %v4034_v18  ;;  %708 = vrot.lane.b32.xlu1 %v693_v60, %s3037_s23  ;;  %v844_v23 = vcombine.low %v825_v20, %v841_v15  ;;  %v923_v12 = vshrl.u32 %v843_v54, 16  ;;  %v924_v57 = vshrl.u32 %v911_v61, 16 }
 0x164   : > { %v4060_v52 = vrot.slane %v1450_v37, %v3463_v24  ;;  %706 = vrot.lane.b32.xlu0 %v690_v1, %s3035_s6  ;;  %v912_v1 = vcombine.low %v893_v43, %v909_v4  ;;  %v1197_v37 = vcombine.high %v3925_v5, %v3930_v47  ;;  %v1129_v30 = vcombine.high %v3886_v6, %v3895_v27 }
 0x165   : > { %v4066_v14 = vrot.slane %v1382_v9, %v3463_v24  ;;  %v4068_v46 = vpop.permute.xlu1 %1530  ;;  %v1213_v26 = vcombine.high %v3941_v48, %v3944_v44  ;;  %v1145_v62 = vcombine.high %v3908_v42, %v3913_v63  ;;  %v1237_v5 = vpack.i.b16 %v1236_v40, %v1235_v32 }
 0x166   : > { %v4078_v11 = vpop.permute.xlu0 %1528  ;;  %v4087_v45 = vcombine.low %v4073_v34, %v4060_v52  ;;  %v928_v41 = vpack.i.b16 %v912_v1, %v844_v23  ;;  %v1161_v6 = vcombine.high %v3968_v21, %v3971_v2  ;;  %v925_v47 = vpack.i.b16 %v924_v57, %v923_v12  ;;  %v4700_v12 = vld [vmem:[#allocation25_spill] sm:$0xff] }
 0x167   : > { %710 = vrot.lane.b32.xlu1 %v696_v0, %s3039_s26  ;;  %v4091_v53 = vcombine.low %v4076_v35, %v4066_v14  ;;  %v929_v48 = vshrl.u32 %v844_v23, 16  ;;  %v930_v44 = vshrl.u32 %v912_v1, 16  ;;  %v1229_v42 = vcombine.high %v3983_v49, %v3996_v56 }
 0x168   : > { %938 = vrot.lane.b32.xlu0 %v919_v17, %s3034_s5  ;;  %v1143_v63 = vrot.slane %v1129_v30, %v3463_v24  ;;  %v1159_v10 = vrot.slane %v1145_v62, %v3463_v24  ;;  %v1211_v61 = vrot.slane %v1197_v37, %v3463_v24  ;;  %v1227_v17 = vrot.slane %v1213_v26, %v3463_v24  ;;  %v4701_v37 = vld [vmem:[#allocation30_spill] sm:$0xff]  ;;  %v4703_v62 = vld [vmem:[#allocation27_spill] sm:$0xff] }
 0x169   : > { %v4095_v60 = vpop.permute.xlu1 %1534  ;;  %v1472_v9 = vpack.i.b16 %v4087_v45, %v4091_v53  ;;  %v1241_v2 = vshrl.u32 %v1161_v6, 16  ;;  %v931_v32 = vpack.i.b16 %v930_v44, %v929_v48  ;;  %v913_v49 = vcombine.high %v893_v43, %v909_v4  ;;  %v4702_v30 = vld [vmem:[#allocation26_spill] sm:$0xff]  ;;  %v4704_v4 = vld [vmem:[#allocation28_spill] sm:$0xff]  ;;  %v4705_v43 = vld [vmem:[#allocation31_spill] sm:$0xff] }
 0x16a   : > { %v4098_v59 = vpop.permute.xlu0 %1532  ;;  %v1242_v56 = vshrl.u32 %v1229_v42, 16  ;;  %v1240_v23 = vpack.i.b16 %v1229_v42, %v1161_v6  ;;  %v4131_v1 = vcombine.low %v1143_v63, %v1159_v10  ;;  %v4133_v40 = vcombine.low %v1211_v61, %v1227_v17  ;;  %v4707_v6 = vld [vmem:[#allocation32_spill] sm:$0xff] }
 0x16b   : > { %712 = vrot.lane.b32.xlu1 %v699_v50, %s3040_s11  ;;  %v845_v50 = vcombine.high %v825_v20, %v841_v15  ;;  %v1794_v26 = vcombine.low %v4702_v30, %v4701_v37  ;;  %v1802_v15 = vcombine.low %v4704_v4, %v3672_v16  ;;  %v1878_v20 = vcombine.low %v4705_v43, %v3727_v8 }
 0x16c   : > { %940 = vrot.lane.b32.xlu0 %v922_v29, %s3033_s7  ;;  %v4699_v29 = vld [vmem:[#allocation29_spill] sm:$0xff]  ;;  %v1243_v37 = vpack.i.b16 %v1242_v56, %v1241_v2  ;;  %v1163_v30 = vcombine.high %v1143_v63, %v1159_v10  ;;  %v1231_v16 = vcombine.high %v1211_v61, %v1227_v17  ;;  %v4708_v10 = vld [vmem:[#allocation39_spill] sm:$0xff]  ;;  %v1572_v43 = vcombine.low %v4045_v33, %v4098_v59 }
 0x16d   : > { %v4112_v0 = vpop.permute.xlu1 %1538  ;;  %v1862_v57 = vcombine.low %v4700_v12, %v4699_v29  ;;  %v934_v42 = vpack.i.b16 %v913_v49, %v845_v50  ;;  %v935_v29 = vshrl.u32 %v845_v50, 16  ;;  %v936_v12 = vshrl.u32 %v913_v49, 16  ;;  %v4709_v61 = vld [vmem:[#allocation33_spill] sm:$0xff] }
 0x16e   : > { %v4116_v27 = vpop.permute.xlu0 %1536  ;;  %v4155_v8 = vrot.slane %v1794_v26, %v3435_v58  ;;  %v1648_v2 = vcombine.low %v4068_v46, %v4112_v0  ;;  %v4164_v50 = vrot.slane %v1802_v15, %v3435_v58  ;;  %v4167_v63 = vrot.slane %v1878_v20, %v3435_v58  ;;  %v4711_v46 = vld [vmem:[#allocation34_spill] sm:$0xff] }
 0x16f   : > { %944 = vrot.lane.b32.xlu1 %v928_v41, %s3035_s6  ;;  %v1870_v41 = vcombine.low %v4703_v62, %v3667_v3  ;;  %v1247_v3 = vshrl.u32 %v4131_v1, 16  ;;  %v4152_v62 = vrot.slane %v1862_v57, %v3435_v58  ;;  %v1886_v17 = vcombine.low %v4709_v61, %v4708_v10  ;;  %v4710_v57 = vld [vmem:[#allocation42_spill] sm:$0xff] }
 0x170   : > { %942 = vrot.lane.b32.xlu0 %v925_v47, %s3036_s29  ;;  %v1580_v49 = vcombine.low %v4078_v11, %v4116_v27  ;;  %v1818_v0 = vcombine.low %v4711_v46, %v4710_v57  ;;  %v1640_v26 = vcombine.low %v4036_v55, %v4095_v60  ;;  %v937_v15 = vpack.i.b16 %v936_v12, %v935_v29 }
 0x171   : > { %v4126_v21 = vpop.permute.xlu1 %1542  ;;  %v4158_v4 = vrot.slane %v1870_v41, %v3435_v58  ;;  %v1246_v11 = vpack.i.b16 %v4133_v40, %v4131_v1  ;;  %v1252_v20 = vpack.i.b16 %v1231_v16, %v1163_v30  ;;  %v1253_v60 = vshrl.u32 %v1163_v30, 16 }
 0x172   : > { %v4128_v54 = vpop.permute.xlu0 %1540  ;;  %v1383_v33 = vcombine.high %v4031_v38, %v4034_v18  ;;  %v4195_v59 = vrot.slane %v1580_v49, %v3435_v58  ;;  %v1474_v29 = vshrl.u32 %v4087_v45, 16  ;;  %v1435_v12 = vcombine.high %v4015_v51, %v4004_v36 }
 0x173   : > { %1256 = vrot.lane.b32.xlu1 %v1237_v5, %s3034_s5  ;;  %v4706_v5 = vld [vmem:[#allocation36_spill] sm:$0xff]  ;;  %v1367_v38 = vcombine.high %v4018_v19, %v4007_v13  ;;  %v4208_v18 = vrot.slane %v1572_v43, %v3435_v58  ;;  %v1399_v10 = vcombine.high %v4076_v35, %v4066_v14  ;;  %v1467_v61 = vcombine.high %v4073_v34, %v4060_v52 }
 0x174   : > { %946 = vrot.lane.b32.xlu0 %v931_v32, %s3037_s23  ;;  %v1810_v47 = vcombine.low %v4707_v6, %v4706_v5  ;;  %v1248_v32 = vshrl.u32 %v4133_v40, 16  ;;  %v1451_v5 = vcombine.high %v4021_v22, %v4024_v28  ;;  %v4188_v6 = vrot.slane %v1648_v2, %v3435_v58 }
 0x175   : > { %v1547_v48 = vpop.permute.xlu1 %1546  ;;  %v4199_v22 = vrot.slane %v1640_v26, %v3435_v58  ;;  %v4220_v36 = vrot.slane %v1383_v33, %v3463_v24  ;;  %v1604_v13 = vcombine.low %v4208_v18, %v4195_v59  ;;  %v1449_v49 = vrot.slane %v1435_v12, %v3463_v24 }
 0x176   : > { %v1545_v44 = vpop.permute.xlu0 %1544  ;;  %v1249_v27 = vpack.i.b16 %v1248_v32, %v1247_v3  ;;  %v4238_v26 = vrot.slane %v1886_v17, %v3435_v58  ;;  %v1894_v33 = vcombine.low %v4152_v62, %v4158_v4 }
 0x177   : > { %1258 = vrot.lane.b32.xlu1 %v1240_v23, %s3033_s7  ;;  %v4174_v23 = vrot.slane %v1810_v47, %v3435_v58  ;;  %v1254_v47 = vshrl.u32 %v1231_v16, 16  ;;  %v1612_v52 = vrot.slane %v1604_v13, %v3463_v24 }
 0x178   : > { %948 = vrot.lane.b32.xlu0 %v934_v42, %s3039_s26 }
 0x179   : > { %v1551_v56 = vpop.permute.xlu1 %1550  ;;  %v1255_v46 = vpack.i.b16 %v1254_v47, %v1253_v60 }
 0x17a   : > { %v1549_v41 = vpop.permute.xlu0 %1548  ;;  %v1656_v55 = vcombine.low %v4126_v21, %v1551_v56  ;;  %v1473_v21 = vshrl.u32 %v4091_v53, 16  ;;  %v1381_v56 = vrot.slane %v1367_v38, %v3463_v24  ;;  %v1673_v38 = vcombine.high %v4199_v22, %v4188_v6 }
 0x17b   : > { %1260 = vrot.lane.b32.xlu1 %v1243_v37, %s3036_s29  ;;  %v1588_v1 = vcombine.low %v4128_v54, %v1549_v41  ;;  %v4212_v37 = vrot.slane %v1451_v5, %v3463_v24  ;;  %v4241_v41 = vrot.slane %v1818_v0, %v3435_v58  ;;  %v1480_v5 = vshrl.u32 %v1467_v61, 16 }
 0x17c   : > { %950 = vrot.lane.b32.xlu0 %v937_v15, %s3040_s11  ;;  %v1663_v3 = vrot.slane %v1656_v55, %v3435_v58  ;;  %v1475_v2 = vpack.i.b16 %v1474_v29, %v1473_v21  ;;  %v1400_v43 = vcombine.low %v1381_v56, %v4220_v36  ;;  %v1826_v55 = vcombine.low %v4155_v8, %v4164_v50 }
 0x17d   : > { %v1555_v40 = vpop.permute.xlu1 %1554  ;;  %v1595_v51 = vrot.slane %v1588_v1, %v3435_v58  ;;  %v1468_v17 = vcombine.low %v1449_v49, %v4212_v37  ;;  %v1910_v1 = vcombine.low %v4167_v63, %v4238_v26 }
 0x17e   : > { %v1664_v28 = vcombine.low %v1547_v48, %v1555_v40  ;;  %v1553_v42 = vpop.permute.xlu0 %1552  ;;  %v1672_v48 = vcombine.low %v4199_v22, %v4188_v6  ;;  %v1842_v40 = vcombine.low %v4174_v23, %v4241_v41  ;;  %v1485_v13 = vshrl.u32 %v1400_v43, 16 }
 0x17f   : > { %v1596_v54 = vcombine.low %v1545_v44, %v1553_v42  ;;  %1264 = vrot.lane.b32.xlu1 %v1249_v27, %s3037_s23  ;;  %v1478_v27 = vpack.i.b16 %v1467_v61, %v1399_v10  ;;  %v1484_v21 = vpack.i.b16 %v1468_v17, %v1400_v43  ;;  %v4286_v22 = vrot.slane %v1894_v33, %v3463_v24 }
 0x180   : > { %v1671_v32 = vrot.slane %v1664_v28, %v3435_v58  ;;  %1262 = vrot.lane.b32.xlu0 %v1246_v11, %s3035_s6  ;;  %v1680_v15 = vrot.slane %v1672_v48, %v3463_v24  ;;  %v1850_v6 = vrot.slane %v1842_v40, %v3463_v24 }
 0x181   : > { %v1603_v19 = vrot.slane %v1596_v54, %v3435_v58  ;;  %v4226_v44 = vpop.permute.xlu1 %1986 }
 0x182   : > { %v1688_v30 = vcombine.low %v1663_v3, %v1671_v32  ;;  %v4228_v16 = vpop.permute.xlu0 %1984  ;;  %v1689_v47 = vcombine.high %v1663_v3, %v1671_v32  ;;  %v1605_v3 = vcombine.high %v4208_v18, %v4195_v59  ;;  %v1834_v32 = vrot.slane %v1826_v55, %v3463_v24 }
 0x183   : > { %v1620_v57 = vcombine.low %v1595_v51, %v1603_v19  ;;  %1266 = vrot.lane.b32.xlu1 %v1252_v20, %s3039_s26  ;;  %v1479_v20 = vshrl.u32 %v1399_v10, 16  ;;  %v1621_v28 = vcombine.high %v1595_v51, %v1603_v19 }
 0x184   : > { %v1696_v14 = vrot.slane %v1688_v30, %v3463_v24  ;;  %1494 = vrot.lane.b32.xlu0 %v1475_v2, %s3034_s5  ;;  %v1486_v30 = vshrl.u32 %v1468_v17, 16  ;;  %v1703_v19 = vrot.slane %v1689_v47, %v3463_v24  ;;  %v1918_v2 = vrot.slane %v1910_v1, %v3463_v24 }
 0x185   : > { %v1628_v34 = vrot.slane %v1620_v57, %v3463_v24  ;;  %v4248_v35 = vpop.permute.xlu1 %1990  ;;  %v1481_v48 = vpack.i.b16 %v1480_v5, %v1479_v20  ;;  %v1635_v59 = vrot.slane %v1621_v28, %v3463_v24  ;;  %v1469_v20 = vcombine.high %v1449_v49, %v4212_v37 }
 0x186   : > { %v4252_v11 = vcombine.low %v1680_v15, %v1696_v14  ;;  %v4254_v0 = vpop.permute.xlu0 %1988  ;;  %v1705_v10 = vcombine.high %v1680_v15, %v1696_v14  ;;  %v1487_v17 = vpack.i.b16 %v1486_v30, %v1485_v13  ;;  %v1619_v5 = vrot.slane %v1605_v3, %v3463_v24 }
 0x187   : > { %v4258_v60 = vcombine.low %v1612_v52, %v1628_v34  ;;  %1268 = vrot.lane.b32.xlu1 %v1255_v46, %s3040_s11  ;;  %v1637_v18 = vcombine.high %v1612_v52, %v1628_v34  ;;  %v1687_v46 = vrot.slane %v1673_v38, %v3463_v24  ;;  %v4296_v15 = vcombine.low %v1834_v32, %v1850_v6 }
 0x188   : > { %1496 = vrot.lane.b32.xlu0 %v1478_v27, %s3033_s7  ;;  %v1712_v12 = vshrl.u32 %v4252_v11, 16  ;;  %v1401_v27 = vcombine.high %v1381_v56, %v4220_v36  ;;  %v4299_v14 = vcombine.low %v4286_v22, %v1918_v2  ;;  %v1638_v52 = vcombine.low %v1619_v5, %v1635_v59 }
 0x189   : > { %v4268_v42 = vpop.permute.xlu1 %1994  ;;  %v1711_v29 = vshrl.u32 %v4258_v60, 16  ;;  %v1710_v51 = vpack.i.b16 %v4252_v11, %v4258_v60  ;;  %v1706_v55 = vcombine.low %v1687_v46, %v1703_v19  ;;  %v1716_v33 = vpack.i.b16 %v1705_v10, %v1637_v18 }
 0x18a   : > { %v4274_v54 = vpop.permute.xlu0 %1992  ;;  %v1717_v1 = vshrl.u32 %v1637_v18, 16  ;;  %v1718_v36 = vshrl.u32 %v1705_v10, 16  ;;  %v1490_v37 = vpack.i.b16 %v1469_v20, %v1401_v27  ;;  %v1491_v49 = vshrl.u32 %v1401_v27, 16 }
 0x18b   : > { %1500 = vrot.lane.b32.xlu1 %v1484_v21, %s3035_s6  ;;  %v1713_v57 = vpack.i.b16 %v1712_v12, %v1711_v29  ;;  %v1492_v40 = vshrl.u32 %v1469_v20, 16  ;;  %v1933_v47 = vshrl.u32 %v4296_v15, 16  ;;  %v1723_v29 = vshrl.u32 %v1638_v52, 16 }
 0x18c   : > { %1498 = vrot.lane.b32.xlu0 %v1481_v48, %s3036_s29  ;;  %v1719_v21 = vpack.i.b16 %v1718_v36, %v1717_v1  ;;  %v1724_v12 = vshrl.u32 %v1706_v55, 16  ;;  %v1934_v38 = vshrl.u32 %v4299_v14, 16  ;;  %v1827_v48 = vcombine.high %v4155_v8, %v4164_v50 }
 0x18d   : > { %v1999_v61 = vpop.permute.xlu1 %1998  ;;  %v1493_v30 = vpack.i.b16 %v1492_v40, %v1491_v49  ;;  %v1895_v3 = vcombine.high %v4152_v62, %v4158_v4  ;;  %v1911_v10 = vcombine.high %v4167_v63, %v4238_v26  ;;  %v1843_v18 = vcombine.high %v4174_v23, %v4241_v41 }
 0x18e   : > { %v1997_v43 = vpop.permute.xlu0 %1996  ;;  %v1639_v27 = vcombine.high %v1619_v5, %v1635_v59  ;;  %v1725_v20 = vpack.i.b16 %v1724_v12, %v1723_v29  ;;  %v2100_v62 = vcombine.low %v4226_v44, %v4268_v42  ;;  %v1722_v63 = vpack.i.b16 %v1706_v55, %v1638_v52 }
 0x18f   : > { %1732 = vrot.lane.b32.xlu1 %v1713_v57, %s3034_s5  ;;  %v1707_v57 = vcombine.high %v1687_v46, %v1703_v19  ;;  %v2040_v8 = vcombine.low %v4254_v0, %v1997_v43  ;;  %v1859_v26 = vcombine.high %v1834_v32, %v1850_v6  ;;  %v1841_v23 = vrot.slane %v1827_v48, %v3463_v24 }
 0x190   : > { %1502 = vrot.lane.b32.xlu0 %v1487_v17, %s3037_s23  ;;  %v2108_v17 = vcombine.low %v4248_v35, %v1999_v61  ;;  %v2032_v41 = vcombine.low %v4228_v16, %v4274_v54  ;;  %v1857_v35 = vrot.slane %v1843_v18, %v3463_v24  ;;  %v1909_v0 = vrot.slane %v1895_v3, %v3463_v24 }
 0x191   : > { %v4301_v34 = vpop.permute.xlu1 %2002  ;;  %v1925_v19 = vrot.slane %v1911_v10, %v3463_v24  ;;  %v1927_v42 = vcombine.high %v4286_v22, %v1918_v2  ;;  %v1730_v32 = vshrl.u32 %v1707_v57, 16  ;;  %v4337_v16 = vrot.slane %v2040_v8, %v3435_v58 }
 0x192   : > { %v4303_v56 = vpop.permute.xlu0 %2000  ;;  %v4331_v59 = vrot.slane %v2108_v17, %v3435_v58  ;;  %v1728_v61 = vpack.i.b16 %v1707_v57, %v1639_v27  ;;  %v1729_v46 = vshrl.u32 %v1639_v27, 16  ;;  %v2107_v43 = vrot.slane %v2100_v62, %v3435_v58 }
 0x193   : > { %1734 = vrot.lane.b32.xlu1 %v1716_v33, %s3033_s7  ;;  %v1935_v33 = vpack.i.b16 %v1934_v38, %v1933_v47  ;;  %v1939_v52 = vshrl.u32 %v1859_v26, 16  ;;  %v1940_v1 = vshrl.u32 %v1927_v42, 16  ;;  %v1860_v22 = vcombine.low %v1841_v23, %v1857_v35 }
 0x194   : > { %1504 = vrot.lane.b32.xlu0 %v1490_v37, %s3039_s26  ;;  %v1928_v2 = vcombine.low %v1909_v0, %v1925_v19  ;;  %v2132_v37 = vcombine.low %v2107_v43, %v4331_v59  ;;  %v1938_v40 = vpack.i.b16 %v1927_v42, %v1859_v26  ;;  %v1731_v12 = vpack.i.b16 %v1730_v32, %v1729_v46 }
 0x195   : > { %v2007_v28 = vpop.permute.xlu1 %2006  ;;  %v1945_v57 = vshrl.u32 %v1860_v22, 16  ;;  %v1861_v26 = vcombine.high %v1841_v23, %v1857_v35  ;;  %v1929_v32 = vcombine.high %v1909_v0, %v1925_v19 }
 0x196   : > { %v2005_v13 = vpop.permute.xlu0 %2004  ;;  %v1944_v3 = vpack.i.b16 %v1928_v2, %v1860_v22  ;;  %v2140_v10 = vrot.slane %v2132_v37, %v3463_v24  ;;  %v1946_v17 = vshrl.u32 %v1928_v2, 16 }
 0x197   : > { %1736 = vrot.lane.b32.xlu1 %v1719_v21, %s3036_s29  ;;  %v1950_v0 = vpack.i.b16 %v1929_v32, %v1861_v26  ;;  %v1951_v19 = vshrl.u32 %v1861_v26, 16 }
 0x198   : > { %1506 = vrot.lane.b32.xlu0 %v1493_v30, %s3040_s11  ;;  %v1941_v30 = vpack.i.b16 %v1940_v1, %v1939_v52 }
 0x199   : > { %v2011_v50 = vpop.permute.xlu1 %2010 }
 0x19a   : > { %v2009_v4 = vpop.permute.xlu0 %2008  ;;  %v2116_v44 = vcombine.low %v4301_v34, %v2011_v50  ;;  %v2039_v34 = vrot.slane %v2032_v41, %v3435_v58  ;;  %v2133_v41 = vcombine.high %v2107_v43, %v4331_v59 }
 0x19b   : > { %1740 = vrot.lane.b32.xlu1 %v1725_v20, %s3037_s23  ;;  %v2048_v54 = vcombine.low %v4303_v56, %v2009_v4 }
 0x19c   : > { %1738 = vrot.lane.b32.xlu0 %v1722_v63, %s3035_s6  ;;  %v2123_v56 = vrot.slane %v2116_v44, %v3435_v58  ;;  %v2064_v47 = vcombine.low %v2039_v34, %v4337_v16  ;;  %v1947_v44 = vpack.i.b16 %v1946_v17, %v1945_v57  ;;  %v2147_v43 = vrot.slane %v2133_v41, %v3463_v24 }
 0x19d   : > { %v2015_v6 = vpop.permute.xlu1 %2014 }
 0x19e   : > { %v2124_v5 = vcombine.low %v2007_v28, %v2015_v6  ;;  %v2013_v55 = vpop.permute.xlu0 %2012  ;;  %v2055_v28 = vrot.slane %v2048_v54, %v3435_v58  ;;  %v2072_v27 = vrot.slane %v2064_v47, %v3463_v24  ;;  %v2065_v54 = vcombine.high %v2039_v34, %v4337_v16 }
 0x19f   : > { %v2056_v36 = vcombine.low %v2005_v13, %v2013_v55  ;;  %1742 = vrot.lane.b32.xlu1 %v1728_v61, %s3039_s26  ;;  %v1952_v16 = vshrl.u32 %v1929_v32, 16 }
 0x1a0   : > { %v2131_v49 = vrot.slane %v2124_v5, %v3435_v58  ;;  %1954 = vrot.lane.b32.xlu0 %v1935_v33, %s3034_s5  ;;  %v2079_v1 = vrot.slane %v2065_v54, %v3463_v24 }
 0x1a1   : > { %v2063_v21 = vrot.slane %v2056_v36, %v3435_v58  ;;  %v4350_v29 = vpop.permute.xlu1 %2224 }
 0x1a2   : > { %v2148_v38 = vcombine.low %v2123_v56, %v2131_v49  ;;  %v4352_v48 = vpop.permute.xlu0 %2222  ;;  %v2149_v20 = vcombine.high %v2123_v56, %v2131_v49 }
 0x1a3   : > { %v2080_v13 = vcombine.low %v2055_v28, %v2063_v21  ;;  %1744 = vrot.lane.b32.xlu1 %v1731_v12, %s3040_s11  ;;  %v2081_v62 = vcombine.high %v2055_v28, %v2063_v21 }
 0x1a4   : > { %v2156_v18 = vrot.slane %v2148_v38, %v3463_v24  ;;  %1956 = vrot.lane.b32.xlu0 %v1938_v40, %s3033_s7  ;;  %v2163_v46 = vrot.slane %v2149_v20, %v3463_v24  ;;  %v1953_v40 = vpack.i.b16 %v1952_v16, %v1951_v19 }
 0x1a5   : > { %v2088_v8 = vrot.slane %v2080_v13, %v3463_v24  ;;  %v2229_v50 = vpop.permute.xlu1 %2228  ;;  %v2095_v5 = vrot.slane %v2081_v62, %v3463_v24 }
 0x1a6   : > { %v4360_v33 = vcombine.low %v2140_v10, %v2156_v18  ;;  %v2227_v4 = vpop.permute.xlu0 %2226  ;;  %v2165_v52 = vcombine.high %v2140_v10, %v2156_v18  ;;  %v2166_v36 = vcombine.low %v2147_v43, %v2163_v46  ;;  %v2167_v10 = vcombine.high %v2147_v43, %v2163_v46 }
 0x1a7   : > { %v4362_v63 = vcombine.low %v2072_v27, %v2088_v8  ;;  %1960 = vrot.lane.b32.xlu1 %v1944_v3, %s3035_s6  ;;  %v2097_v23 = vcombine.high %v2072_v27, %v2088_v8  ;;  %v2098_v2 = vcombine.low %v2079_v1, %v2095_v5  ;;  %v2099_v18 = vcombine.high %v2079_v1, %v2095_v5 }
 0x1a8   : > { %1958 = vrot.lane.b32.xlu0 %v1941_v30, %s3036_s29  ;;  %v2172_v42 = vshrl.u32 %v4360_v33, 16  ;;  %v2178_v49 = vshrl.u32 %v2165_v52, 16  ;;  %v2184_v38 = vshrl.u32 %v2166_v36, 16  ;;  %v2190_v32 = vshrl.u32 %v2167_v10, 16 }
 0x1a9   : > { %v2233_v6 = vpop.permute.xlu1 %2232  ;;  %v2171_v61 = vshrl.u32 %v4362_v63, 16  ;;  %v2170_v59 = vpack.i.b16 %v4360_v33, %v4362_v63  ;;  %v2176_v37 = vpack.i.b16 %v2165_v52, %v2097_v23  ;;  %v2177_v56 = vshrl.u32 %v2097_v23, 16  ;;  %v4712_v23 = vld [vmem:[#allocation16_spill] sm:$0xff] }
 0x1aa   : > { %v2231_v55 = vpop.permute.xlu0 %2230  ;;  %v2183_v12 = vshrl.u32 %v2098_v2, 16  ;;  %v2182_v3 = vpack.i.b16 %v2166_v36, %v2098_v2  ;;  %v2338_v8 = vcombine.low %v4350_v29, %v2233_v6 }
 0x1ab   : > { %v2173_v35 = vpack.i.b16 %v2172_v42, %v2171_v61  ;;  %v2179_v21 = vpack.i.b16 %v2178_v49, %v2177_v56  ;;  %v2270_v62 = vcombine.low %v4352_v48, %v2231_v55  ;;  %v2189_v42 = vshrl.u32 %v2099_v18, 16 }
 0x1ac   : > { %1962 = vrot.lane.b32.xlu0 %v1947_v44, %s3037_s23  ;;  %v2185_v17 = vpack.i.b16 %v2184_v38, %v2183_v12  ;;  %v2188_v44 = vpack.i.b16 %v2167_v10, %v2099_v18 }
 0x1ad   : > { %2192 = vrot.lane.b32.xlu1 %v2173_v35, %s3034_s5  ;;  %v2237_v34 = vpop.permute.xlu1 %2236  ;;  %v2277_v6 = vrot.slane %v2270_v62, %v3435_v58  ;;  %v2191_v52 = vpack.i.b16 %v2190_v32, %v2189_v42  ;;  %v4713_v35 = vld [vmem:[#allocation17_spill] sm:$0xff] }
 0x1ae   : > { %v2235_v22 = vpop.permute.xlu0 %2234  ;;  %v2346_v57 = vcombine.low %v2229_v50, %v2237_v34  ;;  %v417_v43 = vpack.i.b16 %v4713_v35, %v4712_v23 }
 0x1af   : > { %v2278_v27 = vcombine.low %v2227_v4, %v2235_v22  ;;  %v2345_v4 = vrot.slane %v2338_v8, %v3435_v58 }
 0x1b0   : > { %1964 = vrot.lane.b32.xlu0 %v1950_v0, %s3039_s26  ;;  %v2353_v41 = vrot.slane %v2346_v57, %v3435_v58 }
 0x1b1   : > { %2194 = vrot.lane.b32.xlu1 %v2176_v37, %s3033_s7  ;;  %v2241_v47 = vpop.permute.xlu1 %2240  ;;  %v2285_v54 = vrot.slane %v2278_v27, %v3435_v58 }
 0x1b2   : > { %v2239_v28 = vpop.permute.xlu0 %2238  ;;  %v2370_v48 = vcombine.low %v2345_v4, %v2353_v41  ;;  %v2371_v0 = vcombine.high %v2345_v4, %v2353_v41 }
 0x1b3   : > { %v2302_v19 = vcombine.low %v2277_v6, %v2285_v54  ;;  %v2303_v34 = vcombine.high %v2277_v6, %v2285_v54 }
 0x1b4   : > { %1966 = vrot.lane.b32.xlu0 %v1953_v40, %s3040_s11  ;;  %v2378_v40 = vrot.slane %v2370_v48, %v3463_v24  ;;  %v2385_v12 = vrot.slane %v2371_v0, %v3463_v24 }
 0x1b5   : > { %2196 = vrot.lane.b32.xlu1 %v2179_v21, %s3036_s29  ;;  %v2245_v13 = vpop.permute.xlu1 %2244  ;;  %v2310_v38 = vrot.slane %v2302_v19, %v3463_v24 }
 0x1b6   : > { %v2243_v30 = vpop.permute.xlu0 %2242 }
 0x1b8   : > { %2198 = vrot.lane.b32.xlu0 %v2182_v3, %s3035_s6 }
 0x1b9   : > { %2200 = vrot.lane.b32.xlu1 %v2185_v17, %s3037_s23  ;;  %v2249_v20 = vpop.permute.xlu1 %2248 }
 0x1ba   : > { %v2247_v26 = vpop.permute.xlu0 %2246  ;;  %v2354_v50 = vcombine.low %v2241_v47, %v2249_v20 }
 0x1bb   : > { %v2286_v61 = vcombine.low %v2239_v28, %v2247_v26 }
 0x1bc   : > { %v2361_v16 = vrot.slane %v2354_v50, %v3435_v58 }
 0x1bd   : > { %2202 = vrot.lane.b32.xlu1 %v2188_v44, %s3039_s26  ;;  %v2253_v29 = vpop.permute.xlu1 %2252  ;;  %v2293_v36 = vrot.slane %v2286_v61, %v3435_v58 }
 0x1be   : > { %v2362_v46 = vcombine.low %v2245_v13, %v2253_v29  ;;  %v2251_v5 = vpop.permute.xlu0 %2250 }
 0x1bf   : > { %v2294_v55 = vcombine.low %v2243_v30, %v2251_v5  ;;  %v2317_v30 = vrot.slane %v2303_v34, %v3463_v24 }
 0x1c0   : > { %v2369_v1 = vrot.slane %v2362_v46, %v3435_v58 }
 0x1c1   : > { %v2301_v22 = vrot.slane %v2294_v55, %v3435_v58  ;;  %2204 = vrot.lane.b32.xlu1 %v2191_v52, %s3040_s11  ;;  %v442_v2 = vpop.permute.xlu1 %441 }
 0x1c2   : > { %v2386_v37 = vcombine.low %v2361_v16, %v2369_v1  ;;  %v2387_v56 = vcombine.high %v2361_v16, %v2369_v1  ;;  %v440_v49 = vpop.permute.xlu0 %439  ;;  %v4424_v16 = vld [vmem:[#allocation5] sm:$0xff] }
 0x1c3   : > { %v2318_v47 = vcombine.low %v2293_v36, %v2301_v22  ;;  %v2319_v28 = vcombine.high %v2293_v36, %v2301_v22  ;;  %v456_v21 = vsel %vm453_vm0, %v417_v43, %v440_v49  ;;  %v2659_v34 = vcombine.high %v4424_v16, %v4424_v16 }
 0x1c4   : > { %v2394_v58 = vrot.slane %v2386_v37, %v3463_v24  ;;  %v2401_v13 = vrot.slane %v2387_v56, %v3463_v24  ;;  %v459_v57 = vsel %vm457_vm1, %v456_v21, %v442_v2  ;;  %v2461_v56 = vld [vmem:[#allocation7] sm:$0xff] }
 0x1c5   : > { %v2326_v3 = vrot.slane %v2318_v47, %v3463_v24  ;;  %v2333_v10 = vrot.slane %v2319_v28, %v3463_v24  ;;  %v446_v18 = vpop.permute.xlu1 %445  ;;  %2660 = vmatprep.mubr.msk.bf16.mxu0 %vm453_vm0, %v2659_v34  ;;  %v4715_v47 = vld [vmem:[#allocation43_spill] sm:$0xff]  ;;  %v4716_v28 = vld [vmem:[#allocation44_spill] sm:$0xff] }
 0x1c6   : > { %v4408_v17 = vcombine.low %v2378_v40, %v2394_v58  ;;  %v2404_v27 = vcombine.low %v2385_v12, %v2401_v13  ;;  %v444_v8 = vpop.permute.xlu0 %443  ;;  %v2405_v44 = vcombine.high %v2385_v12, %v2401_v13  ;;  %v2403_v61 = vcombine.high %v2378_v40, %v2394_v58 }
 0x1c7   : > { %v4410_v20 = vcombine.low %v2310_v38, %v2326_v3  ;;  %v2336_v62 = vcombine.low %v2317_v30, %v2333_v10  ;;  %v462_v26 = vsel %vm460_vm2, %v459_v57, %v444_v8  ;;  %v2337_v42 = vcombine.high %v2317_v30, %v2333_v10 }
 0x1c8   : > { %v2410_v41 = vshrl.u32 %v4408_v17, 16  ;;  %v465_v50 = vsel %vm463_vm3, %v462_v26, %v446_v18  ;;  %v2335_v29 = vcombine.high %v2310_v38, %v2326_v3  ;;  %v2416_v43 = vshrl.u32 %v2403_v61, 16 }
 0x1c9   : > { %v701_v32 = vpop.permute.xlu1 %700  ;;  %v2420_v24 = vpack.i.b16 %v2404_v27, %v2336_v62  ;;  %v2409_v54 = vshrl.u32 %v4410_v20, 16  ;;  %v2408_v46 = vpack.i.b16 %v4408_v17, %v4410_v20  ;;  %v2426_v55 = vpack.i.b16 %v2405_v44, %v2337_v42 }
 0x1ca   : > { %v448_v4 = vpop.permute.xlu0 %447  ;;  %v2414_v23 = vpack.i.b16 %v2403_v61, %v2335_v29  ;;  %v2415_v35 = vshrl.u32 %v2335_v29, 16  ;;  %v2421_v22 = vshrl.u32 %v2336_v62, 16  ;;  %v2422_v2 = vshrl.u32 %v2404_v27, 16 }
 0x1cb   : > { %2436 = vrot.lane.b32.xlu1 %v2420_v24, %s3035_s6  ;;  %v2411_v6 = vpack.i.b16 %v2410_v41, %v2409_v54  ;;  %v468_v5 = vsel %vm466_vm4, %v465_v50, %v448_v4  ;;  %v4714_v40 = vmov 0   ;;  %v4717_v21 = vpack.i.b16 %v4715_v47, %v4716_v28 }
 0x1cc   : > { %v2417_v36 = vpack.i.b16 %v2416_v43, %v2415_v35  ;;  %v2423_v13 = vpack.i.b16 %v2422_v2, %v2421_v22  ;;  %v2427_v30 = vshrl.u32 %v2337_v42, 16  ;;  %v2428_v3 = vshrl.u32 %v2405_v44, 16 }
 0x1cd   : > { %2430 = vrot.lane.b32.xlu0 %v2411_v6, %s3034_s5  ;;  %v703_v48 = vpop.permute.xlu1 %702  ;;  %v716_v12 = vsel %vm453_vm0, %v4717_v21, %v701_v32  ;;  %v1234_v4 = vpack.i.b16 %v4057_v31, %v4001_v25  ;;  %v4718_v61 = vpack.i.b16 %v3863_v39, %v3867_v7 }
 0x1ce   : > { %v450_v52 = vpop.permute.xlu0 %449  ;;  %v718_v58 = vsel %vm457_vm1, %v716_v12, %v703_v48  ;;  %v2429_v8 = vpack.i.b16 %v2428_v3, %v2427_v30 }
 0x1cf   : > { %2440 = vrot.lane.b32.xlu1 %v2426_v55, %s3039_s26  ;;  %v471_v0 = vsel %vm469_vm5, %v468_v5, %v450_v52 }
 0x1d1   : > { %2432 = vrot.lane.b32.xlu0 %v2414_v23, %s3033_s7  ;;  %v705_v19 = vpop.permute.xlu1 %704  ;;  %s3041_s7 = smov [#allocation8]  }
 0x1d2   : > { %v452_v1 = vpop.permute.xlu0 %451  ;;  %v720_v10 = vsel %vm460_vm2, %v718_v58, %v705_v19  ;;  %s2900_s5 = sshll.u32 %s3041_s7, 4  ;;  %s2901_s5 = int_to_ptr.vmem [resolvable:$false] %s2900_s5 }
 0x1d3   : > { %v474_v37 = vsel %vm472_vm6, %v471_v0, %v452_v1  ;;  %2464 = vperm.xlu1 %2806, %v2461_v56   ;;  %s2902_s6 = scalar_lea.vmem %s2901_s5, 256  ;;  %p2903_p12 = scmp.lt.s32.totalorder %s4529_s2, %s2901_s5 }
 0x1d4   : > { %2477 = vmatpush1.bf16.msra.mxu0 %v474_v37  ;;  %p2904_p5 = scmp.lt.s32.totalorder %s2902_s6, %s2896_s19 }
 0x1d5   : > { %2434 = vrot.lane.b32.xlu0 %v2417_v36, %s3036_s29  ;;  %v709_v49 = vpop.permute.xlu1 %708  ;;  %2478 = vmatprep.subr.bf16.mxu0 %v4714_v40 }
 0x1d6   : > { %v707_v38 = vpop.permute.xlu0 %706  ;;  %p2905_p3 = por %p2904_p5, %p2903_p12 }
 0x1d7   : > { %v722_v18 = vsel %vm463_vm3, %v720_v10, %v707_v38 }
 0x1d8   : > { %v724_v62 = vsel %vm466_vm4, %v722_v18, %v709_v49  ;;  %p2906_p6 = pnand %p2905_p3, %p2899_p9 }
 0x1d9   : > { %2438 = vrot.lane.b32.xlu0 %v2423_v13, %s3037_s23  ;;  %v711_v57 = vpop.permute.xlu1 %710 }
 0x1da   : > { %v939_v27 = vpop.permute.xlu0 %938  ;;  %v726_v26 = vsel %vm469_vm5, %v724_v62, %v711_v57 }
 0x1db   : > { %v954_v29 = vsel %vm453_vm0, %v4718_v61, %v939_v27 }
 0x1dd   : > { %2442 = vrot.lane.b32.xlu0 %v2429_v8, %s3040_s11  ;;  %v713_v41 = vpop.permute.xlu1 %712 }
 0x1de   : > { %v941_v32 = vpop.permute.xlu0 %940  ;;  %v728_v42 = vsel %vm472_vm6, %v726_v26, %v713_v41 }
 0x1df   : > { %2479 = vmatpush1.bf16.msra.mxu0 %v728_v42  ;;  %v956_v6 = vsel %vm457_vm1, %v954_v29, %v941_v32 }
 0x1e0   : > { %2480 = vmatprep.subr.bf16.mxu0 %v4714_v40 }
 0x1e1   : > { %v945_v44 = vpop.permute.xlu1 %944 }
 0x1e2   : > { %v943_v24 = vpop.permute.xlu0 %942 }
 0x1e3   : > { %v958_v5 = vsel %vm460_vm2, %v956_v6, %v943_v24 }
 0x1e4   : > { %v960_v23 = vsel %vm463_vm3, %v958_v5, %v945_v44  ;;  %v1932_v44 = vpack.i.b16 %v4299_v14, %v4296_v15 }
 0x1e5   : > { %v1257_v54 = vpop.permute.xlu1 %1256 }
 0x1e6   : > { %v947_v50 = vpop.permute.xlu0 %946  ;;  %v1272_v55 = vsel %vm453_vm0, %v1234_v4, %v1257_v54 }
 0x1e7   : > { %v962_v35 = vsel %vm466_vm4, %v960_v23, %v947_v50 }
 0x1e9   : > { %v1259_v48 = vpop.permute.xlu1 %1258 }
 0x1ea   : > { %v949_v52 = vpop.permute.xlu0 %948  ;;  %v1274_v43 = vsel %vm457_vm1, %v1272_v55, %v1259_v48 }
 0x1eb   : > { %v964_v31 = vsel %vm469_vm5, %v962_v35, %v949_v52 }
 0x1ed   : > { %v1261_v25 = vpop.permute.xlu1 %1260 }
 0x1ee   : > { %v951_v39 = vpop.permute.xlu0 %950  ;;  %v1276_v0 = vsel %vm460_vm2, %v1274_v43, %v1261_v25 }
 0x1ef   : > { %v966_v7 = vsel %vm472_vm6, %v964_v31, %v951_v39 }
 0x1f0   : > { %2481 = vmatpush1.bf16.msra.mxu0 %v966_v7 }
 0x1f1   : > { %v1265_v19 = vpop.permute.xlu1 %1264  ;;  %2482 = vmatprep.subr.bf16.mxu0 %v4714_v40 }
 0x1f2   : > { %v1263_v1 = vpop.permute.xlu0 %1262 }
 0x1f3   : > { %v1278_v34 = vsel %vm463_vm3, %v1276_v0, %v1263_v1 }
 0x1f4   : > { %v1280_v36 = vsel %vm466_vm4, %v1278_v34, %v1265_v19 }
 0x1f5   : > { %v1267_v22 = vpop.permute.xlu1 %1266 }
 0x1f6   : > { %v1495_v2 = vpop.permute.xlu0 %1494  ;;  %v1282_v37 = vsel %vm469_vm5, %v1280_v36, %v1267_v22 }
 0x1f7   : > { %v1510_v58 = vsel %vm453_vm0, %v1472_v9, %v1495_v2 }
 0x1f9   : > { %v1269_v56 = vpop.permute.xlu1 %1268 }
 0x1fa   : > { %v1497_v49 = vpop.permute.xlu0 %1496  ;;  %v1284_v47 = vsel %vm472_vm6, %v1282_v37, %v1269_v56 }
 0x1fb   : > { %2483 = vmatpush1.bf16.msra.mxu0 %v1284_v47  ;;  %v1512_v13 = vsel %vm457_vm1, %v1510_v58, %v1497_v49 }
 0x1fc   : > { %2484 = vmatprep.subr.bf16.mxu0 %v4714_v40 }
 0x1fd   : > { %v1501_v28 = vpop.permute.xlu1 %1500 }
 0x1fe   : > { %v1499_v21 = vpop.permute.xlu0 %1498 }
 0x1ff   : > { %v1514_v30 = vsel %vm460_vm2, %v1512_v13, %v1499_v21 }
 0x200   : > { %v1516_v18 = vsel %vm463_vm3, %v1514_v30, %v1501_v28 }
 0x201   : > { %v1733_v12 = vpop.permute.xlu1 %1732 }
 0x202   : > { %v1503_v38 = vpop.permute.xlu0 %1502  ;;  %v1748_v53 = vsel %vm453_vm0, %v1710_v51, %v1733_v12 }
 0x203   : > { %v1518_v57 = vsel %vm466_vm4, %v1516_v18, %v1503_v38 }
 0x205   : > { %v1735_v3 = vpop.permute.xlu1 %1734 }
 0x206   : > { %v1505_v10 = vpop.permute.xlu0 %1504  ;;  %v1750_v41 = vsel %vm457_vm1, %v1748_v53, %v1735_v3 }
 0x207   : > { %v1520_v8 = vsel %vm469_vm5, %v1518_v57, %v1505_v10 }
 0x209   : > { %v1737_v27 = vpop.permute.xlu1 %1736 }
 0x20a   : > { %v1507_v62 = vpop.permute.xlu0 %1506  ;;  %v1752_v32 = vsel %vm460_vm2, %v1750_v41, %v1737_v27 }
 0x20b   : > { %v1522_v26 = vsel %vm472_vm6, %v1520_v8, %v1507_v62 }
 0x20c   : > { %2485 = vmatpush1.bf16.msra.mxu0 %v1522_v26 }
 0x20d   : > { %v1741_v45 = vpop.permute.xlu1 %1740  ;;  %2486 = vmatprep.subr.bf16.mxu0 %v4714_v40 }
 0x20e   : > { %v1739_v9 = vpop.permute.xlu0 %1738 }
 0x20f   : > { %v1754_v42 = vsel %vm463_vm3, %v1752_v32, %v1739_v9 }
 0x210   : > { %v1756_v50 = vsel %vm466_vm4, %v1754_v42, %v1741_v45 }
 0x211   : > { %v1743_v24 = vpop.permute.xlu1 %1742 }
 0x212   : > { %v1955_v54 = vpop.permute.xlu0 %1954  ;;  %v1758_v11 = vsel %vm469_vm5, %v1756_v50, %v1743_v24 }
 0x213   : > { %v1970_v4 = vsel %vm453_vm0, %v1932_v44, %v1955_v54 }
 0x215   : > { %v1745_v60 = vpop.permute.xlu1 %1744 }
 0x216   : > { %v1957_v51 = vpop.permute.xlu0 %1956  ;;  %v1760_v61 = vsel %vm472_vm6, %v1758_v11, %v1745_v60 }
 0x217   : > { %2487 = vmatpush1.bf16.msra.mxu0 %v1760_v61  ;;  %v1972_v29 = vsel %vm457_vm1, %v1970_v4, %v1957_v51 }
 0x218   : > { %2488 = vmatprep.subr.bf16.mxu0 %v4714_v40 }
 0x219   : > { %v1961_v6 = vpop.permute.xlu1 %1960 }
 0x21a   : > { %v1959_v5 = vpop.permute.xlu0 %1958 }
 0x21b   : > { %v1974_v15 = vsel %vm460_vm2, %v1972_v29, %v1959_v5 }
 0x21c   : > { %v1976_v14 = vsel %vm463_vm3, %v1974_v15, %v1961_v6 }
 0x21e   : > { %v1963_v48 = vpop.permute.xlu0 %1962 }
 0x21f   : > { %v2193_v55 = vpop.permute.xlu1 %2192  ;;  %v1978_v52 = vsel %vm466_vm4, %v1976_v14, %v1963_v48 }
 0x220   : > { %v2208_v0 = vsel %vm453_vm0, %v2170_v59, %v2193_v55 }
 0x222   : > { %v1965_v23 = vpop.permute.xlu0 %1964 }
 0x223   : > { %v2195_v35 = vpop.permute.xlu1 %2194  ;;  %v1980_v43 = vsel %vm469_vm5, %v1978_v52, %v1965_v23 }
 0x224   : > { %v2210_v1 = vsel %vm457_vm1, %v2208_v0, %v2195_v35 }
 0x226   : > { %v1967_v25 = vpop.permute.xlu0 %1966 }
 0x227   : > { %v2197_v31 = vpop.permute.xlu1 %2196  ;;  %v1982_v39 = vsel %vm472_vm6, %v1980_v43, %v1967_v25 }
 0x228   : > { %2489 = vmatpush1.bf16.msra.mxu0 %v1982_v39  ;;  %v2212_v34 = vsel %vm460_vm2, %v2210_v1, %v2197_v31 }
 0x229   : > { %2490 = vmatprep.subr.bf16.mxu0 %v4714_v40 }
 0x22a   : > { %v2199_v19 = vpop.permute.xlu0 %2198 }
 0x22b   : > { %v2201_v7 = vpop.permute.xlu1 %2200  ;;  %v2214_v36 = vsel %vm463_vm3, %v2212_v34, %v2199_v19 }
 0x22c   : > { %v2216_v2 = vsel %vm466_vm4, %v2214_v36, %v2201_v7 }
 0x22f   : > { %v2203_v22 = vpop.permute.xlu1 %2202 }
 0x230   : > { %v2218_v37 = vsel %vm469_vm5, %v2216_v2, %v2203_v22 }
 0x233   : > { %v2205_v56 = vpop.permute.xlu1 %2204 }
 0x234   : > { %v2220_v49 = vsel %vm472_vm6, %v2218_v37, %v2205_v56 }
 0x235   : > { %2491 = vmatpush1.bf16.msra.mxu0 %v2220_v49 }
 0x236   : > { %2492 = vmatprep.subr.bf16.mxu0 %v4714_v40 }
 0x23d   : > { %v2437_v21 = vpop.permute.xlu1 %2436 }
 0x23f   : > { %v2431_v33 = vpop.permute.xlu0 %2430 }
 0x240   : > { %v2446_v59 = vsel %vm453_vm0, %v2408_v46, %v2431_v33  ;;  %v2658_v46 = vcombine.low %v4424_v16, %v4424_v16 }
 0x241   : > { %v2441_v13 = vpop.permute.xlu1 %2440 }
 0x243   : > { %v2433_v63 = vpop.permute.xlu0 %2432 }
 0x244   : > { %v2448_v47 = vsel %vm457_vm1, %v2446_v59, %v2433_v63 }
 0x247   : > { %v2435_v28 = vpop.permute.xlu0 %2434 }
 0x248   : > { %v2450_v12 = vsel %vm460_vm2, %v2448_v47, %v2435_v28 }
 0x249   : > { %v2452_v58 = vsel %vm463_vm3, %v2450_v12, %v2437_v21 }
 0x24b   : > { %v2439_v38 = vpop.permute.xlu0 %2438 }
 0x24c   : > { %v2454_v40 = vsel %vm466_vm4, %v2452_v58, %v2439_v38 }
 0x24d   : > { %v2456_v17 = vsel %vm469_vm5, %v2454_v40, %v2441_v13 }
 0x24f   : > { %v2443_v30 = vpop.permute.xlu0 %2442 }
 0x250   : > { %v2458_v20 = vsel %vm472_vm6, %v2456_v17, %v2443_v30 }
 0x251   : > { %2493 = vmatpush1.bf16.msra.mxu0 %v2458_v20 }
 0x252   : > { %v2465_v3 = vpop.permute.xlu1 %2464 }
 0x254   : > { %2509 = vmatmul.mubr.bf16.vlgmr.msra.gmra.mrb[0].mxu0 %v2658_v46 }
 0x327   : > { %v2510_v10 = vpop.f32.mrb[0].mxu0 }
 0x328   : > { %v2511_v18 = vadd.f32 %v2510_v10, %v2465_v3  ;;  %v2512_v57 = vpop.f32.mrb[1].mxu0 }
 0x329   : > { %v2513_v27 = vpop.f32.mrb[2].mxu0 }
 0x32a   : > { %v2516_v8 = vmax.f32 %v2511_v18, 0.0  ;;  %v2514_v62 = vpop.f32.mrb[3].mxu0 }
 0x32c   : > { %2517 = vst [vmem:[%s227_s10] sm:$0xff] %v2516_v8 }
 0x32d   : > { %2909 = shalt.err (!%p2906_p6)
}
 0x32e   : > { %s2910_s29 = scalar_lea.hbm %s4527_s27, 128  ;;  %s2914_s11 = scalar_lea.hbm %s4592_s3, 512 }
 0x32f   : > { %p2911_p7 = scmp.ne.s32.totalorder %s4527_s27, %s2910_s29  ;;  %p2915_p0 = scmp.lt.u32.totalorder %s4527_s27, %s4592_s3 }
 0x330   : > { %p2916_p8 = scmp.lt.u32.totalorder %s2914_s11, %s2910_s29  ;;  %p2918_p10 = scmp.lt.u32.totalorder %s2910_s29, %s4527_s27 }
 0x331   : > { %p2912_p11 = pnand %p2911_p7, %p4719_p1 }
 0x332   : > { %p2917_p4 = por %p2916_p8, %p2915_p0 }
 0x333   : > { %p2913_p13 = pneg %p2912_p11 }
 0x334   : > { %p2919_p2 = por %p2918_p10, %p2917_p4 }
 0x336   : > { %p2920_p9 = pnand %p2919_p2, %p2913_p13 }
 0x338   : > { %2923 = shalt.err (!%p2920_p9)
}
 0x339   : > { %2679 = dma.vmem_to_hbm [thread:$0]  (%p4719_p1), %s4529_s2, 128, %s4527_s27, %s2519_s18  }
 0x33a PF: > { %s4720_s4 = sld [smem:[#allocation12_spill]]  ;;  %s4721_s12 = sld [smem:[#allocation14_spill]] }
 0x33b   : > { %p2701_p12 = scmp.ge.s32.totalorder %s3022_s22, 2 }
 0x340   : > { %s2546_s8 = sand.u32 1, %s4720_s4   ;;  %p4722_p5 = scmp.ne.s32.totalorder %s4721_s12, 0 }
 0x341   : > { %s2547_s10 = scalar_lea.sflag [#allocation4], %s2546_s8 }
 0x342   : > { %p2693_p3 = pnand %p2701_p12, %p4722_p5 }
 0x344   : > { %2977 = dma.done.wait (!%p2693_p3), %s2547_s10, 128  }
 0x345   : > { %2979 = vsyncadd (!%p2693_p3), %s2547_s10, 4294967168  ;;  %s20_s22 = sadd.s32 1, %s3022_s22   ;;  %s4723_s28 = smov %s3233_s15 }
 0x346   : > { %p17_p6 = scmp.ge.s32.totalorder %s20_s22, 6   ;;  %s4724_s18 = sld [smem:[#allocation13_spill]] }
 0x347   : > { %s4725_s2 = sld [smem:[#allocation15_spill]]  ;;  %s4726_s12 = smov %s2986_s13 }
 0x348   : > { %s4727_s13 = smov %s2990_s14  ;;  %s4728_s14 = smov %s3236_s20 }
 0x349   : > { %s4729_s15 = smov %s2998_s16  ;;  %s4730_s16 = smov %s3002_s17 }
 0x34a   : > { %s4731_s17 = smov %s4723_s28  ;;  %s4732_s19 = smov %s3018_s21 }
 0x34b   : > { %s4734_s21 = smov %s4740_s24  ;;  %19 = sbr.rel (!%p17_p6) target bundleno = 13 (0xd), region = 86 }
 0x34d   : > { %s4733_s20 = smov %s4725_s2 }
 0x352   :  { %2552 = vsyncpa [#allocation3], 1 }
 0x353   :  { %2554 = vsyncpa [#allocation3 + $0x1], 1 }
 0x354   :  { %2555 = vsyncpa [#allocation6], 1 }
 0x355   :  { %2556 = vsyncpa [#allocation4], 1 }
 0x356   :  { %2558 = vsyncpa [#allocation4 + $0x1], 1 }

// kernel: esbup_forward.8
= control target key start
LH: loop header
LB: loop body
LE: loop exit
PB: predicated region body
PF: predicated region fallthrough
CT: control target
= control target key end

     0   :  { %s6999_s0 = inlined_call_operand.hbm [shape: f32[2,24,18,18], index: 0, kind: input, shape index: {}]   ;;  %s7000_s1 = inlined_call_operand.hbm [shape: bf16[8,216], index: 1, kind: input, shape index: {}]   ;;  %s7001_s2 = inlined_call_operand.hbm [shape: f32[8,1], index: 2, kind: input, shape index: {}]   ;;  %s7002_s3 = inlined_call_operand.hbm [shape: f32[2,8,256], index: 3, kind: output, shape index: {}]  }
   0x1   :  { %7076 = sst [smem:[#allocation77_spill]] %s7000_s1 }
   0x2   :  { %7077 = sst [smem:[#allocation78_spill]] %s7001_s2 }
   0x3   :  { %8 = vsyncpa [#allocation3], 0 }
   0x4   :  { %10 = vsyncpa [#allocation3 + $0x1], 0 }
   0x5   :  { %11 = vsyncpa [#allocation6], 0 }
   0x6   :  { %12 = vsyncpa [#allocation4], 0 }
   0x7   :  { %14 = vsyncpa [#allocation4 + $0x1], 0  ;;  %s4447_s12 = smov 0   ;;  %s4449_s13 = smov 0  }
   0x8   :  { %s4451_s14 = smov 0   ;;  %s4453_s15 = smov 0  }
   0x9   :  { %s4455_s16 = smov 0   ;;  %s4457_s17 = smov 0  }
   0xa   :  { %s4459_s18 = smov 0   ;;  %s4461_s19 = smov 0  }
   0xb   :  { %s4463_s20 = smov 0   ;;  %s4465_s21 = smov 0  }
   0xc   :  { %s4467_s22 = smov 0  }
   0xd LB: > { %7078 = sst [smem:[#allocation12_spill]] %s4367_s12  ;;  %s4020_s23 = sadd.s32 4294967295, %s4407_s22   ;;  %s4407_s22 = sphi %s4467_s22, %s20_s22   ;;  %s4403_s21 = sphi %s4465_s21, %s7302_s21   ;;  %s4399_s20 = sphi %s4463_s20, %s7301_s20   ;;  %s4395_s19 = sphi %s4461_s19, %s7300_s19   ;;  %s4391_s18 = sphi %s4459_s18, %s7292_s18   ;;  %s4387_s17 = sphi %s4457_s17, %s7299_s17   ;;  %s4383_s16 = sphi %s4455_s16, %s7298_s16   ;;  %s4379_s15 = sphi %s4453_s15, %s7297_s15   ;;  %s4375_s14 = sphi %s4451_s14, %s7296_s14   ;;  %s4371_s13 = sphi %s4449_s13, %s7295_s13   ;;  %s4367_s12 = sphi %s4447_s12, %s7294_s12  }
   0xe   : > { %7079 = sst [smem:[#allocation13_spill]] %s4399_s20  ;;  %p46_p0 = scmp.ne.s32.totalorder %s4387_s17, %s4383_s16 }
   0xf   : > { %p47_p1 = scmp.eq.s32.totalorder %s4407_s22, 0  ;;  %p52_p2 = scmp.ne.s32.totalorder %s4383_s16, %s4379_s15 }
  0x10   : > { %s4021_s24 = sadd.s32 4294967294, %s4407_s22   ;;  %p4506_p3 = scmp.eq.s32.totalorder %s4020_s23, 0 }
  0x11   : > { %p4510_p4 = por %p47_p1, %p46_p0  ;;  %p119_p5 = scmp.ne.s32.totalorder %s4375_s14, %s4371_s13 }
  0x12   : > { %s7080_s25 = scalar_select %p4506_p3, 1, 0 }
  0x13   : > { %p4518_p6 = por %p4506_p3, %p52_p2  ;;  %p120_p7 = scmp.eq.s32.totalorder %s4020_s23, 3 }
  0x14   : > { %p125_p8 = scmp.ne.s32.totalorder %s4371_s13, %s4367_s12  ;;  %p126_p9 = scmp.eq.s32.totalorder %s4021_s24, 3 }
  0x15   : > { %s7082_s27 = scalar_select %p4518_p6, 1, 0 }
  0x16   : > { %p4524_p10 = por %p120_p7, %p119_p5  ;;  %p4022_p11 = scmp.ge.s32.totalorder %s4407_s22, 1 }
  0x17   : > { %p4529_p12 = por %p126_p9, %p125_p8  ;;  %p133_p13 = scmp.lt.s32.totalorder %s4407_s22, 5 }
  0x18   : > { %s7083_s28 = scalar_select %p4524_p10, 1, 0 }
  0x19   : > { %s7084_s29 = scalar_select %p4529_p12, 1, 0 }
  0x1a   : > { %p4534_p0 = pnand %p4022_p11, %p133_p13  ;;  %s4409_s4 = smov [#allocation5]  }
  0x1b   : > { %7085 = sst [smem:[#allocation14_spill]] %s7084_s29  ;;  %s146_s5 = sshll.u32 %s4409_s4, 4  ;;  %s147_s5 = int_to_ptr.vmem [resolvable:$true] %s146_s5 }
  0x1c   : > { %s7086_s30 = scalar_select %p4534_p0, 1, 0 }
  0x1d   : > { %p4067_p1 = pneg %p4534_p0  ;;  %p4084_p2 = scmp.lt.s32.totalorder %s4407_s22, 4 }
  0x1e   : > { %s4410_s8 = smov [#allocation7]   ;;  %s7089_s1 = sld [smem:[#allocation77_spill]] }
  0x1f   : > { %p4543_p5 = pnand %p4067_p1, %p4506_p3  ;;  %p4549_p7 = pnand %p4084_p2, %p4510_p4 }
  0x20   : > { %s157_s9 = sshll.u32 %s4410_s8, 4  ;;  %s158_s9 = int_to_ptr.vmem [resolvable:$true] %s157_s9 }
  0x21   : > { %s7088_s7 = scalar_select %p4549_p7, 1, 0 }
  0x22   : > { %p4197_p9 = pneg %p4543_p5 }
  0x24   : > { %s4195_s15 = scalar_lea.hbm %s7089_s1, 128 }
  0x25   : > { %p4196_p8 = scmp.ne.s32.totalorder %s7089_s1, %s4195_s15  ;;  %p4202_p4 = scmp.lt.u32.totalorder %s4195_s15, %s7089_s1 }
  0x27   : > { %p4198_p11 = pnand %p4197_p9, %p4196_p8 }
  0x29   : > { %p4199_p13 = pneg %p4198_p11 }
  0x2b   : > { %p4204_p1 = pnand %p4202_p4, %p4199_p13 }
  0x2d   : > { %4207 = shalt.err (!%p4204_p1)
}
  0x2e   : > { %s4208_s8 = scalar_lea.vmem %s147_s5, 128  ;;  %p4216_p3 = scmp.lt.s32.totalorder %s147_s5, %s147_s5 }
  0x2f   : > { %p4209_p2 = scmp.ne.s32.totalorder %s147_s5, %s4208_s8  ;;  %p4217_p6 = scmp.lt.s32.totalorder %s4208_s8, %s4208_s8 }
  0x31   : > { %p4211_p12 = pnand %p4209_p2, %p4197_p9  ;;  %p4218_p0 = por %p4217_p6, %p4216_p3 }
  0x33   : > { %p4212_p10 = pneg %p4211_p12 }
  0x35   : > { %p4219_p7 = pnand %p4218_p0, %p4212_p10 }
  0x37   : > { %4222 = shalt.err (!%p4219_p7)
}
  0x38   : > { %4070 = dma.hbm_to_vmem [thread:$0]  (!%p4543_p5), %s7089_s1, 128, %s147_s5, [#allocation6]  }
  0x39   : > { %s7090_s2 = sld [smem:[#allocation78_spill]] }
  0x3f   : > { %s4223_s24 = scalar_lea.hbm %s7090_s2, 128 }
  0x40   : > { %p4224_p12 = scmp.ne.s32.totalorder %s7090_s2, %s4223_s24  ;;  %p4230_p10 = scmp.lt.u32.totalorder %s4223_s24, %s7090_s2 }
  0x42   : > { %p4226_p3 = pnand %p4224_p12, %p4197_p9 }
  0x44   : > { %p4227_p6 = pneg %p4226_p3 }
  0x46   : > { %p4232_p0 = pnand %p4230_p10, %p4227_p6 }
  0x48   : > { %4235 = shalt.err (!%p4232_p0)
}
  0x49   : > { %s4236_s5 = scalar_lea.vmem %s158_s9, 128  ;;  %p4244_p13 = scmp.lt.s32.totalorder %s158_s9, %s158_s9 }
  0x4a   : > { %p4237_p7 = scmp.ne.s32.totalorder %s158_s9, %s4236_s5  ;;  %p4245_p4 = scmp.lt.s32.totalorder %s4236_s5, %s4236_s5 }
  0x4c   : > { %p4239_p8 = pnand %p4237_p7, %p4197_p9  ;;  %p4246_p1 = por %p4245_p4, %p4244_p13 }
  0x4e   : > { %p4240_p11 = pneg %p4239_p8 }
  0x50   : > { %p4247_p2 = pnand %p4246_p1, %p4240_p11 }
  0x52   : > { %4250 = shalt.err (!%p4247_p2)
}
  0x53   : > { %4073 = dma.hbm_to_vmem [thread:$0]  (!%p4543_p5), %s7090_s2, 128, %s158_s9, [#allocation6]  }
  0x54   : > { %s39_s29 = sadd.s32 1, %s4387_s17  ;;  %s29_s15 = sadd.s32 1, %s4399_s20 }
  0x55   : > { %s168_s23 = sand.u32 1, %s4387_s17   ;;  %p30_p9 = scmp.ge.s32.totalorder %s29_s15, 2 }
  0x56   : > { %s32_s24 = sadd.s32 1, %s4403_s21  ;;  %s109_s26 = sadd.s32 1, %s4375_s14 }
  0x57   : > { %s4052_s6 = smul.u32 576, %s168_s23  ;;  %s7304_s15 = smov (%p30_p9, %s29_s15), 0 }
  0x58   : > { %7091 = sst [smem:[#allocation15_spill]] %s7304_s15  ;;  %s7306_s24 = smov (!%p30_p9, %s32_s24), %s4403_s21 }
  0x59   : > { %p34_p12 = scmp.ge.s32.totalorder %s7306_s24, 2  ;;  %s4053_s4 = smul.u32 9216, %s4403_s21 }
  0x5a   : > { %s105_s8 = ssub.s32 %s4399_s20, %s7304_s15  ;;  %s172_s9 = scalar_lea.vmem [#allocation2], %s4052_s6 }
  0x5b   : > { %s7308_s24 = smov (%p34_p12, %s7306_s24), 0  ;;  %s179_s5 = sshll.u32 %s172_s9, 4  ;;  %s4615_s5 = int_to_ptr.vmem [resolvable:$true] %s179_s5 }
  0x5c   : > { %s36_s10 = ssub.s32 %s4403_s21, %s7308_s24  ;;  %s4613_s2 = scalar_lea.hbm %s6999_s0, %s4053_s4 }
  0x5d   : > { %p37_p5 = scmp.eq.s32.totalorder %s36_s10, 0  ;;  %s106_s12 = sor.u32 %s105_s8, %s36_s10 }
  0x5e   : > { %p107_p3 = scmp.eq.s32.totalorder %s106_s12, 0  ;;  %s4623_s6 = scalar_lea.sflag [#allocation3], %s168_s23 }
  0x5f   : > { %s4618_s15 = scalar_select %p37_p5, %s4387_s17, %s39_s29  }
  0x60   : > { %s4621_s20 = scalar_select %p107_p3, %s4375_s14, %s109_s26  }
  0x61   : > { %s4251_s9 = scalar_lea.hbm %s4613_s2, 9216  ;;  %p7092_p10 = scmp.ne.s32.totalorder %s7088_s7, 0 }
  0x62   : > { %p4252_p6 = scmp.ne.s32.totalorder %s4613_s2, %s4251_s9  ;;  %s4256_s12 = scalar_lea.hbm %s6999_s0, 18432 }
  0x63   : > { %p4253_p0 = pneg %p7092_p10  ;;  %p4257_p11 = scmp.lt.u32.totalorder %s4613_s2, %s6999_s0 }
  0x64   : > { %p4258_p13 = scmp.lt.u32.totalorder %s4256_s12, %s4251_s9  ;;  %p4260_p1 = scmp.lt.u32.totalorder %s4251_s9, %s4613_s2 }
  0x65   : > { %p4254_p7 = pnand %p4253_p0, %p4252_p6 }
  0x66   : > { %p4259_p4 = por %p4258_p13, %p4257_p11 }
  0x67   : > { %p4255_p8 = pneg %p4254_p7 }
  0x68   : > { %p4261_p2 = por %p4260_p1, %p4259_p4 }
  0x6a   : > { %p4262_p9 = pnand %p4261_p2, %p4255_p8 }
  0x6c   : > { %4265 = shalt.err (!%p4262_p9)
}
  0x6d   : > { %s4266_s29 = scalar_lea.vmem %s4615_s5, 9216  ;;  %s4411_s23 = smov [#allocation2]  }
  0x6e   : > { %p4267_p12 = scmp.ne.s32.totalorder %s4615_s5, %s4266_s29  ;;  %s4271_s26 = sshll.u32 %s4411_s23, 4  ;;  %s4272_s26 = int_to_ptr.vmem [resolvable:$false] %s4271_s26 }
  0x6f   : > { %s4273_s11 = scalar_lea.vmem %s4272_s26, 18432  ;;  %p4274_p6 = scmp.lt.s32.totalorder %s4615_s5, %s4272_s26 }
  0x70   : > { %p4269_p5 = pnand %p4267_p12, %p4253_p0  ;;  %p4275_p7 = scmp.lt.s32.totalorder %s4273_s11, %s4266_s29 }
  0x72   : > { %p4270_p3 = pneg %p4269_p5  ;;  %p4276_p11 = por %p4275_p7, %p4274_p6 }
  0x74   : > { %p4277_p13 = pnand %p4276_p11, %p4270_p3 }
  0x76   : > { %4280 = shalt.err (!%p4277_p13)
}
  0x77   : > { %s4412_s9 = smov 128   ;;  %s4413_s1 = smov 8  }
  0x78   : > { %4077 = dma.hbm_to_vmem [thread:$0]  (!%p7092_p10), %s4613_s2, 9216, %s4615_s5, %s4623_s6, %s4412_s9, %s4412_s9, %s4413_s1  }
  0x79   : > { %p7093_p0 = scmp.ne.s32.totalorder %s7086_s30, 0 }
  0x7b   : > { %191 = sbr.rel (%p7093_p0) target bundleno = 1254 (0x4e6), region = 32 }
  0x82   : > { %s193_s4 = sand.u32 1, %s4383_s16   ;;  %p7094_p8 = scmp.ne.s32.totalorder %s7082_s27, 0 }
  0x83   : > { %s4054_s12 = smul.u32 576, %s193_s4  ;;  %s194_s8 = scalar_lea.sflag [#allocation3], %s193_s4 }
  0x85   : > { %s197_s10 = scalar_lea.vmem [#allocation2], %s4054_s12 }
  0x86   : > { %4354 = dma.done.wait (%p7094_p8), %s194_s8, 9216  }
  0x87   : > { %4356 = vsyncadd (%p7094_p8), %s194_s8, 4294958080  ;;  %p7095_p4 = scmp.ne.s32.totalorder %s7080_s25, 0 }
  0x89   : > { %4358 = dma.done.wait (%p7095_p4), [#allocation6], 256  }
  0x8a   : > { %4360 = vsyncadd (%p7095_p4), [#allocation6], 4294967040  ;;  %v307_v0 = vlaneseq  ;;  %s4031_s2 = sshll.u32 %s4391_s18, 3  ;;  %v4414_v1 = vmov 1983009808   ;;  %v7013_v3 = vmov 0  }
  0x8b   : > { %v305_v2 = vunpack.c.l.s4 %v4414_v1  ;;  %3858 = vmatprep.subr.bf16.mxu0 %v7013_v3  ;;  %4192 = vset.pattern.permute.xlu0 %v7013_v3  ;;  %v4416_v6 = vmov 1934713408   ;;  %s4665_s27 = scalar_lea.vmem %s197_s10, %s4031_s2 [#allocation2]  ;;  %s4417_s25 = smov 64   ;;  %vm583_vm0 = vcmask 130048   ;;  %vm595_vm1 = vcmask 392192  }
  0x8c   : > { %v308_v5 = vshrl.u32 %v307_v0, 7  ;;  %v338_v7 = vunpack.c.l.s4 %v4416_v6  ;;  %v4668_v8 = vld [vmem:[%s4665_s27 + $0x180] sm:$0xff]  ;;  %v4671_v9 = vld [vmem:[%s4665_s27 + $0x198] sm:$0xff]  ;;  %v4674_v10 = vld [vmem:[%s4665_s27 + $0x1b0] sm:$0xff]  ;;  %s4418_s30 = smov 16   ;;  %s4419_s7 = smov 32  }
  0x8d   : > { %v306_v4 = vunpack.c.0.s8 %v305_v2  ;;  %v4679_v13 = vld [vmem:[%s4665_s27 + $0x1c8] sm:$0xff]  ;;  %v4682_v14 = vld [vmem:[%s4665_s27 + $0x1e0] sm:$0xff]  ;;  %v4685_v15 = vld [vmem:[%s4665_s27 + $0x1f8] sm:$0xff]  ;;  %s4420_s5 = smov 96   ;;  %s4421_s6 = smov 80   ;;  %vm590_vm2 = vcmask 261120  }
  0x8e   : > { %v339_v12 = vunpack.c.0.s8 %v338_v7  ;;  %v4688_v16 = vld [vmem:[%s4665_s27 + $0x210] sm:$0xff]  ;;  %v4691_v17 = vld [vmem:[%s4665_s27 + $0x228] sm:$0xff]  ;;  %v4040_v18 = vpack.c.bf16 %v4682_v14, %v4668_v8  ;;  %v4042_v19 = vpack.c.bf16 %v4685_v15, %v4671_v9  ;;  %v4698_v20 = vld [vmem:[%s4665_s27] sm:$0xff]  ;;  %s4422_s29 = smov 48   ;;  %s4423_s23 = smov 112   ;;  %vm600_vm3 = vcmask 523264  }
  0x8f   : > { %v4676_v11 = vsub.s32 %v306_v4, %v308_v5  ;;  %v4041_v21 = vpack.c.bf16 %v4688_v16, %v4674_v10  ;;  %v4043_v22 = vpack.c.bf16 %v4691_v17, %v4679_v13  ;;  %v4705_v23 = vld [vmem:[%s4665_s27 + $0x18] sm:$0xff]  ;;  %v4708_v24 = vld [vmem:[%s4665_s27 + $0x30] sm:$0xff]  ;;  %v4711_v25 = vld [vmem:[%s4665_s27 + $0x48] sm:$0xff]  ;;  %s4424_s26 = smov 127   ;;  %s4425_s11 = smov 126   ;;  %vm605_vm4 = vcmask 654336  }
  0x90   : > { %v4713_v26 = vsub.s32 %v339_v12, %v308_v5  ;;  %v4718_v29 = vld [vmem:[%s4665_s27 + $0x60] sm:$0xff]  ;;  %v4721_v30 = vld [vmem:[%s4665_s27 + $0x78] sm:$0xff]  ;;  %v4724_v31 = vld [vmem:[%s4665_s27 + $0x90] sm:$0xff]  ;;  %vm610_vm5 = vcmask 785408   ;;  %vm615_vm6 = vcmask 916480   ;;  %vm3803_vm7 = vcmask 1043456  }
  0x91   : > { %v446_v27 = vrot.slane %v4040_v18, %v4676_v11  ;;  %v480_v28 = vrot.slane %v4042_v19, %v4676_v11  ;;  %v454_v32 = vrot.slane %v4041_v21, %v4676_v11  ;;  %v488_v33 = vrot.slane %v4043_v22, %v4676_v11  ;;  %v4729_v34 = vld [vmem:[%s4665_s27 + $0xa8] sm:$0xff]  ;;  %v4732_v35 = vld [vmem:[%s4665_s27 + $0xc0] sm:$0xff]  ;;  %v4739_v38 = vld [vmem:[%s4665_s27 + $0xf0] sm:$0xff]  ;;  %s225_s9 = sand.u32 1, %s4371_s13   ;;  %s4048_s4 = sshll.u32 %s4395_s19, 1 }
  0x92   : > { %v4032_v36 = vpack.c.bf16 %v4718_v29, %v4698_v20  ;;  %v4033_v37 = vpack.c.bf16 %v4724_v31, %v4708_v24  ;;  %v4742_v39 = vld [vmem:[%s4665_s27 + $0x120] sm:$0xff]  ;;  %v4036_v40 = vpack.c.bf16 %v4721_v30, %v4705_v23  ;;  %v4037_v41 = vpack.c.bf16 %v4729_v34, %v4711_v25  ;;  %v4749_v46 = vld [vmem:[%s4665_s27 + $0x150] sm:$0xff]  ;;  %v4752_v47 = vld [vmem:[%s4665_s27 + $0xd8] sm:$0xff]  ;;  %s4030_s1 = sshll.u32 %s225_s9, 3  ;;  %s3912_s12 = sadd.s32 %s4391_s18, %s4048_s4 }
  0x93   : > { %v456_v42 = vcombine.high %v446_v27, %v454_v32  ;;  %v490_v43 = vcombine.high %v480_v28, %v488_v33  ;;  %v455_v44 = vcombine.low %v446_v27, %v454_v32  ;;  %v489_v45 = vcombine.low %v480_v28, %v488_v33  ;;  %v4773_v56 = vld [vmem:[%s4665_s27 + $0x108] sm:$0xff]  ;;  %v4776_v57 = vld [vmem:[%s4665_s27 + $0x138] sm:$0xff]  ;;  %s4049_s8 = sshll.u32 %s3912_s12, 7  ;;  %s227_s10 = scalar_lea.vmem [#allocation8], %s4030_s1 }
  0x94   : > { %v310_v48 = vrot.slane %v4032_v36, %v4676_v11  ;;  %v318_v49 = vrot.slane %v4033_v37, %v4676_v11  ;;  %v4034_v50 = vpack.c.bf16 %v4742_v39, %v4732_v35  ;;  %v4035_v51 = vpack.c.bf16 %v4749_v46, %v4739_v38  ;;  %v4779_v58 = vld [vmem:[%s4665_s27 + $0x168] sm:$0xff]  ;;  %s3916_s2 = sshll.u32 %s227_s10, 4  ;;  %s3901_s18 = scalar_lea.sflag [#allocation4], %s225_s9  ;;  %s6939_s2 = int_to_ptr.vmem [resolvable:$true] %s3916_s2 }
  0x95   : > { %v4761_v52 = vrot.slane %v456_v42, %v4713_v26  ;;  %v4764_v53 = vrot.slane %v490_v43, %v4713_v26  ;;  %v4767_v54 = vrot.slane %v455_v44, %v4713_v26  ;;  %v4770_v55 = vrot.slane %v489_v45, %v4713_v26  ;;  %s4281_s19 = scalar_lea.vmem %s6939_s2, 128  ;;  %p7287_p1 = scmp.ne.s32.totalorder %s7083_s28, 0 }
  0x96   : > { %v326_v59 = vrot.slane %v4034_v50, %v4676_v11  ;;  %v334_v60 = vrot.slane %v4035_v51, %v4676_v11  ;;  %v335_v61 = vcombine.low %v310_v48, %v318_v49  ;;  %v378_v62 = vrot.slane %v4036_v40, %v4676_v11  ;;  %p4282_p10 = scmp.ne.s32.totalorder %s6939_s2, %s4281_s19 }
  0x97   : > { %v545_v63 = vpack.i.b16 %v4764_v53, %v4761_v52  ;;  %v534_v0 = vshrl.u32 %v4767_v54, 16  ;;  %v535_v1 = vshrl.u32 %v4770_v55, 16  ;;  %v386_v2 = vrot.slane %v4037_v41, %v4676_v11 }
  0x98   : > { %v343_v4 = vrot.slane %v335_v61, %v4713_v26  ;;  %v351_v5 = vcombine.low %v326_v59, %v334_v60  ;;  %v4038_v6 = vpack.c.bf16 %v4776_v57, %v4752_v47  ;;  %v4039_v7 = vpack.c.bf16 %v4779_v58, %v4773_v56  ;;  %p4283_p2 = pnand %p4282_p10, %p7287_p1 }
  0x99   : > { %569 = vrot.lane.b32.xlu1 %v545_v63, %s4417_s25  ;;  %v536_v12 = vpack.i.b16 %v535_v1, %v534_v0  ;;  %v403_v18 = vcombine.low %v378_v62, %v386_v2  ;;  %v336_v19 = vcombine.high %v310_v48, %v318_v49  ;;  %v352_v21 = vcombine.high %v326_v59, %v334_v60 }
  0x9a   : > { %v359_v22 = vrot.slane %v351_v5, %v4713_v26  ;;  %v394_v27 = vrot.slane %v4038_v6, %v4676_v11  ;;  %v402_v28 = vrot.slane %v4039_v7, %v4676_v11  ;;  %v404_v32 = vcombine.high %v378_v62, %v386_v2  ;;  %p4284_p9 = pneg %p4283_p2 }
  0x9b   : > { %557 = vrot.lane.b32.xlu0 %v536_v12, %s4418_s30  ;;  %v350_v33 = vrot.slane %v336_v19, %v4713_v26  ;;  %v366_v36 = vrot.slane %v352_v21, %v4713_v26  ;;  %v411_v37 = vrot.slane %v403_v18, %v4713_v26  ;;  %v471_v49 = vcombine.high %v4767_v54, %v7013_v3 }
  0x9c   : > { %v419_v40 = vcombine.low %v394_v27, %v402_v28  ;;  %v418_v41 = vrot.slane %v404_v32, %v4713_v26  ;;  %v420_v42 = vcombine.high %v394_v27, %v402_v28  ;;  %v368_v43 = vcombine.high %v343_v4, %v359_v22  ;;  %v266_v27 = vld [vmem:[%s4665_s27 + $0x1a0] sm:$0x3]  ;;  %v264_v28 = vld [vmem:[%s4665_s27 + $0x188] sm:$0x3]  ;;  %v270_v32 = vld [vmem:[%s4665_s27 + $0x1d0] sm:$0x3] }
  0x9d   : > { %v4804_v45 = vcombine.low %v350_v33, %v366_v36  ;;  %v505_v50 = vcombine.high %v4770_v55, %v7013_v3  ;;  %v4811_v51 = vcombine.high %v350_v33, %v366_v36  ;;  %v4815_v62 = vcombine.low %v343_v4, %v359_v22  ;;  %v268_v33 = vld [vmem:[%s4665_s27 + $0x1b8] sm:$0x3] }
  0x9e   : > { %v427_v44 = vrot.slane %v419_v40, %v4713_v26  ;;  %v434_v48 = vrot.slane %v420_v42, %v4713_v26  ;;  %v546_v2 = vshrl.u32 %v4761_v52, 16  ;;  %v547_v5 = vshrl.u32 %v4764_v53, 16  ;;  %v274_v40 = vld [vmem:[%s4665_s27 + $0x200] sm:$0x3] }
  0x9f   : > { %v539_v4 = vpack.i.b16 %v505_v50, %v471_v49  ;;  %v510_v7 = vshrl.u32 %v4815_v62, 16  ;;  %v472_v18 = vcombine.high %v4761_v52, %v7013_v3  ;;  %v506_v19 = vcombine.high %v4764_v53, %v7013_v3  ;;  %v272_v52 = vld [vmem:[%s4665_s27 + $0x1e8] sm:$0x3]  ;;  %v278_v53 = vld [vmem:[%s4665_s27 + $0x230] sm:$0x3] }
  0xa0   : > { %v436_v59 = vcombine.high %v411_v37, %v427_v44  ;;  %v437_v60 = vcombine.low %v418_v41, %v434_v48  ;;  %v4813_v61 = vcombine.high %v418_v41, %v434_v48  ;;  %v4817_v63 = vcombine.low %v411_v37, %v427_v44  ;;  %v276_v44 = vld [vmem:[%s4665_s27 + $0x218] sm:$0x3] }
  0xa1   : > { %v516_v21 = vshrl.u32 %v368_v43, 16  ;;  %v548_v36 = vpack.i.b16 %v547_v5, %v546_v2  ;;  %v551_v41 = vpack.i.b16 %v506_v19, %v472_v18  ;;  %v540_v42 = vshrl.u32 %v471_v49, 16 }
  0xa2   : > { %v515_v0 = vpack.i.b16 %v436_v59, %v368_v43  ;;  %v521_v1 = vpack.i.b16 %v437_v60, %v4804_v45  ;;  %v527_v6 = vpack.i.b16 %v4813_v61, %v4811_v51  ;;  %v511_v12 = vshrl.u32 %v4817_v63, 16 }
  0xa3   : > { %v517_v22 = vshrl.u32 %v436_v59, 16  ;;  %v541_v48 = vshrl.u32 %v505_v50, 16  ;;  %v522_v59 = vshrl.u32 %v4804_v45, 16  ;;  %v4853_v2 = vpack.c.bf16 %v268_v33, %v4674_v10  ;;  %v244_v33 = vld [vmem:[%s4665_s27 + $0x98] sm:$0x3] }
  0xa4   : > { %559 = vrot.lane.b32.xlu1 %v515_v0, %s4419_s7  ;;  %567 = vrot.lane.b32.xlu0 %v521_v1, %s4417_s25  ;;  %v512_v37 = vpack.i.b16 %v511_v12, %v510_v7  ;;  %v4844_v0 = vpack.c.bf16 %v266_v27, %v4671_v9  ;;  %v4847_v1 = vpack.c.bf16 %v264_v28, %v4668_v8  ;;  %v523_v45 = vshrl.u32 %v437_v60, 16  ;;  %v234_v12 = vld [vmem:[%s4665_s27 + $0x20] sm:$0x3] }
  0xa5   : > { %v518_v43 = vpack.i.b16 %v517_v22, %v516_v21  ;;  %v4856_v49 = vpack.c.bf16 %v274_v40, %v4685_v15  ;;  %v4861_v9 = vpack.c.bf16 %v272_v52, %v4682_v14  ;;  %v4864_v8 = vpack.c.bf16 %v278_v53, %v4691_v17  ;;  %v236_v21 = vld [vmem:[%s4665_s27 + $0x38] sm:$0x3]  ;;  %v242_v27 = vld [vmem:[%s4665_s27 + $0x80] sm:$0x3] }
  0xa6   : > { %7096 = vst [vmem:[#allocation16_spill] sm:$0xff] %v4844_v0  ;;  %v509_v15 = vpack.i.b16 %v4817_v63, %v4815_v62  ;;  %v552_v50 = vshrl.u32 %v472_v18, 16  ;;  %v553_v5 = vshrl.u32 %v506_v19, 16  ;;  %v542_v14 = vpack.i.b16 %v541_v48, %v540_v42  ;;  %v232_v18 = vld [vmem:[%s4665_s27 + $0x8] sm:$0x3] }
  0xa7   : > { %v528_v17 = vshrl.u32 %v4811_v51, 16  ;;  %v529_v60 = vshrl.u32 %v4813_v61, 16  ;;  %v4884_v51 = vpack.c.bf16 %v234_v12, %v4705_v23  ;;  %v4887_v61 = vpack.c.bf16 %v232_v18, %v4698_v20  ;;  %v238_v19 = vld [vmem:[%s4665_s27 + $0x50] sm:$0x3]  ;;  %v240_v20 = vld [vmem:[%s4665_s27 + $0x68] sm:$0x3] }
  0xa8   : > { %561 = vrot.lane.b32.xlu1 %v539_v4, %s4419_s7  ;;  %575 = vrot.lane.b32.xlu0 %v527_v6, %s4420_s5  ;;  %v4850_v4 = vpack.c.bf16 %v270_v32, %v4679_v13  ;;  %v4867_v13 = vpack.c.bf16 %v276_v44, %v4688_v16  ;;  %v524_v16 = vpack.i.b16 %v523_v45, %v522_v59  ;;  %v252_v52 = vld [vmem:[%s4665_s27 + $0xf8] sm:$0x3]  ;;  %v258_v42 = vld [vmem:[%s4665_s27 + $0x140] sm:$0x3]  ;;  %vm3852_vm8 = vcmask 719872  }
  0xa9   : > { %v554_v6 = vpack.i.b16 %v553_v5, %v552_v50  ;;  %v530_v7 = vpack.i.b16 %v529_v60, %v528_v17  ;;  %v4896_v22 = vpack.c.bf16 %v238_v19, %v4711_v25  ;;  %v4899_v23 = vpack.c.bf16 %v236_v21, %v4708_v24  ;;  %v246_v25 = vld [vmem:[%s4665_s27 + $0xb0] sm:$0x3] }
  0xaa   : > { %v4908_v28 = vpack.c.bf16 %v242_v27, %v4721_v30  ;;  %v4911_v32 = vpack.c.bf16 %v240_v20, %v4718_v29  ;;  %v4920_v24 = vpack.c.bf16 %v246_v25, %v4729_v34  ;;  %v250_v30 = vld [vmem:[%s4665_s27 + $0xe0] sm:$0x3]  ;;  %v254_v34 = vld [vmem:[%s4665_s27 + $0x110] sm:$0x3] }
  0xab   : > { %v4932_v29 = vpack.c.bf16 %v250_v30, %v4752_v47  ;;  %v256_v47 = vld [vmem:[%s4665_s27 + $0x128] sm:$0x3]  ;;  %v262_v44 = vld [vmem:[%s4665_s27 + $0x170] sm:$0x3] }
  0xac   : > { %573 = vrot.lane.b32.xlu1 %v548_v36, %s4421_s6  ;;  %555 = vrot.lane.b32.xlu0 %v512_v37, %s4418_s30  ;;  %v4923_v36 = vpack.c.bf16 %v244_v33, %v4724_v31  ;;  %v248_v37 = vld [vmem:[%s4665_s27 + $0xc8] sm:$0x3]  ;;  %v4944_v31 = vpack.c.bf16 %v254_v34, %v4773_v56  ;;  %v4959_v53 = vpack.c.bf16 %v256_v47, %v4742_v39  ;;  %v260_v56 = vld [vmem:[%s4665_s27 + $0x158] sm:$0x3] }
  0xad   : > { %7097 = vst [vmem:[#allocation17_spill] sm:$0xff] %v4932_v29  ;;  %v4935_v40 = vpack.c.bf16 %v248_v37, %v4732_v35  ;;  %v4956_v35 = vpack.c.bf16 %v258_v42, %v4776_v57 }
  0xae   : > { %7098 = vst [vmem:[#allocation18_spill] sm:$0xff] %v4944_v31 }
  0xaf   : > { %7099 = vst [vmem:[#allocation19_spill] sm:$0xff] %v4956_v35 }
  0xb0   : > { %577 = vrot.lane.b32.xlu1 %v551_v41, %s4420_s5  ;;  %563 = vrot.lane.b32.xlu0 %v518_v43, %s4422_s29  ;;  %v4947_v41 = vpack.c.bf16 %v252_v52, %v4739_v38  ;;  %v4968_v38 = vpack.c.bf16 %v262_v44, %v4779_v58  ;;  %v4971_v43 = vpack.c.bf16 %v260_v56, %v4749_v46 }
  0xb2   : > { %7100 = vst [vmem:[#allocation20_spill] sm:$0xff] %v4968_v38 }
  0xb4   : > { %565 = vrot.lane.b32.xlu1 %v542_v14, %s4422_s29  ;;  %571 = vrot.lane.b32.xlu0 %v524_v16, %s4421_s6 }
  0xb8   : > { %581 = vrot.lane.b32.xlu1 %v554_v6, %s4423_s23  ;;  %579 = vrot.lane.b32.xlu0 %v530_v7, %s4423_s23 }
  0xbc   : > { %647 = vrot.lane.b32.xlu1 %v4884_v51, %s4424_s26  ;;  %645 = vrot.lane.b32.xlu0 %v4887_v61, %s4424_s26 }
  0xc0   : > { %651 = vrot.lane.b32.xlu1 %v4896_v22, %s4424_s26  ;;  %649 = vrot.lane.b32.xlu0 %v4899_v23, %s4424_s26 }
  0xc4   : > { %655 = vrot.lane.b32.xlu1 %v4908_v28, %s4424_s26  ;;  %653 = vrot.lane.b32.xlu0 %v4911_v32, %s4424_s26 }
  0xc8   : > { %659 = vrot.lane.b32.xlu1 %v4920_v24, %s4424_s26  ;;  %657 = vrot.lane.b32.xlu0 %v4923_v36, %s4424_s26 }
  0xcc   : > { %663 = vrot.lane.b32.xlu1 %v4932_v29, %s4424_s26  ;;  %661 = vrot.lane.b32.xlu0 %v4935_v40, %s4424_s26 }
  0xd0   : > { %667 = vrot.lane.b32.xlu1 %v4944_v31, %s4424_s26  ;;  %665 = vrot.lane.b32.xlu0 %v4947_v41, %s4424_s26 }
  0xd4   : > { %671 = vrot.lane.b32.xlu1 %v4956_v35, %s4424_s26  ;;  %669 = vrot.lane.b32.xlu0 %v4959_v53, %s4424_s26 }
  0xd8   : > { %675 = vrot.lane.b32.xlu1 %v4968_v38, %s4424_s26  ;;  %673 = vrot.lane.b32.xlu0 %v4971_v43, %s4424_s26 }
  0xdc   : > { %679 = vrot.lane.b32.xlu1 %v4844_v0, %s4424_s26  ;;  %677 = vrot.lane.b32.xlu0 %v4847_v1, %s4424_s26 }
  0xe0   : > { %683 = vrot.lane.b32.xlu1 %v4850_v4, %s4424_s26  ;;  %681 = vrot.lane.b32.xlu0 %v4853_v2, %s4424_s26 }
  0xe4   : > { %687 = vrot.lane.b32.xlu1 %v4856_v49, %s4424_s26  ;;  %685 = vrot.lane.b32.xlu0 %v4861_v9, %s4424_s26 }
  0xe8   : > { %691 = vrot.lane.b32.xlu1 %v4864_v8, %s4424_s26  ;;  %689 = vrot.lane.b32.xlu0 %v4867_v13, %s4424_s26 }
  0xec   : > { %1029 = vrot.lane.b32.xlu1 %v4884_v51, %s4425_s11  ;;  %1027 = vrot.lane.b32.xlu0 %v4887_v61, %s4425_s11 }
  0xf0   : > { %1033 = vrot.lane.b32.xlu1 %v4896_v22, %s4425_s11  ;;  %1031 = vrot.lane.b32.xlu0 %v4899_v23, %s4425_s11 }
  0xf4   : > { %1037 = vrot.lane.b32.xlu1 %v4908_v28, %s4425_s11  ;;  %1035 = vrot.lane.b32.xlu0 %v4911_v32, %s4425_s11 }
  0xf8   : > { %1041 = vrot.lane.b32.xlu1 %v4920_v24, %s4425_s11  ;;  %1039 = vrot.lane.b32.xlu0 %v4923_v36, %s4425_s11 }
  0xfc   : > { %1045 = vrot.lane.b32.xlu1 %v4932_v29, %s4425_s11  ;;  %1043 = vrot.lane.b32.xlu0 %v4935_v40, %s4425_s11 }
 0x100   : > { %1049 = vrot.lane.b32.xlu1 %v4944_v31, %s4425_s11  ;;  %1047 = vrot.lane.b32.xlu0 %v4947_v41, %s4425_s11 }
 0x104   : > { %1053 = vrot.lane.b32.xlu1 %v4956_v35, %s4425_s11  ;;  %1051 = vrot.lane.b32.xlu0 %v4959_v53, %s4425_s11 }
 0x108   : > { %1057 = vrot.lane.b32.xlu1 %v4968_v38, %s4425_s11  ;;  %1055 = vrot.lane.b32.xlu0 %v4971_v43, %s4425_s11 }
 0x10b   : > { %v5029_v39 = vpop.permute.xlu1 %569 }
 0x10c   : > { %1059 = vrot.lane.b32.xlu0 %v4847_v1, %s4425_s11  ;;  %1061 = vrot.lane.b32.xlu1 %v4844_v0, %s4425_s11 }
 0x10d   : > { %v5031_v46 = vpop.permute.xlu0 %557 }
 0x116   : > { %v560_v57 = vpop.permute.xlu1 %559  ;;  %v568_v58 = vpop.permute.xlu0 %567 }
 0x11a   : > { %v5033_v48 = vpop.permute.xlu1 %561  ;;  %v576_v59 = vpop.permute.xlu0 %575 }
 0x11e   : > { %v5035_v45 = vpop.permute.xlu1 %573  ;;  %v556_v50 = vpop.permute.xlu0 %555 }
 0x11f   : > { %v586_v5 = vsel %vm583_vm0, %v509_v15, %v556_v50 }
 0x120   : > { %v592_v17 = vsel %vm590_vm2, %v586_v5, %v560_v57 }
 0x122   : > { %v5041_v14 = vpop.permute.xlu1 %577  ;;  %v564_v16 = vpop.permute.xlu0 %563 }
 0x123   : > { %v597_v60 = vsel %vm595_vm1, %v592_v17, %v564_v16 }
 0x124   : > { %v602_v12 = vsel %vm600_vm3, %v597_v60, %v568_v58 }
 0x126   : > { %v5045_v6 = vpop.permute.xlu1 %565  ;;  %v572_v7 = vpop.permute.xlu0 %571 }
 0x127   : > { %v607_v62 = vsel %vm605_vm4, %v602_v12, %v572_v7 }
 0x128   : > { %v612_v18 = vsel %vm610_vm5, %v607_v62, %v576_v59 }
 0x12a   : > { %v5049_v63 = vpop.permute.xlu1 %581  ;;  %v580_v15 = vpop.permute.xlu0 %579 }
 0x12b   : > { %v617_v19 = vsel %vm615_vm6, %v612_v18, %v580_v15 }
 0x12c   : > { %3859 = vmatpush1.bf16.msra.mxu0 %v617_v19 }
 0x12d   : > { %3860 = vmatprep.subr.bf16.mxu0 %v7013_v3 }
 0x12e   : > { %v648_v21 = vpop.permute.xlu1 %647  ;;  %v646_v27 = vpop.permute.xlu0 %645 }
 0x132   : > { %v652_v20 = vpop.permute.xlu1 %651  ;;  %v650_v25 = vpop.permute.xlu0 %649 }
 0x136   : > { %v656_v33 = vpop.permute.xlu1 %655  ;;  %v654_v30 = vpop.permute.xlu0 %653 }
 0x137   : > { %v785_v58 = vcombine.low %v648_v21, %v656_v33  ;;  %v717_v59 = vcombine.low %v646_v27, %v654_v30 }
 0x139   : > { %v792_v12 = vrot.slane %v785_v58, %v4676_v11  ;;  %v724_v62 = vrot.slane %v717_v59, %v4676_v11 }
 0x13a   : > { %v660_v37 = vpop.permute.xlu1 %659  ;;  %v658_v34 = vpop.permute.xlu0 %657 }
 0x13b   : > { %v793_v56 = vcombine.low %v652_v20, %v660_v37  ;;  %v725_v57 = vcombine.low %v650_v25, %v658_v34 }
 0x13d   : > { %v800_v16 = vrot.slane %v793_v56, %v4676_v11  ;;  %v732_v17 = vrot.slane %v725_v57, %v4676_v11 }
 0x13e   : > { %v664_v52 = vpop.permute.xlu1 %663  ;;  %v662_v42 = vpop.permute.xlu0 %661 }
 0x13f   : > { %v817_v20 = vcombine.low %v792_v12, %v800_v16  ;;  %v749_v25 = vcombine.low %v724_v62, %v732_v17  ;;  %v750_v37 = vcombine.high %v724_v62, %v732_v17  ;;  %v818_v59 = vcombine.high %v792_v12, %v800_v16 }
 0x141   : > { %v764_v17 = vrot.slane %v750_v37, %v4713_v26  ;;  %v832_v16 = vrot.slane %v818_v59, %v4713_v26 }
 0x142   : > { %v668_v47 = vpop.permute.xlu1 %667  ;;  %v666_v44 = vpop.permute.xlu0 %665 }
 0x146   : > { %v672_v50 = vpop.permute.xlu1 %671  ;;  %v670_v5 = vpop.permute.xlu0 %669 }
 0x147   : > { %v801_v60 = vcombine.low %v664_v52, %v672_v50  ;;  %v733_v7 = vcombine.low %v662_v42, %v670_v5 }
 0x149   : > { %v808_v21 = vrot.slane %v801_v60, %v4676_v11  ;;  %v740_v27 = vrot.slane %v733_v7, %v4676_v11 }
 0x14a   : > { %v676_v15 = vpop.permute.xlu1 %675  ;;  %v674_v18 = vpop.permute.xlu0 %673 }
 0x14b   : > { %v809_v19 = vcombine.low %v668_v47, %v676_v15  ;;  %v741_v10 = vcombine.low %v666_v44, %v674_v18  ;;  %v825_v47 = vrot.slane %v817_v20, %v4713_v26  ;;  %v757_v44 = vrot.slane %v749_v25, %v4713_v26 }
 0x14d   : > { %v816_v33 = vrot.slane %v809_v19, %v4676_v11  ;;  %v748_v30 = vrot.slane %v741_v10, %v4676_v11 }
 0x14e   : > { %v680_v34 = vpop.permute.xlu1 %679  ;;  %v678_v52 = vpop.permute.xlu0 %677 }
 0x14f   : > { %v833_v42 = vcombine.low %v808_v21, %v816_v33  ;;  %v834_v56 = vcombine.high %v808_v21, %v816_v33  ;;  %v765_v57 = vcombine.low %v740_v27, %v748_v30  ;;  %v766_v58 = vcombine.high %v740_v27, %v748_v30 }
 0x151   : > { %v841_v50 = vrot.slane %v833_v42, %v4713_v26  ;;  %v773_v5 = vrot.slane %v765_v57, %v4713_v26  ;;  %v780_v60 = vrot.slane %v766_v58, %v4713_v26  ;;  %v848_v62 = vrot.slane %v834_v56, %v4713_v26 }
 0x152   : > { %v684_v7 = vpop.permute.xlu1 %683  ;;  %v682_v10 = vpop.permute.xlu0 %681 }
 0x153   : > { %v782_v15 = vcombine.high %v757_v44, %v773_v5  ;;  %v850_v18 = vcombine.high %v825_v47, %v841_v50  ;;  %v783_v19 = vcombine.low %v764_v17, %v780_v60  ;;  %v5070_v20 = vcombine.low %v757_v44, %v773_v5 }
 0x154   : > { %v851_v27 = vcombine.low %v832_v16, %v848_v62  ;;  %v5073_v33 = vcombine.low %v825_v47, %v841_v50  ;;  %v5075_v30 = vcombine.high %v764_v17, %v780_v60  ;;  %v852_v3 = vcombine.high %v832_v16, %v848_v62 }
 0x155   : > { %v929_v12 = vpack.i.b16 %v850_v18, %v782_v15  ;;  %v924_v47 = vshrl.u32 %v5070_v20, 16 }
 0x156   : > { %v688_v25 = vpop.permute.xlu1 %687  ;;  %v686_v21 = vpop.permute.xlu0 %685  ;;  %v935_v56 = vpack.i.b16 %v851_v27, %v783_v19  ;;  %v925_v62 = vshrl.u32 %v5073_v33, 16 }
 0x157   : > { %973 = vrot.lane.b32.xlu0 %v929_v12, %s4419_s7  ;;  %v887_v37 = vcombine.low %v680_v34, %v688_v25  ;;  %v853_v42 = vcombine.low %v678_v52, %v686_v21  ;;  %v941_v12 = vpack.i.b16 %v852_v3, %v5075_v30 }
 0x159   : > { %v894_v50 = vrot.slane %v887_v37, %v4676_v11  ;;  %v860_v34 = vrot.slane %v853_v42, %v4676_v11 }
 0x15a   : > { %v692_v58 = vpop.permute.xlu1 %691  ;;  %v690_v59 = vpop.permute.xlu0 %689 }
 0x15b   : > { %v895_v44 = vcombine.low %v684_v7, %v692_v58  ;;  %v861_v5 = vcombine.low %v682_v10, %v690_v59  ;;  %981 = vrot.lane.b32.xlu0 %v935_v56, %s4417_s25  ;;  %v926_v56 = vpack.i.b16 %v925_v62, %v924_v47  ;;  %v930_v58 = vshrl.u32 %v782_v15, 16 }
 0x15d   : > { %v902_v52 = vrot.slane %v895_v44, %v4676_v11  ;;  %v868_v60 = vrot.slane %v861_v5, %v4676_v11 }
 0x15e   : > { %v1030_v17 = vpop.permute.xlu1 %1029  ;;  %v1028_v25 = vpop.permute.xlu0 %1027 }
 0x15f   : > { %v903_v7 = vcombine.low %v894_v50, %v902_v52  ;;  %v904_v10 = vcombine.high %v894_v50, %v902_v52  ;;  %v869_v16 = vcombine.low %v860_v34, %v868_v60  ;;  %v870_v21 = vcombine.high %v860_v34, %v868_v60  ;;  %989 = vrot.lane.b32.xlu0 %v941_v12, %s4420_s5 }
 0x160   : > { %v931_v34 = vshrl.u32 %v850_v18, 16  ;;  %v936_v52 = vshrl.u32 %v783_v19, 16 }
 0x161   : > { %v5089_v37 = vrot.slane %v903_v7, %v4713_v26  ;;  %v918_v42 = vrot.slane %v904_v10, %v4713_v26  ;;  %v5093_v59 = vrot.slane %v869_v16, %v4713_v26  ;;  %v884_v44 = vrot.slane %v870_v21, %v4713_v26 }
 0x162   : > { %v1034_v5 = vpop.permute.xlu1 %1033  ;;  %v1032_v57 = vpop.permute.xlu0 %1031  ;;  %v932_v15 = vpack.i.b16 %v931_v34, %v930_v58  ;;  %v937_v10 = vshrl.u32 %v851_v27, 16  ;;  %v7101_v16 = vmov 0  }
 0x163   : > { %969 = vrot.lane.b32.xlu0 %v926_v56, %s4418_s30  ;;  %v959_v50 = vpack.i.b16 %v918_v42, %v884_v44  ;;  %v948_v12 = vshrl.u32 %v5093_v59, 16  ;;  %v949_v47 = vshrl.u32 %v5089_v37, 16  ;;  %v885_v21 = vcombine.high %v5093_v59, %v7101_v16 }
 0x164   : > { %v942_v56 = vshrl.u32 %v5075_v30, 16  ;;  %v938_v58 = vpack.i.b16 %v937_v10, %v936_v52  ;;  %v919_v19 = vcombine.high %v5089_v37, %v7101_v16  ;;  %v960_v30 = vshrl.u32 %v884_v44, 16 }
 0x165   : > { %983 = vrot.lane.b32.xlu1 %v959_v50, %s4417_s25  ;;  %v950_v7 = vpack.i.b16 %v949_v47, %v948_v12  ;;  %v943_v12 = vshrl.u32 %v852_v3, 16  ;;  %v961_v31 = vshrl.u32 %v918_v42, 16  ;;  %v886_v10 = vcombine.high %v884_v44, %v7101_v16 }
 0x166   : > { %v1038_v60 = vpop.permute.xlu1 %1037  ;;  %v1036_v62 = vpop.permute.xlu0 %1035  ;;  %v953_v38 = vpack.i.b16 %v919_v19, %v885_v21 }
 0x167   : > { %977 = vrot.lane.b32.xlu0 %v932_v15, %s4422_s29  ;;  %v1167_v0 = vcombine.low %v1030_v17, %v1038_v60  ;;  %v1099_v50 = vcombine.low %v1028_v25, %v1036_v62  ;;  %v944_v35 = vpack.i.b16 %v943_v12, %v942_v56 }
 0x169   : > { %971 = vrot.lane.b32.xlu1 %v950_v7, %s4418_s30  ;;  %v1174_v17 = vrot.slane %v1167_v0, %v4676_v11  ;;  %v1106_v25 = vrot.slane %v1099_v50, %v4676_v11  ;;  %v962_v7 = vpack.i.b16 %v961_v31, %v960_v30  ;;  %v920_v0 = vcombine.high %v918_v42, %v7101_v16 }
 0x16a   : > { %v1042_v34 = vpop.permute.xlu1 %1041  ;;  %v1040_v15 = vpop.permute.xlu0 %1039 }
 0x16b   : > { %v1175_v27 = vcombine.low %v1034_v5, %v1042_v34  ;;  %v1107_v47 = vcombine.low %v1032_v57, %v1040_v15  ;;  %985 = vrot.lane.b32.xlu0 %v938_v58, %s4421_s6  ;;  %v965_v58 = vpack.i.b16 %v920_v0, %v886_v10  ;;  %v955_v34 = vshrl.u32 %v919_v19, 16 }
 0x16c   : > { %v967_v42 = vshrl.u32 %v920_v0, 16 }
 0x16d   : > { %v1182_v52 = vrot.slane %v1175_v27, %v4676_v11  ;;  %v1114_v60 = vrot.slane %v1107_v47, %v4676_v11  ;;  %975 = vrot.lane.b32.xlu1 %v953_v38, %s4419_s7  ;;  %v954_v38 = vshrl.u32 %v885_v21, 16 }
 0x16e   : > { %v1046_v62 = vpop.permute.xlu1 %1045  ;;  %v1044_v3 = vpop.permute.xlu0 %1043 }
 0x16f   : > { %v1200_v5 = vcombine.high %v1174_v17, %v1182_v52  ;;  %v1132_v57 = vcombine.high %v1106_v25, %v1114_v60  ;;  %993 = vrot.lane.b32.xlu0 %v944_v35, %s4423_s23  ;;  %v966_v35 = vshrl.u32 %v886_v10, 16  ;;  %v956_v44 = vpack.i.b16 %v955_v34, %v954_v38 }
 0x170   : > { %v1199_v47 = vcombine.low %v1174_v17, %v1182_v52  ;;  %v1131_v30 = vcombine.low %v1106_v25, %v1114_v60 }
 0x171   : > { %987 = vrot.lane.b32.xlu1 %v962_v7, %s4421_s6  ;;  %v968_v21 = vpack.i.b16 %v967_v42, %v966_v35 }
 0x172   : > { %v1050_v56 = vpop.permute.xlu1 %1049  ;;  %v1048_v50 = vpop.permute.xlu0 %1047  ;;  %v1207_v17 = vrot.slane %v1199_v47, %v4713_v26  ;;  %v1139_v25 = vrot.slane %v1131_v30, %v4713_v26 }
 0x173   : > { %1063 = vrot.lane.b32.xlu0 %v4853_v2, %s4425_s11 }
 0x175   : > { %991 = vrot.lane.b32.xlu1 %v965_v58, %s4420_s5 }
 0x176   : > { %v1054_v15 = vpop.permute.xlu1 %1053  ;;  %v1052_v12 = vpop.permute.xlu0 %1051 }
 0x177   : > { %v1183_v31 = vcombine.low %v1046_v62, %v1054_v15  ;;  %v1115_v27 = vcombine.low %v1044_v3, %v1052_v12  ;;  %1067 = vrot.lane.b32.xlu0 %v4861_v9, %s4425_s11 }
 0x179   : > { %979 = vrot.lane.b32.xlu1 %v956_v44, %s4422_s29  ;;  %v1190_v58 = vrot.slane %v1183_v31, %v4676_v11  ;;  %v1122_v19 = vrot.slane %v1115_v27, %v4676_v11 }
 0x17a   : > { %v1058_v7 = vpop.permute.xlu1 %1057  ;;  %v1056_v18 = vpop.permute.xlu0 %1055 }
 0x17b   : > { %v1191_v29 = vcombine.low %v1050_v56, %v1058_v7  ;;  %v1123_v10 = vcombine.low %v1048_v50, %v1056_v18  ;;  %1071 = vrot.lane.b32.xlu0 %v4867_v13, %s4425_s11  ;;  %v1214_v56 = vrot.slane %v1200_v5, %v4713_v26  ;;  %v1146_v18 = vrot.slane %v1132_v57, %v4713_v26 }
 0x17c   : > { %v1413_v5 = vshll.u32 %v4887_v61, 16  ;;  %v1411_v7 = vshrl.u32 %v4887_v61, 16 }
 0x17d   : > { %v1198_v62 = vrot.slane %v1191_v29, %v4676_v11  ;;  %v1130_v3 = vrot.slane %v1123_v10, %v4676_v11  ;;  %995 = vrot.lane.b32.xlu1 %v968_v21, %s4423_s23 }
 0x17f   : > { %v1215_v52 = vcombine.low %v1190_v58, %v1198_v62  ;;  %v1216_v60 = vcombine.high %v1190_v58, %v1198_v62  ;;  %v1147_v0 = vcombine.low %v1122_v19, %v1130_v3  ;;  %v1148_v38 = vcombine.high %v1122_v19, %v1130_v3 }
 0x181   : > { %v1223_v50 = vrot.slane %v1215_v52, %v4713_v26  ;;  %v1230_v29 = vrot.slane %v1216_v60, %v4713_v26  ;;  %v1155_v34 = vrot.slane %v1147_v0, %v4713_v26  ;;  %v1162_v15 = vrot.slane %v1148_v38, %v4713_v26  ;;  %1065 = vrot.lane.b32.xlu1 %v4850_v4, %s4425_s11 }
 0x182   : > { %v1415_v60 = vrot.slane %v1413_v5, 1  ;;  %v1427_v0 = vshll.u32 %v4899_v23, 16  ;;  %v1441_v5 = vshll.u32 %v4911_v32, 16 }
 0x183   : > { %v5142_v12 = vcombine.low %v1139_v25, %v1155_v34  ;;  %v5144_v35 = vcombine.low %v1207_v17, %v1223_v50  ;;  %v1164_v31 = vcombine.high %v1139_v25, %v1155_v34  ;;  %v1232_v27 = vcombine.high %v1207_v17, %v1223_v50 }
 0x184   : > { %v5147_v57 = vcombine.high %v1146_v18, %v1162_v15  ;;  %v5149_v44 = vcombine.high %v1214_v56, %v1230_v29  ;;  %v5162_v17 = vcombine.low %v1146_v18, %v1162_v15  ;;  %v5164_v25 = vcombine.low %v1214_v56, %v1230_v29 }
 0x185   : > { %7102 = vst [vmem:[#allocation21_spill] sm:$0xff] %v5142_v12  ;;  %7103 = vst [vmem:[#allocation22_spill] sm:$0xff] %v5144_v35  ;;  %1069 = vrot.lane.b32.xlu1 %v4856_v49, %s4425_s11  ;;  %v1306_v42 = vshrl.u32 %v5142_v12, 16  ;;  %v1307_v47 = vshrl.u32 %v5144_v35, 16  ;;  %v1312_v30 = vshrl.u32 %v1164_v31, 16  ;;  %v1313_v21 = vshrl.u32 %v1232_v27, 16  ;;  %v5253_v12 = vpop.permute.xlu1 %1061 }
 0x186   : > { %7104 = vst [vmem:[#allocation23_spill] sm:$0xff] %v5147_v57  ;;  %v1324_v10 = vshrl.u32 %v5147_v57, 16  ;;  %v1325_v3 = vshrl.u32 %v5149_v44, 16  ;;  %7105 = vst [vmem:[#allocation24_spill] sm:$0xff] %v5162_v17  ;;  %v1311_v52 = vpack.i.b16 %v1232_v27, %v1164_v31  ;;  %v1318_v18 = vshrl.u32 %v5162_v17, 16 }
 0x187   : > { %v1308_v62 = vpack.i.b16 %v1307_v47, %v1306_v42  ;;  %7106 = vst [vmem:[#allocation25_spill] sm:$0xff] %v5164_v25  ;;  %v5167_v38 = vpack.i.b16 %v1313_v21, %v1312_v30  ;;  %v1319_v56 = vshrl.u32 %v5164_v25, 16  ;;  %v5181_v15 = vor.u32 %v1415_v60, %v1411_v7 }
 0x188   : > { %v5172_v50 = vpack.i.b16 %v1325_v3, %v1324_v10  ;;  %v1425_v31 = vshrl.u32 %v4899_v23, 16  ;;  %v1429_v27 = vrot.slane %v1427_v0, 1  ;;  %v1439_v47 = vshrl.u32 %v4911_v32, 16 }
 0x189   : > { %7107 = vst [vmem:[#allocation26_spill] sm:$0xff] %v5167_v38  ;;  %1073 = vrot.lane.b32.xlu1 %v4864_v8, %s4425_s11  ;;  %1351 = vrot.lane.b32.xlu0 %v1308_v62, %s4418_s30  ;;  %v5178_v29 = vpack.i.b16 %v1319_v56, %v1318_v18  ;;  %v1443_v30 = vrot.slane %v1441_v5, 1  ;;  %v1455_v21 = vshll.u32 %v4923_v36, 16  ;;  %v1453_v10 = vshrl.u32 %v4923_v36, 16 }
 0x18a   : > { %7108 = vst [vmem:[#allocation27_spill] sm:$0xff] %v5172_v50  ;;  %v5187_v42 = vor.u32 %v1429_v27, %v1425_v31  ;;  %v1469_v3 = vshll.u32 %v4935_v40, 16  ;;  %v1467_v60 = vshrl.u32 %v4935_v40, 16  ;;  %v1483_v18 = vshll.u32 %v4947_v41, 16 }
 0x18b   : > { %7109 = vst [vmem:[#allocation28_spill] sm:$0xff] %v5178_v29  ;;  %v5193_v7 = vor.u32 %v1443_v30, %v1439_v47  ;;  %v1457_v62 = vrot.slane %v1455_v21, 1  ;;  %v1481_v31 = vshrl.u32 %v4947_v41, 16  ;;  %v1497_v5 = vshll.u32 %v4959_v53, 16 }
 0x18c   : > { %v1471_v0 = vrot.slane %v1469_v3, 1  ;;  %v1485_v27 = vrot.slane %v1483_v18, 1  ;;  %v1495_v30 = vshrl.u32 %v4959_v53, 16  ;;  %v1509_v3 = vshrl.u32 %v4971_v43, 16  ;;  %v5236_v18 = vpop.permute.xlu0 %1059 }
 0x18d   : > { %1355 = vrot.lane.b32.xlu0 %v1311_v52, %s4419_s7  ;;  %v5199_v52 = vor.u32 %v1457_v62, %v1453_v10  ;;  %v1499_v21 = vrot.slane %v1497_v5, 1  ;;  %v1511_v10 = vshll.u32 %v4971_v43, 16  ;;  %v1523_v5 = vshrl.u32 %v4847_v1, 16 }
 0x18e   : > { %v5205_v56 = vor.u32 %v1471_v0, %v1467_v60  ;;  %v5211_v47 = vor.u32 %v1485_v27, %v1481_v31  ;;  %v1525_v31 = vshll.u32 %v4847_v1, 16  ;;  %v1553_v34 = vshll.u32 %v4861_v9, 16 }
 0x18f   : > { %v5217_v62 = vor.u32 %v1499_v21, %v1495_v30  ;;  %v1513_v60 = vrot.slane %v1511_v10, 1  ;;  %v1539_v21 = vshll.u32 %v4853_v2, 16  ;;  %v1551_v35 = vshrl.u32 %v4861_v9, 16 }
 0x190   : > { %v1527_v30 = vrot.slane %v1525_v31, 1  ;;  %v1555_v29 = vrot.slane %v1553_v34, 1  ;;  %v1567_v17 = vshll.u32 %v4867_v13, 16  ;;  %v7110_v38 = vpack.i.b16 %v4770_v55, %v4767_v54 }
 0x191   : > { %1912 = vrot.lane.b32.xlu0 %v5181_v15, %s4424_s26  ;;  %v5222_v0 = vor.u32 %v1513_v60, %v1509_v3  ;;  %v1537_v60 = vshrl.u32 %v4853_v2, 16  ;;  %v1541_v58 = vrot.slane %v1539_v21, 1  ;;  %v1565_v21 = vshrl.u32 %v4867_v13, 16 }
 0x192   : > { %v5247_v3 = vor.u32 %v1527_v30, %v1523_v5  ;;  %v5261_v30 = vor.u32 %v1555_v29, %v1551_v35  ;;  %v1569_v25 = vrot.slane %v1567_v17, 1  ;;  %v7111_v34 = vpack.i.b16 %v5073_v33, %v5070_v20 }
 0x193   : > { %v5255_v31 = vor.u32 %v1541_v58, %v1537_v60  ;;  %v589_v58 = vsel %vm583_vm0, %v7110_v38, %v5031_v46 }
 0x194   : > { %v594_v50 = vsel %vm590_vm2, %v589_v58, %v5033_v48  ;;  %v5280_v54 = vor.u32 %v1569_v25, %v1565_v21 }
 0x195   : > { %1916 = vrot.lane.b32.xlu0 %v5187_v42, %s4424_s26  ;;  %v599_v35 = vsel %vm595_vm1, %v594_v50, %v5045_v6 }
 0x196   : > { %v604_v46 = vsel %vm600_vm3, %v599_v35, %v5029_v39 }
 0x197   : > { %v609_v6 = vsel %vm605_vm4, %v604_v46, %v5035_v45 }
 0x198   : > { %v614_v25 = vsel %vm610_vm5, %v609_v6, %v5041_v14 }
 0x199   : > { %1920 = vrot.lane.b32.xlu0 %v5193_v7, %s4424_s26  ;;  %v620_v45 = vsel %vm615_vm6, %v614_v25, %v5049_v63  ;;  %v5326_v25 = vrot.slane %v4899_v23, 1  ;;  %v5338_v23 = vrot.slane %v4923_v36, 1 }
 0x19b   : > { %7114 = vst [vmem:[#allocation30_spill] sm:$0xff] %v5326_v25  ;;  %7116 = vst [vmem:[#allocation32_spill] sm:$0xff] %v5338_v23 }
 0x19d   : > { %1924 = vrot.lane.b32.xlu0 %v5199_v52, %s4424_s26 }
 0x1a1   : > { %1928 = vrot.lane.b32.xlu0 %v5205_v56, %s4424_s26 }
 0x1a5   : > { %1932 = vrot.lane.b32.xlu0 %v5211_v47, %s4424_s26 }
 0x1a9   : > { %1936 = vrot.lane.b32.xlu0 %v5217_v62, %s4424_s26 }
 0x1ad   : > { %1940 = vrot.lane.b32.xlu0 %v5222_v0, %s4424_s26 }
 0x1b1   : > { %2295 = vrot.lane.b32.xlu0 %v5181_v15, %s4425_s11 }
 0x1b5   : > { %2299 = vrot.lane.b32.xlu0 %v5187_v42, %s4425_s11 }
 0x1b9   : > { %2303 = vrot.lane.b32.xlu0 %v5193_v7, %s4425_s11 }
 0x1bd   : > { %2307 = vrot.lane.b32.xlu0 %v5199_v52, %s4425_s11 }
 0x1c1   : > { %2311 = vrot.lane.b32.xlu0 %v5205_v56, %s4425_s11 }
 0x1c5   : > { %2315 = vrot.lane.b32.xlu0 %v5211_v47, %s4425_s11 }
 0x1c9   : > { %v974_v27 = vpop.permute.xlu0 %973  ;;  %2319 = vrot.lane.b32.xlu0 %v5217_v62, %s4425_s11 }
 0x1cd   : > { %v982_v10 = vpop.permute.xlu0 %981  ;;  %2323 = vrot.lane.b32.xlu0 %v5222_v0, %s4425_s11 }
 0x1d1   : > { %v990_v19 = vpop.permute.xlu0 %989  ;;  %1944 = vrot.lane.b32.xlu0 %v5247_v3, %s4424_s26 }
 0x1d5   : > { %v970_v5 = vpop.permute.xlu0 %969  ;;  %1948 = vrot.lane.b32.xlu0 %v5255_v31, %s4424_s26 }
 0x1d6   : > { %v999_v60 = vsel %vm583_vm0, %v7111_v34, %v970_v5 }
 0x1d7   : > { %v984_v57 = vpop.permute.xlu1 %983  ;;  %v1004_v17 = vsel %vm590_vm2, %v999_v60, %v974_v27  ;;  %v7112_v60 = vpack.i.b16 %v5089_v37, %v5093_v59 }
 0x1d9   : > { %v978_v29 = vpop.permute.xlu0 %977  ;;  %1952 = vrot.lane.b32.xlu0 %v5261_v30, %s4424_s26 }
 0x1da   : > { %v1008_v55 = vsel %vm595_vm1, %v1004_v17, %v978_v29 }
 0x1db   : > { %v972_v20 = vpop.permute.xlu1 %971  ;;  %v1012_v48 = vsel %vm600_vm3, %v1008_v55, %v982_v10 }
 0x1dc   : > { %v1002_v35 = vsel %vm583_vm0, %v7112_v60, %v972_v20 }
 0x1dd   : > { %v986_v33 = vpop.permute.xlu0 %985  ;;  %1956 = vrot.lane.b32.xlu0 %v5280_v54, %s4424_s26 }
 0x1de   : > { %v1016_v38 = vsel %vm605_vm4, %v1012_v48, %v986_v33  ;;  %v5316_v33 = vrot.slane %v4887_v61, 1 }
 0x1df   : > { %v976_v50 = vpop.permute.xlu1 %975  ;;  %v1020_v27 = vsel %vm610_vm5, %v1016_v38, %v990_v19 }
 0x1e0   : > { %v1006_v63 = vsel %vm590_vm2, %v1002_v35, %v976_v50  ;;  %7113 = vst [vmem:[#allocation29_spill] sm:$0xff] %v5316_v33 }
 0x1e1   : > { %v994_v5 = vpop.permute.xlu0 %993  ;;  %2327 = vrot.lane.b32.xlu0 %v5247_v3, %s4425_s11 }
 0x1e2   : > { %v1024_v39 = vsel %vm615_vm6, %v1020_v27, %v994_v5 }
 0x1e3   : > { %v3804_v10 = vrot.slane %v1024_v39, 4  ;;  %v988_v21 = vpop.permute.xlu1 %987  ;;  %v5332_v39 = vrot.slane %v4911_v32, 1  ;;  %v5346_v32 = vrot.slane %v4935_v40, 1  ;;  %v5361_v40 = vrot.slane %v4947_v41, 1 }
 0x1e5   : > { %v1064_v58 = vpop.permute.xlu0 %1063  ;;  %2331 = vrot.lane.b32.xlu0 %v5255_v31, %s4425_s11  ;;  %v3828_v14 = vsel %vm3803_vm7, %v620_v45, %v3804_v10  ;;  %7115 = vst [vmem:[#allocation31_spill] sm:$0xff] %v5332_v39  ;;  %7118 = vst [vmem:[#allocation34_spill] sm:$0xff] %v5346_v32 }
 0x1e6   : > { %3861 = vmatpush1.bf16.msra.mxu0 %v3828_v14  ;;  %7122 = vst [vmem:[#allocation38_spill] sm:$0xff] %v5361_v40 }
 0x1e7   : > { %v992_v19 = vpop.permute.xlu1 %991  ;;  %3862 = vmatprep.subr.bf16.mxu0 %v7101_v16 }
 0x1e9   : > { %v1068_v34 = vpop.permute.xlu0 %1067  ;;  %2335 = vrot.lane.b32.xlu0 %v5261_v30, %s4425_s11 }
 0x1ea   : > { %v1235_v29 = vcombine.low %v5236_v18, %v1068_v34 }
 0x1eb   : > { %v980_v17 = vpop.permute.xlu1 %979 }
 0x1ec   : > { %v1010_v55 = vsel %vm595_vm1, %v1006_v63, %v980_v17  ;;  %v1242_v38 = vrot.slane %v1235_v29, %v4676_v11 }
 0x1ed   : > { %v1014_v46 = vsel %vm600_vm3, %v1010_v55, %v984_v57  ;;  %v1072_v48 = vpop.permute.xlu0 %1071  ;;  %2339 = vrot.lane.b32.xlu0 %v5280_v54, %s4425_s11 }
 0x1ee   : > { %v1243_v6 = vcombine.low %v1064_v58, %v1072_v48  ;;  %v1018_v37 = vsel %vm605_vm4, %v1014_v46, %v988_v21 }
 0x1ef   : > { %v1022_v59 = vsel %vm610_vm5, %v1018_v37, %v992_v19  ;;  %v996_v20 = vpop.permute.xlu1 %995  ;;  %v1420_v37 = vshll.u32 %v4884_v51, 16 }
 0x1f0   : > { %v1250_v18 = vrot.slane %v1243_v6, %v4676_v11  ;;  %v1026_v50 = vsel %vm615_vm6, %v1022_v59, %v996_v20 }
 0x1f1   : > { %v3805_v57 = vrot.slane %v1026_v50, 4  ;;  %3036 = vrot.lane.b32.xlu0 %v5316_v33, %s4424_s26  ;;  %v5391_v50 = vrot.slane %v4959_v53, 1 }
 0x1f2   : > { %v1252_v61 = vcombine.high %v1242_v38, %v1250_v18  ;;  %v1251_v45 = vcombine.low %v1242_v38, %v1250_v18 }
 0x1f3   : > { %v1066_v27 = vpop.permute.xlu1 %1065  ;;  %v3806_v5 = vsel %vm3803_vm7, %v3804_v10, %v3805_v57  ;;  %7125 = vst [vmem:[#allocation41_spill] sm:$0xff] %v5391_v50 }
 0x1f4   : > { %3863 = vmatpush1.bf16.msra.mxu0 %v3806_v5  ;;  %v5349_v34 = vrot.slane %v1251_v45, %v4713_v26  ;;  %v5354_v35 = vrot.slane %v1252_v61, %v4713_v26 }
 0x1f5   : > { %3040 = vrot.lane.b32.xlu0 %v5326_v25, %s4424_s26  ;;  %3864 = vmatprep.subr.bf16.mxu0 %v7101_v16 }
 0x1f6   : > { %7119 = vst [vmem:[#allocation35_spill] sm:$0xff] %v5349_v34  ;;  %7120 = vst [vmem:[#allocation36_spill] sm:$0xff] %v5354_v35  ;;  %v1267_v46 = vcombine.high %v5349_v34, %v7101_v16  ;;  %v1330_v6 = vshrl.u32 %v5349_v34, 16  ;;  %v5377_v59 = vcombine.high %v5354_v35, %v7101_v16  ;;  %v1342_v61 = vshrl.u32 %v5354_v35, 16 }
 0x1f7   : > { %v1070_v21 = vpop.permute.xlu1 %1069 }
 0x1f8   : > { %v1269_v58 = vcombine.low %v5253_v12, %v1070_v21  ;;  %v1336_v21 = vshrl.u32 %v1267_v46, 16 }
 0x1f9   : > { %3044 = vrot.lane.b32.xlu0 %v5332_v39, %s4424_s26 }
 0x1fa   : > { %v1276_v60 = vrot.slane %v1269_v58, %v4676_v11 }
 0x1fb   : > { %v1074_v10 = vpop.permute.xlu1 %1073  ;;  %v5341_v14 = vpop.permute.xlu0 %1351 }
 0x1fc   : > { %7117 = vst [vmem:[#allocation33_spill] sm:$0xff] %v5341_v14  ;;  %v1277_v19 = vcombine.low %v1066_v27, %v1074_v10 }
 0x1fd   : > { %3048 = vrot.lane.b32.xlu0 %v5338_v23, %s4424_s26 }
 0x1fe   : > { %v1284_v36 = vrot.slane %v1277_v19, %v4676_v11  ;;  %v1348_v19 = vshrl.u32 %v5377_v59, 16 }
 0x1ff   : > { %v5356_v12 = vpop.permute.xlu0 %1355 }
 0x200   : > { %7121 = vst [vmem:[#allocation37_spill] sm:$0xff] %v5356_v12  ;;  %v1285_v63 = vcombine.low %v1276_v60, %v1284_v36  ;;  %v1286_v17 = vcombine.high %v1276_v60, %v1284_v36  ;;  %v1418_v36 = vshrl.u32 %v4884_v51, 16 }
 0x201   : > { %3052 = vrot.lane.b32.xlu0 %v5346_v32, %s4424_s26 }
 0x202   : > { %v5364_v29 = vrot.slane %v1285_v63, %v4713_v26  ;;  %v5367_v55 = vrot.slane %v1286_v17, %v4713_v26  ;;  %v1422_v63 = vrot.slane %v1420_v37, 1  ;;  %v1434_v17 = vshll.u32 %v4896_v22, 16 }
 0x203   : > { %v5371_v48 = vpop.permute.xlu0 %1912  ;;  %v1432_v37 = vshrl.u32 %v4896_v22, 16 }
 0x204   : > { %7123 = vst [vmem:[#allocation39_spill] sm:$0xff] %v5364_v29  ;;  %7124 = vst [vmem:[#allocation40_spill] sm:$0xff] %v5367_v55  ;;  %v1331_v41 = vshrl.u32 %v5364_v29, 16  ;;  %v1301_v20 = vcombine.high %v5364_v29, %v7101_v16  ;;  %v5384_v38 = vcombine.high %v5367_v55, %v7101_v16  ;;  %v1343_v27 = vshrl.u32 %v5367_v55, 16 }
 0x205   : > { %3056 = vrot.lane.b32.xlu0 %v5361_v40, %s4424_s26 }
 0x206   : > { %v1332_v5 = vpack.i.b16 %v1331_v41, %v1330_v6  ;;  %v1337_v45 = vshrl.u32 %v1301_v20, 16  ;;  %v1349_v60 = vshrl.u32 %v5384_v38, 16  ;;  %v5401_v53 = vpack.i.b16 %v1343_v27, %v1342_v61 }
 0x207   : > { %v1917_v10 = vpop.permute.xlu0 %1916  ;;  %v5411_v41 = vrot.slane %v4971_v43, 1  ;;  %v1335_v57 = vpack.i.b16 %v1301_v20, %v1267_v46  ;;  %v5416_v27 = vor.u32 %v1422_v63, %v1418_v36  ;;  %v1446_v20 = vshrl.u32 %v4908_v28, 16 }
 0x208   : > { %7126 = vst [vmem:[#allocation42_spill] sm:$0xff] %v5401_v53  ;;  %1353 = vrot.lane.b32.xlu1 %v1332_v5, %s4418_s30  ;;  %v5406_v6 = vpack.i.b16 %v1337_v45, %v1336_v21  ;;  %v5413_v18 = vpack.i.b16 %v1349_v60, %v1348_v19  ;;  %v1436_v5 = vrot.slane %v1434_v17, 1  ;;  %v1448_v21 = vshll.u32 %v4908_v28, 16 }
 0x209   : > { %3060 = vrot.lane.b32.xlu0 %v5391_v50, %s4424_s26  ;;  %7128 = vst [vmem:[#allocation44_spill] sm:$0xff] %v5411_v41  ;;  %v5423_v45 = vrot.slane %v4847_v1, 1  ;;  %v1462_v19 = vshll.u32 %v4920_v24, 16  ;;  %v5434_v60 = vrot.slane %v4853_v2, 1  ;;  %v1460_v63 = vshrl.u32 %v4920_v24, 16  ;;  %v7133_v2 = vld [vmem:[#allocation18_spill] sm:$0xff] }
 0x20a   : > { %7127 = vst [vmem:[#allocation43_spill] sm:$0xff] %v5406_v6  ;;  %v5427_v46 = vor.u32 %v1436_v5, %v1432_v37  ;;  %v7131_v37 = vld [vmem:[#allocation17_spill] sm:$0xff]  ;;  %v1490_v34 = vshll.u32 %v7133_v2, 16  ;;  %v1488_v53 = vshrl.u32 %v7133_v2, 16 }
 0x20b   : > { %v1921_v61 = vpop.permute.xlu0 %1920  ;;  %7129 = vst [vmem:[#allocation45_spill] sm:$0xff] %v5423_v45  ;;  %7130 = vst [vmem:[#allocation46_spill] sm:$0xff] %v5434_v60  ;;  %v1464_v17 = vrot.slane %v1462_v19, 1  ;;  %v1476_v5 = vshll.u32 %v7131_v37, 16 }
 0x20c   : > { %1357 = vrot.lane.b32.xlu1 %v1335_v57, %s4419_s7  ;;  %v1450_v57 = vrot.slane %v1448_v21, 1  ;;  %v5445_v21 = vrot.slane %v4861_v9, 1  ;;  %v1984_v19 = vcombine.low %v5371_v48, %v1921_v61  ;;  %v5457_v9 = vrot.slane %v4867_v13, 1 }
 0x20d   : > { %3064 = vrot.lane.b32.xlu0 %v5411_v41, %s4424_s26  ;;  %v5450_v29 = vor.u32 %v1464_v17, %v1460_v63  ;;  %v1492_v35 = vrot.slane %v1490_v34, 1  ;;  %v7135_v17 = vld [vmem:[#allocation19_spill] sm:$0xff] }
 0x20e   : > { %v5438_v1 = vor.u32 %v1450_v57, %v1446_v20  ;;  %7132 = vst [vmem:[#allocation17_spill] sm:$0xff] %v5445_v21  ;;  %v1474_v20 = vshrl.u32 %v7131_v37, 16  ;;  %v1478_v57 = vrot.slane %v1476_v5, 1  ;;  %7134 = vst [vmem:[#allocation18_spill] sm:$0xff] %v5457_v9  ;;  %v1504_v5 = vshll.u32 %v7135_v17, 16 }
 0x20f   : > { %v1925_v43 = vpop.permute.xlu0 %1924  ;;  %v5466_v48 = vrot.slane %v1984_v19, %v4676_v11  ;;  %v5473_v61 = vor.u32 %v1492_v35, %v1488_v53 }
 0x210   : > { %1914 = vrot.lane.b32.xlu1 %v5416_v27, %s4424_s26  ;;  %v1992_v12 = vcombine.low %v1917_v10, %v1925_v43  ;;  %v5462_v63 = vor.u32 %v1478_v57, %v1474_v20  ;;  %v7139_v20 = vld [vmem:[#allocation20_spill] sm:$0xff] }
 0x211   : > { %3068 = vrot.lane.b32.xlu0 %v5423_v45, %s4424_s26  ;;  %7136 = vst [vmem:[#allocation19_spill] sm:$0xff] %v5466_v48  ;;  %v1518_v57 = vshll.u32 %v7139_v20, 16  ;;  %v1516_v19 = vshrl.u32 %v7139_v20, 16 }
 0x212   : > { %v5469_v10 = vrot.slane %v1992_v12, %v4676_v11 }
 0x213   : > { %v1929_v36 = vpop.permute.xlu0 %1928 }
 0x214   : > { %1918 = vrot.lane.b32.xlu1 %v5427_v46, %s4424_s26  ;;  %7137 = vst [vmem:[#allocation47_spill] sm:$0xff] %v5469_v10  ;;  %v2016_v12 = vcombine.low %v5466_v48, %v5469_v10  ;;  %v1560_v10 = vshll.u32 %v4856_v49, 16 }
 0x215   : > { %3072 = vrot.lane.b32.xlu0 %v5434_v60, %s4424_s26 }
 0x217   : > { %v1933_v58 = vpop.permute.xlu0 %1932 }
 0x218   : > { %1922 = vrot.lane.b32.xlu1 %v5438_v1, %s4424_s26 }
 0x219   : > { %3076 = vrot.lane.b32.xlu0 %v5445_v21, %s4424_s26 }
 0x21b   : > { %v1937_v14 = vpop.permute.xlu0 %1936 }
 0x21c   : > { %v2000_v55 = vcombine.low %v1929_v36, %v1937_v14  ;;  %1926 = vrot.lane.b32.xlu1 %v5450_v29, %s4424_s26  ;;  %v1502_v14 = vshrl.u32 %v7135_v17, 16  ;;  %v1506_v36 = vrot.slane %v1504_v5, 1  ;;  %v1520_v5 = vrot.slane %v1518_v57, 1 }
 0x21d   : > { %3080 = vrot.lane.b32.xlu0 %v5457_v9, %s4424_s26 }
 0x21e   : > { %v5477_v34 = vrot.slane %v2000_v55, %v4676_v11  ;;  %v5507_v6 = vor.u32 %v1520_v5, %v1516_v19  ;;  %v1610_v19 = vcombine.low %v5187_v42, %v5199_v52  ;;  %v1618_v5 = vcombine.low %v5205_v56, %v5217_v62 }
 0x21f   : > { %v1941_v13 = vpop.permute.xlu0 %1940 }
 0x220   : > { %7138 = vst [vmem:[#allocation48_spill] sm:$0xff] %v5477_v34  ;;  %v2008_v43 = vcombine.low %v1933_v58, %v1941_v13  ;;  %1930 = vrot.lane.b32.xlu1 %v5462_v63, %s4424_s26  ;;  %v1507_v58 = vor.u32 %v1506_v36, %v1502_v14  ;;  %v5497_v13 = vrot.slane %v2016_v12, %v4713_v26 }
 0x221   : > { %3418 = vrot.lane.b32.xlu0 %v5316_v33, %s4425_s11  ;;  %v1694_v42 = vcombine.low %v5473_v61, %v5507_v6  ;;  %v5554_v56 = vrot.slane %v1610_v19, %v4676_v11 }
 0x222   : > { %v5487_v35 = vrot.slane %v2008_v43, %v4676_v11 }
 0x223   : > { %v5489_v53 = vpop.permute.xlu0 %2295 }
 0x224   : > { %7140 = vst [vmem:[#allocation20_spill] sm:$0xff] %v5487_v35  ;;  %v2032_v55 = vcombine.low %v5477_v34, %v5487_v35  ;;  %1934 = vrot.lane.b32.xlu1 %v5473_v61, %s4424_s26 }
 0x225   : > { %3422 = vrot.lane.b32.xlu0 %v5326_v25, %s4425_s11  ;;  %v1626_v25 = vcombine.low %v5211_v47, %v5222_v0  ;;  %v5557_v47 = vrot.slane %v1618_v5, %v4676_v11 }
 0x226   : > { %v5502_v43 = vrot.slane %v2032_v55, %v4713_v26  ;;  %v1602_v55 = vcombine.low %v5181_v15, %v5193_v7  ;;  %v1686_v15 = vcombine.low %v5462_v63, %v1507_v58 }
 0x227   : > { %v5504_v33 = vpop.permute.xlu0 %2299  ;;  %v5560_v62 = vrot.slane %v1626_v25, %v4676_v11 }
 0x228   : > { %1938 = vrot.lane.b32.xlu1 %v1507_v58, %s4424_s26  ;;  %v5513_v14 = vcombine.high %v5497_v13, %v5502_v43  ;;  %v5551_v52 = vrot.slane %v1602_v55, %v4676_v11  ;;  %v1701_v55 = vrot.slane %v1694_v42, %v4676_v11 }
 0x229   : > { %3426 = vrot.lane.b32.xlu0 %v5332_v39, %s4425_s11  ;;  %v7144_v39 = vld [vmem:[#allocation16_spill] sm:$0xff] }
 0x22a   : > { %7141 = vst [vmem:[#allocation49_spill] sm:$0xff] %v5513_v14  ;;  %v1634_v25 = vcombine.low %v5551_v52, %v5554_v56  ;;  %v1635_v34 = vcombine.high %v5551_v52, %v5554_v56 }
 0x22b   : > { %v5515_v36 = vpop.permute.xlu0 %2303 }
 0x22c   : > { %1942 = vrot.lane.b32.xlu1 %v5507_v6, %s4424_s26 }
 0x22d   : > { %3430 = vrot.lane.b32.xlu0 %v5338_v23, %s4425_s11  ;;  %v1678_v23 = vcombine.low %v5427_v46, %v5450_v29 }
 0x22f   : > { %v5521_v57 = vpop.permute.xlu0 %2307 }
 0x230   : > { %2297 = vrot.lane.b32.xlu1 %v5416_v27, %s4425_s11 }
 0x231   : > { %3434 = vrot.lane.b32.xlu0 %v5346_v32, %s4425_s11  ;;  %v1670_v32 = vcombine.low %v5416_v27, %v5438_v1  ;;  %v1685_v27 = vrot.slane %v1678_v23, %v4676_v11 }
 0x233   : > { %v5527_v12 = vpop.permute.xlu0 %2311  ;;  %v1677_v0 = vrot.slane %v1670_v32, %v4676_v11  ;;  %v1650_v32 = vcombine.low %v5557_v47, %v5560_v62 }
 0x234   : > { %2301 = vrot.lane.b32.xlu1 %v5427_v46, %s4425_s11  ;;  %v1693_v46 = vrot.slane %v1686_v15, %v4676_v11 }
 0x235   : > { %3438 = vrot.lane.b32.xlu0 %v5361_v40, %s4425_s11  ;;  %v1658_v15 = vrot.slane %v1650_v32, %v4713_v26  ;;  %v1530_v32 = vshrl.u32 %v7144_v39, 16 }
 0x236   : > { %v1718_v23 = vcombine.low %v1693_v46, %v1701_v55  ;;  %v1719_v52 = vcombine.high %v1693_v46, %v1701_v55 }
 0x237   : > { %v5548_v7 = vpop.permute.xlu0 %2315 }
 0x238   : > { %7142 = vst [vmem:[#allocation50_spill] sm:$0xff] %v5548_v7  ;;  %2305 = vrot.lane.b32.xlu1 %v5438_v1, %s4425_s11  ;;  %v1702_v1 = vcombine.low %v1677_v0, %v1685_v27  ;;  %v1726_v40 = vrot.slane %v1718_v23, %v4713_v26  ;;  %v1546_v23 = vshll.u32 %v4850_v4, 16 }
 0x239   : > { %3442 = vrot.lane.b32.xlu0 %v5391_v50, %s4425_s11 }
 0x23a   : > { %v1710_v42 = vrot.slane %v1702_v1, %v4713_v26 }
 0x23b   : > { %v5570_v19 = vpop.permute.xlu0 %2319 }
 0x23c   : > { %2309 = vrot.lane.b32.xlu1 %v5450_v29, %s4425_s11  ;;  %v1642_v29 = vrot.slane %v1634_v25, %v4713_v26 }
 0x23d   : > { %3446 = vrot.lane.b32.xlu0 %v5411_v41, %s4425_s11  ;;  %v1532_v41 = vshll.u32 %v7144_v39, 16 }
 0x23f   : > { %v5580_v5 = vpop.permute.xlu0 %2323  ;;  %v1534_v1 = vrot.slane %v1532_v41, 1  ;;  %v1574_v41 = vshll.u32 %v4864_v8, 16 }
 0x240   : > { %2313 = vrot.lane.b32.xlu1 %v5462_v63, %s4425_s11  ;;  %v5597_v63 = vcombine.low %v1642_v29, %v1658_v15 }
 0x241   : > { %3450 = vrot.lane.b32.xlu0 %v5423_v45, %s4425_s11  ;;  %v5599_v45 = vcombine.low %v1710_v42, %v1726_v40  ;;  %v1535_v48 = vor.u32 %v1534_v1, %v1530_v32  ;;  %v1558_v1 = vshrl.u32 %v4856_v49, 16  ;;  %v1576_v7 = vrot.slane %v1574_v41, 1 }
 0x242   : > { %7145 = vst [vmem:[#allocation16_spill] sm:$0xff] %v5597_v63 }
 0x243   : > { %v5590_v50 = vpop.permute.xlu0 %1944  ;;  %7146 = vst [vmem:[#allocation52_spill] sm:$0xff] %v5599_v45 }
 0x244   : > { %7143 = vst [vmem:[#allocation51_spill] sm:$0xff] %v5590_v50  ;;  %2317 = vrot.lane.b32.xlu1 %v5473_v61, %s4425_s11  ;;  %v1809_v61 = vshrl.u32 %v5597_v63, 16  ;;  %v1735_v63 = vcombine.high %v1710_v42, %v1726_v40  ;;  %v1703_v50 = vcombine.high %v1677_v0, %v1685_v27  ;;  %v1733_v27 = vrot.slane %v1719_v52, %v4713_v26 }
 0x245   : > { %3454 = vrot.lane.b32.xlu0 %v5434_v60, %s4425_s11  ;;  %v1810_v60 = vshrl.u32 %v5599_v45, 16  ;;  %v1651_v45 = vcombine.high %v5557_v47, %v5560_v62  ;;  %v1649_v62 = vrot.slane %v1635_v34, %v4713_v26  ;;  %v1746_v42 = vcombine.low %v5255_v31, %v5280_v54 }
 0x246   : > { %v1816_v47 = vshrl.u32 %v1735_v63, 16  ;;  %v1717_v0 = vrot.slane %v1703_v50, %v4713_v26 }
 0x247   : > { %v5601_v25 = vpop.permute.xlu0 %1948  ;;  %v1811_v56 = vpack.i.b16 %v1810_v60, %v1809_v61  ;;  %v1665_v60 = vrot.slane %v1651_v45, %v4713_v26 }
 0x248   : > { %7147 = vst [vmem:[#allocation53_spill] sm:$0xff] %v5601_v25  ;;  %2321 = vrot.lane.b32.xlu1 %v1507_v58, %s4425_s11  ;;  %v1544_v58 = vshrl.u32 %v4850_v4, 16  ;;  %v1667_v25 = vcombine.high %v1642_v29, %v1658_v15 }
 0x249   : > { %3458 = vrot.lane.b32.xlu0 %v5445_v21, %s4425_s11  ;;  %v1548_v21 = vrot.slane %v1546_v23, 1  ;;  %v1668_v50 = vcombine.low %v1649_v62, %v1665_v60 }
 0x24a   : > { %v1814_v29 = vpack.i.b16 %v1735_v63, %v1667_v25  ;;  %v1815_v15 = vshrl.u32 %v1667_v25, 16  ;;  %v1736_v25 = vcombine.low %v1717_v0, %v1733_v27 }
 0x24b   : > { %v5612_v35 = vpop.permute.xlu0 %1952  ;;  %v1549_v40 = vor.u32 %v1548_v21, %v1544_v58  ;;  %v1738_v21 = vcombine.low %v5247_v3, %v5261_v30  ;;  %v1753_v3 = vrot.slane %v1746_v42, %v4676_v11  ;;  %v1821_v58 = vshrl.u32 %v1668_v50, 16 }
 0x24c   : > { %7148 = vst [vmem:[#allocation54_spill] sm:$0xff] %v5612_v35  ;;  %2325 = vrot.lane.b32.xlu1 %v5507_v6, %s4425_s11  ;;  %v1562_v35 = vrot.slane %v1560_v10, 1  ;;  %v1572_v6 = vshrl.u32 %v4864_v8, 16  ;;  %v1817_v63 = vpack.i.b16 %v1816_v47, %v1815_v15  ;;  %v1820_v54 = vpack.i.b16 %v1736_v25, %v1668_v50 }
 0x24d   : > { %3462 = vrot.lane.b32.xlu0 %v5457_v9, %s4425_s11  ;;  %v1822_v52 = vshrl.u32 %v1736_v25, 16  ;;  %v5670_v42 = vcombine.high %v1649_v62, %v1665_v60  ;;  %v5699_v25 = vrot.slane %v4896_v22, 1  ;;  %v7154_v22 = vpack.i.b16 %v5384_v38, %v5377_v59 }
 0x24e   : > { %v1563_v46 = vor.u32 %v1562_v35, %v1558_v1  ;;  %v1577_v55 = vor.u32 %v1576_v7, %v1572_v6  ;;  %v1745_v35 = vrot.slane %v1738_v21, %v4676_v11  ;;  %v7149_v1 = vld [vmem:[#allocation23_spill] sm:$0xff] }
 0x24f   : > { %v5623_v32 = vpop.permute.xlu0 %1956  ;;  %v7150_v6 = vpack.i.b16 %v5149_v44, %v7149_v1 }
 0x250   : > { %1946 = vrot.lane.b32.xlu1 %v1535_v48, %s4424_s26  ;;  %v1772_v45 = vcombine.low %v1535_v48, %v1563_v46  ;;  %v1780_v34 = vcombine.low %v1549_v40, %v1577_v55  ;;  %v1754_v61 = vcombine.low %v1745_v35, %v1753_v3 }
 0x251   : > { %1854 = vrot.lane.b32.xlu0 %v1811_v56, %s4418_s30 }
 0x252   : > { %v1779_v30 = vrot.slane %v1772_v45, %v4676_v11  ;;  %v1787_v31 = vrot.slane %v1780_v34, %v4676_v11  ;;  %v5661_v15 = vrot.slane %v1754_v61, %v4713_v26  ;;  %v1755_v34 = vcombine.high %v1745_v35, %v1753_v3 }
 0x253   : > { %v5633_v10 = vpop.permute.xlu0 %2327  ;;  %v5713_v35 = vrot.slane %v4908_v28, 1  ;;  %v5732_v28 = vrot.slane %v4920_v24, 1  ;;  %v5743_v61 = vrot.slane %v7131_v37, 1  ;;  %v5760_v37 = vrot.slane %v7135_v17, 1 }
 0x254   : > { %1950 = vrot.lane.b32.xlu1 %v1549_v40, %s4424_s26  ;;  %v1788_v41 = vcombine.low %v1779_v30, %v1787_v31  ;;  %7151 = vst [vmem:[#allocation23_spill] sm:$0xff] %v5661_v15  ;;  %v5676_v44 = vcombine.high %v5661_v15, %v7101_v16  ;;  %v1789_v50 = vcombine.high %v1779_v30, %v1787_v31  ;;  %v5779_v17 = vrot.slane %v4850_v4, 1 }
 0x255   : > { %1858 = vrot.lane.b32.xlu0 %v1814_v29, %s4419_s7  ;;  %v1823_v29 = vpack.i.b16 %v1822_v52, %v1821_v58 }
 0x256   : > { %v5664_v47 = vrot.slane %v1788_v41, %v4713_v26  ;;  %v1839_v62 = vshrl.u32 %v5676_v44, 16  ;;  %7162 = vst [vmem:[#allocation62_spill] sm:$0xff] %v5779_v17 }
 0x257   : > { %v5641_v23 = vpop.permute.xlu0 %2331 }
 0x258   : > { %1954 = vrot.lane.b32.xlu1 %v1563_v46, %s4424_s26  ;;  %7152 = vst [vmem:[#allocation55_spill] sm:$0xff] %v5664_v47 }
 0x259   : > { %1862 = vrot.lane.b32.xlu0 %v1817_v63, %s4422_s29  ;;  %v5680_v63 = vcombine.high %v5664_v47, %v7101_v16 }
 0x25b   : > { %v5649_v7 = vpop.permute.xlu0 %2335  ;;  %v1840_v60 = vshrl.u32 %v5680_v63, 16 }
 0x25c   : > { %1958 = vrot.lane.b32.xlu1 %v1577_v55, %s4424_s26 }
 0x25d   : > { %1866 = vrot.lane.b32.xlu0 %v1820_v54, %s4417_s25 }
 0x25f   : > { %v5653_v56 = vpop.permute.xlu0 %2339 }
 0x260   : > { %2329 = vrot.lane.b32.xlu1 %v1535_v48, %s4425_s11  ;;  %v5672_v48 = vcombine.high %v1717_v0, %v1733_v27  ;;  %v5693_v27 = vrot.slane %v4884_v51, 1  ;;  %v5708_v51 = vrot.slane %v1789_v50, %v4713_v26 }
 0x261   : > { %1371 = vrot.lane.b32.xlu0 %v7150_v6, %s4420_s5  ;;  %v5765_v6 = vrot.slane %v7139_v20, 1 }
 0x262   : > { %v1826_v45 = vpack.i.b16 %v5672_v48, %v5670_v42  ;;  %v5725_v30 = vcombine.high %v5708_v51, %v7101_v16 }
 0x263   : > { %v5667_v21 = vpop.permute.xlu0 %3036 }
 0x264   : > { %2333 = vrot.lane.b32.xlu1 %v1549_v40, %s4425_s11  ;;  %v7153_v40 = vld [vmem:[#allocation27_spill] sm:$0xff]  ;;  %7156 = vst [vmem:[#allocation56_spill] sm:$0xff] %v5725_v30 }
 0x265   : > { %1870 = vrot.lane.b32.xlu0 %v1823_v29, %s4421_s6 }
 0x267   : > { %v5689_v0 = vpop.permute.xlu0 %3040 }
 0x268   : > { %2337 = vrot.lane.b32.xlu1 %v1563_v46, %s4425_s11  ;;  %v1841_v46 = vpack.i.b16 %v1840_v60, %v1839_v62  ;;  %v5784_v60 = vrot.slane %v4856_v49, 1 }
 0x269   : > { %1375 = vrot.lane.b32.xlu0 %v7153_v40, %s4423_s23  ;;  %v5772_v40 = vrot.slane %v7144_v39, 1 }
 0x26a   : > { %7163 = vst [vmem:[#allocation63_spill] sm:$0xff] %v5784_v60 }
 0x26b   : > { %v5701_v54 = vpop.permute.xlu0 %3044  ;;  %7160 = vst [vmem:[#allocation60_spill] sm:$0xff] %v5772_v40 }
 0x26c   : > { %2341 = vrot.lane.b32.xlu1 %v1577_v55, %s4425_s11  ;;  %v5705_v55 = vrot.slane %v1755_v34, %v4713_v26  ;;  %v5791_v34 = vrot.slane %v4864_v8, 1 }
 0x26d   : > { %1874 = vrot.lane.b32.xlu0 %v1826_v45, %s4420_s5 }
 0x26e   : > { %v5721_v3 = vcombine.high %v5705_v55, %v7101_v16 }
 0x26f   : > { %v5727_v31 = vpop.permute.xlu0 %3048 }
 0x270   : > { %3038 = vrot.lane.b32.xlu1 %v5693_v27, %s4424_s26  ;;  %7155 = vst [vmem:[#allocation27_spill] sm:$0xff] %v5721_v3  ;;  %v1850_v59 = vpack.i.b16 %v5725_v30, %v5721_v3 }
 0x271   : > { %1864 = vrot.lane.b32.xlu0 %v1841_v46, %s4422_s29 }
 0x273   : > { %v5745_v41 = vpop.permute.xlu0 %3052 }
 0x274   : > { %3042 = vrot.lane.b32.xlu1 %v5699_v25, %s4424_s26 }
 0x275   : > { %1373 = vrot.lane.b32.xlu0 %v7154_v22, %s4420_s5 }
 0x277   : > { %v5755_v52 = vpop.permute.xlu0 %3056 }
 0x278   : > { %3046 = vrot.lane.b32.xlu1 %v5713_v35, %s4424_s26  ;;  %7159 = vst [vmem:[#allocation59_spill] sm:$0xff] %v5755_v52  ;;  %v7184_v52 = vld [vmem:[#allocation19_spill] sm:$0xff] }
 0x279   : > { %1377 = vrot.lane.b32.xlu0 %v5413_v18, %s4423_s23  ;;  %v5753_v18 = vrot.slane %v7133_v2, 1 }
 0x27a   : > { %v5738_v38 = vpop.permute.xlu1 %1353 }
 0x27b   : > { %7157 = vst [vmem:[#allocation57_spill] sm:$0xff] %v5738_v38  ;;  %v5767_v29 = vpop.permute.xlu0 %3060 }
 0x27c   : > { %3050 = vrot.lane.b32.xlu1 %v5732_v28, %s4424_s26 }
 0x27d   : > { %1876 = vrot.lane.b32.xlu0 %v1850_v59, %s4420_s5 }
 0x27e   : > { %v5748_v24 = vpop.permute.xlu1 %1357 }
 0x27f   : > { %7158 = vst [vmem:[#allocation58_spill] sm:$0xff] %v5748_v24  ;;  %v5774_v62 = vpop.permute.xlu0 %3064 }
 0x280   : > { %3054 = vrot.lane.b32.xlu1 %v5743_v61, %s4424_s26  ;;  %7161 = vst [vmem:[#allocation61_spill] sm:$0xff] %v5774_v62 }
 0x282   : > { %v1915_v58 = vpop.permute.xlu1 %1914 }
 0x283   : > { %v5786_v46 = vpop.permute.xlu0 %3068 }
 0x284   : > { %3058 = vrot.lane.b32.xlu1 %v5753_v18, %s4424_s26  ;;  %7164 = vst [vmem:[#allocation64_spill] sm:$0xff] %v5786_v46 }
 0x286   : > { %v1919_v1 = vpop.permute.xlu1 %1918 }
 0x287   : > { %v5793_v4 = vpop.permute.xlu0 %3072 }
 0x288   : > { %3062 = vrot.lane.b32.xlu1 %v5760_v37, %s4424_s26  ;;  %7165 = vst [vmem:[#allocation65_spill] sm:$0xff] %v5793_v4 }
 0x28a   : > { %v1923_v2 = vpop.permute.xlu1 %1922 }
 0x28b   : > { %v2052_v59 = vcombine.low %v1915_v58, %v1923_v2  ;;  %v5805_v8 = vpop.permute.xlu0 %3076 }
 0x28c   : > { %3066 = vrot.lane.b32.xlu1 %v5765_v6, %s4424_s26  ;;  %7166 = vst [vmem:[#allocation66_spill] sm:$0xff] %v5805_v8 }
 0x28d   : > { %v5801_v46 = vrot.slane %v2052_v59, %v4676_v11 }
 0x28e   : > { %v1927_v45 = vpop.permute.xlu1 %1926 }
 0x28f   : > { %v2060_v50 = vcombine.low %v1919_v1, %v1927_v45 }
 0x290   : > { %3070 = vrot.lane.b32.xlu1 %v5772_v40, %s4424_s26 }
 0x291   : > { %v5798_v49 = vrot.slane %v2060_v50, %v4676_v11 }
 0x292   : > { %v1931_v20 = vpop.permute.xlu1 %1930 }
 0x293   : > { %v2084_v58 = vcombine.low %v5801_v46, %v5798_v49 }
 0x294   : > { %3074 = vrot.lane.b32.xlu1 %v5779_v17, %s4424_s26 }
 0x296   : > { %v1935_v39 = vpop.permute.xlu1 %1934 }
 0x298   : > { %3078 = vrot.lane.b32.xlu1 %v5784_v60, %s4424_s26 }
 0x29a   : > { %v1939_v22 = vpop.permute.xlu1 %1938 }
 0x29b   : > { %v2068_v24 = vcombine.low %v1931_v20, %v1939_v22  ;;  %v5825_v22 = vpop.permute.xlu0 %3080 }
 0x29c   : > { %3082 = vrot.lane.b32.xlu1 %v5791_v34, %s4424_s26  ;;  %7168 = vst [vmem:[#allocation68_spill] sm:$0xff] %v5825_v22 }
 0x29d   : > { %v5810_v1 = vrot.slane %v2068_v24, %v4676_v11 }
 0x29e   : > { %v1943_v38 = vpop.permute.xlu1 %1942 }
 0x29f   : > { %v2076_v9 = vcombine.low %v1935_v39, %v1943_v38  ;;  %v5821_v38 = vcombine.low %v5497_v13, %v5502_v43  ;;  %v2092_v39 = vrot.slane %v2084_v58, %v4713_v26  ;;  %v2197_v58 = vshrl.u32 %v5513_v14, 16 }
 0x2a0   : > { %3420 = vrot.lane.b32.xlu1 %v5693_v27, %s4425_s11  ;;  %v2367_v14 = vcombine.low %v5489_v53, %v5515_v36 }
 0x2a1   : > { %v5813_v2 = vrot.slane %v2076_v9, %v4676_v11  ;;  %7167 = vst [vmem:[#allocation67_spill] sm:$0xff] %v5821_v38  ;;  %v2191_v4 = vshrl.u32 %v5821_v38, 16 }
 0x2a2   : > { %v2298_v45 = vpop.permute.xlu1 %2297 }
 0x2a3   : > { %v2100_v20 = vcombine.low %v5810_v1, %v5813_v2  ;;  %v2101_v30 = vcombine.high %v5810_v1, %v5813_v2 }
 0x2a4   : > { %3424 = vrot.lane.b32.xlu1 %v5699_v25, %s4425_s11 }
 0x2a5   : > { %v2108_v50 = vrot.slane %v2100_v20, %v4713_v26 }
 0x2a6   : > { %v2302_v24 = vpop.permute.xlu1 %2301 }
 0x2a7   : > { %v5827_v9 = vcombine.low %v2092_v39, %v2108_v50  ;;  %v5829_v59 = vcombine.high %v2092_v39, %v2108_v50  ;;  %v5843_v50 = vpop.permute.xlu0 %3418 }
 0x2a8   : > { %3428 = vrot.lane.b32.xlu1 %v5713_v35, %s4425_s11  ;;  %7172 = vst [vmem:[#allocation72_spill] sm:$0xff] %v5843_v50  ;;  %v5861_v50 = vrot.slane %v2367_v14, %v4676_v11 }
 0x2a9   : > { %7169 = vst [vmem:[#allocation69_spill] sm:$0xff] %v5827_v9  ;;  %7170 = vst [vmem:[#allocation70_spill] sm:$0xff] %v5829_v59  ;;  %v2192_v8 = vshrl.u32 %v5827_v9, 16  ;;  %v2198_v20 = vshrl.u32 %v5829_v59, 16 }
 0x2aa   : > { %v2306_v13 = vpop.permute.xlu1 %2305 }
 0x2ab   : > { %v2193_v22 = vpack.i.b16 %v2192_v8, %v2191_v4  ;;  %v5841_v39 = vpack.i.b16 %v2198_v20, %v2197_v58  ;;  %v5848_v43 = vpop.permute.xlu0 %3422  ;;  %v2375_v4 = vcombine.low %v5504_v33, %v5521_v57  ;;  %v2383_v8 = vcombine.low %v5527_v12, %v5570_v19 }
 0x2ac   : > { %3432 = vrot.lane.b32.xlu1 %v5732_v28, %s4425_s11  ;;  %7173 = vst [vmem:[#allocation73_spill] sm:$0xff] %v5848_v43  ;;  %v2435_v19 = vcombine.low %v2298_v45, %v2306_v13 }
 0x2ad   : > { %7171 = vst [vmem:[#allocation71_spill] sm:$0xff] %v5841_v39  ;;  %2236 = vrot.lane.b32.xlu0 %v2193_v22, %s4418_s30  ;;  %v7174_v22 = vld [vmem:[#allocation50_spill] sm:$0xff]  ;;  %v5864_v43 = vrot.slane %v2375_v4, %v4676_v11  ;;  %v5869_v33 = vrot.slane %v2383_v8, %v4676_v11  ;;  %v7180_v39 = vld [vmem:[#allocation51_spill] sm:$0xff] }
 0x2ae   : > { %v2310_v38 = vpop.permute.xlu1 %2309  ;;  %v2391_v58 = vcombine.low %v7174_v22, %v5580_v5 }
 0x2af   : > { %v5874_v36 = vpop.permute.xlu0 %3426  ;;  %v2443_v57 = vcombine.low %v2302_v24, %v2310_v38  ;;  %v2399_v14 = vcombine.low %v5861_v50, %v5864_v43  ;;  %v5888_v38 = vrot.slane %v2435_v19, %v4676_v11 }
 0x2b0   : > { %3436 = vrot.lane.b32.xlu1 %v5743_v61, %s4425_s11  ;;  %v5872_v53 = vrot.slane %v2391_v58, %v4676_v11  ;;  %7175 = vst [vmem:[#allocation50_spill] sm:$0xff] %v5874_v36 }
 0x2b1   : > { %v5883_v4 = vrot.slane %v2443_v57, %v4676_v11  ;;  %v2407_v24 = vrot.slane %v2399_v14, %v4713_v26 }
 0x2b2   : > { %v2314_v9 = vpop.permute.xlu1 %2313  ;;  %v2415_v5 = vcombine.low %v5869_v33, %v5872_v53 }
 0x2b3   : > { %v5885_v58 = vpop.permute.xlu0 %3430  ;;  %v2467_v36 = vcombine.low %v5888_v38, %v5883_v4 }
 0x2b4   : > { %3440 = vrot.lane.b32.xlu1 %v5753_v18, %s4425_s11  ;;  %7176 = vst [vmem:[#allocation74_spill] sm:$0xff] %v5885_v58  ;;  %v2423_v13 = vrot.slane %v2415_v5, %v4713_v26 }
 0x2b5   : > { %v2475_v14 = vrot.slane %v2467_v36, %v4713_v26  ;;  %v7185_v36 = vld [vmem:[#allocation20_spill] sm:$0xff] }
 0x2b6   : > { %v2318_v20 = vpop.permute.xlu1 %2317 }
 0x2b7   : > { %v5902_v19 = vpop.permute.xlu0 %3434 }
 0x2b8   : > { %3444 = vrot.lane.b32.xlu1 %v5760_v37, %s4425_s11  ;;  %7178 = vst [vmem:[#allocation76_spill] sm:$0xff] %v5902_v19 }
 0x2ba   : > { %v2322_v12 = vpop.permute.xlu1 %2321 }
 0x2bb   : > { %v2451_v8 = vcombine.low %v2314_v9, %v2322_v12 }
 0x2bc   : > { %3448 = vrot.lane.b32.xlu1 %v5765_v6, %s4425_s11 }
 0x2bd   : > { %v2458_v57 = vrot.slane %v2451_v8, %v4676_v11  ;;  %v7181_v8 = vld [vmem:[#allocation53_spill] sm:$0xff] }
 0x2be   : > { %v2326_v22 = vpop.permute.xlu1 %2325 }
 0x2bf   : > { %v2459_v45 = vcombine.low %v2318_v20, %v2326_v22  ;;  %v5900_v20 = vcombine.low %v2407_v24, %v2423_v13  ;;  %v7179_v22 = vld [vmem:[#allocation54_spill] sm:$0xff] }
 0x2c0   : > { %3452 = vrot.lane.b32.xlu1 %v5772_v40, %s4425_s11  ;;  %v2120_v59 = vcombine.low %v7180_v39, %v7179_v22  ;;  %v2085_v39 = vcombine.high %v5801_v46, %v5798_v49 }
 0x2c1   : > { %v2466_v9 = vrot.slane %v2459_v45, %v4676_v11  ;;  %7177 = vst [vmem:[#allocation75_spill] sm:$0xff] %v5900_v20  ;;  %v2128_v45 = vcombine.low %v7181_v8, %v5623_v32  ;;  %v2574_v22 = vshrl.u32 %v5900_v20, 16  ;;  %v7200_v20 = vld [vmem:[#allocation43_spill] sm:$0xff] }
 0x2c2   : > { %v1947_v12 = vpop.permute.xlu1 %1946  ;;  %v5925_v1 = vrot.slane %v2120_v59, %v4676_v11  ;;  %v2099_v59 = vrot.slane %v2085_v39, %v4713_v26  ;;  %v2416_v39 = vcombine.high %v5869_v33, %v5872_v53 }
 0x2c3   : > { %v2483_v58 = vcombine.low %v2458_v57, %v2466_v9  ;;  %v5928_v8 = vrot.slane %v2128_v45, %v4676_v11  ;;  %v5941_v45 = vcombine.high %v2407_v24, %v2423_v13  ;;  %v2400_v13 = vcombine.high %v5861_v50, %v5864_v43 }
 0x2c4   : > { %3456 = vrot.lane.b32.xlu1 %v5779_v17, %s4425_s11  ;;  %v7183_v17 = vld [vmem:[#allocation47_spill] sm:$0xff] }
 0x2c5   : > { %v2491_v5 = vrot.slane %v2483_v58, %v4713_v26  ;;  %v2017_v62 = vcombine.high %v7184_v52, %v7183_v17  ;;  %v7186_v58 = vld [vmem:[#allocation48_spill] sm:$0xff]  ;;  %v2115_v52 = vrot.slane %v2101_v30, %v4713_v26  ;;  %v5931_v17 = vpop.permute.xlu0 %3438  ;;  %v5987_v53 = vrot.slane %v2400_v13, %v4713_v26 }
 0x2c6   : > { %v1951_v40 = vpop.permute.xlu1 %1950  ;;  %v2033_v19 = vcombine.high %v7186_v58, %v7185_v36  ;;  %7187 = vst [vmem:[#allocation51_spill] sm:$0xff] %v5931_v17  ;;  %v7199_v13 = vld [vmem:[#allocation28_spill] sm:$0xff] }
 0x2c7   : > { %v5912_v3 = vcombine.low %v2475_v14, %v2491_v5  ;;  %v5933_v36 = vcombine.high %v2475_v14, %v2491_v5  ;;  %v2031_v46 = vrot.slane %v2017_v62, %v4713_v26  ;;  %v5947_v5 = vcombine.low %v2099_v59, %v2115_v52 }
 0x2c8   : > { %3460 = vrot.lane.b32.xlu1 %v5784_v60, %s4425_s11  ;;  %v2047_v49 = vrot.slane %v2033_v19, %v4713_v26 }
 0x2c9   : > { %7182 = vst [vmem:[#allocation54_spill] sm:$0xff] %v5912_v3  ;;  %v2575_v32 = vshrl.u32 %v5912_v3, 16  ;;  %v2579_v62 = vpack.i.b16 %v5933_v36, %v5941_v45  ;;  %v5951_v19 = vpop.permute.xlu0 %3442 }
 0x2ca   : > { %v1955_v2 = vpop.permute.xlu1 %1954  ;;  %7189 = vst [vmem:[#allocation53_spill] sm:$0xff] %v5951_v19  ;;  %v2119_v19 = vcombine.high %v2099_v59, %v2115_v52 }
 0x2cb   : > { %v2576_v60 = vpack.i.b16 %v2575_v32, %v2574_v22  ;;  %v2154_v58 = vcombine.low %v1947_v12, %v1955_v2  ;;  %v2136_v22 = vcombine.low %v5925_v1, %v5928_v8  ;;  %v7188_v32 = vld [vmem:[#allocation26_spill] sm:$0xff]  ;;  %v2484_v12 = vcombine.high %v2458_v57, %v2466_v9 }
 0x2cc   : > { %3464 = vrot.lane.b32.xlu1 %v5791_v34, %s4425_s11  ;;  %v2468_v57 = vcombine.high %v5888_v38, %v5883_v4  ;;  %v5990_v38 = vrot.slane %v2416_v39, %v4713_v26  ;;  %v1834_v39 = vshrl.u32 %v5664_v47, 16 }
 0x2cd   : > { %2619 = vrot.lane.b32.xlu0 %v2576_v60, %s4418_s30  ;;  %v5954_v60 = vrot.slane %v2154_v58, %v4676_v11  ;;  %v5980_v50 = vrot.slane %v2484_v12, %v4713_v26 }
 0x2ce   : > { %v1959_v30 = vpop.permute.xlu1 %1958 }
 0x2cf   : > { %v2162_v14 = vcombine.low %v1951_v40, %v1959_v30  ;;  %v5960_v40 = vcombine.low %v2031_v46, %v2047_v49  ;;  %v5967_v30 = vrot.slane %v2136_v22, %v4713_v26  ;;  %v5993_v22 = vrot.slane %v2468_v57, %v4713_v26 }
 0x2d0   : > { %1359 = vrot.lane.b32.xlu1 %v7188_v32, %s4422_s29  ;;  %v5995_v32 = vpop.permute.xlu0 %3446 }
 0x2d1   : > { %v5957_v24 = vrot.slane %v2162_v14, %v4676_v11  ;;  %2623 = vrot.lane.b32.xlu0 %v2579_v62, %s4419_s7  ;;  %7190 = vst [vmem:[#allocation47_spill] sm:$0xff] %v5960_v40  ;;  %7191 = vst [vmem:[#allocation19_spill] sm:$0xff] %v5967_v30  ;;  %v2202_v58 = vpack.i.b16 %v5947_v5, %v5960_v40  ;;  %v7192_v14 = vld [vmem:[#allocation25_spill] sm:$0xff]  ;;  %v7193_v62 = vld [vmem:[#allocation24_spill] sm:$0xff]  ;;  %v5999_v12 = vcombine.high %v5967_v30, %v7101_v16 }
 0x2d2   : > { %v2330_v2 = vpop.permute.xlu1 %2329  ;;  %v7194_v43 = vpack.i.b16 %v7192_v14, %v7193_v62  ;;  %7196 = vst [vmem:[#allocation48_spill] sm:$0xff] %v5995_v32  ;;  %v2501_v14 = vcombine.low %v5993_v22, %v5980_v50  ;;  %v2503_v62 = vcombine.low %v5633_v10, %v5649_v7 }
 0x2d3   : > { %v2170_v9 = vcombine.low %v5954_v60, %v5957_v24  ;;  %7197 = vst [vmem:[#allocation26_spill] sm:$0xff] %v5999_v12 }
 0x2d4   : > { %1363 = vrot.lane.b32.xlu1 %v7194_v43, %s4417_s25  ;;  %v2511_v43 = vcombine.low %v5641_v23, %v5653_v56  ;;  %v6025_v10 = vrot.slane %v2503_v62, %v4676_v11  ;;  %v1838_v62 = vpack.i.b16 %v5680_v63, %v5676_v44  ;;  %v2793_v44 = vcombine.low %v5693_v27, %v5713_v35 }
 0x2d5   : > { %v5983_v33 = vrot.slane %v2170_v9, %v4713_v26  ;;  %2248 = vrot.lane.b32.xlu0 %v2202_v58, %s4417_s25  ;;  %v1833_v58 = vshrl.u32 %v5661_v15, 16  ;;  %v6022_v15 = vpop.permute.xlu0 %3450  ;;  %v2137_v27 = vcombine.high %v5925_v1, %v5928_v8  ;;  %v1827_v35 = vshrl.u32 %v5670_v42, 16 }
 0x2d6   : > { %v2334_v4 = vpop.permute.xlu1 %2333  ;;  %7201 = vst [vmem:[#allocation24_spill] sm:$0xff] %v6022_v15  ;;  %v6028_v23 = vrot.slane %v2511_v43, %v4676_v11 }
 0x2d7   : > { %7195 = vst [vmem:[#allocation20_spill] sm:$0xff] %v5983_v33  ;;  %v6003_v9 = vcombine.high %v5983_v33, %v7101_v16  ;;  %v1835_v47 = vpack.i.b16 %v1834_v39, %v1833_v58  ;;  %v7208_v39 = vld [vmem:[#allocation36_spill] sm:$0xff] }
 0x2d8   : > { %1367 = vrot.lane.b32.xlu1 %v7199_v13, %s4421_s6  ;;  %v2433_v13 = vcombine.low %v5987_v53, %v5990_v38  ;;  %v2519_v58 = vcombine.low %v6025_v10, %v6028_v23 }
 0x2d9   : > { %7198 = vst [vmem:[#allocation25_spill] sm:$0xff] %v6003_v9  ;;  %v2220_v57 = vpack.i.b16 %v6003_v9, %v5999_v12  ;;  %v7202_v12 = vld [vmem:[#allocation31_spill] sm:$0xff]  ;;  %v7203_v9 = vld [vmem:[#allocation29_spill] sm:$0xff] }
 0x2da   : > { %v2338_v3 = vpop.permute.xlu1 %2337  ;;  %v2585_v32 = vpack.i.b16 %v2501_v14, %v2433_v13 }
 0x2db   : > { %2242 = vrot.lane.b32.xlu0 %v2220_v57, %s4419_s7  ;;  %v2537_v17 = vcombine.low %v2330_v2, %v2338_v3  ;;  %v2051_v57 = vcombine.high %v2031_v46, %v2047_v49  ;;  %v2587_v2 = vshrl.u32 %v2501_v14, 16  ;;  %v7206_v49 = vld [vmem:[#allocation30_spill] sm:$0xff] }
 0x2dc   : > { %1361 = vrot.lane.b32.xlu1 %v7200_v20, %s4422_s29  ;;  %v2725_v20 = vcombine.low %v7203_v9, %v7202_v12  ;;  %v7207_v9 = vld [vmem:[#allocation40_spill] sm:$0xff] }
 0x2dd   : > { %v6035_v3 = vrot.slane %v2537_v17, %v4676_v11  ;;  %v2208_v59 = vpack.i.b16 %v2119_v19, %v2051_v57  ;;  %v7205_v17 = vld [vmem:[#allocation32_spill] sm:$0xff]  ;;  %v7209_v14 = vpack.i.b16 %v7207_v9, %v7208_v39  ;;  %v6068_v9 = vrot.slane %v2519_v58, %v4713_v26 }
 0x2de   : > { %v2342_v7 = vpop.permute.xlu1 %2341  ;;  %v2733_v12 = vcombine.low %v7206_v49, %v7205_v17  ;;  %v6058_v43 = vrot.slane %v2725_v20, %v4676_v11  ;;  %v7213_v17 = vld [vmem:[#allocation44_spill] sm:$0xff]  ;;  %v7214_v49 = vld [vmem:[#allocation38_spill] sm:$0xff]  ;;  %v2801_v20 = vcombine.low %v5699_v25, %v5732_v28  ;;  %v1828_v25 = vshrl.u32 %v5672_v48, 16 }
 0x2df   : > { %v2545_v56 = vcombine.low %v2334_v4, %v2342_v7  ;;  %2631 = vrot.lane.b32.xlu0 %v2585_v32, %s4417_s25  ;;  %v6044_v32 = vpop.permute.xlu0 %3454  ;;  %v2749_v40 = vcombine.low %v7214_v49, %v7213_v17  ;;  %7215 = vst [vmem:[#allocation31_spill] sm:$0xff] %v6068_v9  ;;  %v6108_v48 = vrot.slane %v2793_v44, %v4676_v11 }
 0x2e0   : > { %1856 = vrot.lane.b32.xlu1 %v1835_v47, %s4418_s30  ;;  %7204 = vst [vmem:[#allocation28_spill] sm:$0xff] %v6044_v32  ;;  %v2586_v47 = vshrl.u32 %v2433_v13, 16  ;;  %v7211_v13 = vld [vmem:[#allocation41_spill] sm:$0xff]  ;;  %v7212_v32 = vld [vmem:[#allocation34_spill] sm:$0xff]  ;;  %v6082_v58 = vrot.slane %v2733_v12, %v4676_v11  ;;  %v1844_v44 = vpack.i.b16 %v5708_v51, %v5705_v55 }
 0x2e1   : > { %v6038_v52 = vrot.slane %v2545_v56, %v4676_v11  ;;  %v2741_v15 = vcombine.low %v7212_v32, %v7211_v13  ;;  %v2209_v32 = vshrl.u32 %v2051_v57, 16  ;;  %v6105_v42 = vrot.slane %v2749_v40, %v4676_v11 }
 0x2e2   : > { %v6042_v4 = vpop.permute.xlu1 %3038  ;;  %v2588_v56 = vpack.i.b16 %v2587_v2, %v2586_v47  ;;  %v2817_v2 = vcombine.low %v5753_v18, %v5765_v6  ;;  %v6128_v40 = vcombine.high %v5987_v53, %v5990_v38  ;;  %v1829_v57 = vpack.i.b16 %v1828_v25, %v1827_v35 }
 0x2e3   : > { %v2553_v46 = vcombine.low %v6035_v3, %v6038_v52  ;;  %2256 = vrot.lane.b32.xlu0 %v2208_v59, %s4420_s5  ;;  %v2210_v59 = vshrl.u32 %v2119_v19, 16  ;;  %v2809_v19 = vcombine.low %v5743_v61, %v5760_v37  ;;  %v6089_v28 = vpop.permute.xlu0 %3458  ;;  %v2171_v61 = vcombine.high %v5954_v60, %v5957_v24 }
 0x2e4   : > { %1365 = vrot.lane.b32.xlu1 %v7209_v14, %s4417_s25  ;;  %v6095_v37 = vcombine.high %v5993_v22, %v5980_v50  ;;  %v6102_v1 = vrot.slane %v2741_v15, %v4676_v11  ;;  %v6114_v60 = vcombine.high %v6068_v9, %v7101_v16  ;;  %v6117_v24 = vrot.slane %v2801_v20, %v4676_v11  ;;  %v7216_v22 = vld [vmem:[#allocation42_spill] sm:$0xff] }
 0x2e5   : > { %v6061_v7 = vrot.slane %v2553_v46, %v4713_v26  ;;  %v2211_v18 = vpack.i.b16 %v2210_v59, %v2209_v32  ;;  %v6120_v50 = vrot.slane %v2809_v19, %v4676_v11  ;;  %v6123_v15 = vrot.slane %v2817_v2, %v4676_v11 }
 0x2e6   : > { %v6072_v63 = vpop.permute.xlu1 %3042  ;;  %v6133_v46 = vrot.slane %v2137_v27, %v4713_v26  ;;  %v6136_v47 = vrot.slane %v2171_v61, %v4713_v26  ;;  %v2591_v12 = vpack.i.b16 %v6095_v37, %v6128_v40  ;;  %v1845_v53 = vshrl.u32 %v5705_v55, 16 }
 0x2e7   : > { %7210 = vst [vmem:[#allocation43_spill] sm:$0xff] %v6061_v7  ;;  %2635 = vrot.lane.b32.xlu0 %v2588_v56, %s4421_s6  ;;  %v6099_v6 = vcombine.high %v6061_v7, %v7101_v16  ;;  %v1846_v38 = vshrl.u32 %v5708_v51, 16  ;;  %v6144_v56 = vpop.permute.xlu0 %3462  ;;  %v2757_v59 = vcombine.low %v6058_v43, %v6082_v58  ;;  %v2773_v13 = vcombine.low %v6102_v1, %v6105_v42 }
 0x2e8   : > { %1860 = vrot.lane.b32.xlu1 %v1838_v62, %s4419_s7  ;;  %v2604_v62 = vshrl.u32 %v6114_v60, 16  ;;  %v2825_v17 = vcombine.low %v6108_v48, %v6117_v24  ;;  %v2841_v49 = vcombine.low %v6120_v50, %v6123_v15  ;;  %v2554_v20 = vcombine.high %v6035_v3, %v6038_v52 }
 0x2e9   : > { %v2605_v39 = vshrl.u32 %v6099_v6, 16  ;;  %v2153_v2 = vcombine.high %v6133_v46, %v7101_v16  ;;  %v2187_v32 = vcombine.high %v6136_v47, %v7101_v16  ;;  %v2520_v27 = vcombine.high %v6025_v10, %v6028_v23  ;;  %v7219_v23 = vld [vmem:[#allocation27_spill] sm:$0xff] }
 0x2ea   : > { %v6110_v8 = vpop.permute.xlu1 %3046  ;;  %v3108_v35 = vcombine.low %v5667_v21, %v5701_v54  ;;  %v3116_v25 = vcombine.low %v5689_v0, %v5727_v31  ;;  %v1847_v51 = vpack.i.b16 %v1846_v38, %v1845_v53  ;;  %v6172_v3 = vrot.slane %v2757_v59, %v4713_v26  ;;  %v7217_v0 = vld [vmem:[#allocation61_spill] sm:$0xff]  ;;  %v7218_v54 = vld [vmem:[#allocation59_spill] sm:$0xff] }
 0x2eb   : > { %2260 = vrot.lane.b32.xlu0 %v2211_v18, %s4423_s23  ;;  %v2606_v19 = vpack.i.b16 %v2605_v39, %v2604_v62  ;;  %v6175_v52 = vrot.slane %v2773_v13, %v4713_v26  ;;  %v6178_v61 = vrot.slane %v2825_v17, %v4713_v26  ;;  %v6181_v10 = vrot.slane %v2841_v49, %v4713_v26 }
 0x2ec   : > { %1369 = vrot.lane.b32.xlu1 %v7216_v22, %s4421_s6  ;;  %v3124_v21 = vcombine.low %v5745_v41, %v5767_v29  ;;  %v3132_v31 = vcombine.low %v7218_v54, %v7217_v0  ;;  %v1851_v18 = vshrl.u32 %v7219_v23, 16  ;;  %v7220_v22 = vld [vmem:[#allocation56_spill] sm:$0xff]  ;;  %v6193_v39 = vrot.slane %v2554_v20, %v4713_v26  ;;  %v7225_v23 = vld [vmem:[#allocation17_spill] sm:$0xff] }
 0x2ed   : > { %v2232_v62 = vpack.i.b16 %v2187_v32, %v2153_v2  ;;  %v2234_v53 = vshrl.u32 %v2187_v32, 16  ;;  %v2233_v59 = vshrl.u32 %v2153_v2, 16  ;;  %v6196_v41 = vrot.slane %v2520_v27, %v4713_v26 }
 0x2ee   : > { %v3051_v14 = vpop.permute.xlu1 %3050  ;;  %v6199_v29 = vrot.slane %v3108_v35, %v4676_v11  ;;  %v6204_v13 = vcombine.low %v6172_v3, %v6175_v52  ;;  %v6208_v17 = vcombine.low %v6178_v61, %v6181_v10  ;;  %v6211_v49 = vrot.slane %v3116_v25, %v4676_v11 }
 0x2ef   : > { %2639 = vrot.lane.b32.xlu0 %v2591_v12, %s4420_s5  ;;  %v6190_v12 = vpop.permute.xlu0 %1854  ;;  %v6217_v20 = vrot.slane %v3132_v31, %v4676_v11  ;;  %v3184_v2 = vcombine.low %v6072_v63, %v3051_v14  ;;  %v2235_v32 = vpack.i.b16 %v2234_v53, %v2233_v59  ;;  %v6223_v27 = vcombine.high %v6193_v39, %v7101_v16 }
 0x2f0   : > { %1878 = vrot.lane.b32.xlu1 %v1829_v57, %s4423_s23  ;;  %v1852_v57 = vshrl.u32 %v7220_v22, 16  ;;  %7221 = vst [vmem:[#allocation29_spill] sm:$0xff] %v6190_v12  ;;  %7222 = vst [vmem:[#allocation32_spill] sm:$0xff] %v6204_v13  ;;  %v3176_v25 = vcombine.low %v6042_v4, %v6110_v8  ;;  %v2933_v63 = vshrl.u32 %v6208_v17, 16  ;;  %v3140_v14 = vcombine.low %v6199_v29, %v6211_v49 }
 0x2f1   : > { %7223 = vst [vmem:[#allocation30_spill] sm:$0xff] %v6208_v17  ;;  %v6242_v4 = vrot.slane %v3184_v2, %v4676_v11  ;;  %v7230_v17 = vld [vmem:[#allocation60_spill] sm:$0xff] }
 0x2f2   : > { %v3055_v55 = vpop.permute.xlu1 %3054  ;;  %v3148_v2 = vrot.slane %v3140_v14, %v4713_v26 }
 0x2f3   : > { %2629 = vrot.lane.b32.xlu0 %v2606_v19, %s4422_s29  ;;  %v1853_v19 = vpack.i.b16 %v1852_v57, %v1851_v18  ;;  %v6225_v0 = vpop.permute.xlu0 %1858  ;;  %v7226_v18 = vld [vmem:[#allocation45_spill] sm:$0xff]  ;;  %v7227_v57 = vld [vmem:[#allocation18_spill] sm:$0xff] }
 0x2f4   : > { %1868 = vrot.lane.b32.xlu1 %v1844_v44, %s4417_s25  ;;  %v6214_v44 = vrot.slane %v3124_v21, %v4676_v11  ;;  %7224 = vst [vmem:[#allocation40_spill] sm:$0xff] %v6225_v0  ;;  %v6232_v21 = vcombine.high %v6196_v41, %v7101_v16  ;;  %v2861_v22 = vcombine.low %v7226_v18, %v7225_v23  ;;  %v7231_v23 = vld [vmem:[#allocation70_spill] sm:$0xff]  ;;  %v7232_v18 = vld [vmem:[#allocation49_spill] sm:$0xff] }
 0x2f5   : > { %v6253_v0 = vrot.slane %v3176_v25, %v4676_v11  ;;  %v7233_v12 = vpack.i.b16 %v7231_v23, %v7232_v18  ;;  %v2842_v18 = vcombine.high %v6120_v50, %v6123_v15 }
 0x2f6   : > { %v3059_v38 = vpop.permute.xlu1 %3058  ;;  %v3156_v54 = vcombine.low %v6214_v44, %v6217_v20  ;;  %v2615_v31 = vpack.i.b16 %v6223_v27, %v6232_v21 }
 0x2f7   : > { %2258 = vrot.lane.b32.xlu0 %v2232_v62, %s4420_s5  ;;  %v7228_v62 = vld [vmem:[#allocation46_spill] sm:$0xff] }
 0x2f8   : > { %1872 = vrot.lane.b32.xlu1 %v1847_v51, %s4421_s6  ;;  %v2932_v51 = vshrl.u32 %v6204_v13, 16  ;;  %v2869_v53 = vcombine.low %v7228_v62, %v7227_v57  ;;  %v7234_v57 = vld [vmem:[#allocation62_spill] sm:$0xff] }
 0x2f9   : > { %v2903_v62 = vcombine.low %v7234_v57, %v5791_v34 }
 0x2fa   : > { %v3063_v35 = vpop.permute.xlu1 %3062  ;;  %v6281_v34 = vrot.slane %v2869_v53, %v4676_v11  ;;  %v2774_v53 = vcombine.high %v6102_v1, %v6105_v42  ;;  %v2580_v42 = vshrl.u32 %v5941_v45, 16 }
 0x2fb   : > { %2262 = vrot.lane.b32.xlu0 %v2235_v32, %s4423_s23  ;;  %v3192_v8 = vcombine.low %v3055_v55, %v3063_v35  ;;  %v7229_v32 = vld [vmem:[#allocation63_spill] sm:$0xff]  ;;  %v2934_v55 = vpack.i.b16 %v2933_v63, %v2932_v51  ;;  %v3164_v35 = vrot.slane %v3156_v54, %v4713_v26  ;;  %v6275_v63 = vrot.slane %v2861_v22, %v4676_v11 }
 0x2fc   : > { %1880 = vrot.lane.b32.xlu1 %v1853_v19, %s4423_s23  ;;  %v2895_v13 = vcombine.low %v7230_v17, %v7229_v32  ;;  %v6264_v17 = vpop.permute.xlu0 %1862  ;;  %v7236_v22 = vld [vmem:[#allocation71_spill] sm:$0xff]  ;;  %v2758_v32 = vcombine.high %v6058_v43, %v6082_v58  ;;  %v2581_v43 = vshrl.u32 %v5933_v36, 16  ;;  %v2856_v36 = vrot.slane %v2842_v18, %v4713_v26 }
 0x2fd   : > { %v6269_v25 = vrot.slane %v3192_v8, %v4676_v11 }
 0x2fe   : > { %v3067_v59 = vpop.permute.xlu1 %3066  ;;  %v6284_v54 = vrot.slane %v2895_v13, %v4676_v11  ;;  %v2826_v13 = vcombine.high %v6108_v48, %v6117_v24  ;;  %v2772_v24 = vrot.slane %v2758_v32, %v4713_v26 }
 0x2ff   : > { %v3200_v19 = vcombine.low %v3059_v38, %v3067_v59  ;;  %2641 = vrot.lane.b32.xlu0 %v2615_v31, %s4420_s5  ;;  %v3208_v38 = vcombine.low %v6253_v0, %v6242_v4  ;;  %v2215_v31 = vshrl.u32 %v5967_v30, 16  ;;  %v6290_v59 = vcombine.low %v3148_v2, %v3164_v35 }
 0x300   : > { %2240 = vrot.lane.b32.xlu1 %v7233_v12, %s4419_s7  ;;  %v2216_v12 = vshrl.u32 %v5983_v33, 16  ;;  %v6310_v58 = vpop.permute.xlu0 %1866  ;;  %v2840_v50 = vrot.slane %v2826_v13, %v4713_v26 }
 0x301   : > { %v6272_v51 = vrot.slane %v3200_v19, %v4676_v11  ;;  %7235 = vst [vmem:[#allocation36_spill] sm:$0xff] %v6290_v59  ;;  %v6301_v19 = vrot.slane %v2903_v62, %v4676_v11  ;;  %v3216_v23 = vrot.slane %v3208_v38, %v4713_v26  ;;  %v3315_v48 = vshrl.u32 %v6290_v59, 16 }
 0x302   : > { %v6277_v14 = vpop.permute.xlu1 %3070  ;;  %v2788_v62 = vrot.slane %v2774_v53, %v4713_v26  ;;  %v2877_v38 = vcombine.low %v6275_v63, %v6281_v34  ;;  %v7238_v53 = vld [vmem:[#allocation47_spill] sm:$0xff]  ;;  %v6338_v33 = vcombine.low %v2840_v50, %v2856_v36 }
 0x303   : > { %v3224_v8 = vcombine.low %v6269_v25, %v6272_v51  ;;  %2977 = vrot.lane.b32.xlu0 %v2934_v55, %s4418_s30  ;;  %v2911_v45 = vcombine.low %v6284_v54, %v6301_v19  ;;  %v2203_v13 = vshrl.u32 %v7238_v53, 16 }
 0x304   : > { %2244 = vrot.lane.b32.xlu1 %v7236_v22, %s4422_s29  ;;  %v2217_v22 = vpack.i.b16 %v2216_v12, %v2215_v31  ;;  %v2204_v31 = vshrl.u32 %v5947_v5, 16  ;;  %v6333_v18 = vpop.permute.xlu0 %1371  ;;  %v6336_v59 = vcombine.low %v2772_v24, %v2788_v62 }
 0x305   : > { %v3232_v55 = vrot.slane %v3224_v8, %v4713_v26  ;;  %v2582_v8 = vpack.i.b16 %v2581_v43, %v2580_v42  ;;  %v6341_v43 = vrot.slane %v2877_v38, %v4713_v26  ;;  %v6344_v5 = vrot.slane %v2911_v45, %v4713_v26  ;;  %v7239_v42 = vld [vmem:[#allocation25_spill] sm:$0xff]  ;;  %v7240_v45 = vld [vmem:[#allocation26_spill] sm:$0xff] }
 0x306   : > { %v6307_v57 = vpop.permute.xlu1 %3074  ;;  %v3157_v38 = vcombine.high %v6214_v44, %v6217_v20  ;;  %v2599_v20 = vshrl.u32 %v6061_v7, 16 }
 0x307   : > { %v6312_v1 = vcombine.low %v3216_v23, %v3232_v55  ;;  %v6327_v32 = vcombine.high %v3216_v23, %v3232_v55  ;;  %v2205_v55 = vpack.i.b16 %v2204_v31, %v2203_v13  ;;  %v3209_v31 = vcombine.high %v6253_v0, %v6242_v4 }
 0x308   : > { %2238 = vrot.lane.b32.xlu1 %v2217_v22, %s4418_s30  ;;  %v6382_v53 = vrot.slane %v3157_v38, %v4713_v26  ;;  %v2598_v13 = vshrl.u32 %v6068_v9, 16  ;;  %v7242_v38 = vld [vmem:[#allocation66_spill] sm:$0xff] }
 0x309   : > { %7237 = vst [vmem:[#allocation41_spill] sm:$0xff] %v6312_v1  ;;  %v3316_v15 = vshrl.u32 %v6312_v1, 16  ;;  %v6331_v1 = vcombine.high %v3148_v2, %v3164_v35  ;;  %v3225_v2 = vcombine.high %v6269_v25, %v6272_v51  ;;  %v2943_v25 = vpack.i.b16 %v6338_v33, %v6336_v59 }
 0x30a   : > { %v3079_v12 = vpop.permute.xlu1 %3078  ;;  %v6364_v51 = vcombine.high %v6341_v43, %v7101_v16 }
 0x30b   : > { %v3317_v22 = vpack.i.b16 %v3316_v15, %v3315_v48  ;;  %v2222_v48 = vshrl.u32 %v7239_v42, 16  ;;  %v3320_v35 = vpack.i.b16 %v6327_v32, %v6331_v1  ;;  %v3141_v15 = vcombine.high %v6199_v29, %v6211_v49 }
 0x30c   : > { %2627 = vrot.lane.b32.xlu1 %v2582_v8, %s4422_s29  ;;  %v2221_v8 = vshrl.u32 %v7240_v45, 16  ;;  %v6368_v29 = vcombine.high %v6344_v5, %v7101_v16  ;;  %v6376_v0 = vrot.slane %v3225_v2, %v4713_v26  ;;  %v2600_v2 = vpack.i.b16 %v2599_v20, %v2598_v13  ;;  %v7243_v45 = vld [vmem:[#allocation64_spill] sm:$0xff] }
 0x30d   : > { %3360 = vrot.lane.b32.xlu0 %v3317_v22, %s4418_s30  ;;  %v6373_v22 = vpop.permute.xlu0 %1870  ;;  %v6379_v4 = vrot.slane %v3141_v15, %v4713_v26  ;;  %v3278_v30 = vcombine.low %v6277_v14, %v3079_v12  ;;  %v2226_v13 = vpack.i.b16 %v6136_v47, %v6133_v46  ;;  %v2228_v12 = vshrl.u32 %v6136_v47, 16 }
 0x30e   : > { %v3083_v23 = vpop.permute.xlu1 %3082  ;;  %v2223_v44 = vpack.i.b16 %v2222_v48, %v2221_v8  ;;  %7241 = vst [vmem:[#allocation34_spill] sm:$0xff] %v6373_v22  ;;  %v2961_v42 = vpack.i.b16 %v6368_v29, %v6364_v51  ;;  %v3244_v8 = vcombine.low %v7243_v45, %v7242_v38 }
 0x310   : > { %2252 = vrot.lane.b32.xlu1 %v2205_v55, %s4421_s6  ;;  %v3223_v55 = vrot.slane %v3209_v31, %v4713_v26  ;;  %v3174_v31 = vcombine.low %v6379_v4, %v6382_v53  ;;  %v6414_v45 = vrot.slane %v3244_v8, %v4676_v11 }
 0x311   : > { %3364 = vrot.lane.b32.xlu0 %v3320_v35, %s4419_s7  ;;  %v3286_v35 = vcombine.low %v6307_v57, %v3083_v23  ;;  %v6401_v9 = vpop.permute.xlu0 %1375  ;;  %v2792_v57 = vcombine.high %v2772_v24, %v2788_v62  ;;  %v2860_v23 = vcombine.high %v2840_v50, %v2856_v36  ;;  %v6420_v24 = vrot.slane %v3278_v30, %v4676_v11 }
 0x312   : > { %v6370_v49 = vpop.permute.xlu1 %3420  ;;  %v3242_v15 = vcombine.low %v3223_v55, %v6376_v0  ;;  %v2603_v36 = vpack.i.b16 %v6099_v6, %v6114_v60  ;;  %v2227_v30 = vshrl.u32 %v6133_v46, 16  ;;  %v2592_v46 = vshrl.u32 %v6128_v40, 16 }
 0x313   : > { %v2949_v62 = vpack.i.b16 %v2860_v23, %v2792_v57  ;;  %v2951_v6 = vshrl.u32 %v2860_v23, 16  ;;  %v7247_v23 = vld [vmem:[#allocation50_spill] sm:$0xff]  ;;  %v6462_v22 = vcombine.high %v3223_v55, %v6376_v0 }
 0x314   : > { %2246 = vrot.lane.b32.xlu1 %v2223_v44, %s4422_s29  ;;  %v7244_v44 = vld [vmem:[#allocation68_spill] sm:$0xff]  ;;  %v3326_v38 = vpack.i.b16 %v3242_v15, %v3174_v31  ;;  %v3328_v8 = vshrl.u32 %v3242_v15, 16  ;;  %v2229_v47 = vpack.i.b16 %v2228_v12, %v2227_v30  ;;  %v7249_v12 = vld [vmem:[#allocation74_spill] sm:$0xff] }
 0x315   : > { %2989 = vrot.lane.b32.xlu0 %v2943_v25, %s4417_s25  ;;  %v7245_v25 = vld [vmem:[#allocation65_spill] sm:$0xff] }
 0x316   : > { %v6390_v48 = vpop.permute.xlu1 %3424  ;;  %v3252_v7 = vcombine.low %v7245_v25, %v7244_v44  ;;  %v3327_v44 = vshrl.u32 %v3174_v31, 16  ;;  %v2950_v25 = vshrl.u32 %v2792_v57, 16  ;;  %v2912_v31 = vcombine.high %v6284_v54, %v6301_v19 }
 0x318   : > { %2621 = vrot.lane.b32.xlu1 %v2600_v2, %s4418_s30  ;;  %v6410_v2 = vrot.slane %v3286_v35, %v4676_v11  ;;  %v6417_v14 = vrot.slane %v3252_v7, %v4676_v11  ;;  %v3329_v15 = vpack.i.b16 %v3328_v8, %v3327_v44  ;;  %v2952_v40 = vpack.i.b16 %v2951_v6, %v2950_v25  ;;  %v7251_v44 = vld [vmem:[#allocation53_spill] sm:$0xff] }
 0x319   : > { %2983 = vrot.lane.b32.xlu0 %v2961_v42, %s4419_s7  ;;  %v6426_v42 = vpop.permute.xlu0 %1874  ;;  %v6471_v25 = vcombine.high %v6379_v4, %v6382_v53 }
 0x31a   : > { %v6405_v20 = vpop.permute.xlu1 %3428  ;;  %7246 = vst [vmem:[#allocation44_spill] sm:$0xff] %v6426_v42  ;;  %v3294_v35 = vcombine.low %v6420_v24, %v6410_v2  ;;  %v3260_v7 = vcombine.low %v6414_v45, %v6417_v14  ;;  %v7254_v42 = vld [vmem:[#allocation51_spill] sm:$0xff] }
 0x31c   : > { %2250 = vrot.lane.b32.xlu1 %v2226_v13, %s4417_s25  ;;  %v2593_v13 = vshrl.u32 %v6095_v37, 16  ;;  %v6448_v57 = vrot.slane %v3260_v7, %v4713_v26 }
 0x31d   : > { %3372 = vrot.lane.b32.xlu0 %v3326_v38, %s4417_s25  ;;  %v6439_v38 = vrot.slane %v3294_v35, %v4713_v26  ;;  %v7250_v35 = vld [vmem:[#allocation73_spill] sm:$0xff]  ;;  %v6454_v8 = vpop.permute.xlu0 %1864 }
 0x31e   : > { %v3433_v50 = vpop.permute.xlu1 %3432  ;;  %v3498_v30 = vcombine.low %v7250_v35, %v7249_v12  ;;  %v2594_v7 = vpack.i.b16 %v2593_v13, %v2592_v46  ;;  %v6489_v4 = vcombine.high %v6448_v57, %v7101_v16  ;;  %v2610_v12 = vshrl.u32 %v6196_v41, 16 }
 0x31f   : > { %v3566_v55 = vcombine.low %v6390_v48, %v3433_v50  ;;  %v3558_v48 = vcombine.low %v6370_v49, %v6405_v20  ;;  %v3332_v50 = vpack.i.b16 %v6462_v22, %v6471_v25  ;;  %v2616_v35 = vshrl.u32 %v6232_v21, 16 }
 0x320   : > { %2625 = vrot.lane.b32.xlu1 %v2603_v36, %s4419_s7  ;;  %v2878_v36 = vcombine.high %v6275_v63, %v6281_v34  ;;  %v7253_v34 = vld [vmem:[#allocation48_spill] sm:$0xff]  ;;  %v6483_v0 = vrot.slane %v3498_v30, %v4676_v11  ;;  %v3261_v49 = vcombine.high %v6414_v45, %v6417_v14  ;;  %v3295_v45 = vcombine.high %v6420_v24, %v6410_v2 }
 0x321   : > { %2997 = vrot.lane.b32.xlu0 %v2949_v62, %s4420_s5  ;;  %v7248_v62 = vld [vmem:[#allocation72_spill] sm:$0xff]  ;;  %v3514_v54 = vcombine.low %v7254_v42, %v7253_v34  ;;  %v6477_v42 = vrot.slane %v2912_v31, %v4713_v26  ;;  %v2611_v31 = vshrl.u32 %v6193_v39, 16  ;;  %v6517_v20 = vrot.slane %v3566_v55, %v4676_v11 }
 0x322   : > { %v6435_v60 = vpop.permute.xlu1 %3436  ;;  %v3490_v37 = vcombine.low %v7248_v62, %v7247_v23  ;;  %v6466_v23 = vcombine.high %v6439_v38, %v7101_v16  ;;  %v6474_v6 = vrot.slane %v2878_v36, %v4713_v26  ;;  %v2609_v36 = vpack.i.b16 %v6193_v39, %v6196_v41  ;;  %v6500_v62 = vpop.permute.xlu0 %1373 }
 0x323   : > { %v2928_v39 = vcombine.high %v6477_v42, %v7101_v16  ;;  %v3345_v41 = vshrl.u32 %v6489_v4, 16  ;;  %v2617_v34 = vshrl.u32 %v6223_v27, 16  ;;  %v6530_v14 = vrot.slane %v3558_v48, %v4676_v11 }
 0x324   : > { %2254 = vrot.lane.b32.xlu1 %v2229_v47, %s4421_s6  ;;  %v7252_v47 = vld [vmem:[#allocation76_spill] sm:$0xff]  ;;  %v6480_v13 = vrot.slane %v3490_v37, %v4676_v11  ;;  %v3346_v37 = vshrl.u32 %v6466_v23, 16  ;;  %v2894_v30 = vcombine.high %v6474_v6, %v7101_v16  ;;  %v2790_v55 = vcombine.high %v6172_v3, %v6175_v52 }
 0x325   : > { %3376 = vrot.lane.b32.xlu0 %v3329_v15, %s4421_s6  ;;  %v3506_v63 = vcombine.low %v7252_v47, %v7251_v44  ;;  %v6495_v15 = vrot.slane %v3514_v54, %v4676_v11  ;;  %v3590_v27 = vcombine.low %v6530_v14, %v6517_v20  ;;  %v6547_v3 = vrot.slane %v3261_v49, %v4713_v26 }
 0x326   : > { %v3441_v19 = vpop.permute.xlu1 %3440  ;;  %v3522_v21 = vcombine.low %v6480_v13, %v6483_v0  ;;  %v3347_v54 = vpack.i.b16 %v3346_v37, %v3345_v41  ;;  %v6550_v52 = vrot.slane %v3295_v45, %v4713_v26  ;;  %v2957_v45 = vshrl.u32 %v6344_v5, 16 }
 0x327   : > { %v6492_v53 = vrot.slane %v3506_v63, %v4676_v11  ;;  %v2612_v63 = vpack.i.b16 %v2611_v31, %v2610_v12  ;;  %v6537_v31 = vpop.permute.xlu0 %1377  ;;  %v2938_v12 = vshrl.u32 %v2790_v55, 16 }
 0x328   : > { %2643 = vrot.lane.b32.xlu1 %v2594_v7, %s4423_s23  ;;  %v2973_v7 = vpack.i.b16 %v2928_v39, %v2894_v30 }
 0x329   : > { %3001 = vrot.lane.b32.xlu0 %v2952_v40, %s4423_s23  ;;  %v3538_v44 = vcombine.low %v6492_v53, %v6495_v15 }
 0x32a   : > { %v3445_v46 = vpop.permute.xlu1 %3444 }
 0x32b   : > { %v3574_v40 = vcombine.low %v6435_v60, %v3445_v46  ;;  %v2858_v46 = vcombine.high %v6178_v61, %v6181_v10  ;;  %v3530_v10 = vrot.slane %v3522_v21, %v4713_v26  ;;  %v6564_v21 = vcombine.high %v6550_v52, %v7101_v16 }
 0x32c   : > { %2633 = vrot.lane.b32.xlu1 %v2609_v36, %s4417_s25  ;;  %v2974_v36 = vshrl.u32 %v2894_v30, 16 }
 0x32d   : > { %3380 = vrot.lane.b32.xlu0 %v3332_v50, %s4420_s5  ;;  %v3581_v2 = vrot.slane %v3574_v40, %v4676_v11  ;;  %v2618_v50 = vpack.i.b16 %v2617_v34, %v2616_v35  ;;  %v2937_v37 = vpack.i.b16 %v2858_v46, %v2790_v55  ;;  %v2939_v30 = vshrl.u32 %v2858_v46, 16 }
 0x32e   : > { %v3449_v47 = vpop.permute.xlu1 %3448  ;;  %v3546_v40 = vrot.slane %v3538_v44, %v4713_v26  ;;  %v3598_v35 = vrot.slane %v3590_v27, %v4713_v26  ;;  %v2956_v44 = vshrl.u32 %v6341_v43, 16 }
 0x32f   : > { %v3582_v60 = vcombine.low %v3441_v19, %v3449_v47  ;;  %v2975_v19 = vshrl.u32 %v2928_v39, 16  ;;  %v6555_v39 = vpop.permute.xlu0 %1876  ;;  %v2940_v34 = vpack.i.b16 %v2939_v30, %v2938_v12 }
 0x330   : > { %2637 = vrot.lane.b32.xlu1 %v2612_v63, %s4421_s6  ;;  %v6588_v12 = vcombine.high %v3530_v10, %v3546_v40 }
 0x331   : > { %v3589_v24 = vrot.slane %v3582_v60, %v4676_v11  ;;  %3370 = vrot.lane.b32.xlu0 %v3347_v54, %s4422_s29  ;;  %v2976_v41 = vpack.i.b16 %v2975_v19, %v2974_v36  ;;  %v6569_v60 = vcombine.low %v3530_v10, %v3546_v40  ;;  %v6574_v54 = vcombine.high %v6547_v3, %v7101_v16 }
 0x332   : > { %v6544_v48 = vpop.permute.xlu1 %3452 }
 0x333   : > { %v3606_v61 = vcombine.low %v3581_v2, %v3589_v24  ;;  %v6576_v55 = vpop.permute.xlu0 %2236  ;;  %v3607_v46 = vcombine.high %v3581_v2, %v3589_v24  ;;  %v3356_v27 = vpack.i.b16 %v6564_v21, %v6574_v54  ;;  %v3591_v2 = vcombine.high %v6530_v14, %v6517_v20 }
 0x334   : > { %2645 = vrot.lane.b32.xlu1 %v2618_v50, %s4423_s23  ;;  %v3523_v50 = vcombine.high %v6480_v13, %v6483_v0  ;;  %v3697_v24 = vshrl.u32 %v6569_v60, 16  ;;  %v2944_v14 = vshrl.u32 %v6336_v59, 16  ;;  %v2962_v59 = vshrl.u32 %v6364_v51, 16 }
 0x335   : > { %v3614_v49 = vrot.slane %v3606_v61, %v4713_v26  ;;  %2999 = vrot.lane.b32.xlu0 %v2973_v7, %s4420_s5  ;;  %v3539_v61 = vcombine.high %v6492_v53, %v6495_v15  ;;  %v3621_v13 = vrot.slane %v3607_v46, %v4713_v26  ;;  %v3321_v15 = vshrl.u32 %v6331_v1, 16 }
 0x336   : > { %v3457_v47 = vpop.permute.xlu1 %3456  ;;  %v3537_v40 = vrot.slane %v3523_v50, %v4713_v26 }
 0x337   : > { %v6560_v63 = vcombine.low %v3598_v35, %v3614_v49  ;;  %v6578_v36 = vcombine.high %v3598_v35, %v3614_v49  ;;  %v3322_v35 = vshrl.u32 %v6327_v32, 16  ;;  %v3553_v20 = vrot.slane %v3539_v61, %v4713_v26  ;;  %v7255_v61 = vld [vmem:[#allocation24_spill] sm:$0xff] }
 0x338   : > { %2981 = vrot.lane.b32.xlu1 %v2937_v37, %s4419_s7  ;;  %v2958_v37 = vpack.i.b16 %v2957_v45, %v2956_v44  ;;  %v2945_v49 = vshrl.u32 %v6338_v33, 16  ;;  %v3605_v32 = vrot.slane %v3591_v2, %v4713_v26  ;;  %v2963_v33 = vshrl.u32 %v6368_v29, 16  ;;  %v7256_v2 = vld [vmem:[#allocation28_spill] sm:$0xff] }
 0x339   : > { %3003 = vrot.lane.b32.xlu0 %v2976_v41, %s4423_s23  ;;  %v3698_v19 = vshrl.u32 %v6560_v63, 16  ;;  %v3704_v10 = vshrl.u32 %v6578_v36, 16  ;;  %v3703_v41 = vshrl.u32 %v6588_v12, 16  ;;  %v3323_v1 = vpack.i.b16 %v3322_v35, %v3321_v15  ;;  %v7257_v35 = vld [vmem:[#allocation33_spill] sm:$0xff] }
 0x33a   : > { %v3461_v7 = vpop.permute.xlu1 %3460  ;;  %v3556_v50 = vcombine.low %v3537_v40, %v3553_v20  ;;  %v7259_v15 = vld [vmem:[#allocation21_spill] sm:$0xff] }
 0x33b   : > { %v3699_v53 = vpack.i.b16 %v3698_v19, %v3697_v24  ;;  %v3705_v46 = vpack.i.b16 %v3704_v10, %v3703_v41  ;;  %v2946_v19 = vpack.i.b16 %v2945_v49, %v2944_v14  ;;  %v3634_v24 = vcombine.low %v7256_v2, %v6144_v56 }
 0x33c   : > { %2985 = vrot.lane.b32.xlu1 %v2940_v34, %s4422_s29  ;;  %v2964_v56 = vpack.i.b16 %v2963_v33, %v2962_v59  ;;  %v3625_v2 = vcombine.high %v3605_v32, %v3621_v13 }
 0x33d   : > { %3382 = vrot.lane.b32.xlu0 %v3356_v27, %s4420_s5  ;;  %v3624_v27 = vcombine.low %v3605_v32, %v3621_v13  ;;  %v7262_v32 = vld [vmem:[#allocation16_spill] sm:$0xff] }
 0x33e   : > { %v3465_v30 = vpop.permute.xlu1 %3464 }
 0x33f   : > { %v6596_v0 = vpop.permute.xlu0 %2619  ;;  %v3668_v44 = vcombine.low %v3457_v47, %v3465_v30  ;;  %v3660_v47 = vcombine.low %v6544_v48, %v3461_v7  ;;  %v3708_v29 = vpack.i.b16 %v3624_v27, %v3556_v50  ;;  %v3710_v49 = vshrl.u32 %v3624_v27, 16 }
 0x340   : > { %2979 = vrot.lane.b32.xlu1 %v2958_v37, %s4418_s30  ;;  %v3626_v37 = vcombine.low %v7255_v61, %v6089_v28  ;;  %v7261_v28 = vld [vmem:[#allocation37_spill] sm:$0xff]  ;;  %v3709_v48 = vshrl.u32 %v3556_v50, 16  ;;  %v3340_v50 = vshrl.u32 %v6439_v38, 16 }
 0x341   : > { %3742 = vrot.lane.b32.xlu0 %v3699_v53, %s4418_s30  ;;  %v7258_v53 = vld [vmem:[#allocation22_spill] sm:$0xff]  ;;  %v6625_v51 = vrot.slane %v3668_v44, %v4676_v11 }
 0x342   : > { %v1360_v34 = vpop.permute.xlu1 %1359  ;;  %v7260_v10 = vpack.i.b16 %v7258_v53, %v7259_v15  ;;  %v6631_v7 = vrot.slane %v3626_v37, %v4676_v11  ;;  %v3711_v37 = vpack.i.b16 %v3710_v49, %v3709_v48  ;;  %v7263_v15 = vld [vmem:[#allocation52_spill] sm:$0xff]  ;;  %v2967_v49 = vpack.i.b16 %v6477_v42, %v6474_v6 }
 0x343   : > { %v6608_v45 = vpop.permute.xlu0 %2623 }
 0x344   : > { %3368 = vrot.lane.b32.xlu1 %v3323_v1, %s4422_s29  ;;  %v1381_v14 = vsel %vm583_vm0, %v7260_v10, %v7257_v35  ;;  %v6634_v1 = vrot.slane %v3634_v24, %v4676_v11  ;;  %v3557_v35 = vcombine.high %v3537_v40, %v3553_v20  ;;  %v1808_v10 = vpack.i.b16 %v7263_v15, %v7262_v32  ;;  %v7267_v32 = vld [vmem:[#allocation39_spill] sm:$0xff] }
 0x345   : > { %3750 = vrot.lane.b32.xlu0 %v3705_v46, %s4422_s29  ;;  %v1386_v41 = vsel %vm590_vm2, %v1381_v14, %v7261_v28  ;;  %v6637_v46 = vrot.slane %v3660_v47, %v4676_v11  ;;  %v7268_v15 = vld [vmem:[#allocation35_spill] sm:$0xff] }
 0x346   : > { %v1364_v30 = vpop.permute.xlu1 %1363  ;;  %v1390_v44 = vsel %vm595_vm1, %v1386_v41, %v1360_v34  ;;  %v3339_v34 = vshrl.u32 %v6448_v57, 16  ;;  %v3643_v24 = vcombine.high %v6631_v7, %v6634_v1  ;;  %v3714_v14 = vpack.i.b16 %v3625_v2, %v3557_v35  ;;  %v7264_v41 = vld [vmem:[#allocation29_spill] sm:$0xff] }
 0x347   : > { %v6640_v61 = vpop.permute.xlu0 %2248  ;;  %v1394_v27 = vsel %vm600_vm3, %v1390_v44, %v1364_v30  ;;  %v3677_v59 = vcombine.high %v6637_v46, %v6625_v51  ;;  %v3715_v20 = vshrl.u32 %v3557_v35, 16  ;;  %v3334_v35 = vshrl.u32 %v6462_v22, 16 }
 0x348   : > { %2993 = vrot.lane.b32.xlu1 %v2946_v19, %s4421_s6  ;;  %v3341_v13 = vpack.i.b16 %v3340_v50, %v3339_v34 }
 0x349   : > { %3754 = vrot.lane.b32.xlu0 %v3708_v29, %s4417_s25  ;;  %v3716_v29 = vshrl.u32 %v3625_v2, 16 }
 0x34a   : > { %v1368_v19 = vpop.permute.xlu1 %1367 }
 0x34b   : > { %v1398_v33 = vsel %vm605_vm4, %v1394_v27, %v1368_v19  ;;  %v3717_v48 = vpack.i.b16 %v3716_v29, %v3715_v20  ;;  %v2968_v27 = vshrl.u32 %v6474_v6, 16  ;;  %v2969_v19 = vshrl.u32 %v6477_v42, 16 }
 0x34c   : > { %2987 = vrot.lane.b32.xlu1 %v2964_v56, %s4422_s29  ;;  %v1402_v11 = vsel %vm610_vm5, %v1398_v33, %v6333_v18  ;;  %v6662_v18 = vrot.slane %v3677_v59, %v4713_v26  ;;  %v1884_v56 = vsel %vm583_vm0, %v1808_v10, %v7264_v41  ;;  %v7265_v33 = vld [vmem:[#allocation40_spill] sm:$0xff]  ;;  %v7270_v10 = vld [vmem:[#allocation58_spill] sm:$0xff] }
 0x34d   : > { %3758 = vrot.lane.b32.xlu0 %v3711_v37, %s4421_s6  ;;  %v6655_v47 = vpop.permute.xlu0 %2242  ;;  %v1406_v30 = vsel %vm615_vm6, %v1402_v11, %v6401_v9  ;;  %v6669_v9 = vrot.slane %v3643_v24, %v4713_v26  ;;  %v1889_v37 = vsel %vm590_vm2, %v1884_v56, %v7265_v33  ;;  %v3344_v11 = vpack.i.b16 %v6466_v23, %v6489_v4  ;;  %v7273_v33 = vld [vmem:[#allocation55_spill] sm:$0xff] }
 0x34e   : > { %v1362_v53 = vpop.permute.xlu1 %1361  ;;  %3865 = vmatpush1.bf16.msra.mxu0 %v1406_v30  ;;  %v6678_v44 = vcombine.high %v6662_v18, %v7101_v16  ;;  %v2970_v42 = vpack.i.b16 %v2969_v19, %v2968_v27  ;;  %v1893_v34 = vsel %vm595_vm1, %v1889_v37, %v6264_v17  ;;  %v7269_v23 = vpack.i.b16 %v7267_v32, %v7268_v15 }
 0x34f   : > { %3866 = vmatprep.subr.bf16.mxu0 %v7101_v16  ;;  %v6688_v59 = vcombine.high %v6669_v9, %v7101_v16  ;;  %v1897_v29 = vsel %vm600_vm3, %v1893_v34, %v6310_v58  ;;  %v3333_v17 = vshrl.u32 %v6471_v25, 16  ;;  %v7272_v58 = vld [vmem:[#allocation23_spill] sm:$0xff]  ;;  %v3352_v25 = vshrl.u32 %v6550_v52, 16 }
 0x350   : > { %3362 = vrot.lane.b32.xlu1 %v3341_v13, %s4418_s30  ;;  %v7266_v13 = vld [vmem:[#allocation57_spill] sm:$0xff]  ;;  %v1832_v37 = vpack.i.b16 %v7273_v33, %v7272_v58  ;;  %v3350_v34 = vpack.i.b16 %v6550_v52, %v6547_v3 }
 0x351   : > { %3762 = vrot.lane.b32.xlu0 %v3714_v14, %s4420_s5  ;;  %v6672_v40 = vpop.permute.xlu0 %2631  ;;  %v3738_v6 = vpack.i.b16 %v6678_v44, %v6688_v59  ;;  %v1384_v4 = vsel %vm583_vm0, %v7269_v23, %v7266_v13  ;;  %v3335_v56 = vpack.i.b16 %v3334_v35, %v3333_v17  ;;  %v3351_v13 = vshrl.u32 %v6547_v3, 16 }
 0x352   : > { %v1857_v28 = vpop.permute.xlu1 %1856  ;;  %v1388_v14 = vsel %vm590_vm2, %v1384_v4, %v7270_v10  ;;  %v3358_v3 = vshrl.u32 %v6564_v21, 16  ;;  %v3357_v17 = vshrl.u32 %v6574_v54, 16 }
 0x353   : > { %v1887_v15 = vsel %vm583_vm0, %v1832_v37, %v1857_v28  ;;  %v3353_v10 = vpack.i.b16 %v3352_v25, %v3351_v13  ;;  %v3642_v28 = vcombine.low %v6631_v7, %v6634_v1  ;;  %v7276_v13 = vld [vmem:[#allocation69_spill] sm:$0xff] }
 0x354   : > { %2991 = vrot.lane.b32.xlu1 %v2967_v49, %s4417_s25  ;;  %v1392_v49 = vsel %vm595_vm1, %v1388_v14, %v1362_v53  ;;  %v7274_v53 = vld [vmem:[#allocation44_spill] sm:$0xff] }
 0x355   : > { %3766 = vrot.lane.b32.xlu0 %v3717_v48, %s4423_s23  ;;  %v6684_v50 = vpop.permute.xlu0 %2256  ;;  %v7271_v48 = vld [vmem:[#allocation34_spill] sm:$0xff]  ;;  %v6761_v1 = vrot.slane %v3642_v28, %v4713_v26 }
 0x356   : > { %v1366_v2 = vpop.permute.xlu1 %1365  ;;  %v1901_v27 = vsel %vm605_vm4, %v1897_v29, %v7271_v48 }
 0x357   : > { %v1396_v22 = vsel %vm600_vm3, %v1392_v49, %v1366_v2  ;;  %v3359_v49 = vpack.i.b16 %v3358_v3, %v3357_v17  ;;  %v3840_v17 = vld [vmem:[#allocation7] sm:$0xff] }
 0x358   : > { %3366 = vrot.lane.b32.xlu1 %v3344_v11, %s4419_s7 }
 0x359   : > { %3764 = vrot.lane.b32.xlu0 %v3738_v6, %s4420_s5  ;;  %v6700_v24 = vpop.permute.xlu0 %2635  ;;  %v1905_v6 = vsel %vm610_vm5, %v1901_v27, %v7274_v53 }
 0x35a   : > { %v1861_v30 = vpop.permute.xlu1 %1860 }
 0x35b   : > { %v1891_v52 = vsel %vm590_vm2, %v1887_v15, %v1861_v30 }
 0x35c   : > { %2995 = vrot.lane.b32.xlu1 %v2970_v42, %s4421_s6 }
 0x35d   : > { %v6715_v20 = vpop.permute.xlu0 %2260  ;;  %3843 = vperm.xlu0 %4192, %v3840_v17  }
 0x35e   : > { %v1370_v41 = vpop.permute.xlu1 %1369 }
 0x35f   : > { %v1400_v19 = vsel %vm605_vm4, %v1396_v22, %v1370_v41  ;;  %v3702_v22 = vpack.i.b16 %v6578_v36, %v6588_v12  ;;  %v3658_v36 = vcombine.high %v6761_v1, %v7101_v16 }
 0x360   : > { %3384 = vrot.lane.b32.xlu1 %v3335_v56, %s4423_s23  ;;  %v1404_v2 = vsel %vm610_vm5, %v1400_v19, %v6500_v62  ;;  %v3676_v62 = vcombine.low %v6637_v46, %v6625_v51 }
 0x361   : > { %v6724_v11 = vpop.permute.xlu0 %2639  ;;  %v1409_v4 = vsel %vm615_vm6, %v1404_v2, %v6537_v31  ;;  %v1895_v31 = vsel %vm595_vm1, %v1891_v52, %v6454_v8  ;;  %v3732_v52 = vpack.i.b16 %v6662_v18, %v6669_v9 }
 0x362   : > { %v1879_v42 = vpop.permute.xlu1 %1878  ;;  %v6756_v46 = vrot.slane %v3676_v62, %v4713_v26  ;;  %v3721_v26 = vshrl.u32 %v6761_v1, 16 }
 0x363   : > { %v1909_v35 = vsel %vm615_vm6, %v1905_v6, %v1879_v42  ;;  %v3727_v6 = vshrl.u32 %v3658_v36, 16 }
 0x364   : > { %v3810_v32 = vrot.slane %v1909_v35, 4  ;;  %3374 = vrot.lane.b32.xlu1 %v3350_v34, %s4417_s25  ;;  %v3722_v41 = vshrl.u32 %v6756_v46, 16  ;;  %v7275_v35 = vld [vmem:[#allocation67_spill] sm:$0xff] }
 0x365   : > { %v6737_v23 = vpop.permute.xlu0 %2629 }
 0x366   : > { %v1869_v14 = vpop.permute.xlu1 %1868  ;;  %v3831_v29 = vsel %vm3803_vm7, %v1409_v4, %v3810_v32  ;;  %v3723_v33 = vpack.i.b16 %v3722_v41, %v3721_v26  ;;  %v6791_v4 = vld [vmem:[#allocation5] sm:$0xff] }
 0x367   : > { %3867 = vmatpush1.bf16.msra.mxu0 %v3831_v29  ;;  %v1899_v21 = vsel %vm600_vm3, %v1895_v31, %v1869_v14  ;;  %v3734_v14 = vshrl.u32 %v6662_v18, 16  ;;  %v4045_v29 = vcombine.high %v6791_v4, %v6791_v4  ;;  %v3740_v18 = vshrl.u32 %v6678_v44, 16 }
 0x368   : > { %3378 = vrot.lane.b32.xlu1 %v3353_v10, %s4421_s6  ;;  %3868 = vmatprep.subr.bf16.mxu0 %v7101_v16 }
 0x369   : > { %v6753_v51 = vpop.permute.xlu0 %2258  ;;  %4046 = vmatprep.mubr.msk.bf16.mxu0 %vm3852_vm8, %v4045_v29 }
 0x36a   : > { %v1873_v30 = vpop.permute.xlu1 %1872 }
 0x36b   : > { %v1903_v7 = vsel %vm605_vm4, %v1899_v21, %v1873_v30 }
 0x36c   : > { %3386 = vrot.lane.b32.xlu1 %v3359_v49, %s4423_s23  ;;  %v1907_v8 = vsel %vm610_vm5, %v1903_v7, %v6555_v39  ;;  %v3692_v39 = vcombine.high %v6756_v46, %v7101_v16 }
 0x36d   : > { %v6769_v56 = vpop.permute.xlu0 %2262 }
 0x36e   : > { %v1881_v54 = vpop.permute.xlu1 %1880  ;;  %v3726_v25 = vpack.i.b16 %v3692_v39, %v3658_v36  ;;  %v3728_v53 = vshrl.u32 %v3692_v39, 16 }
 0x36f   : > { %v1911_v48 = vsel %vm615_vm6, %v1907_v8, %v1881_v54 }
 0x370   : > { %v3811_v27 = vrot.slane %v1911_v48, 4  ;;  %3746 = vrot.lane.b32.xlu1 %v3702_v22, %s4419_s7  ;;  %v3729_v34 = vpack.i.b16 %v3728_v53, %v3727_v6  ;;  %v7277_v48 = vld [vmem:[#allocation75_spill] sm:$0xff] }
 0x371   : > { %v6781_v12 = vpop.permute.xlu0 %2641 }
 0x372   : > { %v2241_v19 = vpop.permute.xlu1 %2240  ;;  %v3812_v58 = vsel %vm3803_vm7, %v3810_v32, %v3811_v27  ;;  %v2190_v32 = vpack.i.b16 %v7276_v13, %v7275_v35  ;;  %v7278_v27 = vld [vmem:[#allocation54_spill] sm:$0xff] }
 0x373   : > { %3869 = vmatpush1.bf16.msra.mxu0 %v3812_v58  ;;  %v2573_v26 = vpack.i.b16 %v7278_v27, %v7277_v48  ;;  %v7279_v58 = vld [vmem:[#allocation19_spill] sm:$0xff]  ;;  %v7283_v48 = vld [vmem:[#allocation32_spill] sm:$0xff]  ;;  %v7284_v27 = vld [vmem:[#allocation30_spill] sm:$0xff] }
 0x374   : > { %3744 = vrot.lane.b32.xlu1 %v3723_v33, %s4418_s30  ;;  %3870 = vmatprep.subr.bf16.mxu0 %v7101_v16  ;;  %v2266_v15 = vsel %vm583_vm0, %v2190_v32, %v6576_v55  ;;  %v3733_v55 = vshrl.u32 %v6669_v9, 16  ;;  %v3739_v9 = vshrl.u32 %v6688_v59, 16  ;;  %s6937_s30 = scalar_lea.hbm %s7002_s3, %s4049_s8 }
 0x375   : > { %v6784_v2 = vpop.permute.xlu0 %2977  ;;  %v2271_v10 = vsel %vm590_vm2, %v2266_v15, %v2241_v19  ;;  %v2649_v59 = vsel %vm583_vm0, %v2573_v26, %v6596_v0  ;;  %v2931_v26 = vpack.i.b16 %v7284_v27, %v7283_v48  ;;  %v3696_v48 = vpack.i.b16 %v6560_v63, %v6569_v60 }
 0x376   : > { %v2245_v37 = vpop.permute.xlu1 %2244  ;;  %v3735_v30 = vpack.i.b16 %v3734_v14, %v3733_v55  ;;  %v2654_v39 = vsel %vm590_vm2, %v2649_v59, %v6608_v45 }
 0x377   : > { %v2275_v3 = vsel %vm595_vm1, %v2271_v10, %v2245_v37 }
 0x378   : > { %3748 = vrot.lane.b32.xlu1 %v3726_v25, %s4419_s7  ;;  %v2279_v21 = vsel %vm600_vm3, %v2275_v3, %v6640_v61  ;;  %v3741_v61 = vpack.i.b16 %v3740_v18, %v3739_v9  ;;  %s4426_s7 = smov [#allocation8]  }
 0x379   : > { %s4285_s5 = sshll.u32 %s4426_s7, 4  ;;  %s4286_s5 = int_to_ptr.vmem [resolvable:$false] %s4285_s5 }
 0x37a   : > { %v2239_v42 = vpop.permute.xlu1 %2238  ;;  %p4288_p12 = scmp.lt.s32.totalorder %s6939_s2, %s4286_s5 }
 0x37c   : > { %3752 = vrot.lane.b32.xlu1 %v3729_v34, %s4422_s29 }
 0x37e   : > { %v2628_v62 = vpop.permute.xlu1 %2627 }
 0x37f   : > { %v6800_v28 = vpop.permute.xlu0 %3360  ;;  %v2658_v37 = vsel %vm595_vm1, %v2654_v39, %v2628_v62  ;;  %v7281_v62 = vld [vmem:[#allocation31_spill] sm:$0xff] }
 0x380   : > { %3756 = vrot.lane.b32.xlu1 %v3732_v52, %s4417_s25  ;;  %v2662_v6 = vsel %vm600_vm3, %v2658_v37, %v6672_v40 }
 0x382   : > { %v2253_v31 = vpop.permute.xlu1 %2252 }
 0x383   : > { %v2283_v49 = vsel %vm605_vm4, %v2279_v21, %v2253_v31  ;;  %v6808_v7 = vpop.permute.xlu0 %3364 }
 0x384   : > { %3760 = vrot.lane.b32.xlu1 %v3735_v30, %s4421_s6  ;;  %v2287_v54 = vsel %vm610_vm5, %v2283_v49, %v6684_v50  ;;  %s4287_s6 = scalar_lea.vmem %s4286_s5, 256 }
 0x385   : > { %v2291_v8 = vsel %vm615_vm6, %v2287_v54, %v6715_v20  ;;  %v7280_v20 = vld [vmem:[#allocation20_spill] sm:$0xff]  ;;  %p4289_p5 = scmp.lt.s32.totalorder %s4287_s6, %s4281_s19 }
 0x386   : > { %v2247_v22 = vpop.permute.xlu1 %2246  ;;  %3871 = vmatpush1.bf16.msra.mxu0 %v2291_v8  ;;  %v2214_v33 = vpack.i.b16 %v7280_v20, %v7279_v58  ;;  %v3007_v58 = vsel %vm583_vm0, %v2931_v26, %v6784_v2 }
 0x387   : > { %v2990_v41 = vpop.permute.xlu0 %2989  ;;  %3872 = vmatprep.subr.bf16.mxu0 %v7101_v16  ;;  %p4290_p3 = por %p4289_p5, %p4288_p12 }
 0x388   : > { %3768 = vrot.lane.b32.xlu1 %v3741_v61, %s4423_s23  ;;  %v2269_v36 = vsel %vm583_vm0, %v2214_v33, %v2239_v42  ;;  %v2666_v42 = vsel %vm605_vm4, %v2662_v6, %v6700_v24 }
 0x389   : > { %v2273_v34 = vsel %vm590_vm2, %v2269_v36, %v6655_v47  ;;  %v2670_v40 = vsel %vm610_vm5, %v2666_v42, %v6724_v11  ;;  %v7282_v47 = vld [vmem:[#allocation43_spill] sm:$0xff]  ;;  %v7286_v42 = vld [vmem:[#allocation41_spill] sm:$0xff]  ;;  %p4291_p6 = pnand %p4290_p3, %p4284_p9 }
 0x38a   : > { %v2622_v44 = vpop.permute.xlu1 %2621  ;;  %v2277_v0 = vsel %vm595_vm1, %v2273_v34, %v2247_v22  ;;  %v2597_v52 = vpack.i.b16 %v7282_v47, %v7281_v62 }
 0x38b   : > { %v6820_v19 = vpop.permute.xlu0 %2983 }
 0x38c   : > { %v2652_v3 = vsel %vm583_vm0, %v2597_v52, %v2622_v44 }
 0x38e   : > { %v2251_v50 = vpop.permute.xlu1 %2250 }
 0x38f   : > { %v6830_v53 = vpop.permute.xlu0 %3372  ;;  %v2281_v35 = vsel %vm600_vm3, %v2277_v0, %v2251_v50 }
 0x392   : > { %v2626_v25 = vpop.permute.xlu1 %2625 }
 0x393   : > { %v2998_v32 = vpop.permute.xlu0 %2997  ;;  %v2656_v24 = vsel %vm590_vm2, %v2652_v3, %v2626_v25 }
 0x394   : > { %v2660_v11 = vsel %vm595_vm1, %v2656_v24, %v6737_v23 }
 0x396   : > { %v2255_v13 = vpop.permute.xlu1 %2254 }
 0x397   : > { %v2285_v45 = vsel %vm605_vm4, %v2281_v35, %v2255_v13  ;;  %v3377_v31 = vpop.permute.xlu0 %3376 }
 0x398   : > { %v2289_v15 = vsel %vm610_vm5, %v2285_v45, %v6753_v51  ;;  %v7285_v45 = vld [vmem:[#allocation36_spill] sm:$0xff] }
 0x399   : > { %v2294_v55 = vsel %vm615_vm6, %v2289_v15, %v6769_v56  ;;  %v3314_v15 = vpack.i.b16 %v7286_v42, %v7285_v45 }
 0x39a   : > { %v2644_v10 = vpop.permute.xlu1 %2643 }
 0x39b   : > { %v2674_v14 = vsel %vm615_vm6, %v2670_v40, %v2644_v10  ;;  %v3002_v49 = vpop.permute.xlu0 %3001  ;;  %v2955_v10 = vpack.i.b16 %v6344_v5, %v6341_v43  ;;  %v3390_v40 = vsel %vm583_vm0, %v3314_v15, %v6800_v28 }
 0x39c   : > { %v3816_v29 = vrot.slane %v2674_v14, 4 }
 0x39e   : > { %v2634_v17 = vpop.permute.xlu1 %2633  ;;  %v3834_v51 = vsel %vm3803_vm7, %v2294_v55, %v3816_v29 }
 0x39f   : > { %3873 = vmatpush1.bf16.msra.mxu0 %v3834_v51  ;;  %v2664_v21 = vsel %vm600_vm3, %v2660_v11, %v2634_v17  ;;  %v3381_v44 = vpop.permute.xlu0 %3380 }
 0x3a0   : > { %3874 = vmatprep.subr.bf16.mxu0 %v7101_v16 }
 0x3a2   : > { %v2638_v30 = vpop.permute.xlu1 %2637 }
 0x3a3   : > { %v2668_v18 = vsel %vm605_vm4, %v2664_v21, %v2638_v30  ;;  %v3371_v50 = vpop.permute.xlu0 %3370 }
 0x3a4   : > { %v2672_v56 = vsel %vm610_vm5, %v2668_v18, %v6781_v12 }
 0x3a6   : > { %v2646_v54 = vpop.permute.xlu1 %2645 }
 0x3a7   : > { %v2676_v9 = vsel %vm615_vm6, %v2672_v56, %v2646_v54  ;;  %v3000_v33 = vpop.permute.xlu0 %2999 }
 0x3a8   : > { %v3817_v8 = vrot.slane %v2676_v9, 4 }
 0x3aa   : > { %v2982_v22 = vpop.permute.xlu1 %2981  ;;  %v3818_v61 = vsel %vm3803_vm7, %v3816_v29, %v3817_v8 }
 0x3ab   : > { %3875 = vmatpush1.bf16.msra.mxu0 %v3818_v61  ;;  %v3012_v12 = vsel %vm590_vm2, %v3007_v58, %v2982_v22  ;;  %v3004_v34 = vpop.permute.xlu0 %3003 }
 0x3ac   : > { %3876 = vmatprep.subr.bf16.mxu0 %v7101_v16 }
 0x3ae   : > { %v2986_v23 = vpop.permute.xlu1 %2985 }
 0x3af   : > { %v3016_v39 = vsel %vm595_vm1, %v3012_v12, %v2986_v23  ;;  %v3383_v13 = vpop.permute.xlu0 %3382 }
 0x3b0   : > { %v3020_v37 = vsel %vm600_vm3, %v3016_v39, %v2990_v41 }
 0x3b2   : > { %v2980_v59 = vpop.permute.xlu1 %2979 }
 0x3b3   : > { %v3010_v62 = vsel %vm583_vm0, %v2955_v10, %v2980_v59  ;;  %v3743_v47 = vpop.permute.xlu0 %3742 }
 0x3b4   : > { %v3014_v3 = vsel %vm590_vm2, %v3010_v62, %v6820_v19  ;;  %v3772_v59 = vsel %vm583_vm0, %v3696_v48, %v3743_v47 }
 0x3b6   : > { %v3369_v20 = vpop.permute.xlu1 %3368 }
 0x3b7   : > { %v3751_v55 = vpop.permute.xlu0 %3750 }
 0x3ba   : > { %v2994_v36 = vpop.permute.xlu1 %2993 }
 0x3bb   : > { %v3024_v25 = vsel %vm605_vm4, %v3020_v37, %v2994_v36  ;;  %v3755_v30 = vpop.permute.xlu0 %3754 }
 0x3bc   : > { %v3028_v6 = vsel %vm610_vm5, %v3024_v25, %v2998_v32  ;;  %v3395_v32 = vsel %vm590_vm2, %v3390_v40, %v6808_v7  ;;  %v4044_v40 = vcombine.low %v6791_v4, %v6791_v4 }
 0x3bd   : > { %v3032_v0 = vsel %vm615_vm6, %v3028_v6, %v3002_v49  ;;  %v3399_v52 = vsel %vm595_vm1, %v3395_v32, %v3369_v20 }
 0x3be   : > { %v2988_v35 = vpop.permute.xlu1 %2987  ;;  %3877 = vmatpush1.bf16.msra.mxu0 %v3032_v0  ;;  %v3403_v29 = vsel %vm600_vm3, %v3399_v52, %v6830_v53  ;;  %v3338_v53 = vpack.i.b16 %v6439_v38, %v6448_v57 }
 0x3bf   : > { %3878 = vmatprep.subr.bf16.mxu0 %v7101_v16  ;;  %v3018_v43 = vsel %vm595_vm1, %v3014_v3, %v2988_v35  ;;  %v3407_v24 = vsel %vm605_vm4, %v3403_v29, %v3377_v31  ;;  %v3759_v8 = vpop.permute.xlu0 %3758 }
 0x3c0   : > { %v3411_v11 = vsel %vm610_vm5, %v3407_v24, %v3381_v44 }
 0x3c2   : > { %v3363_v2 = vpop.permute.xlu1 %3362 }
 0x3c3   : > { %v3393_v18 = vsel %vm583_vm0, %v3338_v53, %v3363_v2  ;;  %v3763_v26 = vpop.permute.xlu0 %3762 }
 0x3c6   : > { %v2992_v41 = vpop.permute.xlu1 %2991 }
 0x3c7   : > { %v3022_v5 = vsel %vm600_vm3, %v3018_v43, %v2992_v41  ;;  %v3767_v63 = vpop.permute.xlu0 %3766 }
 0x3ca   : > { %v3367_v14 = vpop.permute.xlu1 %3366 }
 0x3cb   : > { %v3397_v54 = vsel %vm590_vm2, %v3393_v18, %v3367_v14 }
 0x3cc   : > { %v3401_v9 = vsel %vm595_vm1, %v3397_v54, %v3371_v50 }
 0x3ce   : > { %v2996_v28 = vpop.permute.xlu1 %2995 }
 0x3cf   : > { %v3026_v7 = vsel %vm605_vm4, %v3022_v5, %v2996_v28 }
 0x3d0   : > { %v3030_v17 = vsel %vm610_vm5, %v3026_v7, %v3000_v33 }
 0x3d1   : > { %v3035_v49 = vsel %vm615_vm6, %v3030_v17, %v3004_v34  ;;  %v3720_v34 = vpack.i.b16 %v6756_v46, %v6761_v1 }
 0x3d2   : > { %v3385_v51 = vpop.permute.xlu1 %3384 }
 0x3d3   : > { %v3415_v19 = vsel %vm615_vm6, %v3411_v11, %v3385_v51 }
 0x3d4   : > { %v3822_v21 = vrot.slane %v3415_v19, 4 }
 0x3d6   : > { %v3375_v56 = vpop.permute.xlu1 %3374  ;;  %v3837_v31 = vsel %vm3803_vm7, %v3035_v49, %v3822_v21 }
 0x3d7   : > { %3879 = vmatpush1.bf16.msra.mxu0 %v3837_v31  ;;  %v3405_v38 = vsel %vm600_vm3, %v3401_v9, %v3375_v56 }
 0x3d8   : > { %3880 = vmatprep.subr.bf16.mxu0 %v7101_v16 }
 0x3da   : > { %v3379_v57 = vpop.permute.xlu1 %3378 }
 0x3db   : > { %v3409_v22 = vsel %vm605_vm4, %v3405_v38, %v3379_v57 }
 0x3dc   : > { %v3413_v44 = vsel %vm610_vm5, %v3409_v22, %v3383_v13 }
 0x3de   : > { %v3387_v61 = vpop.permute.xlu1 %3386 }
 0x3df   : > { %v3417_v23 = vsel %vm615_vm6, %v3413_v44, %v3387_v61 }
 0x3e0   : > { %v3823_v27 = vrot.slane %v3417_v23, 4 }
 0x3e2   : > { %v3747_v58 = vpop.permute.xlu1 %3746  ;;  %v3824_v50 = vsel %vm3803_vm7, %v3822_v21, %v3823_v27 }
 0x3e3   : > { %v3777_v12 = vsel %vm590_vm2, %v3772_v59, %v3747_v58  ;;  %3881 = vmatpush1.bf16.msra.mxu0 %v3824_v50 }
 0x3e4   : > { %v3781_v20 = vsel %vm595_vm1, %v3777_v12, %v3751_v55  ;;  %3882 = vmatprep.subr.bf16.mxu0 %v7101_v16 }
 0x3e5   : > { %v3785_v33 = vsel %vm600_vm3, %v3781_v20, %v3755_v30 }
 0x3e6   : > { %v3745_v39 = vpop.permute.xlu1 %3744  ;;  %v3789_v36 = vsel %vm605_vm4, %v3785_v33, %v3759_v8 }
 0x3e7   : > { %v3793_v60 = vsel %vm610_vm5, %v3789_v36, %v3763_v26  ;;  %v3775_v35 = vsel %vm583_vm0, %v3720_v34, %v3745_v39 }
 0x3e8   : > { %v3797_v37 = vsel %vm615_vm6, %v3793_v60, %v3767_v63 }
 0x3e9   : > { %3883 = vmatpush1.bf16.msra.mxu0 %v3797_v37 }
 0x3ea   : > { %v3749_v25 = vpop.permute.xlu1 %3748  ;;  %3884 = vmatprep.subr.bf16.mxu0 %v7101_v16  ;;  %v3765_v16 = vpop.permute.xlu0 %3764 }
 0x3eb   : > { %v3779_v2 = vsel %vm590_vm2, %v3775_v35, %v3749_v25 }
 0x3ee   : > { %v3753_v6 = vpop.permute.xlu1 %3752  ;;  %v3844_v32 = vpop.permute.xlu0 %3843 }
 0x3ef   : > { %v3783_v13 = vsel %vm595_vm1, %v3779_v2, %v3753_v6 }
 0x3f2   : > { %v3757_v0 = vpop.permute.xlu1 %3756 }
 0x3f3   : > { %v3787_v45 = vsel %vm600_vm3, %v3783_v13, %v3757_v0 }
 0x3f6   : > { %v3761_v42 = vpop.permute.xlu1 %3760 }
 0x3f7   : > { %v3791_v15 = vsel %vm605_vm4, %v3787_v45, %v3761_v42 }
 0x3f8   : > { %v3795_v41 = vsel %vm610_vm5, %v3791_v15, %v3765_v16 }
 0x3fa   : > { %v3769_v10 = vpop.permute.xlu1 %3768 }
 0x3fb   : > { %v3800_v46 = vsel %vm615_vm6, %v3795_v41, %v3769_v10 }
 0x3fc   : > { %v3856_v1 = vsel %vm3803_vm7, %v3800_v46, 0 }
 0x3fd   : > { %3885 = vmatpush1.bf16.msra.mxu0 %v3856_v1 }
 0x400   : > { %3891 = vmatmul.mubr.bf16.vlgmr.msra.gmra.mrb[0].mxu0 %v4044_v40 }
 0x4d3   : > { %v3892_v62 = vpop.f32.mrb[0].mxu0 }
 0x4d4   : > { %v3893_v47 = vadd.f32 %v3892_v62, %v3844_v32  ;;  %v3894_v52 = vpop.f32.mrb[1].mxu0 }
 0x4d5   : > { %v3895_v14 = vpop.f32.mrb[2].mxu0 }
 0x4d6   : > { %v3898_v29 = vmax.f32 %v3893_v47, 0.0  ;;  %v3896_v3 = vpop.f32.mrb[3].mxu0 }
 0x4d8   : > { %3899 = vst [vmem:[%s227_s10] sm:$0xff] %v3898_v29 }
 0x4d9   : > { %4294 = shalt.err (!%p4291_p6)
}
 0x4da   : > { %s4295_s29 = scalar_lea.hbm %s6937_s30, 128  ;;  %s4299_s11 = scalar_lea.hbm %s7002_s3, 512 }
 0x4db   : > { %p4296_p7 = scmp.ne.s32.totalorder %s6937_s30, %s4295_s29  ;;  %p4300_p0 = scmp.lt.u32.totalorder %s6937_s30, %s7002_s3 }
 0x4dc   : > { %p4301_p8 = scmp.lt.u32.totalorder %s4299_s11, %s4295_s29  ;;  %p4303_p10 = scmp.lt.u32.totalorder %s4295_s29, %s6937_s30 }
 0x4dd   : > { %p4297_p11 = pnand %p4296_p7, %p7287_p1 }
 0x4de   : > { %p4302_p4 = por %p4301_p8, %p4300_p0 }
 0x4df   : > { %p4298_p13 = pneg %p4297_p11 }
 0x4e0   : > { %p4304_p2 = por %p4303_p10, %p4302_p4 }
 0x4e2   : > { %p4305_p9 = pnand %p4304_p2, %p4298_p13 }
 0x4e4   : > { %4308 = shalt.err (!%p4305_p9)
}
 0x4e5   : > { %4065 = dma.vmem_to_hbm [thread:$0]  (%p7287_p1), %s6939_s2, 128, %s6937_s30, %s3901_s18  }
 0x4e6 PF: > { %s7288_s4 = sld [smem:[#allocation12_spill]]  ;;  %s7289_s12 = sld [smem:[#allocation14_spill]] }
 0x4e7   : > { %p4087_p12 = scmp.ge.s32.totalorder %s4407_s22, 2 }
 0x4ec   : > { %s3928_s8 = sand.u32 1, %s7288_s4   ;;  %p7290_p5 = scmp.ne.s32.totalorder %s7289_s12, 0 }
 0x4ed   : > { %s3929_s10 = scalar_lea.sflag [#allocation4], %s3928_s8 }
 0x4ee   : > { %p4079_p3 = pnand %p4087_p12, %p7290_p5 }
 0x4f0   : > { %4362 = dma.done.wait (!%p4079_p3), %s3929_s10, 128  }
 0x4f1   : > { %4364 = vsyncadd (!%p4079_p3), %s3929_s10, 4294967168  ;;  %s20_s22 = sadd.s32 1, %s4407_s22   ;;  %s7291_s28 = smov %s4618_s15 }
 0x4f2   : > { %p17_p6 = scmp.ge.s32.totalorder %s20_s22, 6   ;;  %s7292_s18 = sld [smem:[#allocation13_spill]] }
 0x4f3   : > { %s7293_s2 = sld [smem:[#allocation15_spill]]  ;;  %s7294_s12 = smov %s4371_s13 }
 0x4f4   : > { %s7295_s13 = smov %s4375_s14  ;;  %s7296_s14 = smov %s4621_s20 }
 0x4f5   : > { %s7297_s15 = smov %s4383_s16  ;;  %s7298_s16 = smov %s4387_s17 }
 0x4f6   : > { %s7299_s17 = smov %s7291_s28  ;;  %s7300_s19 = smov %s4403_s21 }
 0x4f7   : > { %s7302_s21 = smov %s7308_s24  ;;  %19 = sbr.rel (!%p17_p6) target bundleno = 13 (0xd), region = 86 }
 0x4f9   : > { %s7301_s20 = smov %s7293_s2 }
 0x4fe   :  { %3934 = vsyncpa [#allocation3], 1 }
 0x4ff   :  { %3936 = vsyncpa [#allocation3 + $0x1], 1 }
 0x500   :  { %3937 = vsyncpa [#allocation6], 1 }
 0x501   :  { %3938 = vsyncpa [#allocation4], 1 }
 0x502   :  { %3940 = vsyncpa [#allocation4 + $0x1], 1 }

// kernel: esbup_forward.9
= control target key start
LH: loop header
LB: loop body
LE: loop exit
PB: predicated region body
PF: predicated region fallthrough
CT: control target
= control target key end

     0   :  { %s3188_s0 = inlined_call_operand.hbm [shape: f32[2,8,18,18], index: 0, kind: input, shape index: {}]   ;;  %s3189_s1 = inlined_call_operand.hbm [shape: bf16[8,72], index: 1, kind: input, shape index: {}]   ;;  %s3190_s2 = inlined_call_operand.hbm [shape: f32[8,1], index: 2, kind: input, shape index: {}]   ;;  %s3191_s3 = inlined_call_operand.hbm [shape: f32[2,8,256], index: 3, kind: output, shape index: {}]  }
   0x1   :  { %3202 = sst [smem:[#allocation16_spill]] %s3189_s1 }
   0x2   :  { %3203 = sst [smem:[#allocation17_spill]] %s3190_s2 }
   0x3   :  { %8 = vsyncpa [#allocation3], 0 }
   0x4   :  { %10 = vsyncpa [#allocation3 + $0x1], 0 }
   0x5   :  { %11 = vsyncpa [#allocation6], 0 }
   0x6   :  { %12 = vsyncpa [#allocation4], 0 }
   0x7   :  { %14 = vsyncpa [#allocation4 + $0x1], 0  ;;  %s2219_s12 = smov 0   ;;  %s2221_s13 = smov 0  }
   0x8   :  { %s2223_s14 = smov 0   ;;  %s2225_s15 = smov 0  }
   0x9   :  { %s2227_s16 = smov 0   ;;  %s2229_s17 = smov 0  }
   0xa   :  { %s2231_s18 = smov 0   ;;  %s2233_s19 = smov 0  }
   0xb   :  { %s2235_s20 = smov 0   ;;  %s2237_s21 = smov 0  }
   0xc   :  { %s2239_s22 = smov 0  }
   0xd LB: > { %3204 = sst [smem:[#allocation12_spill]] %s2137_s12  ;;  %s1779_s23 = sadd.s32 4294967295, %s2177_s22   ;;  %s2177_s22 = sphi %s2239_s22, %s20_s22   ;;  %s2173_s21 = sphi %s2237_s21, %s3237_s21   ;;  %s2169_s20 = sphi %s2235_s20, %s3236_s20   ;;  %s2165_s19 = sphi %s2233_s19, %s3235_s19   ;;  %s2161_s18 = sphi %s2231_s18, %s3227_s18   ;;  %s2157_s17 = sphi %s2229_s17, %s3234_s17   ;;  %s2153_s16 = sphi %s2227_s16, %s3233_s16   ;;  %s2149_s15 = sphi %s2225_s15, %s3232_s15   ;;  %s2145_s14 = sphi %s2223_s14, %s3231_s14   ;;  %s2141_s13 = sphi %s2221_s13, %s3230_s13   ;;  %s2137_s12 = sphi %s2219_s12, %s3229_s12  }
   0xe   : > { %3205 = sst [smem:[#allocation13_spill]] %s2169_s20  ;;  %p46_p0 = scmp.ne.s32.totalorder %s2157_s17, %s2153_s16 }
   0xf   : > { %p47_p1 = scmp.eq.s32.totalorder %s2177_s22, 0  ;;  %p52_p2 = scmp.ne.s32.totalorder %s2153_s16, %s2149_s15 }
  0x10   : > { %s1780_s24 = sadd.s32 4294967294, %s2177_s22   ;;  %p2278_p3 = scmp.eq.s32.totalorder %s1779_s23, 0 }
  0x11   : > { %p2282_p4 = por %p47_p1, %p46_p0  ;;  %p119_p5 = scmp.ne.s32.totalorder %s2145_s14, %s2141_s13 }
  0x12   : > { %s3206_s25 = scalar_select %p2278_p3, 1, 0 }
  0x13   : > { %p2290_p6 = por %p2278_p3, %p52_p2  ;;  %p120_p7 = scmp.eq.s32.totalorder %s1779_s23, 3 }
  0x14   : > { %p125_p8 = scmp.ne.s32.totalorder %s2141_s13, %s2137_s12  ;;  %p126_p9 = scmp.eq.s32.totalorder %s1780_s24, 3 }
  0x15   : > { %s3208_s27 = scalar_select %p2290_p6, 1, 0 }
  0x16   : > { %p2296_p10 = por %p120_p7, %p119_p5  ;;  %p1781_p11 = scmp.ge.s32.totalorder %s2177_s22, 1 }
  0x17   : > { %p2301_p12 = por %p126_p9, %p125_p8  ;;  %p133_p13 = scmp.lt.s32.totalorder %s2177_s22, 5 }
  0x18   : > { %s3209_s28 = scalar_select %p2296_p10, 1, 0 }
  0x19   : > { %s3210_s29 = scalar_select %p2301_p12, 1, 0 }
  0x1a   : > { %p2306_p0 = pnand %p1781_p11, %p133_p13  ;;  %s2179_s4 = smov [#allocation5]  }
  0x1b   : > { %3211 = sst [smem:[#allocation14_spill]] %s3210_s29  ;;  %s146_s5 = sshll.u32 %s2179_s4, 4  ;;  %s147_s5 = int_to_ptr.vmem [resolvable:$true] %s146_s5 }
  0x1c   : > { %s3212_s30 = scalar_select %p2306_p0, 1, 0 }
  0x1d   : > { %p1836_p1 = pneg %p2306_p0  ;;  %p1853_p2 = scmp.lt.s32.totalorder %s2177_s22, 4 }
  0x1e   : > { %s2180_s8 = smov [#allocation7]   ;;  %s3215_s1 = sld [smem:[#allocation16_spill]] }
  0x1f   : > { %p2315_p5 = pnand %p1836_p1, %p2278_p3  ;;  %p2321_p7 = pnand %p1853_p2, %p2282_p4 }
  0x20   : > { %s157_s9 = sshll.u32 %s2180_s8, 4  ;;  %s158_s9 = int_to_ptr.vmem [resolvable:$true] %s157_s9 }
  0x21   : > { %s3214_s7 = scalar_select %p2321_p7, 1, 0 }
  0x22   : > { %p1967_p9 = pneg %p2315_p5 }
  0x24   : > { %s1965_s15 = scalar_lea.hbm %s3215_s1, 64 }
  0x25   : > { %p1966_p8 = scmp.ne.s32.totalorder %s3215_s1, %s1965_s15  ;;  %p1972_p4 = scmp.lt.u32.totalorder %s1965_s15, %s3215_s1 }
  0x27   : > { %p1968_p11 = pnand %p1967_p9, %p1966_p8 }
  0x29   : > { %p1969_p13 = pneg %p1968_p11 }
  0x2b   : > { %p1974_p1 = pnand %p1972_p4, %p1969_p13 }
  0x2d   : > { %1977 = shalt.err (!%p1974_p1)
}
  0x2e   : > { %s1978_s8 = scalar_lea.vmem %s147_s5, 64  ;;  %p1986_p3 = scmp.lt.s32.totalorder %s147_s5, %s147_s5 }
  0x2f   : > { %p1979_p2 = scmp.ne.s32.totalorder %s147_s5, %s1978_s8  ;;  %p1987_p6 = scmp.lt.s32.totalorder %s1978_s8, %s1978_s8 }
  0x31   : > { %p1981_p12 = pnand %p1979_p2, %p1967_p9  ;;  %p1988_p0 = por %p1987_p6, %p1986_p3 }
  0x33   : > { %p1982_p10 = pneg %p1981_p12 }
  0x35   : > { %p1989_p7 = pnand %p1988_p0, %p1982_p10 }
  0x37   : > { %1992 = shalt.err (!%p1989_p7)
}
  0x38   : > { %1839 = dma.hbm_to_vmem [thread:$0]  (!%p2315_p5), %s3215_s1, 64, %s147_s5, [#allocation6]  }
  0x39   : > { %s3216_s2 = sld [smem:[#allocation17_spill]] }
  0x3f   : > { %s1993_s24 = scalar_lea.hbm %s3216_s2, 128 }
  0x40   : > { %p1994_p12 = scmp.ne.s32.totalorder %s3216_s2, %s1993_s24  ;;  %p2000_p10 = scmp.lt.u32.totalorder %s1993_s24, %s3216_s2 }
  0x42   : > { %p1996_p3 = pnand %p1994_p12, %p1967_p9 }
  0x44   : > { %p1997_p6 = pneg %p1996_p3 }
  0x46   : > { %p2002_p0 = pnand %p2000_p10, %p1997_p6 }
  0x48   : > { %2005 = shalt.err (!%p2002_p0)
}
  0x49   : > { %s2006_s5 = scalar_lea.vmem %s158_s9, 128  ;;  %p2014_p13 = scmp.lt.s32.totalorder %s158_s9, %s158_s9 }
  0x4a   : > { %p2007_p7 = scmp.ne.s32.totalorder %s158_s9, %s2006_s5  ;;  %p2015_p4 = scmp.lt.s32.totalorder %s2006_s5, %s2006_s5 }
  0x4c   : > { %p2009_p8 = pnand %p2007_p7, %p1967_p9  ;;  %p2016_p1 = por %p2015_p4, %p2014_p13 }
  0x4e   : > { %p2010_p11 = pneg %p2009_p8 }
  0x50   : > { %p2017_p2 = pnand %p2016_p1, %p2010_p11 }
  0x52   : > { %2020 = shalt.err (!%p2017_p2)
}
  0x53   : > { %1842 = dma.hbm_to_vmem [thread:$0]  (!%p2315_p5), %s3216_s2, 128, %s158_s9, [#allocation6]  }
  0x54   : > { %s39_s29 = sadd.s32 1, %s2157_s17  ;;  %s29_s15 = sadd.s32 1, %s2169_s20 }
  0x55   : > { %s168_s23 = sand.u32 1, %s2157_s17   ;;  %p30_p9 = scmp.ge.s32.totalorder %s29_s15, 2 }
  0x56   : > { %s32_s24 = sadd.s32 1, %s2173_s21  ;;  %s109_s26 = sadd.s32 1, %s2145_s14 }
  0x57   : > { %s1821_s6 = smul.u32 192, %s168_s23  ;;  %s3239_s15 = smov (%p30_p9, %s29_s15), 0 }
  0x58   : > { %3217 = sst [smem:[#allocation15_spill]] %s3239_s15  ;;  %s3241_s24 = smov (!%p30_p9, %s32_s24), %s2173_s21 }
  0x59   : > { %p34_p12 = scmp.ge.s32.totalorder %s3241_s24, 2  ;;  %s1822_s4 = smul.u32 3072, %s2173_s21 }
  0x5a   : > { %s105_s8 = ssub.s32 %s2169_s20, %s3239_s15  ;;  %s172_s9 = scalar_lea.vmem [#allocation2], %s1821_s6 }
  0x5b   : > { %s3243_s24 = smov (%p34_p12, %s3241_s24), 0  ;;  %s179_s5 = sshll.u32 %s172_s9, 4  ;;  %s2387_s5 = int_to_ptr.vmem [resolvable:$true] %s179_s5 }
  0x5c   : > { %s36_s10 = ssub.s32 %s2173_s21, %s3243_s24  ;;  %s2385_s2 = scalar_lea.hbm %s3188_s0, %s1822_s4 }
  0x5d   : > { %p37_p5 = scmp.eq.s32.totalorder %s36_s10, 0  ;;  %s106_s12 = sor.u32 %s105_s8, %s36_s10 }
  0x5e   : > { %p107_p3 = scmp.eq.s32.totalorder %s106_s12, 0  ;;  %s2395_s6 = scalar_lea.sflag [#allocation3], %s168_s23 }
  0x5f   : > { %s2390_s15 = scalar_select %p37_p5, %s2157_s17, %s39_s29  }
  0x60   : > { %s2393_s20 = scalar_select %p107_p3, %s2145_s14, %s109_s26  }
  0x61   : > { %s2021_s9 = scalar_lea.hbm %s2385_s2, 3072  ;;  %p3218_p10 = scmp.ne.s32.totalorder %s3214_s7, 0 }
  0x62   : > { %p2022_p6 = scmp.ne.s32.totalorder %s2385_s2, %s2021_s9  ;;  %s2026_s12 = scalar_lea.hbm %s3188_s0, 6144 }
  0x63   : > { %p2023_p0 = pneg %p3218_p10  ;;  %p2027_p11 = scmp.lt.u32.totalorder %s2385_s2, %s3188_s0 }
  0x64   : > { %p2028_p13 = scmp.lt.u32.totalorder %s2026_s12, %s2021_s9  ;;  %p2030_p1 = scmp.lt.u32.totalorder %s2021_s9, %s2385_s2 }
  0x65   : > { %p2024_p7 = pnand %p2023_p0, %p2022_p6 }
  0x66   : > { %p2029_p4 = por %p2028_p13, %p2027_p11 }
  0x67   : > { %p2025_p8 = pneg %p2024_p7 }
  0x68   : > { %p2031_p2 = por %p2030_p1, %p2029_p4 }
  0x6a   : > { %p2032_p9 = pnand %p2031_p2, %p2025_p8 }
  0x6c   : > { %2035 = shalt.err (!%p2032_p9)
}
  0x6d   : > { %s2036_s29 = scalar_lea.vmem %s2387_s5, 3072  ;;  %s2181_s23 = smov [#allocation2]  }
  0x6e   : > { %p2037_p12 = scmp.ne.s32.totalorder %s2387_s5, %s2036_s29  ;;  %s2041_s26 = sshll.u32 %s2181_s23, 4  ;;  %s2042_s26 = int_to_ptr.vmem [resolvable:$false] %s2041_s26 }
  0x6f   : > { %s2043_s11 = scalar_lea.vmem %s2042_s26, 6144  ;;  %p2044_p6 = scmp.lt.s32.totalorder %s2387_s5, %s2042_s26 }
  0x70   : > { %p2039_p5 = pnand %p2037_p12, %p2023_p0  ;;  %p2045_p7 = scmp.lt.s32.totalorder %s2043_s11, %s2036_s29 }
  0x72   : > { %p2040_p3 = pneg %p2039_p5  ;;  %p2046_p11 = por %p2045_p7, %p2044_p6 }
  0x74   : > { %p2047_p13 = pnand %p2046_p11, %p2040_p3 }
  0x76   : > { %2050 = shalt.err (!%p2047_p13)
}
  0x77   : > { %s2182_s9 = smov 128   ;;  %s2183_s1 = smov 8  }
  0x78   : > { %1846 = dma.hbm_to_vmem [thread:$0]  (!%p3218_p10), %s2385_s2, 3072, %s2387_s5, %s2395_s6, %s2182_s9, %s2182_s9, %s2183_s1  }
  0x79   : > { %p3219_p0 = scmp.ne.s32.totalorder %s3212_s30, 0 }
  0x7a   : > { %s193_s4 = sand.u32 (!%p3219_p0), 1, %s2153_s16   ;;  %p3220_p8 = scmp.ne.s32.totalorder (!%p3219_p0), %s3208_s27, 0 }
  0x7b   : > { %191 = sbr.rel (%p3219_p0) target bundleno = 745 (0x2e9), region = 32  ;;  %s194_s8 = scalar_lea.sflag (!%p3219_p0), [#allocation3], %s193_s4 }
  0x7c   : > { %s1823_s12 = smul.u32 (!%p3219_p0), 192, %s193_s4 }
  0x7e   : > { %s197_s10 = scalar_lea.vmem (!%p3219_p0), [#allocation2], %s1823_s12 }
  0x82   : > { %2124 = dma.done.wait (%p3220_p8), %s194_s8, 3072  }
  0x83   : > { %2126 = vsyncadd (%p3220_p8), %s194_s8, 4294964224  ;;  %p3221_p4 = scmp.ne.s32.totalorder %s3206_s25, 0 }
  0x85   : > { %2128 = dma.done.wait (%p3221_p4), [#allocation6], 192  }
  0x86   : > { %2130 = vsyncadd (%p3221_p4), [#allocation6], 4294967104  ;;  %s1790_s2 = sshll.u32 %s2161_s18, 3  ;;  %v2184_v0 = vmov 0   ;;  %s2185_s25 = smov 127   ;;  %v259_v25 = vlaneseq  ;;  %vm2197_vm0 = vmmov 0  }
  0x87   : > { %1963 = vset.pattern.permute.xlu1 %v2184_v0  ;;  %1964 = vset.pattern.permute.xlu0 %v2184_v0  ;;  %s2437_s30 = scalar_lea.vmem %s197_s10, %s1790_s2 [#allocation2]  ;;  %v2186_v23 = vmov 1983009808   ;;  %v2187_v34 = vmov 1934713408   ;;  %s2188_s27 = smov 126   ;;  %vm361_vm1 = vcmask 130048  }
  0x88   : > { %v235_v1 = vld [vmem:[%s2437_s30 + $0x30] sm:$0xff]  ;;  %v236_v2 = vld [vmem:[%s2437_s30 + $0x38] sm:$0x3]  ;;  %v231_v3 = vld [vmem:[%s2437_s30] sm:$0xff]  ;;  %v257_v24 = vunpack.c.l.s4 %v2186_v23  ;;  %v260_v31 = vshrl.u32 %v259_v25, 7  ;;  %v274_v35 = vunpack.c.l.s4 %v2187_v34  ;;  %s2189_s7 = smov 64  }
  0x89   : > { %v2442_v4 = vpack.c.bf16 %v236_v2, %v235_v1  ;;  %v232_v5 = vld [vmem:[%s2437_s30 + $0x8] sm:$0x3]  ;;  %v238_v7 = vld [vmem:[%s2437_s30 + $0x50] sm:$0x3]  ;;  %v233_v9 = vld [vmem:[%s2437_s30 + $0x18] sm:$0xff]  ;;  %s2190_s5 = smov 16  }
  0x8a   : > { %v237_v6 = vld [vmem:[%s2437_s30 + $0x48] sm:$0xff]  ;;  %v2447_v8 = vpack.c.bf16 %v232_v5, %v231_v3  ;;  %v234_v10 = vld [vmem:[%s2437_s30 + $0x20] sm:$0x3]  ;;  %v241_v11 = vld [vmem:[%s2437_s30 + $0x78] sm:$0xff]  ;;  %v258_v30 = vunpack.c.0.s8 %v257_v24  ;;  %v275_v37 = vunpack.c.0.s8 %v274_v35  ;;  %s2191_s6 = smov 32   ;;  %s2192_s29 = smov 48  }
  0x8b   : > { %395 = vrot.lane.b32.xlu1 %v2442_v4, %s2185_s25  ;;  %v2454_v12 = vpack.c.bf16 %v238_v7, %v237_v6  ;;  %v1793_v13 = vpack.c.bf16 %v241_v11, %v233_v9  ;;  %v239_v14 = vld [vmem:[%s2437_s30 + $0x60] sm:$0xff]  ;;  %v2459_v15 = vpack.c.bf16 %v234_v10, %v233_v9  ;;  %v245_v18 = vld [vmem:[%s2437_s30 + $0xa8] sm:$0xff]  ;;  %v243_v19 = vld [vmem:[%s2437_s30 + $0x90] sm:$0xff]  ;;  %v698_v59 = vshll.u32 %v2442_v4, 16  ;;  %s2193_s23 = smov 112   ;;  %s2194_s26 = smov 80  }
  0x8c   : > { %391 = vrot.lane.b32.xlu0 %v2447_v8, %s2185_s25  ;;  %v242_v16 = vld [vmem:[%s2437_s30 + $0x80] sm:$0x3]  ;;  %v1791_v17 = vpack.c.bf16 %v239_v14, %v231_v3  ;;  %v240_v20 = vld [vmem:[%s2437_s30 + $0x68] sm:$0x3]  ;;  %v1794_v21 = vpack.c.bf16 %v245_v18, %v237_v6  ;;  %v1792_v22 = vpack.c.bf16 %v243_v19, %v235_v1  ;;  %v246_v28 = vld [vmem:[%s2437_s30 + $0xb0] sm:$0x3]  ;;  %v2483_v36 = vsub.s32 %v258_v30, %v260_v31 }
  0x8d   : > { %v2467_v26 = vpack.c.bf16 %v242_v16, %v241_v11  ;;  %v2471_v27 = vpack.c.bf16 %v240_v20, %v239_v14  ;;  %v244_v29 = vld [vmem:[%s2437_s30 + $0x98] sm:$0x3]  ;;  %v2477_v32 = vpack.c.bf16 %v246_v28, %v245_v18  ;;  %v2504_v42 = vsub.s32 %v275_v37, %v260_v31  ;;  %s2195_s11 = smov 96   ;;  %s225_s9 = sand.u32 1, %s2141_s13  }
  0x8e   : > { %v2481_v33 = vpack.c.bf16 %v244_v29, %v243_v19  ;;  %v2490_v38 = vrot.slane %v1791_v17, %v2483_v36  ;;  %v2493_v39 = vrot.slane %v1792_v22, %v2483_v36  ;;  %v2498_v40 = vrot.slane %v1793_v13, %v2483_v36  ;;  %s1789_s1 = sshll.u32 %s225_s9, 3  ;;  %s1797_s4 = sshll.u32 %s2165_s19, 1 }
  0x8f   : > { %397 = vrot.lane.b32.xlu1 %v2454_v12, %s2185_s25  ;;  %v2507_v43 = vrot.slane %v1794_v21, %v2483_v36  ;;  %v691_v48 = vshll.u32 %v2459_v15, 16  ;;  %v684_v49 = vshll.u32 %v2447_v8, 16  ;;  %v689_v53 = vshrl.u32 %v2459_v15, 16  ;;  %s1671_s12 = sadd.s32 %s2161_s18, %s1797_s4  ;;  %s227_s10 = scalar_lea.vmem [#allocation8], %s1789_s1 }
  0x90   : > { %393 = vrot.lane.b32.xlu0 %v2459_v15, %s2185_s25  ;;  %v271_v41 = vcombine.low %v2490_v38, %v2493_v39  ;;  %v272_v44 = vcombine.high %v2490_v38, %v2493_v39  ;;  %v705_v55 = vshll.u32 %v2454_v12, 16  ;;  %v682_v57 = vshrl.u32 %v2447_v8, 16  ;;  %s1798_s8 = sshll.u32 %s1671_s12, 7  ;;  %s1675_s2 = sshll.u32 %s227_s10, 4  ;;  %s3128_s2 = int_to_ptr.vmem [resolvable:$true] %s1675_s2 }
  0x91   : > { %v305_v45 = vcombine.low %v2498_v40, %v2507_v43  ;;  %v306_v47 = vcombine.high %v2498_v40, %v2507_v43  ;;  %v693_v54 = vrot.slane %v691_v48, 1  ;;  %v686_v58 = vrot.slane %v684_v49, 1  ;;  %s1660_s18 = scalar_lea.sflag [#allocation4], %s225_s9  ;;  %s2051_s19 = scalar_lea.vmem %s3128_s2, 128 }
  0x92   : > { %v2514_v46 = vrot.slane %v272_v44, %v2504_v42  ;;  %v703_v62 = vshrl.u32 %v2454_v12, 16  ;;  %v696_v63 = vshrl.u32 %v2442_v4, 16  ;;  %v707_v5 = vrot.slane %v705_v55, 1  ;;  %p2052_p10 = scmp.ne.s32.totalorder %s3128_s2, %s2051_s19  ;;  %p3222_p1 = scmp.ne.s32.totalorder %s3209_s28, 0 }
  0x93   : > { %401 = vrot.lane.b32.xlu1 %v2467_v26, %s2185_s25  ;;  %v2525_v50 = vrot.slane %v306_v47, %v2504_v42  ;;  %v2554_v3 = vor.u32 %v693_v54, %v689_v53  ;;  %v719_v6 = vshll.u32 %v2467_v26, 16  ;;  %v712_v7 = vshll.u32 %v2471_v27, 16 }
  0x94   : > { %399 = vrot.lane.b32.xlu0 %v2471_v27, %s2185_s25  ;;  %v338_v51 = vshrl.u32 %v2514_v46, 16  ;;  %v2541_v60 = vcombine.high %v2514_v46, %v2184_v0  ;;  %v687_v9 = vor.u32 %v686_v58, %v682_v57  ;;  %v700_v10 = vrot.slane %v698_v59, 1  ;;  %p2053_p2 = pnand %p2052_p10, %p3222_p1 }
  0x95   : > { %v337_v52 = vpack.i.b16 %v2525_v50, %v2514_v46  ;;  %v339_v56 = vshrl.u32 %v2525_v50, 16  ;;  %v2549_v1 = vcombine.high %v2525_v50, %v2184_v0  ;;  %v708_v16 = vor.u32 %v707_v5, %v703_v62 }
  0x96   : > { %v344_v2 = vshrl.u32 %v2541_v60, 16  ;;  %v717_v17 = vshrl.u32 %v2467_v26, 16  ;;  %v721_v18 = vrot.slane %v719_v6, 1  ;;  %v733_v19 = vshll.u32 %v2477_v32, 16  ;;  %p2054_p9 = pneg %p2053_p2 }
  0x97   : > { %405 = vrot.lane.b32.xlu1 %v2477_v32, %s2185_s25  ;;  %v2543_v61 = vpack.i.b16 %v339_v56, %v338_v51  ;;  %v345_v11 = vshrl.u32 %v2549_v1, 16  ;;  %v343_v13 = vpack.i.b16 %v2549_v1, %v2541_v60  ;;  %v701_v20 = vor.u32 %v700_v10, %v696_v63 }
  0x98   : > { %403 = vrot.lane.b32.xlu0 %v2481_v33, %s2185_s25  ;;  %v710_v21 = vshrl.u32 %v2471_v27, 16  ;;  %v714_v22 = vrot.slane %v712_v7, 1  ;;  %v726_v23 = vshll.u32 %v2481_v33, 16  ;;  %v722_v24 = vor.u32 %v721_v18, %v717_v17 }
  0x99   : > { %v2563_v14 = vpack.i.b16 %v345_v11, %v344_v2  ;;  %v731_v25 = vshrl.u32 %v2477_v32, 16  ;;  %v735_v28 = vrot.slane %v733_v19, 1  ;;  %v724_v30 = vshrl.u32 %v2481_v33, 16 }
  0x9a   : > { %v715_v29 = vor.u32 %v714_v22, %v710_v21  ;;  %v728_v31 = vrot.slane %v726_v23, 1  ;;  %v2589_v37 = vrot.slane %v2459_v15, 1  ;;  %v2593_v44 = vrot.slane %v2447_v8, 1 }
  0x9b   : > { %538 = vrot.lane.b32.xlu1 %v2459_v15, %s2188_s27  ;;  %v736_v34 = vor.u32 %v735_v28, %v731_v25  ;;  %v2598_v47 = vrot.slane %v2454_v12, 1  ;;  %v2603_v48 = vrot.slane %v2442_v4, 1  ;;  %v2608_v15 = vrot.slane %v2467_v26, 1 }
  0x9c   : > { %536 = vrot.lane.b32.xlu0 %v2447_v8, %s2188_s27  ;;  %v729_v35 = vor.u32 %v728_v31, %v724_v30  ;;  %v2613_v8 = vrot.slane %v2471_v27, 1  ;;  %v745_v49 = vcombine.low %v687_v9, %v715_v29  ;;  %v2646_v57 = vrot.slane %v271_v41, %v2504_v42 }
  0x9d   : > { %v787_v51 = vcombine.low %v708_v16, %v736_v34  ;;  %v2652_v58 = vrot.slane %v305_v45, %v2504_v42  ;;  %vm365_vm2 = vcmask 261120   ;;  %vm368_vm3 = vcmask 392192  }
  0x9e   : > { %v753_v53 = vcombine.low %v701_v20, %v729_v35  ;;  %v326_v38 = vshrl.u32 %v2646_v57, 16  ;;  %v287_v45 = vcombine.high %v2646_v57, %v2184_v0  ;;  %vm371_vm4 = vcmask 523264  }
  0x9f   : > { %542 = vrot.lane.b32.xlu1 %v2454_v12, %s2188_s27  ;;  %v2618_v12 = vrot.slane %v2477_v32, 1  ;;  %v794_v54 = vrot.slane %v787_v51, %v2483_v36  ;;  %v327_v39 = vshrl.u32 %v2652_v58, 16  ;;  %v321_v63 = vcombine.high %v2652_v58, %v2184_v0 }
  0xa0   : > { %540 = vrot.lane.b32.xlu0 %v2442_v4, %s2188_s27  ;;  %v2623_v4 = vrot.slane %v2481_v33, 1  ;;  %v332_v10 = vshrl.u32 %v287_v45, 16  ;;  %vm374_vm5 = vcmask 654336   ;;  %vm377_vm6 = vcmask 785408  }
  0xa1   : > { %v328_v43 = vpack.i.b16 %v327_v39, %v326_v38  ;;  %v333_v11 = vshrl.u32 %v321_v63, 16  ;;  %vm380_vm7 = vcmask 916480   ;;  %vm1591_vm8 = vcmask 1043456  }
  0xa2   : > { %vm1611_vm9 = vcmask 588800  }
  0xa3   : > { %546 = vrot.lane.b32.xlu1 %v2467_v26, %s2188_s27  ;;  %v779_v26 = vcombine.low %v2554_v3, %v722_v24  ;;  %v334_v50 = vpack.i.b16 %v333_v11, %v332_v10 }
  0xa4   : > { %544 = vrot.lane.b32.xlu0 %v2471_v27, %s2188_s27 }
  0xa5   : > { %v786_v27 = vrot.slane %v779_v26, %v2483_v36 }
  0xa7   : > { %550 = vrot.lane.b32.xlu1 %v2477_v32, %s2188_s27  ;;  %v752_v32 = vrot.slane %v745_v49, %v2483_v36  ;;  %v795_v56 = vcombine.low %v786_v27, %v794_v54  ;;  %v796_v2 = vcombine.high %v786_v27, %v794_v54 }
  0xa8   : > { %548 = vrot.lane.b32.xlu0 %v2481_v33, %s2188_s27  ;;  %v760_v33 = vrot.slane %v753_v53, %v2483_v36 }
  0xa9   : > { %v2660_v62 = vrot.slane %v795_v56, %v2504_v42  ;;  %v2688_v46 = vrot.slane %v796_v2, %v2504_v42 }
  0xaa   : > { %v761_v55 = vcombine.low %v752_v32, %v760_v33  ;;  %v762_v7 = vcombine.high %v752_v32, %v760_v33 }
  0xab   : > { %1013 = vrot.lane.b32.xlu1 %v2554_v3, %s2188_s27  ;;  %v811_v41 = vcombine.high %v2660_v62, %v2184_v0  ;;  %v817_v18 = vshrl.u32 %v2660_v62, 16 }
  0xac   : > { %1011 = vrot.lane.b32.xlu0 %v687_v9, %s2188_s27  ;;  %v2657_v59 = vrot.slane %v761_v55, %v2504_v42  ;;  %v2685_v17 = vrot.slane %v762_v7, %v2504_v42 }
  0xad   : > { %v823_v6 = vshrl.u32 %v811_v41, 16 }
  0xae   : > { %v777_v40 = vcombine.high %v2657_v59, %v2184_v0  ;;  %v828_v19 = vshrl.u32 %v2685_v17, 16 }
  0xaf   : > { %1017 = vrot.lane.b32.xlu1 %v708_v16, %s2188_s27 }
  0xb0   : > { %1015 = vrot.lane.b32.xlu0 %v701_v20, %s2188_s27  ;;  %v822_v5 = vshrl.u32 %v777_v40, 16 }
  0xb3   : > { %1021 = vrot.lane.b32.xlu1 %v722_v24, %s2188_s27 }
  0xb4   : > { %1019 = vrot.lane.b32.xlu0 %v715_v29, %s2188_s27 }
  0xb7   : > { %1025 = vrot.lane.b32.xlu1 %v736_v34, %s2188_s27 }
  0xb8   : > { %1023 = vrot.lane.b32.xlu0 %v729_v35, %s2188_s27 }
  0xbb   : > { %868 = vrot.lane.b32.xlu1 %v2554_v3, %s2185_s25  ;;  %v821_v3 = vpack.i.b16 %v811_v41, %v777_v40 }
  0xbc   : > { %866 = vrot.lane.b32.xlu0 %v687_v9, %s2185_s25  ;;  %v331_v9 = vpack.i.b16 %v321_v63, %v287_v45 }
  0xbf   : > { %872 = vrot.lane.b32.xlu1 %v708_v16, %s2185_s25  ;;  %v824_v16 = vpack.i.b16 %v823_v6, %v822_v5 }
  0xc0   : > { %870 = vrot.lane.b32.xlu0 %v701_v20, %s2185_s25  ;;  %v829_v20 = vshrl.u32 %v2688_v46, 16 }
  0xc2   : > { %v830_v22 = vpack.i.b16 %v829_v20, %v828_v19 }
  0xc3   : > { %876 = vrot.lane.b32.xlu1 %v722_v24, %s2185_s25 }
  0xc4   : > { %874 = vrot.lane.b32.xlu0 %v715_v29, %s2185_s25 }
  0xc7   : > { %880 = vrot.lane.b32.xlu1 %v736_v34, %s2185_s25 }
  0xc8   : > { %878 = vrot.lane.b32.xlu0 %v729_v35, %s2185_s25 }
  0xcb   : > { %1295 = vrot.lane.b32.xlu1 %v2589_v37, %s2185_s25 }
  0xcc   : > { %1293 = vrot.lane.b32.xlu0 %v2593_v44, %s2185_s25 }
  0xcf   : > { %1299 = vrot.lane.b32.xlu1 %v2598_v47, %s2185_s25 }
  0xd0   : > { %1297 = vrot.lane.b32.xlu0 %v2603_v48, %s2185_s25 }
  0xd3   : > { %1303 = vrot.lane.b32.xlu1 %v2608_v15, %s2185_s25 }
  0xd4   : > { %1301 = vrot.lane.b32.xlu0 %v2613_v8, %s2185_s25 }
  0xd7   : > { %1307 = vrot.lane.b32.xlu1 %v2618_v12, %s2185_s25 }
  0xd8   : > { %1305 = vrot.lane.b32.xlu0 %v2623_v4, %s2185_s25 }
  0xdb   : > { %1440 = vrot.lane.b32.xlu1 %v2589_v37, %s2188_s27 }
  0xdc   : > { %1438 = vrot.lane.b32.xlu0 %v2593_v44, %s2188_s27 }
  0xdf   : > { %1444 = vrot.lane.b32.xlu1 %v2598_v47, %s2188_s27 }
  0xe0   : > { %1442 = vrot.lane.b32.xlu0 %v2603_v48, %s2188_s27 }
  0xe3   : > { %1448 = vrot.lane.b32.xlu1 %v2608_v15, %s2188_s27 }
  0xe4   : > { %1446 = vrot.lane.b32.xlu0 %v2613_v8, %s2188_s27 }
  0xe7   : > { %1452 = vrot.lane.b32.xlu1 %v2618_v12, %s2188_s27 }
  0xe8   : > { %1450 = vrot.lane.b32.xlu0 %v2623_v4, %s2188_s27  ;;  %s3126_s27 = scalar_lea.hbm %s3191_s3, %s1798_s8 }
  0xeb   : > { %353 = vrot.lane.b32.xlu1 %v337_v52, %s2189_s7  ;;  %v816_v52 = vshrl.u32 %v2657_v59, 16 }
  0xec   : > { %347 = vrot.lane.b32.xlu0 %v328_v43, %s2190_s5 }
  0xed   : > { %v818_v21 = vpack.i.b16 %v817_v18, %v816_v52 }
  0xef   : > { %839 = vrot.lane.b32.xlu1 %v821_v3, %s2191_s6 }
  0xf0   : > { %349 = vrot.lane.b32.xlu0 %v331_v9, %s2191_s6 }
  0xf3   : > { %841 = vrot.lane.b32.xlu1 %v824_v16, %s2192_s29 }
  0xf4   : > { %351 = vrot.lane.b32.xlu0 %v334_v50, %s2192_s29 }
  0xf7   : > { %359 = vrot.lane.b32.xlu1 %v2563_v14, %s2193_s23  ;;  %v827_v14 = vpack.i.b16 %v2688_v46, %v2685_v17 }
  0xf8   : > { %837 = vrot.lane.b32.xlu0 %v818_v21, %s2190_s5 }
  0xfb   : > { %845 = vrot.lane.b32.xlu1 %v830_v22, %s2194_s26 }
  0xfc   : > { %355 = vrot.lane.b32.xlu0 %v2543_v61, %s2194_s26 }
  0xfd   : > { %v396_v23 = vpop.permute.xlu1 %395 }
  0xfe   : > { %v392_v24 = vpop.permute.xlu0 %391 }
 0x100   : > { %357 = vrot.lane.b32.xlu0 %v343_v13, %s2195_s11 }
 0x101   : > { %v398_v25 = vpop.permute.xlu1 %397 }
 0x102   : > { %v394_v28 = vpop.permute.xlu0 %393 }
 0x104   : > { %843 = vrot.lane.b32.xlu0 %v827_v14, %s2189_s7 }
 0x105   : > { %v402_v29 = vpop.permute.xlu1 %401 }
 0x106   : > { %v400_v30 = vpop.permute.xlu0 %399  ;;  %v449_v31 = vcombine.low %v394_v28, %v402_v29 }
 0x107   : > { %v415_v34 = vcombine.low %v392_v24, %v400_v30 }
 0x108   : > { %v456_v51 = vrot.slane %v449_v31, %v2483_v36 }
 0x109   : > { %v406_v61 = vpop.permute.xlu1 %405  ;;  %v422_v1 = vrot.slane %v415_v34, %v2483_v36 }
 0x10a   : > { %v457_v35 = vcombine.low %v398_v25, %v406_v61  ;;  %v404_v26 = vpop.permute.xlu0 %403 }
 0x10b   : > { %v423_v49 = vcombine.low %v396_v23, %v404_v26 }
 0x10c   : > { %v464_v60 = vrot.slane %v457_v35, %v2483_v36 }
 0x10d   : > { %v430_v13 = vrot.slane %v423_v49, %v2483_v36  ;;  %v539_v53 = vpop.permute.xlu1 %538 }
 0x10e   : > { %v465_v27 = vcombine.low %v456_v51, %v464_v60  ;;  %v466_v32 = vcombine.high %v456_v51, %v464_v60  ;;  %v537_v54 = vpop.permute.xlu0 %536 }
 0x10f   : > { %v431_v33 = vcombine.low %v422_v1, %v430_v13  ;;  %v432_v55 = vcombine.high %v422_v1, %v430_v13 }
 0x110   : > { %v2715_v56 = vrot.slane %v465_v27, %v2504_v42  ;;  %v480_v38 = vrot.slane %v466_v32, %v2504_v42 }
 0x111   : > { %v2719_v39 = vrot.slane %v431_v33, %v2504_v42  ;;  %v446_v40 = vrot.slane %v432_v55, %v2504_v42  ;;  %v543_v41 = vpop.permute.xlu1 %542 }
 0x112   : > { %v541_v43 = vpop.permute.xlu0 %540  ;;  %v487_v45 = vshrl.u32 %v2715_v56, 16  ;;  %v481_v5 = vcombine.high %v2715_v56, %v2184_v0  ;;  %v2735_v11 = vcombine.high %v480_v38, %v2184_v0  ;;  %v499_v18 = vshrl.u32 %v480_v38, 16 }
 0x113   : > { %v497_v63 = vpack.i.b16 %v480_v38, %v446_v40  ;;  %v486_v2 = vshrl.u32 %v2719_v39, 16  ;;  %v447_v3 = vcombine.high %v2719_v39, %v2184_v0  ;;  %v485_v6 = vpack.i.b16 %v2715_v56, %v2719_v39 }
 0x114   : > { %v2732_v10 = vcombine.high %v446_v40, %v2184_v0  ;;  %v498_v52 = vshrl.u32 %v446_v40, 16  ;;  %v493_v33 = vshrl.u32 %v481_v5, 16 }
 0x115   : > { %513 = vrot.lane.b32.xlu1 %v497_v63, %s2189_s7  ;;  %v547_v7 = vpop.permute.xlu1 %546  ;;  %v488_v9 = vpack.i.b16 %v487_v45, %v486_v2  ;;  %v491_v50 = vpack.i.b16 %v481_v5, %v447_v3  ;;  %v2196_v5 = vmov 0.0  }
 0x116   : > { %v545_v16 = vpop.permute.xlu0 %544  ;;  %v594_v19 = vcombine.low %v539_v53, %v547_v7  ;;  %v503_v22 = vpack.i.b16 %v2735_v11, %v2732_v10  ;;  %v500_v25 = vpack.i.b16 %v499_v18, %v498_v52  ;;  %1807 = vmatprep.subr.bf16.mxu0 %v2196_v5  ;;  %1817 = vmatprep.mubr.msk.bf16.mxu0 %vm2197_vm0, %v2196_v5 }
 0x117   : > { %507 = vrot.lane.b32.xlu0 %v488_v9, %s2190_s5  ;;  %v560_v20 = vcombine.low %v537_v54, %v545_v16  ;;  %v492_v54 = vshrl.u32 %v447_v3, 16  ;;  %v504_v9 = vshrl.u32 %v2732_v10, 16  ;;  %v505_v3 = vshrl.u32 %v2735_v11, 16 }
 0x118   : > { %v601_v28 = vrot.slane %v594_v19, %v2483_v36 }
 0x119   : > { %509 = vrot.lane.b32.xlu1 %v491_v50, %s2191_s6  ;;  %v551_v21 = vpop.permute.xlu1 %550  ;;  %v567_v30 = vrot.slane %v560_v20, %v2483_v36  ;;  %v494_v7 = vpack.i.b16 %v493_v33, %v492_v54  ;;  %v506_v11 = vpack.i.b16 %v505_v3, %v504_v9 }
 0x11a   : > { %v602_v23 = vcombine.low %v543_v41, %v551_v21  ;;  %v549_v24 = vpop.permute.xlu0 %548 }
 0x11b   : > { %v568_v14 = vcombine.low %v541_v43, %v549_v24  ;;  %517 = vrot.lane.b32.xlu0 %v503_v22, %s2195_s11 }
 0x11c   : > { %v609_v29 = vrot.slane %v602_v23, %v2483_v36 }
 0x11d   : > { %v575_v31 = vrot.slane %v568_v14, %v2483_v36  ;;  %515 = vrot.lane.b32.xlu1 %v500_v25, %s2194_s26  ;;  %v1014_v34 = vpop.permute.xlu1 %1013 }
 0x11e   : > { %v610_v61 = vcombine.low %v601_v28, %v609_v29  ;;  %v1012_v35 = vpop.permute.xlu0 %1011  ;;  %v611_v16 = vcombine.high %v601_v28, %v609_v29 }
 0x11f   : > { %v576_v26 = vcombine.low %v567_v30, %v575_v31  ;;  %v577_v50 = vcombine.high %v567_v30, %v575_v31 }
 0x120   : > { %v2748_v49 = vrot.slane %v610_v61, %v2504_v42  ;;  %v625_v24 = vrot.slane %v611_v16, %v2504_v42  ;;  %v778_v61 = vcombine.high %v2685_v17, %v2184_v0 }
 0x121   : > { %v2751_v51 = vrot.slane %v576_v26, %v2504_v42  ;;  %v1018_v60 = vpop.permute.xlu1 %1017  ;;  %v591_v14 = vrot.slane %v577_v50, %v2504_v42 }
 0x122   : > { %v1016_v1 = vpop.permute.xlu0 %1015  ;;  %v632_v13 = vshrl.u32 %v2748_v49, 16  ;;  %v626_v53 = vcombine.high %v2748_v49, %v2184_v0  ;;  %v834_v54 = vshrl.u32 %v778_v61, 16  ;;  %v644_v9 = vshrl.u32 %v625_v24, 16 }
 0x123   : > { %v631_v27 = vshrl.u32 %v2751_v51, 16  ;;  %v592_v32 = vcombine.high %v2751_v51, %v2184_v0  ;;  %v630_v55 = vpack.i.b16 %v2748_v49, %v2751_v51  ;;  %v643_v50 = vshrl.u32 %v591_v14, 16 }
 0x124   : > { %v638_v45 = vshrl.u32 %v626_v53, 16 }
 0x125   : > { %v1022_v38 = vpop.permute.xlu1 %1021  ;;  %v633_v40 = vpack.i.b16 %v632_v13, %v631_v27  ;;  %v636_v41 = vpack.i.b16 %v626_v53, %v592_v32  ;;  %v637_v43 = vshrl.u32 %v592_v32, 16  ;;  %v642_v13 = vpack.i.b16 %v625_v24, %v591_v14 }
 0x126   : > { %v1020_v63 = vpop.permute.xlu0 %1019  ;;  %v1069_v2 = vcombine.low %v1014_v34, %v1022_v38 }
 0x127   : > { %652 = vrot.lane.b32.xlu0 %v633_v40, %s2190_s5  ;;  %654 = vrot.lane.b32.xlu1 %v636_v41, %s2191_s6  ;;  %v1035_v52 = vcombine.low %v1012_v35, %v1020_v63  ;;  %v639_v19 = vpack.i.b16 %v638_v45, %v637_v43  ;;  %v812_v35 = vcombine.high %v2688_v46, %v2184_v0 }
 0x128   : > { %v2769_v23 = vrot.slane %v1069_v2, %v2483_v36 }
 0x129   : > { %v1026_v18 = vpop.permute.xlu1 %1025  ;;  %v2777_v25 = vrot.slane %v1035_v52, %v2483_v36  ;;  %v835_v33 = vshrl.u32 %v812_v35, 16  ;;  %v833_v63 = vpack.i.b16 %v812_v35, %v778_v61 }
 0x12a   : > { %v1077_v20 = vcombine.low %v1018_v60, %v1026_v18  ;;  %v1024_v21 = vpop.permute.xlu0 %1023 }
 0x12b   : > { %v1043_v22 = vcombine.low %v1016_v1, %v1024_v21  ;;  %656 = vrot.lane.b32.xlu0 %v639_v19, %s2192_s29  ;;  %511 = vrot.lane.b32.xlu1 %v494_v7, %s2192_s29  ;;  %v836_v2 = vpack.i.b16 %v835_v33, %v834_v54  ;;  %v593_v54 = vcombine.high %v591_v14, %v2184_v0 }
 0x12c   : > { %v2772_v10 = vrot.slane %v1077_v20, %v2483_v36  ;;  %v627_v33 = vcombine.high %v625_v24, %v2184_v0 }
 0x12d   : > { %v2780_v28 = vrot.slane %v1043_v22, %v2483_v36  ;;  %v869_v29 = vpop.permute.xlu1 %868 }
 0x12e   : > { %v1085_v30 = vcombine.low %v2769_v23, %v2772_v10  ;;  %v867_v31 = vpop.permute.xlu0 %866 }
 0x12f   : > { %v1051_v34 = vcombine.low %v2777_v25, %v2780_v28  ;;  %519 = vrot.lane.b32.xlu1 %v506_v11, %s2193_s23 }
 0x130   : > { %v2792_v26 = vrot.slane %v1085_v30, %v2504_v42 }
 0x131   : > { %v2795_v60 = vrot.slane %v1051_v34, %v2504_v42  ;;  %v873_v1 = vpop.permute.xlu1 %872  ;;  %v645_v34 = vpack.i.b16 %v644_v9, %v643_v50 }
 0x132   : > { %v871_v53 = vpop.permute.xlu0 %870  ;;  %v1107_v27 = vshrl.u32 %v2792_v26, 16  ;;  %v1101_v32 = vcombine.high %v2792_v26, %v2184_v0 }
 0x133   : > { %658 = vrot.lane.b32.xlu1 %v642_v13, %s2189_s7  ;;  %v1106_v17 = vshrl.u32 %v2795_v60, 16  ;;  %v1067_v46 = vcombine.high %v2795_v60, %v2184_v0  ;;  %v1105_v38 = vpack.i.b16 %v2792_v26, %v2795_v60 }
 0x134   : > { %v1113_v18 = vshrl.u32 %v1101_v32, 16 }
 0x135   : > { %v877_v40 = vpop.permute.xlu1 %876  ;;  %v1108_v41 = vpack.i.b16 %v1107_v27, %v1106_v17  ;;  %v1111_v43 = vpack.i.b16 %v1101_v32, %v1067_v46  ;;  %v1112_v52 = vshrl.u32 %v1067_v46, 16 }
 0x136   : > { %v875_v45 = vpop.permute.xlu0 %874  ;;  %v924_v7 = vcombine.low %v869_v29, %v877_v40 }
 0x137   : > { %1127 = vrot.lane.b32.xlu0 %v1108_v41, %s2190_s5  ;;  %1129 = vrot.lane.b32.xlu1 %v1111_v43, %s2191_s6  ;;  %v890_v3 = vcombine.low %v867_v31, %v875_v45  ;;  %v1114_v61 = vpack.i.b16 %v1113_v18, %v1112_v52 }
 0x138   : > { %v931_v22 = vrot.slane %v924_v7, %v2483_v36  ;;  %v650_v7 = vshrl.u32 %v627_v33, 16 }
 0x139   : > { %v881_v16 = vpop.permute.xlu1 %880  ;;  %v897_v30 = vrot.slane %v890_v3, %v2483_v36 }
 0x13a   : > { %v932_v19 = vcombine.low %v873_v1, %v881_v16  ;;  %v879_v20 = vpop.permute.xlu0 %878  ;;  %v1086_v1 = vcombine.high %v2769_v23, %v2772_v10 }
 0x13b   : > { %v898_v21 = vcombine.low %v871_v53, %v879_v20  ;;  %847 = vrot.lane.b32.xlu0 %v833_v63, %s2195_s11  ;;  %849 = vrot.lane.b32.xlu1 %v836_v2, %s2193_s23  ;;  %v1052_v53 = vcombine.high %v2777_v25, %v2780_v28  ;;  %v649_v2 = vshrl.u32 %v593_v54, 16 }
 0x13c   : > { %v939_v11 = vrot.slane %v932_v19, %v2483_v36  ;;  %v1100_v28 = vrot.slane %v1086_v1, %v2504_v42  ;;  %v1206_v19 = vcombine.low %v2589_v37, %v2608_v15  ;;  %v1214_v1 = vcombine.low %v2598_v47, %v2618_v12 }
 0x13d   : > { %v905_v29 = vrot.slane %v898_v21, %v2483_v36  ;;  %v1296_v31 = vpop.permute.xlu1 %1295  ;;  %v1066_v40 = vrot.slane %v1052_v53, %v2504_v42  ;;  %v1180_v53 = vcombine.low %v2603_v48, %v2623_v4 }
 0x13e   : > { %v940_v35 = vcombine.low %v931_v22, %v939_v11  ;;  %v1294_v13 = vpop.permute.xlu0 %1293  ;;  %v1119_v16 = vshrl.u32 %v1100_v28, 16  ;;  %v941_v50 = vcombine.high %v931_v22, %v939_v11 }
 0x13f   : > { %v906_v27 = vcombine.low %v897_v30, %v905_v29  ;;  %660 = vrot.lane.b32.xlu0 %v645_v34, %s2194_s26  ;;  %1131 = vrot.lane.b32.xlu1 %v1114_v61, %s2192_s29  ;;  %v1118_v3 = vshrl.u32 %v1066_v40, 16  ;;  %v907_v52 = vcombine.high %v897_v30, %v905_v29  ;;  %v648_v34 = vpack.i.b16 %v627_v33, %v593_v54 }
 0x140   : > { %v2821_v32 = vrot.slane %v940_v35, %v2504_v42  ;;  %v651_v61 = vpack.i.b16 %v650_v7, %v649_v2  ;;  %v1172_v35 = vcombine.low %v2593_v44, %v2613_v8  ;;  %v1117_v37 = vpack.i.b16 %v1100_v28, %v1066_v40 }
 0x141   : > { %v2824_v17 = vrot.slane %v906_v27, %v2504_v42  ;;  %v1300_v46 = vpop.permute.xlu1 %1299  ;;  %v1120_v15 = vpack.i.b16 %v1119_v16, %v1118_v3  ;;  %v2851_v30 = vrot.slane %v941_v50, %v2504_v42  ;;  %v2854_v44 = vrot.slane %v907_v52, %v2504_v42 }
 0x142   : > { %v1298_v23 = vpop.permute.xlu0 %1297  ;;  %v962_v10 = vshrl.u32 %v2821_v32, 16  ;;  %v956_v25 = vcombine.high %v2821_v32, %v2184_v0  ;;  %v1068_v7 = vcombine.high %v1066_v40, %v2184_v0 }
 0x143   : > { %v961_v41 = vshrl.u32 %v2824_v17, 16  ;;  %v922_v43 = vcombine.high %v2824_v17, %v2184_v0  ;;  %v960_v14 = vpack.i.b16 %v2821_v32, %v2824_v17 }
 0x144   : > { %v968_v29 = vshrl.u32 %v956_v25, 16 }
 0x145   : > { %v1304_v45 = vpop.permute.xlu1 %1303  ;;  %v963_v24 = vpack.i.b16 %v962_v10, %v961_v41  ;;  %v966_v63 = vpack.i.b16 %v956_v25, %v922_v43  ;;  %v967_v4 = vshrl.u32 %v922_v43, 16  ;;  %v2880_v10 = vrot.slane %v1214_v1, %v2483_v36 }
 0x146   : > { %v1302_v9 = vpop.permute.xlu0 %1301  ;;  %v1351_v18 = vcombine.low %v1296_v31, %v1304_v45  ;;  %v1102_v43 = vcombine.high %v1100_v28, %v2184_v0 }
 0x147   : > { %982 = vrot.lane.b32.xlu0 %v963_v24, %s2190_s5  ;;  %984 = vrot.lane.b32.xlu1 %v966_v63, %s2191_s6  ;;  %v1317_v20 = vcombine.low %v1294_v13, %v1302_v9  ;;  %v2869_v13 = vrot.slane %v1172_v35, %v2483_v36  ;;  %v969_v24 = vpack.i.b16 %v968_v29, %v967_v4 }
 0x148   : > { %v2857_v47 = vrot.slane %v1351_v18, %v2483_v36  ;;  %v972_v63 = vpack.i.b16 %v2851_v30, %v2854_v44 }
 0x149   : > { %v1308_v21 = vpop.permute.xlu1 %1307  ;;  %v2863_v8 = vrot.slane %v1317_v20, %v2483_v36 }
 0x14a   : > { %v1359_v27 = vcombine.low %v1300_v46, %v1308_v21  ;;  %v1306_v22 = vpop.permute.xlu0 %1305  ;;  %v2872_v46 = vrot.slane %v1180_v53, %v2483_v36  ;;  %v1124_v21 = vshrl.u32 %v1068_v7, 16 }
 0x14b   : > { %v1325_v11 = vcombine.low %v1298_v23, %v1306_v22  ;;  %662 = vrot.lane.b32.xlu0 %v648_v34, %s2195_s11  ;;  %664 = vrot.lane.b32.xlu1 %v651_v61, %s2193_s23  ;;  %v2877_v23 = vrot.slane %v1206_v19, %v2483_v36  ;;  %v1125_v34 = vshrl.u32 %v1102_v43, 16 }
 0x14c   : > { %v2860_v48 = vrot.slane %v1359_v27, %v2483_v36  ;;  %v1188_v50 = vcombine.low %v2869_v13, %v2872_v46 }
 0x14d   : > { %v2866_v12 = vrot.slane %v1325_v11, %v2483_v36  ;;  %v1441_v31 = vpop.permute.xlu1 %1440  ;;  %v1222_v40 = vcombine.low %v2877_v23, %v2880_v10  ;;  %v973_v11 = vshrl.u32 %v2854_v44, 16  ;;  %v1126_v4 = vpack.i.b16 %v1125_v34, %v1124_v21 }
 0x14e   : > { %v1367_v54 = vcombine.low %v2857_v47, %v2860_v48  ;;  %v1439_v33 = vpop.permute.xlu0 %1438  ;;  %v2911_v53 = vrot.slane %v1188_v50, %v2504_v42 }
 0x14f   : > { %v1333_v25 = vcombine.low %v2863_v8, %v2866_v12  ;;  %1133 = vrot.lane.b32.xlu0 %v1117_v37, %s2189_s7  ;;  %1135 = vrot.lane.b32.xlu1 %v1120_v15, %s2194_s26  ;;  %v2916_v22 = vrot.slane %v1222_v40, %v2504_v42  ;;  %v974_v37 = vshrl.u32 %v2851_v30, 16  ;;  %v1123_v15 = vpack.i.b16 %v1102_v43, %v1068_v7 }
 0x150   : > { %v2887_v41 = vrot.slane %v1367_v54, %v2504_v42  ;;  %v957_v40 = vcombine.high %v2851_v30, %v2184_v0 }
 0x151   : > { %v2891_v45 = vrot.slane %v1333_v25, %v2504_v42  ;;  %v1445_v2 = vpop.permute.xlu1 %1444  ;;  %v1238_v50 = vcombine.high %v2916_v22, %v2184_v0 }
 0x152   : > { %v1389_v9 = vshrl.u32 %v2887_v41, 16  ;;  %v1383_v3 = vcombine.high %v2887_v41, %v2184_v0  ;;  %v1443_v16 = vpop.permute.xlu0 %1442 }
 0x153   : > { %986 = vrot.lane.b32.xlu0 %v969_v24, %s2192_s29  ;;  %988 = vrot.lane.b32.xlu1 %v972_v63, %s2189_s7  ;;  %v1388_v28 = vshrl.u32 %v2891_v45, 16  ;;  %v1349_v52 = vcombine.high %v2891_v45, %v2184_v0  ;;  %v1387_v18 = vpack.i.b16 %v2887_v41, %v2891_v45 }
 0x155   : > { %v1390_v19 = vpack.i.b16 %v1389_v9, %v1388_v28  ;;  %v1393_v20 = vpack.i.b16 %v1383_v3, %v1349_v52  ;;  %v1449_v61 = vpop.permute.xlu1 %1448  ;;  %v1394_v29 = vshrl.u32 %v1349_v52, 16  ;;  %v1243_v9 = vshrl.u32 %v2911_v53, 16 }
 0x156   : > { %v1496_v35 = vcombine.low %v1441_v31, %v1449_v61  ;;  %v1447_v1 = vpop.permute.xlu0 %1446  ;;  %v1395_v31 = vshrl.u32 %v1383_v3, 16  ;;  %v1244_v3 = vshrl.u32 %v2916_v22, 16  ;;  %v923_v52 = vcombine.high %v2854_v44, %v2184_v0 }
 0x157   : > { %1409 = vrot.lane.b32.xlu0 %v1390_v19, %s2190_s5  ;;  %1411 = vrot.lane.b32.xlu1 %v1393_v20, %s2191_s6  ;;  %v1462_v27 = vcombine.low %v1439_v33, %v1447_v1  ;;  %v1204_v33 = vcombine.high %v2911_v53, %v2184_v0  ;;  %v1368_v19 = vcombine.high %v2857_v47, %v2860_v48  ;;  %v980_v48 = vshrl.u32 %v957_v40, 16 }
 0x158   : > { %v2921_v25 = vrot.slane %v1496_v35, %v2483_v36  ;;  %v1396_v20 = vpack.i.b16 %v1395_v31, %v1394_v29  ;;  %v1245_v44 = vpack.i.b16 %v1244_v3, %v1243_v9  ;;  %v979_v47 = vshrl.u32 %v923_v52, 16 }
 0x159   : > { %v1453_v54 = vpop.permute.xlu1 %1452  ;;  %v2929_v43 = vrot.slane %v1462_v27, %v2483_v36  ;;  %v1248_v61 = vpack.i.b16 %v1238_v50, %v1204_v33  ;;  %v978_v1 = vpack.i.b16 %v957_v40, %v923_v52  ;;  %v1189_v29 = vcombine.high %v2869_v13, %v2872_v46 }
 0x15a   : > { %v1504_v24 = vcombine.low %v1445_v2, %v1453_v54  ;;  %v1451_v63 = vpop.permute.xlu0 %1450  ;;  %v975_v2 = vpack.i.b16 %v974_v37, %v973_v11  ;;  %v981_v27 = vpack.i.b16 %v980_v48, %v979_v47  ;;  %v1249_v31 = vshrl.u32 %v1204_v33, 16 }
 0x15b   : > { %1137 = vrot.lane.b32.xlu0 %v1123_v15, %s2195_s11  ;;  %1139 = vrot.lane.b32.xlu1 %v1126_v4, %s2193_s23  ;;  %v1470_v7 = vcombine.low %v1443_v16, %v1451_v63  ;;  %v1334_v16 = vcombine.high %v2863_v8, %v2866_v12  ;;  %v1382_v8 = vrot.slane %v1368_v19, %v2504_v42  ;;  %v1250_v54 = vshrl.u32 %v1238_v50, 16 }
 0x15c   : > { %v2935_v28 = vrot.slane %v1504_v24, %v2483_v36  ;;  %v1223_v4 = vcombine.high %v2877_v23, %v2880_v10  ;;  %v1203_v3 = vrot.slane %v1189_v29, %v2504_v42 }
 0x15d   : > { %v2946_v21 = vrot.slane %v1470_v7, %v2483_v36  ;;  %v1348_v12 = vrot.slane %v1334_v16, %v2504_v42  ;;  %v1401_v37 = vshrl.u32 %v1382_v8, 16  ;;  %v1384_v7 = vcombine.high %v1382_v8, %v2184_v0  ;;  %v2980_v23 = vpop.permute.xlu1 %353 }
 0x15e   : > { %v1512_v34 = vcombine.low %v2921_v25, %v2935_v28  ;;  %v2978_v13 = vpop.permute.xlu0 %347  ;;  %v1251_v46 = vpack.i.b16 %v1250_v54, %v1249_v31  ;;  %v1255_v40 = vshrl.u32 %v1203_v3, 16  ;;  %v1205_v16 = vcombine.high %v1203_v3, %v2184_v0 }
 0x15f   : > { %990 = vrot.lane.b32.xlu0 %v975_v2, %s2194_s26  ;;  %1413 = vrot.lane.b32.xlu1 %v1396_v20, %s2192_s29  ;;  %v1478_v30 = vcombine.low %v2929_v43, %v2946_v21  ;;  %v1400_v11 = vshrl.u32 %v1348_v12, 16  ;;  %v1399_v24 = vpack.i.b16 %v1382_v8, %v1348_v12  ;;  %v1350_v9 = vcombine.high %v1348_v12, %v2184_v0 }
 0x160   : > { %v2957_v36 = vrot.slane %v1512_v34, %v2504_v42  ;;  %v1237_v2 = vrot.slane %v1223_v4, %v2504_v42  ;;  %v1407_v50 = vshrl.u32 %v1384_v7, 16  ;;  %v1261_v48 = vshrl.u32 %v1205_v16, 16 }
 0x161   : > { %v2960_v35 = vrot.slane %v1478_v30, %v2504_v42  ;;  %v1402_v63 = vpack.i.b16 %v1401_v37, %v1400_v11  ;;  %v1405_v10 = vpack.i.b16 %v1384_v7, %v1350_v9  ;;  %v1406_v33 = vshrl.u32 %v1350_v9, 16 }
 0x162   : > { %v1254_v52 = vpack.i.b16 %v1237_v2, %v1203_v3  ;;  %v1256_v19 = vshrl.u32 %v1237_v2, 16  ;;  %v1239_v20 = vcombine.high %v1237_v2, %v2184_v0  ;;  %v350_v34 = vpop.permute.xlu0 %349  ;;  %v1513_v12 = vcombine.high %v2921_v25, %v2935_v28 }
 0x163   : > { %1264 = vrot.lane.b32.xlu0 %v1245_v44, %s2190_s5  ;;  %1266 = vrot.lane.b32.xlu1 %v1248_v61, %s2191_s6  ;;  %v1532_v15 = vpack.i.b16 %v2957_v36, %v2960_v35  ;;  %v1408_v30 = vpack.i.b16 %v1407_v50, %v1406_v33  ;;  %v2986_v44 = vpop.permute.xlu1 %839  ;;  %v1534_v11 = vshrl.u32 %v2957_v36, 16  ;;  %v1528_v28 = vcombine.high %v2957_v36, %v2184_v0 }
 0x164   : > { %v1257_v61 = vpack.i.b16 %v1256_v19, %v1255_v40  ;;  %v1260_v47 = vpack.i.b16 %v1239_v20, %v1205_v16  ;;  %v1262_v8 = vshrl.u32 %v1239_v20, 16  ;;  %v1527_v31 = vrot.slane %v1513_v12, %v2504_v42  ;;  %v1605_v19 = vld [vmem:[#allocation7] sm:$0xff] }
 0x166   : > { %v352_v37 = vpop.permute.xlu0 %351  ;;  %v1263_v4 = vpack.i.b16 %v1262_v8, %v1261_v48  ;;  %v1546_v50 = vshrl.u32 %v1527_v31, 16  ;;  %v325_v48 = vpack.i.b16 %v2652_v58, %v2646_v57 }
 0x167   : > { %992 = vrot.lane.b32.xlu0 %v978_v1, %s2195_s11  ;;  %994 = vrot.lane.b32.xlu1 %v981_v27, %s2193_s23  ;;  %v1479_v1 = vcombine.high %v2929_v43, %v2946_v21  ;;  %v1533_v27 = vshrl.u32 %v2960_v35, 16  ;;  %v2998_v29 = vpop.permute.xlu1 %841  ;;  %v1494_v43 = vcombine.high %v2960_v35, %v2184_v0 }
 0x169   : > { %v1493_v54 = vrot.slane %v1479_v1, %v2504_v42  ;;  %v1535_v25 = vpack.i.b16 %v1534_v11, %v1533_v27  ;;  %v1538_v9 = vpack.i.b16 %v1528_v28, %v1494_v43  ;;  %v1539_v3 = vshrl.u32 %v1494_v43, 16 }
 0x16a   : > { %v1540_v42 = vshrl.u32 %v1528_v28, 16  ;;  %v364_v1 = vsel %vm361_vm1, %v325_v48, %v2978_v13 }
 0x16b   : > { %1415 = vrot.lane.b32.xlu0 %v1399_v24, %s2189_s7  ;;  %1417 = vrot.lane.b32.xlu1 %v1402_v63, %s2194_s26  ;;  %v1544_v21 = vpack.i.b16 %v1527_v31, %v1493_v54  ;;  %v1529_v24 = vcombine.high %v1527_v31, %v2184_v0  ;;  %v3009_v63 = vpop.permute.xlu0 %837  ;;  %v360_v7 = vpop.permute.xlu1 %359  ;;  %v1495_v2 = vcombine.high %v1493_v54, %v2184_v0  ;;  %v1545_v33 = vshrl.u32 %v1493_v54, 16 }
 0x16c   : > { %v367_v27 = vsel %vm365_vm2, %v364_v1, %v350_v34 }
 0x16d   : > { %v1547_v16 = vpack.i.b16 %v1546_v50, %v1545_v33  ;;  %v1551_v0 = vshrl.u32 %v1495_v2, 16  ;;  %v1552_v20 = vshrl.u32 %v1529_v24, 16  ;;  %v370_v31 = vsel %vm368_vm3, %v367_v27, %v352_v37 }
 0x16e   : > { %v373_v58 = vsel %vm371_vm4, %v370_v31, %v2980_v23 }
 0x16f   : > { %1268 = vrot.lane.b32.xlu0 %v1251_v46, %s2192_s29  ;;  %1419 = vrot.lane.b32.xlu1 %v1405_v10, %s2195_s11  ;;  %v1541_v46 = vpack.i.b16 %v1540_v42, %v1539_v3  ;;  %v1550_v10 = vpack.i.b16 %v1529_v24, %v1495_v2  ;;  %v846_v40 = vpop.permute.xlu1 %845 }
 0x173   : > { %1270 = vrot.lane.b32.xlu0 %v1254_v52, %s2189_s7  ;;  %1421 = vrot.lane.b32.xlu1 %v1408_v30, %s2193_s23  ;;  %v356_v52 = vpop.permute.xlu0 %355 }
 0x174   : > { %v376_v43 = vsel %vm374_vm5, %v373_v58, %v356_v52 }
 0x177   : > { %1272 = vrot.lane.b32.xlu0 %v1257_v61, %s2194_s26  ;;  %1274 = vrot.lane.b32.xlu1 %v1260_v47, %s2195_s11  ;;  %v358_v30 = vpop.permute.xlu0 %357  ;;  %v1553_v47 = vpack.i.b16 %v1552_v20, %v1551_v0 }
 0x178   : > { %v379_v39 = vsel %vm377_vm6, %v376_v43, %v358_v30 }
 0x179   : > { %v382_v3 = vsel %vm380_vm7, %v379_v39, %v360_v7 }
 0x17b   : > { %1554 = vrot.lane.b32.xlu0 %v1535_v25, %s2190_s5  ;;  %1276 = vrot.lane.b32.xlu1 %v1263_v4, %s2193_s23  ;;  %v844_v8 = vpop.permute.xlu0 %843 }
 0x17f   : > { %1556 = vrot.lane.b32.xlu0 %v1538_v9, %s2191_s6  ;;  %1560 = vrot.lane.b32.xlu1 %v1544_v21, %s2189_s7  ;;  %s2198_s7 = smov [#allocation8]  }
 0x180   : > { %s2055_s5 = sshll.u32 %s2198_s7, 4  ;;  %s2056_s5 = int_to_ptr.vmem [resolvable:$false] %s2055_s5 }
 0x181   : > { %s2057_s6 = scalar_lea.vmem %s2056_s5, 256  ;;  %p2058_p12 = scmp.lt.s32.totalorder %s3128_s2, %s2056_s5 }
 0x182   : > { %p2059_p5 = scmp.lt.s32.totalorder %s2057_s6, %s2051_s19 }
 0x183   : > { %1558 = vrot.lane.b32.xlu0 %v1541_v46, %s2192_s29  ;;  %1564 = vrot.lane.b32.xlu1 %v1550_v10, %s2195_s11  ;;  %v815_v10 = vpack.i.b16 %v2660_v62, %v2657_v59 }
 0x184   : > { %p2060_p3 = por %p2059_p5, %p2058_p12 }
 0x185   : > { %v853_v52 = vsel %vm361_vm1, %v815_v10, %v3009_v63 }
 0x186   : > { %p2061_p6 = pnand %p2060_p3, %p2054_p9 }
 0x187   : > { %1562 = vrot.lane.b32.xlu0 %v1547_v16, %s2194_s26  ;;  %1608 = vperm.xlu1 %1963, %v1605_v19   ;;  %v514_v61 = vpop.permute.xlu1 %513  ;;  %v855_v19 = vsel %vm365_vm2, %v853_v52, %v2986_v44 }
 0x188   : > { %v857_v0 = vsel %vm368_vm3, %v855_v19, %v2998_v29 }
 0x189   : > { %v508_v11 = vpop.permute.xlu0 %507  ;;  %v859_v20 = vsel %vm371_vm4, %v857_v0, %v844_v8 }
 0x18a   : > { %v523_v57 = vsel %vm361_vm1, %v485_v6, %v508_v11  ;;  %v861_v62 = vsel %vm374_vm5, %v859_v20, %v846_v40 }
 0x18b   : > { %1566 = vrot.lane.b32.xlu0 %v1553_v47, %s2193_s23  ;;  %v510_v12 = vpop.permute.xlu1 %509 }
 0x18c   : > { %v525_v25 = vsel %vm365_vm2, %v523_v57, %v510_v12 }
 0x18d   : > { %v518_v13 = vpop.permute.xlu0 %517 }
 0x18f   : > { %v516_v4 = vpop.permute.xlu1 %515 }
 0x199   : > { %v655_v54 = vpop.permute.xlu1 %654  ;;  %v653_v28 = vpop.permute.xlu0 %652 }
 0x19a   : > { %v668_v59 = vsel %vm361_vm1, %v630_v55, %v653_v28 }
 0x19b   : > { %v670_v48 = vsel %vm365_vm2, %v668_v59, %v655_v54 }
 0x19d   : > { %v512_v34 = vpop.permute.xlu1 %511  ;;  %v657_v42 = vpop.permute.xlu0 %656 }
 0x19e   : > { %v527_v37 = vsel %vm368_vm3, %v525_v25, %v512_v34  ;;  %v672_v12 = vsel %vm368_vm3, %v670_v48, %v657_v42 }
 0x19f   : > { %v529_v21 = vsel %vm371_vm4, %v527_v37, %v514_v61 }
 0x1a0   : > { %v531_v56 = vsel %vm374_vm5, %v529_v21, %v516_v4 }
 0x1a1   : > { %v533_v6 = vsel %vm377_vm6, %v531_v56, %v518_v13  ;;  %v520_v23 = vpop.permute.xlu1 %519 }
 0x1a2   : > { %v535_v24 = vsel %vm380_vm7, %v533_v6, %v520_v23 }
 0x1a3   : > { %v1584_v9 = vrot.slane %v535_v24, 4 }
 0x1a5   : > { %v659_v2 = vpop.permute.xlu1 %658  ;;  %v1593_v46 = vsel %vm1591_vm8, %v382_v3, %v1584_v9 }
 0x1a6   : > { %1808 = vmatpush3.bf16.msra.mxu0 %v1593_v46  ;;  %v674_v8 = vsel %vm371_vm4, %v672_v12, %v659_v2 }
 0x1a7   : > { %1809 = vmatprep.subr.bf16.mxu0 %v2196_v5 }
 0x1a9   : > { %v1128_v33 = vpop.permute.xlu0 %1127  ;;  %v1130_v50 = vpop.permute.xlu1 %1129 }
 0x1aa   : > { %v1143_v25 = vsel %vm361_vm1, %v1105_v38, %v1128_v33 }
 0x1ab   : > { %v1145_v37 = vsel %vm365_vm2, %v1143_v25, %v1130_v50 }
 0x1ad   : > { %v848_v16 = vpop.permute.xlu0 %847  ;;  %v850_v7 = vpop.permute.xlu1 %849 }
 0x1ae   : > { %v863_v63 = vsel %vm377_vm6, %v861_v62, %v848_v16  ;;  %v1242_v16 = vpack.i.b16 %v2916_v22, %v2911_v53 }
 0x1af   : > { %v865_v29 = vsel %vm380_vm7, %v863_v63, %v850_v7 }
 0x1b0   : > { %v1586_v51 = vrot.slane %v865_v29, 4 }
 0x1b1   : > { %v661_v30 = vpop.permute.xlu0 %660  ;;  %v1132_v61 = vpop.permute.xlu1 %1131 }
 0x1b2   : > { %v676_v1 = vsel %vm374_vm5, %v674_v8, %v661_v30  ;;  %v1147_v28 = vsel %vm368_vm3, %v1145_v37, %v1132_v61 }
 0x1b9   : > { %v983_v47 = vpop.permute.xlu0 %982  ;;  %v985_v44 = vpop.permute.xlu1 %984 }
 0x1ba   : > { %v998_v56 = vsel %vm361_vm1, %v960_v14, %v983_v47 }
 0x1bb   : > { %v1000_v26 = vsel %vm365_vm2, %v998_v56, %v985_v44 }
 0x1bd   : > { %v663_v27 = vpop.permute.xlu0 %662  ;;  %v665_v49 = vpop.permute.xlu1 %664 }
 0x1be   : > { %v678_v55 = vsel %vm377_vm6, %v676_v1, %v663_v27 }
 0x1bf   : > { %v680_v40 = vsel %vm380_vm7, %v678_v55, %v665_v49 }
 0x1c0   : > { %v1596_v11 = vsel %vm1591_vm8, %v680_v40, %v1586_v51 }
 0x1c1   : > { %v1134_v4 = vpop.permute.xlu0 %1133  ;;  %1810 = vmatpush3.bf16.msra.mxu0 %v1596_v11  ;;  %v1136_v31 = vpop.permute.xlu1 %1135 }
 0x1c2   : > { %1811 = vmatprep.subr.bf16.mxu0 %v2196_v5  ;;  %v1149_v21 = vsel %vm371_vm4, %v1147_v28, %v1134_v4 }
 0x1c3   : > { %v1151_v23 = vsel %vm374_vm5, %v1149_v21, %v1136_v31 }
 0x1c5   : > { %v987_v54 = vpop.permute.xlu0 %986  ;;  %v989_v57 = vpop.permute.xlu1 %988 }
 0x1c6   : > { %v1002_v38 = vsel %vm368_vm3, %v1000_v26, %v987_v54 }
 0x1c7   : > { %v1004_v42 = vsel %vm371_vm4, %v1002_v38, %v989_v57 }
 0x1c9   : > { %v1410_v58 = vpop.permute.xlu0 %1409  ;;  %v1412_v13 = vpop.permute.xlu1 %1411 }
 0x1ca   : > { %v1425_v19 = vsel %vm361_vm1, %v1387_v18, %v1410_v58 }
 0x1cb   : > { %v1427_v20 = vsel %vm365_vm2, %v1425_v19, %v1412_v13 }
 0x1cd   : > { %v1138_v34 = vpop.permute.xlu0 %1137  ;;  %v1140_v43 = vpop.permute.xlu1 %1139 }
 0x1ce   : > { %v1153_v60 = vsel %vm377_vm6, %v1151_v23, %v1138_v34  ;;  %v1604_v34 = vld [vmem:[#allocation5] sm:$0xf] }
 0x1cf   : > { %v1155_v3 = vsel %vm380_vm7, %v1153_v60, %v1140_v43 }
 0x1d0   : > { %v1588_v2 = vrot.slane %v1155_v3, 4 }
 0x1d1   : > { %v991_v39 = vpop.permute.xlu0 %990  ;;  %v1414_v6 = vpop.permute.xlu1 %1413 }
 0x1d2   : > { %v1006_v32 = vsel %vm374_vm5, %v1004_v42, %v991_v39  ;;  %v1429_v30 = vsel %vm368_vm3, %v1427_v20, %v1414_v6 }
 0x1d5   : > { %v1265_v24 = vpop.permute.xlu0 %1264  ;;  %v1267_v9 = vpop.permute.xlu1 %1266 }
 0x1d6   : > { %v1280_v61 = vsel %vm361_vm1, %v1242_v16, %v1265_v24 }
 0x1d7   : > { %v1282_v47 = vsel %vm365_vm2, %v1280_v61, %v1267_v9 }
 0x1d9   : > { %v993_v17 = vpop.permute.xlu0 %992  ;;  %v995_v14 = vpop.permute.xlu1 %994 }
 0x1da   : > { %v1008_v46 = vsel %vm377_vm6, %v1006_v32, %v993_v17 }
 0x1db   : > { %v1010_v10 = vsel %vm380_vm7, %v1008_v46, %v995_v14 }
 0x1dc   : > { %v1599_v33 = vsel %vm1591_vm8, %v1010_v10, %v1588_v2 }
 0x1dd   : > { %v1416_v50 = vpop.permute.xlu0 %1415  ;;  %1812 = vmatpush3.bf16.msra.mxu0 %v1599_v33  ;;  %v1418_v52 = vpop.permute.xlu1 %1417 }
 0x1de   : > { %1813 = vmatprep.subr.bf16.mxu0 %v2196_v5  ;;  %v1431_v59 = vsel %vm371_vm4, %v1429_v30, %v1416_v50 }
 0x1df   : > { %v1433_v41 = vsel %vm374_vm5, %v1431_v59, %v1418_v52 }
 0x1e1   : > { %v1269_v7 = vpop.permute.xlu0 %1268  ;;  %v1420_v0 = vpop.permute.xlu1 %1419 }
 0x1e2   : > { %v1284_v45 = vsel %vm368_vm3, %v1282_v47, %v1269_v7  ;;  %v1435_v18 = vsel %vm377_vm6, %v1433_v41, %v1420_v0 }
 0x1e5   : > { %v1271_v62 = vpop.permute.xlu0 %1270  ;;  %v1422_v63 = vpop.permute.xlu1 %1421 }
 0x1e6   : > { %v1286_v53 = vsel %vm371_vm4, %v1284_v45, %v1271_v62  ;;  %v1437_v48 = vsel %vm380_vm7, %v1435_v18, %v1422_v63 }
 0x1e7   : > { %v1590_v29 = vrot.slane %v1437_v48, 4 }
 0x1e9   : > { %v1273_v22 = vpop.permute.xlu0 %1272  ;;  %v1275_v44 = vpop.permute.xlu1 %1274 }
 0x1ea   : > { %v1288_v12 = vsel %vm374_vm5, %v1286_v53, %v1273_v22 }
 0x1eb   : > { %v1290_v8 = vsel %vm377_vm6, %v1288_v12, %v1275_v44 }
 0x1ed   : > { %v1555_v1 = vpop.permute.xlu0 %1554  ;;  %v1277_v27 = vpop.permute.xlu1 %1276 }
 0x1ee   : > { %v1292_v49 = vsel %vm380_vm7, %v1290_v8, %v1277_v27  ;;  %v1570_v40 = vsel %vm361_vm1, %v1532_v15, %v1555_v1 }
 0x1ef   : > { %v1602_v51 = vsel %vm1591_vm8, %v1292_v49, %v1590_v29 }
 0x1f0   : > { %1814 = vmatpush3.bf16.msra.mxu0 %v1602_v51 }
 0x1f1   : > { %v1557_v55 = vpop.permute.xlu0 %1556  ;;  %1815 = vmatprep.subr.bf16.mxu0 %v2196_v5  ;;  %v1561_v31 = vpop.permute.xlu1 %1560 }
 0x1f2   : > { %v1572_v11 = vsel %vm365_vm2, %v1570_v40, %v1557_v55 }
 0x1f5   : > { %v1559_v4 = vpop.permute.xlu0 %1558  ;;  %v1565_v5 = vpop.permute.xlu1 %1564 }
 0x1f6   : > { %v1574_v54 = vsel %vm368_vm3, %v1572_v11, %v1559_v4 }
 0x1f7   : > { %v1576_v58 = vsel %vm371_vm4, %v1574_v54, %v1561_v31 }
 0x1f9   : > { %v1563_v57 = vpop.permute.xlu0 %1562 }
 0x1fa   : > { %v1578_v13 = vsel %vm374_vm5, %v1576_v58, %v1563_v57 }
 0x1fb   : > { %v1580_v36 = vsel %vm377_vm6, %v1578_v13, %v1565_v5 }
 0x1fd   : > { %v1567_v25 = vpop.permute.xlu0 %1566 }
 0x1fe   : > { %v1582_v35 = vsel %vm380_vm7, %v1580_v36, %v1567_v25 }
 0x1ff   : > { %v1615_v15 = vsel %vm1591_vm8, %v1582_v35, 0 }
 0x200   : > { %1816 = vmatpush3.bf16.msra.mxu0 %v1615_v15 }
 0x203   : > { %1818 = vmatmul.mubr.msk.bf16.vlgmr.msra.gmra.mrb[0].mxu0 %vm1611_vm9, %v1604_v34 }
 0x206   : > { %v1609_v43 = vpop.permute.xlu1 %1608 }
 0x2d6   : > { %v1651_v37 = vpop.f32.mrb[0].mxu0 }
 0x2d7   : > { %v1652_v28 = vadd.f32 %v1651_v37, %v1609_v43  ;;  %v1819_v21 = vpop.f32.mrb[1].mxu0 }
 0x2d8   : > { %v1654_v56 = vpop.f32.mrb[2].mxu0 }
 0x2d9   : > { %v1657_v39 = vmax.f32 %v1652_v28, 0.0  ;;  %v1820_v6 = vpop.f32.mrb[3].mxu0 }
 0x2db   : > { %1658 = vst [vmem:[%s227_s10] sm:$0xff] %v1657_v39 }
 0x2dc   : > { %2064 = shalt.err (!%p2061_p6)
}
 0x2dd   : > { %s2065_s29 = scalar_lea.hbm %s3126_s27, 128  ;;  %s2069_s11 = scalar_lea.hbm %s3191_s3, 512 }
 0x2de   : > { %p2066_p7 = scmp.ne.s32.totalorder %s3126_s27, %s2065_s29  ;;  %p2070_p0 = scmp.lt.u32.totalorder %s3126_s27, %s3191_s3 }
 0x2df   : > { %p2071_p8 = scmp.lt.u32.totalorder %s2069_s11, %s2065_s29  ;;  %p2073_p10 = scmp.lt.u32.totalorder %s2065_s29, %s3126_s27 }
 0x2e0   : > { %p2067_p11 = pnand %p2066_p7, %p3222_p1 }
 0x2e1   : > { %p2072_p4 = por %p2071_p8, %p2070_p0 }
 0x2e2   : > { %p2068_p13 = pneg %p2067_p11 }
 0x2e3   : > { %p2074_p2 = por %p2073_p10, %p2072_p4 }
 0x2e5   : > { %p2075_p9 = pnand %p2074_p2, %p2068_p13 }
 0x2e7   : > { %2078 = shalt.err (!%p2075_p9)
}
 0x2e8   : > { %1834 = dma.vmem_to_hbm [thread:$0]  (%p3222_p1), %s3128_s2, 128, %s3126_s27, %s1660_s18  }
 0x2e9 PF: > { %s3223_s4 = sld [smem:[#allocation12_spill]]  ;;  %s3224_s12 = sld [smem:[#allocation14_spill]] }
 0x2ea   : > { %p1856_p12 = scmp.ge.s32.totalorder %s2177_s22, 2 }
 0x2ef   : > { %s1687_s8 = sand.u32 1, %s3223_s4   ;;  %p3225_p5 = scmp.ne.s32.totalorder %s3224_s12, 0 }
 0x2f0   : > { %s1688_s10 = scalar_lea.sflag [#allocation4], %s1687_s8 }
 0x2f1   : > { %p1848_p3 = pnand %p1856_p12, %p3225_p5 }
 0x2f3   : > { %2132 = dma.done.wait (!%p1848_p3), %s1688_s10, 128  }
 0x2f4   : > { %2134 = vsyncadd (!%p1848_p3), %s1688_s10, 4294967168  ;;  %s20_s22 = sadd.s32 1, %s2177_s22   ;;  %s3226_s28 = smov %s2390_s15 }
 0x2f5   : > { %p17_p6 = scmp.ge.s32.totalorder %s20_s22, 6   ;;  %s3227_s18 = sld [smem:[#allocation13_spill]] }
 0x2f6   : > { %s3228_s2 = sld [smem:[#allocation15_spill]]  ;;  %s3229_s12 = smov %s2141_s13 }
 0x2f7   : > { %s3230_s13 = smov %s2145_s14  ;;  %s3231_s14 = smov %s2393_s20 }
 0x2f8   : > { %s3232_s15 = smov %s2153_s16  ;;  %s3233_s16 = smov %s2157_s17 }
 0x2f9   : > { %s3234_s17 = smov %s3226_s28  ;;  %s3235_s19 = smov %s2173_s21 }
 0x2fa   : > { %s3237_s21 = smov %s3243_s24  ;;  %19 = sbr.rel (!%p17_p6) target bundleno = 13 (0xd), region = 86 }
 0x2fc   : > { %s3236_s20 = smov %s3228_s2 }
 0x301   :  { %1693 = vsyncpa [#allocation3], 1 }
 0x302   :  { %1695 = vsyncpa [#allocation3 + $0x1], 1 }
 0x303   :  { %1696 = vsyncpa [#allocation6], 1 }
 0x304   :  { %1697 = vsyncpa [#allocation4], 1 }
 0x305   :  { %1699 = vsyncpa [#allocation4 + $0x1], 1 }

</bundles_post_ra>
